<compile_context>
chip_gen: v5e
topology: v5e:2x2
jax: 0.10.0
libtpu: 0.0.40
codegen_flags: <defaults>
</compile_context>

<pallas_src>
import functools

import jax
import jax.numpy as jnp
from jax import lax
from jax.experimental import pallas as pl
from jax.experimental.pallas import tpu as pltpu


# ----------------------------------------------------------------------------
# Per-generation knobs (decided once at import from the local device kind).
# ----------------------------------------------------------------------------
def _device_kind():
    try:
        return jax.devices()[0].device_kind.lower()
    except Exception:
        return ""


_KIND = _device_kind()
_IS_V7 = ("v7" in _KIND) or ("7x" in _KIND)
# 256-wide MXU (v6e / v7x): fuse fwd+bwd recurrent matmuls block-diagonally.
_FUSE_REC = not any(t in _KIND for t in ("v2", "v3", "v4", "v5"))
if _IS_V7:
    _VMEM_CAP = 48 * (1 << 20)        # v7x: 64 MiB physical VMEM
elif any(t in _KIND for t in ("v5", "v6")):
    _VMEM_CAP = 100 * (1 << 20)       # v5e / v6e: 128 MiB physical VMEM
else:
    _VMEM_CAP = 64 * (1 << 20)


# ----------------------------------------------------------------------------
# Fused kernel (all layers + head), built per static shape configuration.
# ----------------------------------------------------------------------------
def _make_kernel(T, BT, H, n_layers, unroll):
    G = 4 * H

    def lstm_gates(g, c):
        """g: (BT, 4H) pre-activation gates, column order [i, f, o, g]."""
        s = jax.nn.sigmoid(g[:, 0:3 * H])          # i, f, o  (contiguous 3H)
        gg = jnp.tanh(g[:, 3 * H:4 * H])           # g gate only
        c_new = s[:, H:2 * H] * c + s[:, 0:H] * gg
        h = s[:, 2 * H:3 * H] * jnp.tanh(c_new)
        return h, c_new

    def kernel(*refs):
        it = iter(refs)
        x_ref = next(it)
        inter = [(next(it), next(it), next(it)) for _ in range(n_layers - 1)]
        wih_lf, wih_lb, whh_lf, b_lf, b_lb = (next(it) for _ in range(5))
        gamma, beta, w1, b1, w2, b2 = (next(it) for _ in range(6))
        o_ref = next(it)
        gx_ref, hf_ref, hb_ref = next(it), next(it), next(it)

        f32 = jnp.float32
        zeros = jnp.zeros((BT, H), f32)

        def prev_inputs():
            return (hf_ref[...].reshape(T * BT, H),
                    hb_ref[...].reshape(T * BT, H))

        # ---- full bidirectional layers 0 .. L-2 ----------------------------
        for li, (wih_ref, whh_ref, b_ref) in enumerate(inter):
            # Hoisted input projection (+ folded biases): one big MXU matmul.
            if li == 0:
                din = x_ref.shape[-1]
                gx = jnp.dot(x_ref[...].reshape(T * BT, din), wih_ref[...],
                             preferred_element_type=f32)
            else:
                pf, pb = prev_inputs()
                gx = (jnp.dot(pf, wih_ref[0:H, :], preferred_element_type=f32)
                      + jnp.dot(pb, wih_ref[H:2 * H, :],
                                preferred_element_type=f32))
            gx_ref[...] = (gx + b_ref[...]).reshape(T, BT, 2 * G)

            fused = whh_ref.shape[1] == 2 * G
            if fused:
                whh_blk = whh_ref[...]                 # (2H, 8H) block-diagonal
            else:
                whh_f = whh_ref[0:H, :]                # (H, 4H)
                whh_b = whh_ref[H:2 * H, :]

            def step(s, carry):
                hf, cf, hb, cb = carry
                sr = T - 1 - s
                if fused:
                    gmm = jnp.dot(jnp.concatenate([hf, hb], axis=-1), whh_blk,
                                  preferred_element_type=f32)
                    gmm_f, gmm_b = gmm[:, 0:G], gmm[:, G:2 * G]
                else:
                    gmm_f = jnp.dot(hf, whh_f, preferred_element_type=f32)
                    gmm_b = jnp.dot(hb, whh_b, preferred_element_type=f32)
                hf, cf = lstm_gates(gx_ref[s, :, 0:G] + gmm_f, cf)
                hb, cb = lstm_gates(gx_ref[sr, :, G:2 * G] + gmm_b, cb)
                hf_ref[s] = hf                         # full-row VMEM stores
                hb_ref[sr] = hb                        # (time-ordered)
                return (hf, cf, hb, cb)

            lax.fori_loop(0, T, step, (zeros, zeros, zeros, zeros),
                          unroll=unroll)

        # ---- last layer (fwd recurrence + 1-step bwd) + LayerNorm + MLP ----
        if n_layers == 1:
            din = x_ref.shape[-1]
            gxf = jnp.dot(x_ref[...].reshape(T * BT, din), wih_lf[...],
                          preferred_element_type=f32)
            gb = jnp.dot(x_ref[T - 1], wih_lb[...], preferred_element_type=f32)
        else:
            pf, pb = prev_inputs()
            gxf = (jnp.dot(pf, wih_lf[0:H, :], preferred_element_type=f32)
                   + jnp.dot(pb, wih_lf[H:2 * H, :],
                             preferred_element_type=f32))
            gb = (jnp.dot(hf_ref[T - 1], wih_lb[0:H, :],
                          preferred_element_type=f32)
                  + jnp.dot(hb_ref[T - 1], wih_lb[H:2 * H, :],
                            preferred_element_type=f32))
        gx_ref[:, :, 0:G] = (gxf + b_lf[...]).reshape(T, BT, G)

        # Backward direction needed only at t = T-1: first reverse step from
        # zero state -> one gate evaluation, no W_hh_bwd required.
        hb_last, _ = lstm_gates(gb + b_lb[...], zeros)

        whh_f_last = whh_lf[...]

        def fstep(s, carry):
            hf, cf = carry
            g = gx_ref[s, :, 0:G] + jnp.dot(hf, whh_f_last,
                                            preferred_element_type=f32)
            return lstm_gates(g, cf)

        hf_last, _ = lax.fori_loop(0, T, fstep, (zeros, zeros), unroll=unroll)

        last = jnp.concatenate([hf_last, hb_last], axis=-1)     # (BT, 2H)

        # LayerNorm(2H) (eps=1e-5, affine) -> Linear -> ReLU -> Linear.
        mean = jnp.mean(last, axis=-1, keepdims=True)
        var = jnp.mean(jnp.square(last - mean), axis=-1, keepdims=True)
        normed = (last - mean) * lax.rsqrt(var + 1e-5)
        normed = normed * gamma[...] + beta[...]
        h1 = jnp.maximum(
            jnp.dot(normed, w1[...], preferred_element_type=f32) + b1[...], 0.0)
        o_ref[...] = (jnp.dot(h1, w2[...], preferred_element_type=f32)
                      + b2[...])

    return kernel


# ----------------------------------------------------------------------------
# Tiling / VMEM budgeting.
# ----------------------------------------------------------------------------
def _weight_bytes(params):
    return 4 * sum(int(v.size) for v in jax.tree_util.tree_leaves(params))


def _tile_vmem_bytes(bt, T, din0, H, out_size, w_bytes):
    io = 4 * (2 * T * bt * din0 + 2 * bt * out_size)     # double-buffered I/O
    scratch = 4 * T * bt * (8 * H + 2 * H)               # gx + hf + hb
    return io + scratch + 2 * w_bytes                    # weights (conservative)


def _pick_tiling(batch, T, din0, H, out_size, w_bytes):
    bp8 = max(8, ((batch + 7) // 8) * 8)
    bt = 8
    for cand in (256, 128, 64, 32, 16, 8):
        if cand <= bp8 and _tile_vmem_bytes(cand, T, din0, H, out_size,
                                            w_bytes) <= _VMEM_CAP:
            bt = cand
            break
    if _IS_V7 and bp8 >= 16:
        # keep >= 2 batch tiles so the "parallel" axis can use both TensorCores
        while bt > 8 and -(-bp8 // bt) < 2:
            bt //= 2
    bp = -(-bp8 // bt) * bt
    return bt, bp


# ----------------------------------------------------------------------------
# Forward pass (matches RULPredictorBiLSTM.forward in eval mode).
# ----------------------------------------------------------------------------
@functools.partial(jax.jit, static_argnums=(2,))
def _forward_impl(x, params, use_buffered):
    if x.ndim == 2:
        x = x[:, None, :]                                 # unsqueeze(1)
    x = x.astype(jnp.float32)
    batch, T, din0 = x.shape
    H = params["w1_t"].shape[1]
    out_size = params["w2_t"].shape[1]
    n_layers = len(params["lstm"])

    bt, bp = _pick_tiling(batch, T, din0, H, out_size, _weight_bytes(params))
    if bp != batch:
        x = jnp.pad(x, ((0, bp - batch), (0, 0), (0, 0)))
    seq = jnp.transpose(x, (1, 0, 2))                     # (T, bp, Din) time-major

    unroll = True if T <= 16 else 4
    kernel = _make_kernel(T, bt, H, n_layers, unroll)

    def wspec(arr):
        # Constant weights: index_map invariant across the batch grid.
        if use_buffered:
            return pl.BlockSpec(arr.shape, lambda b: (0, 0),
                                pipeline_mode=pl.Buffered(1))
        return pl.BlockSpec(arr.shape, lambda b: (0, 0))

    inputs = [seq]
    in_specs = [pl.BlockSpec((T, bt, din0), lambda b: (0, b, 0))]
    for lp in params["lstm"][:-1]:
        for name in ("wih", "whh", "bias"):
            inputs.append(lp[name])
            in_specs.append(wspec(lp[name]))
    lp = params["lstm"][-1]
    for name in ("wih_f", "wih_b", "whh_f", "b_f", "b_b"):
        inputs.append(lp[name])
        in_specs.append(wspec(lp[name]))
    for name in ("ln_gamma", "ln_beta", "w1_t", "b1", "w2_t", "b2"):
        inputs.append(params[name])
        in_specs.append(wspec(params[name]))

    out = pl.pallas_call(
        kernel,
        out_shape=jax.ShapeDtypeStruct((bp, out_size), jnp.float32),
        grid=(bp // bt,),
        in_specs=in_specs,
        out_specs=pl.BlockSpec((bt, out_size), lambda b: (b, 0)),
        scratch_shapes=[
            pltpu.VMEM((T, bt, 8 * H), jnp.float32),   # gx: [fwd | bwd] gates
            pltpu.VMEM((T, bt, H), jnp.float32),       # h fwd (time-ordered)
            pltpu.VMEM((T, bt, H), jnp.float32),       # h bwd (time-ordered)
        ],
        compiler_params=pltpu.CompilerParams(
            dimension_semantics=("parallel",),
            vmem_limit_bytes=_VMEM_CAP),
    )(*inputs)
    return out[:batch]


_BUFFERED_OK = hasattr(pl, "Buffered")


def forward(x, params):
    global _BUFFERED_OK
    if _BUFFERED_OK:
        try:
            return _forward_impl(x, params, True)
        except Exception:
            _BUFFERED_OK = False      # fall back if Buffered(1) is unsupported
    return _forward_impl(x, params, False)


# ----------------------------------------------------------------------------
# Parameters (deterministic, PyTorch-like uniform init), pre-packed.
# ----------------------------------------------------------------------------
def init_params(key, input_size, hidden_size, num_layers, output_size,
                fuse_rec=_FUSE_REC):
    """Gate columns reordered from PyTorch's [i,f,g,o] to [i,f,o,g]."""
    H = hidden_size
    G = 4 * H
    perm = jnp.concatenate([jnp.arange(0, 2 * H), jnp.arange(3 * H, 4 * H),
                            jnp.arange(2 * H, 3 * H)])

    def unif(k, shape, bound):
        return jax.random.uniform(k, shape, jnp.float32, -bound, bound)

    bound = 1.0 / (H ** 0.5)
    layers = []
    for layer in range(num_layers):
        d_in = input_size if layer == 0 else 2 * H
        key, *ks = jax.random.split(key, 9)
        w_ih_f = unif(ks[0], (4 * H, d_in), bound)
        w_hh_f = unif(ks[1], (4 * H, H), bound)
        b_ih_f = unif(ks[2], (4 * H,), bound)
        b_hh_f = unif(ks[3], (4 * H,), bound)
        w_ih_b = unif(ks[4], (4 * H, d_in), bound)
        w_hh_b = unif(ks[5], (4 * H, H), bound)
        b_ih_b = unif(ks[6], (4 * H,), bound)
        b_hh_b = unif(ks[7], (4 * H,), bound)

        wif, wib = w_ih_f[perm].T, w_ih_b[perm].T            # (d_in, 4H)
        whf, whb = w_hh_f[perm].T, w_hh_b[perm].T            # (H, 4H)
        bf = (b_ih_f + b_hh_f)[perm]
        bb = (b_ih_b + b_hh_b)[perm]

        if layer == num_layers - 1:
            layers.append({
                "wih_f": wif, "wih_b": wib, "whh_f": whf,
                "b_f": bf.reshape(1, G), "b_b": bb.reshape(1, G),
            })
        else:
            if fuse_rec:   # (2H, 8H) block-diagonal -> single fused rec matmul
                whh = jnp.zeros((2 * H, 2 * G), jnp.float32)
                whh = whh.at[0:H, 0:G].set(whf).at[H:2 * H, G:2 * G].set(whb)
            else:          # (2H, 4H) stacked -> two separate rec matmuls
                whh = jnp.concatenate([whf, whb], axis=0)
            layers.append({
                "wih": jnp.concatenate([wif, wib], axis=1),  # (d_in, 8H)
                "whh": whh,
                "bias": jnp.concatenate([bf, bb]).reshape(1, 2 * G),
            })

    params = {"lstm": layers,
              "ln_gamma": jnp.ones((1, 2 * H), jnp.float32),
              "ln_beta": jnp.zeros((1, 2 * H), jnp.float32)}
    k1 = 1.0 / ((2 * H) ** 0.5)
    k2 = 1.0 / (H ** 0.5)
    key, a, b, c, d = jax.random.split(key, 5)
    params["w1_t"] = unif(a, (H, 2 * H), k1).T               # (2H, H)
    params["b1"] = unif(b, (H,), k1).reshape(1, H)
    params["w2_t"] = unif(c, (output_size, H), k2).T         # (H, out)
    params["b2"] = unif(d, (output_size,), k2).reshape(1, output_size)
    return params


# ----------------------------------------------------------------------------
# Pure-JAX reference (same packed params, eval-mode semantics) for validation.
# ----------------------------------------------------------------------------
@jax.jit
def reference_forward(x, params):
    if x.ndim == 2:
        x = x[:, None, :]
    x = x.astype(jnp.float32)
    H = params["w1_t"].shape[1]
    G = 4 * H
    hi = lax.Precision.HIGHEST

    def cell(g, c):
        i = jax.nn.sigmoid(g[:, 0:H])
        f = jax.nn.sigmoid(g[:, H:2 * H])
        o = jax.nn.sigmoid(g[:, 2 * H:3 * H])
        gg = jnp.tanh(g[:, 3 * H:4 * H])
        c = f * c + i * gg
        return o * jnp.tanh(c), c

    def run_dir(gx_t, whh, reverse):
        nb = gx_t.shape[1]

        def step(carry, g):
            h, c = carry
            h, c = cell(g + jnp.dot(h, whh, precision=hi), c)
            return (h, c), h

        init = (jnp.zeros((nb, H), jnp.float32),
                jnp.zeros((nb, H), jnp.float32))
        _, hs = lax.scan(step, init, gx_t, reverse=reverse)
        return hs                                      # time-ordered (T, B, H)

    seq = jnp.swapaxes(x, 0, 1)                        # (T, B, D)
    for lp in params["lstm"][:-1]:
        whh = lp["whh"]
        if whh.shape[1] == 2 * G:
            whh_f, whh_b = whh[0:H, 0:G], whh[H:, G:]
        else:
            whh_f, whh_b = whh[0:H], whh[H:]
        gx = jnp.dot(seq, lp["wih"], precision=hi) + lp["bias"]
        hs_f = run_dir(gx[..., 0:G], whh_f, reverse=False)
        hs_b = run_dir(gx[..., G:2 * G], whh_b, reverse=True)
        seq = jnp.concatenate([hs_f, hs_b], axis=-1)

    lp = params["lstm"][-1]
    gx_f = jnp.dot(seq, lp["wih_f"], precision=hi) + lp["b_f"]
    hf_last = run_dir(gx_f, lp["whh_f"], reverse=False)[-1]
    gb = jnp.dot(seq[-1], lp["wih_b"], precision=hi) + lp["b_b"]
    hb_last, _ = cell(gb, jnp.zeros_like(hf_last))
    last = jnp.concatenate([hf_last, hb_last], axis=-1)

    mean = jnp.mean(last, axis=-1, keepdims=True)
    var = jnp.mean(jnp.square(last - mean), axis=-1, keepdims=True)
    normed = (last - mean) * lax.rsqrt(var + 1e-5)
    normed = normed * params["ln_gamma"] + params["ln_beta"]
    h1 = jnp.maximum(jnp.dot(normed, params["w1_t"], precision=hi)
                     + params["b1"], 0.0)
    return jnp.dot(h1, params["w2_t"], precision=hi) + params["b2"]


# ----------------------------------------------------------------------------
if __name__ == "__main__":
    BATCH = 2
    SEQ = 8
    INPUT_SIZE = 16
    HIDDEN = 32
    NUM_LAYERS = 2
    OUTPUT_SIZE = 1

    key = jax.random.PRNGKey(0)
    key, pkey, xkey = jax.random.split(key, 3)

    params = init_params(pkey, INPUT_SIZE, HIDDEN, NUM_LAYERS, OUTPUT_SIZE)
    x = jax.random.normal(xkey, (BATCH, SEQ, INPUT_SIZE), jnp.float32)

    out = jax.block_until_ready(forward(x, params))
    assert out.shape == (BATCH, OUTPUT_SIZE), out.shape
    assert bool(jnp.all(jnp.isfinite(out)))

    ref = jax.block_until_ready(reference_forward(x, params))
    err = float(jnp.max(jnp.abs(out - ref)))
    assert err < 1e-3, f"kernel vs reference mismatch: max abs err = {err}"

    print("KERNEL_OK")
</pallas_src>

<mosaic_0001>
module attributes {stable_mosaic.version = 11 : i64} {
  func.func @kernel(%arg0: i32, %arg1: memref<8x8x16xf32, #tpu.memory_space<vmem>>, %arg2: memref<16x256xf32, #tpu.memory_space<vmem>>, %arg3: memref<64x256xf32, #tpu.memory_space<vmem>>, %arg4: memref<1x256xf32, #tpu.memory_space<vmem>>, %arg5: memref<64x128xf32, #tpu.memory_space<vmem>>, %arg6: memref<64x128xf32, #tpu.memory_space<vmem>>, %arg7: memref<32x128xf32, #tpu.memory_space<vmem>>, %arg8: memref<1x128xf32, #tpu.memory_space<vmem>>, %arg9: memref<1x128xf32, #tpu.memory_space<vmem>>, %arg10: memref<1x64xf32, #tpu.memory_space<vmem>>, %arg11: memref<1x64xf32, #tpu.memory_space<vmem>>, %arg12: memref<64x32xf32, #tpu.memory_space<vmem>>, %arg13: memref<1x32xf32, #tpu.memory_space<vmem>>, %arg14: memref<32x1xf32, #tpu.memory_space<vmem>>, %arg15: memref<1x1xf32, #tpu.memory_space<vmem>>, %arg16: memref<8x1xf32, #tpu.memory_space<vmem>>, %arg17: memref<8x8x256xf32, #tpu.memory_space<vmem>>, %arg18: memref<8x8x32xf32, #tpu.memory_space<vmem>>, %arg19: memref<8x8x32xf32, #tpu.memory_space<vmem>>) attributes {dimension_semantics = [#tpu.dimension_semantics<parallel>], iteration_bounds = array<i64: 1>, scalar_prefetch = 0 : i64, scratch_operands = 3 : i64, tpu.core_type = #tpu.core_type<tc>, window_params = [{transform_indices = @transform_0, window_bounds = array<i64: 8, 8, 16>}, {pipeline_mode = #tpu.pipeline_mode<synchronous>, transform_indices = @transform_1, window_bounds = array<i64: 16, 256>}, {pipeline_mode = #tpu.pipeline_mode<synchronous>, transform_indices = @transform_2, window_bounds = array<i64: 64, 256>}, {pipeline_mode = #tpu.pipeline_mode<synchronous>, transform_indices = @transform_3, window_bounds = array<i64: 1, 256>}, {pipeline_mode = #tpu.pipeline_mode<synchronous>, transform_indices = @transform_4, window_bounds = array<i64: 64, 128>}, {pipeline_mode = #tpu.pipeline_mode<synchronous>, transform_indices = @transform_5, window_bounds = array<i64: 64, 128>}, {pipeline_mode = #tpu.pipeline_mode<synchronous>, transform_indices = @transform_6, window_bounds = array<i64: 32, 128>}, {pipeline_mode = #tpu.pipeline_mode<synchronous>, transform_indices = @transform_7, window_bounds = array<i64: 1, 128>}, {pipeline_mode = #tpu.pipeline_mode<synchronous>, transform_indices = @transform_8, window_bounds = array<i64: 1, 128>}, {pipeline_mode = #tpu.pipeline_mode<synchronous>, transform_indices = @transform_9, window_bounds = array<i64: 1, 64>}, {pipeline_mode = #tpu.pipeline_mode<synchronous>, transform_indices = @transform_10, window_bounds = array<i64: 1, 64>}, {pipeline_mode = #tpu.pipeline_mode<synchronous>, transform_indices = @transform_11, window_bounds = array<i64: 64, 32>}, {pipeline_mode = #tpu.pipeline_mode<synchronous>, transform_indices = @transform_12, window_bounds = array<i64: 1, 32>}, {pipeline_mode = #tpu.pipeline_mode<synchronous>, transform_indices = @transform_13, window_bounds = array<i64: 32, 1>}, {pipeline_mode = #tpu.pipeline_mode<synchronous>, transform_indices = @transform_14, window_bounds = array<i64: 1, 1>}, {transform_indices = @transform_15, window_bounds = array<i64: 8, 1>}]} {
    %cst = arith.constant 0.000000e+00 : f32
    %0 = vector.broadcast %cst : f32 to vector<8x32xf32>
    %c0 = arith.constant 0 : index
    %c0_0 = arith.constant 0 : index
    %c0_1 = arith.constant 0 : index
    %1 = vector.load %arg1[%c0, %c0_0, %c0_1] : memref<8x8x16xf32, #tpu.memory_space<vmem>>, vector<8x8x16xf32>
    %2 = vector.shape_cast %1 : vector<8x8x16xf32> to vector<64x16xf32>
    %c0_2 = arith.constant 0 : index
    %c0_3 = arith.constant 0 : index
    %3 = vector.load %arg2[%c0_2, %c0_3] : memref<16x256xf32, #tpu.memory_space<vmem>>, vector<16x256xf32>
    %cst_4 = arith.constant dense<0.000000e+00> : vector<64x256xf32>
    %4 = tpu.matmul %2, %3, %cst_4 {dimension_numbers = #tpu.dot_dimension_numbers<[1], [0], [0], [1], [0, 0, 1, 1], [], []>} : vector<64x16xf32>, vector<16x256xf32>, vector<64x256xf32> -> vector<64x256xf32>
    %c0_5 = arith.constant 0 : index
    %c0_6 = arith.constant 0 : index
    %5 = vector.load %arg4[%c0_5, %c0_6] : memref<1x256xf32, #tpu.memory_space<vmem>>, vector<1x256xf32>
    %6 = vector.broadcast %5 : vector<1x256xf32> to vector<64x256xf32>
    %7 = arith.addf %4, %6 : vector<64x256xf32>
    %8 = vector.shape_cast %7 : vector<64x256xf32> to vector<8x8x256xf32>
    %c0_7 = arith.constant 0 : index
    %c0_8 = arith.constant 0 : index
    %c0_9 = arith.constant 0 : index
    %9 = vector.load %arg17[%c0_7, %c0_8, %c0_9] : memref<8x8x256xf32, #tpu.memory_space<vmem>>, vector<8x8x256xf32>
    tpu.vector_store %arg17[%c0_7, %c0_8, %c0_9], %8 {strides = array<i32>} : memref<8x8x256xf32, #tpu.memory_space<vmem>>, vector<8x8x256xf32>,
    %c0_10 = arith.constant 0 : index
    %c0_11 = arith.constant 0 : index
    %10 = vector.load %arg3[%c0_10, %c0_11] : memref<64x256xf32, #tpu.memory_space<vmem>>, vector<64x256xf32>
    %c0_i32 = arith.constant 0 : i32
    %c7_i32 = arith.constant 7 : i32
    %11 = arith.subi %c7_i32, %c0_i32 : i32
    %12 = tpu.concatenate %0, %0 in 1 : vector<8x32xf32>, vector<8x32xf32> -> vector<8x64xf32>
    %cst_12 = arith.constant dense<0.000000e+00> : vector<8x256xf32>
    %13 = tpu.matmul %12, %10, %cst_12 {dimension_numbers = #tpu.dot_dimension_numbers<[1], [0], [0], [1], [0, 0, 1, 1], [], []>} : vector<8x64xf32>, vector<64x256xf32>, vector<8x256xf32> -> vector<8x256xf32>
    %14 = vector.extract_strided_slice %13 {offsets = [0, 0], sizes = [8, 128], strides = [1, 1]} : vector<8x256xf32> to vector<8x128xf32>
    %15 = vector.extract_strided_slice %13 {offsets = [0, 128], sizes = [8, 128], strides = [1, 1]} : vector<8x256xf32> to vector<8x128xf32>
    %16 = arith.index_cast %c0_i32 : i32 to index
    %c0_13 = arith.constant 0 : index
    %c0_14 = arith.constant 0 : index
    %17 = vector.load %arg17[%16, %c0_13, %c0_14] : memref<8x8x256xf32, #tpu.memory_space<vmem>>, vector<1x8x128xf32>
    %18 = vector.shape_cast %17 : vector<1x8x128xf32> to vector<8x128xf32>
    %19 = arith.addf %18, %14 : vector<8x128xf32>
    %20 = vector.extract_strided_slice %19 {offsets = [0, 0], sizes = [8, 96], strides = [1, 1]} : vector<8x128xf32> to vector<8x96xf32>
    %21 = arith.negf %20 : vector<8x96xf32>
    %22 = math.exp %21 : vector<8x96xf32>
    %cst_15 = arith.constant 1.000000e+00 : f32
    %23 = vector.broadcast %cst_15 : f32 to vector<8x96xf32>
    %24 = arith.addf %23, %22 : vector<8x96xf32>
    %25 = arith.divf %23, %24 : vector<8x96xf32>
    %26 = vector.extract_strided_slice %19 {offsets = [0, 96], sizes = [8, 32], strides = [1, 1]} : vector<8x128xf32> to vector<8x32xf32>
    %27 = math.tanh %26 : vector<8x32xf32>
    %28 = vector.extract_strided_slice %25 {offsets = [0, 32], sizes = [8, 32], strides = [1, 1]} : vector<8x96xf32> to vector<8x32xf32>
    %29 = arith.mulf %28, %0 : vector<8x32xf32>
    %30 = vector.extract_strided_slice %25 {offsets = [0, 0], sizes = [8, 32], strides = [1, 1]} : vector<8x96xf32> to vector<8x32xf32>
    %31 = arith.mulf %30, %27 : vector<8x32xf32>
    %32 = arith.addf %29, %31 : vector<8x32xf32>
    %33 = vector.extract_strided_slice %25 {offsets = [0, 64], sizes = [8, 32], strides = [1, 1]} : vector<8x96xf32> to vector<8x32xf32>
    %34 = math.tanh %32 : vector<8x32xf32>
    %35 = arith.mulf %33, %34 : vector<8x32xf32>
    %36 = arith.index_cast %11 : i32 to index
    %c0_16 = arith.constant 0 : index
    %c128 = arith.constant 128 : index
    %37 = vector.load %arg17[%36, %c0_16, %c128] : memref<8x8x256xf32, #tpu.memory_space<vmem>>, vector<1x8x128xf32>
    %38 = vector.shape_cast %37 : vector<1x8x128xf32> to vector<8x128xf32>
    %39 = arith.addf %38, %15 : vector<8x128xf32>
    %40 = vector.extract_strided_slice %39 {offsets = [0, 0], sizes = [8, 96], strides = [1, 1]} : vector<8x128xf32> to vector<8x96xf32>
    %41 = arith.negf %40 : vector<8x96xf32>
    %42 = math.exp %41 : vector<8x96xf32>
    %cst_17 = arith.constant 1.000000e+00 : f32
    %43 = vector.broadcast %cst_17 : f32 to vector<8x96xf32>
    %44 = arith.addf %43, %42 : vector<8x96xf32>
    %45 = arith.divf %43, %44 : vector<8x96xf32>
    %46 = vector.extract_strided_slice %39 {offsets = [0, 96], sizes = [8, 32], strides = [1, 1]} : vector<8x128xf32> to vector<8x32xf32>
    %47 = math.tanh %46 : vector<8x32xf32>
    %48 = vector.extract_strided_slice %45 {offsets = [0, 32], sizes = [8, 32], strides = [1, 1]} : vector<8x96xf32> to vector<8x32xf32>
    %49 = arith.mulf %48, %0 : vector<8x32xf32>
    %50 = vector.extract_strided_slice %45 {offsets = [0, 0], sizes = [8, 32], strides = [1, 1]} : vector<8x96xf32> to vector<8x32xf32>
    %51 = arith.mulf %50, %47 : vector<8x32xf32>
    %52 = arith.addf %49, %51 : vector<8x32xf32>
    %53 = vector.extract_strided_slice %45 {offsets = [0, 64], sizes = [8, 32], strides = [1, 1]} : vector<8x96xf32> to vector<8x32xf32>
    %54 = math.tanh %52 : vector<8x32xf32>
    %55 = arith.mulf %53, %54 : vector<8x32xf32>
    %56 = arith.index_cast %c0_i32 : i32 to index
    %c0_18 = arith.constant 0 : index
    %c0_19 = arith.constant 0 : index
    %57 = vector.load %arg18[%56, %c0_18, %c0_19] : memref<8x8x32xf32, #tpu.memory_space<vmem>>, vector<1x8x32xf32>
    %58 = vector.shape_cast %57 : vector<1x8x32xf32> to vector<8x32xf32>
    %59 = vector.shape_cast %35 : vector<8x32xf32> to vector<1x8x32xf32>
    tpu.vector_store %arg18[%56, %c0_18, %c0_19], %59 {strides = array<i32>} : memref<8x8x32xf32, #tpu.memory_space<vmem>>, vector<1x8x32xf32>,
    %60 = arith.index_cast %11 : i32 to index
    %c0_20 = arith.constant 0 : index
    %c0_21 = arith.constant 0 : index
    %61 = vector.load %arg19[%60, %c0_20, %c0_21] : memref<8x8x32xf32, #tpu.memory_space<vmem>>, vector<1x8x32xf32>
    %62 = vector.shape_cast %61 : vector<1x8x32xf32> to vector<8x32xf32>
    %63 = vector.shape_cast %55 : vector<8x32xf32> to vector<1x8x32xf32>
    tpu.vector_store %arg19[%60, %c0_20, %c0_21], %63 {strides = array<i32>} : memref<8x8x32xf32, #tpu.memory_space<vmem>>, vector<1x8x32xf32>,
    %c1_i32 = arith.constant 1 : i32
    %c7_i32_22 = arith.constant 7 : i32
    %64 = arith.subi %c7_i32_22, %c1_i32 : i32
    %65 = tpu.concatenate %35, %55 in 1 : vector<8x32xf32>, vector<8x32xf32> -> vector<8x64xf32>
    %cst_23 = arith.constant dense<0.000000e+00> : vector<8x256xf32>
    %66 = tpu.matmul %65, %10, %cst_23 {dimension_numbers = #tpu.dot_dimension_numbers<[1], [0], [0], [1], [0, 0, 1, 1], [], []>} : vector<8x64xf32>, vector<64x256xf32>, vector<8x256xf32> -> vector<8x256xf32>
    %67 = vector.extract_strided_slice %66 {offsets = [0, 0], sizes = [8, 128], strides = [1, 1]} : vector<8x256xf32> to vector<8x128xf32>
    %68 = vector.extract_strided_slice %66 {offsets = [0, 128], sizes = [8, 128], strides = [1, 1]} : vector<8x256xf32> to vector<8x128xf32>
    %69 = arith.index_cast %c1_i32 : i32 to index
    %c0_24 = arith.constant 0 : index
    %c0_25 = arith.constant 0 : index
    %70 = vector.load %arg17[%69, %c0_24, %c0_25] : memref<8x8x256xf32, #tpu.memory_space<vmem>>, vector<1x8x128xf32>
    %71 = vector.shape_cast %70 : vector<1x8x128xf32> to vector<8x128xf32>
    %72 = arith.addf %71, %67 : vector<8x128xf32>
    %73 = vector.extract_strided_slice %72 {offsets = [0, 0], sizes = [8, 96], strides = [1, 1]} : vector<8x128xf32> to vector<8x96xf32>
    %74 = arith.negf %73 : vector<8x96xf32>
    %75 = math.exp %74 : vector<8x96xf32>
    %cst_26 = arith.constant 1.000000e+00 : f32
    %76 = vector.broadcast %cst_26 : f32 to vector<8x96xf32>
    %77 = arith.addf %76, %75 : vector<8x96xf32>
    %78 = arith.divf %76, %77 : vector<8x96xf32>
    %79 = vector.extract_strided_slice %72 {offsets = [0, 96], sizes = [8, 32], strides = [1, 1]} : vector<8x128xf32> to vector<8x32xf32>
    %80 = math.tanh %79 : vector<8x32xf32>
    %81 = vector.extract_strided_slice %78 {offsets = [0, 32], sizes = [8, 32], strides = [1, 1]} : vector<8x96xf32> to vector<8x32xf32>
    %82 = arith.mulf %81, %32 : vector<8x32xf32>
    %83 = vector.extract_strided_slice %78 {offsets = [0, 0], sizes = [8, 32], strides = [1, 1]} : vector<8x96xf32> to vector<8x32xf32>
    %84 = arith.mulf %83, %80 : vector<8x32xf32>
    %85 = arith.addf %82, %84 : vector<8x32xf32>
    %86 = vector.extract_strided_slice %78 {offsets = [0, 64], sizes = [8, 32], strides = [1, 1]} : vector<8x96xf32> to vector<8x32xf32>
    %87 = math.tanh %85 : vector<8x32xf32>
    %88 = arith.mulf %86, %87 : vector<8x32xf32>
    %89 = arith.index_cast %64 : i32 to index
    %c0_27 = arith.constant 0 : index
    %c128_28 = arith.constant 128 : index
    %90 = vector.load %arg17[%89, %c0_27, %c128_28] : memref<8x8x256xf32, #tpu.memory_space<vmem>>, vector<1x8x128xf32>
    %91 = vector.shape_cast %90 : vector<1x8x128xf32> to vector<8x128xf32>
    %92 = arith.addf %91, %68 : vector<8x128xf32>
    %93 = vector.extract_strided_slice %92 {offsets = [0, 0], sizes = [8, 96], strides = [1, 1]} : vector<8x128xf32> to vector<8x96xf32>
    %94 = arith.negf %93 : vector<8x96xf32>
    %95 = math.exp %94 : vector<8x96xf32>
    %cst_29 = arith.constant 1.000000e+00 : f32
    %96 = vector.broadcast %cst_29 : f32 to vector<8x96xf32>
    %97 = arith.addf %96, %95 : vector<8x96xf32>
    %98 = arith.divf %96, %97 : vector<8x96xf32>
    %99 = vector.extract_strided_slice %92 {offsets = [0, 96], sizes = [8, 32], strides = [1, 1]} : vector<8x128xf32> to vector<8x32xf32>
    %100 = math.tanh %99 : vector<8x32xf32>
    %101 = vector.extract_strided_slice %98 {offsets = [0, 32], sizes = [8, 32], strides = [1, 1]} : vector<8x96xf32> to vector<8x32xf32>
    %102 = arith.mulf %101, %52 : vector<8x32xf32>
    %103 = vector.extract_strided_slice %98 {offsets = [0, 0], sizes = [8, 32], strides = [1, 1]} : vector<8x96xf32> to vector<8x32xf32>
    %104 = arith.mulf %103, %100 : vector<8x32xf32>
    %105 = arith.addf %102, %104 : vector<8x32xf32>
    %106 = vector.extract_strided_slice %98 {offsets = [0, 64], sizes = [8, 32], strides = [1, 1]} : vector<8x96xf32> to vector<8x32xf32>
    %107 = math.tanh %105 : vector<8x32xf32>
    %108 = arith.mulf %106, %107 : vector<8x32xf32>
    %109 = arith.index_cast %c1_i32 : i32 to index
    %c0_30 = arith.constant 0 : index
    %c0_31 = arith.constant 0 : index
    %110 = vector.load %arg18[%109, %c0_30, %c0_31] : memref<8x8x32xf32, #tpu.memory_space<vmem>>, vector<1x8x32xf32>
    %111 = vector.shape_cast %110 : vector<1x8x32xf32> to vector<8x32xf32>
    %112 = vector.shape_cast %88 : vector<8x32xf32> to vector<1x8x32xf32>
    tpu.vector_store %arg18[%109, %c0_30, %c0_31], %112 {strides = array<i32>} : memref<8x8x32xf32, #tpu.memory_space<vmem>>, vector<1x8x32xf32>,
    %113 = arith.index_cast %64 : i32 to index
    %c0_32 = arith.constant 0 : index
    %c0_33 = arith.constant 0 : index
    %114 = vector.load %arg19[%113, %c0_32, %c0_33] : memref<8x8x32xf32, #tpu.memory_space<vmem>>, vector<1x8x32xf32>
    %115 = vector.shape_cast %114 : vector<1x8x32xf32> to vector<8x32xf32>
    %116 = vector.shape_cast %108 : vector<8x32xf32> to vector<1x8x32xf32>
    tpu.vector_store %arg19[%113, %c0_32, %c0_33], %116 {strides = array<i32>} : memref<8x8x32xf32, #tpu.memory_space<vmem>>, vector<1x8x32xf32>,
    %c2_i32 = arith.constant 2 : i32
    %c7_i32_34 = arith.constant 7 : i32
    %117 = arith.subi %c7_i32_34, %c2_i32 : i32
    %118 = tpu.concatenate %88, %108 in 1 : vector<8x32xf32>, vector<8x32xf32> -> vector<8x64xf32>
    %cst_35 = arith.constant dense<0.000000e+00> : vector<8x256xf32>
    %119 = tpu.matmul %118, %10, %cst_35 {dimension_numbers = #tpu.dot_dimension_numbers<[1], [0], [0], [1], [0, 0, 1, 1], [], []>} : vector<8x64xf32>, vector<64x256xf32>, vector<8x256xf32> -> vector<8x256xf32>
    %120 = vector.extract_strided_slice %119 {offsets = [0, 0], sizes = [8, 128], strides = [1, 1]} : vector<8x256xf32> to vector<8x128xf32>
    %121 = vector.extract_strided_slice %119 {offsets = [0, 128], sizes = [8, 128], strides = [1, 1]} : vector<8x256xf32> to vector<8x128xf32>
    %122 = arith.index_cast %c2_i32 : i32 to index
    %c0_36 = arith.constant 0 : index
    %c0_37 = arith.constant 0 : index
    %123 = vector.load %arg17[%122, %c0_36, %c0_37] : memref<8x8x256xf32, #tpu.memory_space<vmem>>, vector<1x8x128xf32>
    %124 = vector.shape_cast %123 : vector<1x8x128xf32> to vector<8x128xf32>
    %125 = arith.addf %124, %120 : vector<8x128xf32>
    %126 = vector.extract_strided_slice %125 {offsets = [0, 0], sizes = [8, 96], strides = [1, 1]} : vector<8x128xf32> to vector<8x96xf32>
    %127 = arith.negf %126 : vector<8x96xf32>
    %128 = math.exp %127 : vector<8x96xf32>
    %cst_38 = arith.constant 1.000000e+00 : f32
    %129 = vector.broadcast %cst_38 : f32 to vector<8x96xf32>
    %130 = arith.addf %129, %128 : vector<8x96xf32>
    %131 = arith.divf %129, %130 : vector<8x96xf32>
    %132 = vector.extract_strided_slice %125 {offsets = [0, 96], sizes = [8, 32], strides = [1, 1]} : vector<8x128xf32> to vector<8x32xf32>
    %133 = math.tanh %132 : vector<8x32xf32>
    %134 = vector.extract_strided_slice %131 {offsets = [0, 32], sizes = [8, 32], strides = [1, 1]} : vector<8x96xf32> to vector<8x32xf32>
    %135 = arith.mulf %134, %85 : vector<8x32xf32>
    %136 = vector.extract_strided_slice %131 {offsets = [0, 0], sizes = [8, 32], strides = [1, 1]} : vector<8x96xf32> to vector<8x32xf32>
    %137 = arith.mulf %136, %133 : vector<8x32xf32>
    %138 = arith.addf %135, %137 : vector<8x32xf32>
    %139 = vector.extract_strided_slice %131 {offsets = [0, 64], sizes = [8, 32], strides = [1, 1]} : vector<8x96xf32> to vector<8x32xf32>
    %140 = math.tanh %138 : vector<8x32xf32>
    %141 = arith.mulf %139, %140 : vector<8x32xf32>
    %142 = arith.index_cast %117 : i32 to index
    %c0_39 = arith.constant 0 : index
    %c128_40 = arith.constant 128 : index
    %143 = vector.load %arg17[%142, %c0_39, %c128_40] : memref<8x8x256xf32, #tpu.memory_space<vmem>>, vector<1x8x128xf32>
    %144 = vector.shape_cast %143 : vector<1x8x128xf32> to vector<8x128xf32>
    %145 = arith.addf %144, %121 : vector<8x128xf32>
    %146 = vector.extract_strided_slice %145 {offsets = [0, 0], sizes = [8, 96], strides = [1, 1]} : vector<8x128xf32> to vector<8x96xf32>
    %147 = arith.negf %146 : vector<8x96xf32>
    %148 = math.exp %147 : vector<8x96xf32>
    %cst_41 = arith.constant 1.000000e+00 : f32
    %149 = vector.broadcast %cst_41 : f32 to vector<8x96xf32>
    %150 = arith.addf %149, %148 : vector<8x96xf32>
    %151 = arith.divf %149, %150 : vector<8x96xf32>
    %152 = vector.extract_strided_slice %145 {offsets = [0, 96], sizes = [8, 32], strides = [1, 1]} : vector<8x128xf32> to vector<8x32xf32>
    %153 = math.tanh %152 : vector<8x32xf32>
    %154 = vector.extract_strided_slice %151 {offsets = [0, 32], sizes = [8, 32], strides = [1, 1]} : vector<8x96xf32> to vector<8x32xf32>
    %155 = arith.mulf %154, %105 : vector<8x32xf32>
    %156 = vector.extract_strided_slice %151 {offsets = [0, 0], sizes = [8, 32], strides = [1, 1]} : vector<8x96xf32> to vector<8x32xf32>
    %157 = arith.mulf %156, %153 : vector<8x32xf32>
    %158 = arith.addf %155, %157 : vector<8x32xf32>
    %159 = vector.extract_strided_slice %151 {offsets = [0, 64], sizes = [8, 32], strides = [1, 1]} : vector<8x96xf32> to vector<8x32xf32>
    %160 = math.tanh %158 : vector<8x32xf32>
    %161 = arith.mulf %159, %160 : vector<8x32xf32>
    %162 = arith.index_cast %c2_i32 : i32 to index
    %c0_42 = arith.constant 0 : index
    %c0_43 = arith.constant 0 : index
    %163 = vector.load %arg18[%162, %c0_42, %c0_43] : memref<8x8x32xf32, #tpu.memory_space<vmem>>, vector<1x8x32xf32>
    %164 = vector.shape_cast %163 : vector<1x8x32xf32> to vector<8x32xf32>
    %165 = vector.shape_cast %141 : vector<8x32xf32> to vector<1x8x32xf32>
    tpu.vector_store %arg18[%162, %c0_42, %c0_43], %165 {strides = array<i32>} : memref<8x8x32xf32, #tpu.memory_space<vmem>>, vector<1x8x32xf32>,
    %166 = arith.index_cast %117 : i32 to index
    %c0_44 = arith.constant 0 : index
    %c0_45 = arith.constant 0 : index
    %167 = vector.load %arg19[%166, %c0_44, %c0_45] : memref<8x8x32xf32, #tpu.memory_space<vmem>>, vector<1x8x32xf32>
    %168 = vector.shape_cast %167 : vector<1x8x32xf32> to vector<8x32xf32>
    %169 = vector.shape_cast %161 : vector<8x32xf32> to vector<1x8x32xf32>
    tpu.vector_store %arg19[%166, %c0_44, %c0_45], %169 {strides = array<i32>} : memref<8x8x32xf32, #tpu.memory_space<vmem>>, vector<1x8x32xf32>,
    %c3_i32 = arith.constant 3 : i32
    %c7_i32_46 = arith.constant 7 : i32
    %170 = arith.subi %c7_i32_46, %c3_i32 : i32
    %171 = tpu.concatenate %141, %161 in 1 : vector<8x32xf32>, vector<8x32xf32> -> vector<8x64xf32>
    %cst_47 = arith.constant dense<0.000000e+00> : vector<8x256xf32>
    %172 = tpu.matmul %171, %10, %cst_47 {dimension_numbers = #tpu.dot_dimension_numbers<[1], [0], [0], [1], [0, 0, 1, 1], [], []>} : vector<8x64xf32>, vector<64x256xf32>, vector<8x256xf32> -> vector<8x256xf32>
    %173 = vector.extract_strided_slice %172 {offsets = [0, 0], sizes = [8, 128], strides = [1, 1]} : vector<8x256xf32> to vector<8x128xf32>
    %174 = vector.extract_strided_slice %172 {offsets = [0, 128], sizes = [8, 128], strides = [1, 1]} : vector<8x256xf32> to vector<8x128xf32>
    %175 = arith.index_cast %c3_i32 : i32 to index
    %c0_48 = arith.constant 0 : index
    %c0_49 = arith.constant 0 : index
    %176 = vector.load %arg17[%175, %c0_48, %c0_49] : memref<8x8x256xf32, #tpu.memory_space<vmem>>, vector<1x8x128xf32>
    %177 = vector.shape_cast %176 : vector<1x8x128xf32> to vector<8x128xf32>
    %178 = arith.addf %177, %173 : vector<8x128xf32>
    %179 = vector.extract_strided_slice %178 {offsets = [0, 0], sizes = [8, 96], strides = [1, 1]} : vector<8x128xf32> to vector<8x96xf32>
    %180 = arith.negf %179 : vector<8x96xf32>
    %181 = math.exp %180 : vector<8x96xf32>
    %cst_50 = arith.constant 1.000000e+00 : f32
    %182 = vector.broadcast %cst_50 : f32 to vector<8x96xf32>
    %183 = arith.addf %182, %181 : vector<8x96xf32>
    %184 = arith.divf %182, %183 : vector<8x96xf32>
    %185 = vector.extract_strided_slice %178 {offsets = [0, 96], sizes = [8, 32], strides = [1, 1]} : vector<8x128xf32> to vector<8x32xf32>
    %186 = math.tanh %185 : vector<8x32xf32>
    %187 = vector.extract_strided_slice %184 {offsets = [0, 32], sizes = [8, 32], strides = [1, 1]} : vector<8x96xf32> to vector<8x32xf32>
    %188 = arith.mulf %187, %138 : vector<8x32xf32>
    %189 = vector.extract_strided_slice %184 {offsets = [0, 0], sizes = [8, 32], strides = [1, 1]} : vector<8x96xf32> to vector<8x32xf32>
    %190 = arith.mulf %189, %186 : vector<8x32xf32>
    %191 = arith.addf %188, %190 : vector<8x32xf32>
    %192 = vector.extract_strided_slice %184 {offsets = [0, 64], sizes = [8, 32], strides = [1, 1]} : vector<8x96xf32> to vector<8x32xf32>
    %193 = math.tanh %191 : vector<8x32xf32>
    %194 = arith.mulf %192, %193 : vector<8x32xf32>
    %195 = arith.index_cast %170 : i32 to index
    %c0_51 = arith.constant 0 : index
    %c128_52 = arith.constant 128 : index
    %196 = vector.load %arg17[%195, %c0_51, %c128_52] : memref<8x8x256xf32, #tpu.memory_space<vmem>>, vector<1x8x128xf32>
    %197 = vector.shape_cast %196 : vector<1x8x128xf32> to vector<8x128xf32>
    %198 = arith.addf %197, %174 : vector<8x128xf32>
    %199 = vector.extract_strided_slice %198 {offsets = [0, 0], sizes = [8, 96], strides = [1, 1]} : vector<8x128xf32> to vector<8x96xf32>
    %200 = arith.negf %199 : vector<8x96xf32>
    %201 = math.exp %200 : vector<8x96xf32>
    %cst_53 = arith.constant 1.000000e+00 : f32
    %202 = vector.broadcast %cst_53 : f32 to vector<8x96xf32>
    %203 = arith.addf %202, %201 : vector<8x96xf32>
    %204 = arith.divf %202, %203 : vector<8x96xf32>
    %205 = vector.extract_strided_slice %198 {offsets = [0, 96], sizes = [8, 32], strides = [1, 1]} : vector<8x128xf32> to vector<8x32xf32>
    %206 = math.tanh %205 : vector<8x32xf32>
    %207 = vector.extract_strided_slice %204 {offsets = [0, 32], sizes = [8, 32], strides = [1, 1]} : vector<8x96xf32> to vector<8x32xf32>
    %208 = arith.mulf %207, %158 : vector<8x32xf32>
    %209 = vector.extract_strided_slice %204 {offsets = [0, 0], sizes = [8, 32], strides = [1, 1]} : vector<8x96xf32> to vector<8x32xf32>
    %210 = arith.mulf %209, %206 : vector<8x32xf32>
    %211 = arith.addf %208, %210 : vector<8x32xf32>
    %212 = vector.extract_strided_slice %204 {offsets = [0, 64], sizes = [8, 32], strides = [1, 1]} : vector<8x96xf32> to vector<8x32xf32>
    %213 = math.tanh %211 : vector<8x32xf32>
    %214 = arith.mulf %212, %213 : vector<8x32xf32>
    %215 = arith.index_cast %c3_i32 : i32 to index
    %c0_54 = arith.constant 0 : index
    %c0_55 = arith.constant 0 : index
    %216 = vector.load %arg18[%215, %c0_54, %c0_55] : memref<8x8x32xf32, #tpu.memory_space<vmem>>, vector<1x8x32xf32>
    %217 = vector.shape_cast %216 : vector<1x8x32xf32> to vector<8x32xf32>
    %218 = vector.shape_cast %194 : vector<8x32xf32> to vector<1x8x32xf32>
    tpu.vector_store %arg18[%215, %c0_54, %c0_55], %218 {strides = array<i32>} : memref<8x8x32xf32, #tpu.memory_space<vmem>>, vector<1x8x32xf32>,
    %219 = arith.index_cast %170 : i32 to index
    %c0_56 = arith.constant 0 : index
    %c0_57 = arith.constant 0 : index
    %220 = vector.load %arg19[%219, %c0_56, %c0_57] : memref<8x8x32xf32, #tpu.memory_space<vmem>>, vector<1x8x32xf32>
    %221 = vector.shape_cast %220 : vector<1x8x32xf32> to vector<8x32xf32>
    %222 = vector.shape_cast %214 : vector<8x32xf32> to vector<1x8x32xf32>
    tpu.vector_store %arg19[%219, %c0_56, %c0_57], %222 {strides = array<i32>} : memref<8x8x32xf32, #tpu.memory_space<vmem>>, vector<1x8x32xf32>,
    %c4_i32 = arith.constant 4 : i32
    %c7_i32_58 = arith.constant 7 : i32
    %223 = arith.subi %c7_i32_58, %c4_i32 : i32
    %224 = tpu.concatenate %194, %214 in 1 : vector<8x32xf32>, vector<8x32xf32> -> vector<8x64xf32>
    %cst_59 = arith.constant dense<0.000000e+00> : vector<8x256xf32>
    %225 = tpu.matmul %224, %10, %cst_59 {dimension_numbers = #tpu.dot_dimension_numbers<[1], [0], [0], [1], [0, 0, 1, 1], [], []>} : vector<8x64xf32>, vector<64x256xf32>, vector<8x256xf32> -> vector<8x256xf32>
    %226 = vector.extract_strided_slice %225 {offsets = [0, 0], sizes = [8, 128], strides = [1, 1]} : vector<8x256xf32> to vector<8x128xf32>
    %227 = vector.extract_strided_slice %225 {offsets = [0, 128], sizes = [8, 128], strides = [1, 1]} : vector<8x256xf32> to vector<8x128xf32>
    %228 = arith.index_cast %c4_i32 : i32 to index
    %c0_60 = arith.constant 0 : index
    %c0_61 = arith.constant 0 : index
    %229 = vector.load %arg17[%228, %c0_60, %c0_61] : memref<8x8x256xf32, #tpu.memory_space<vmem>>, vector<1x8x128xf32>
    %230 = vector.shape_cast %229 : vector<1x8x128xf32> to vector<8x128xf32>
    %231 = arith.addf %230, %226 : vector<8x128xf32>
    %232 = vector.extract_strided_slice %231 {offsets = [0, 0], sizes = [8, 96], strides = [1, 1]} : vector<8x128xf32> to vector<8x96xf32>
    %233 = arith.negf %232 : vector<8x96xf32>
    %234 = math.exp %233 : vector<8x96xf32>
    %cst_62 = arith.constant 1.000000e+00 : f32
    %235 = vector.broadcast %cst_62 : f32 to vector<8x96xf32>
    %236 = arith.addf %235, %234 : vector<8x96xf32>
    %237 = arith.divf %235, %236 : vector<8x96xf32>
    %238 = vector.extract_strided_slice %231 {offsets = [0, 96], sizes = [8, 32], strides = [1, 1]} : vector<8x128xf32> to vector<8x32xf32>
    %239 = math.tanh %238 : vector<8x32xf32>
    %240 = vector.extract_strided_slice %237 {offsets = [0, 32], sizes = [8, 32], strides = [1, 1]} : vector<8x96xf32> to vector<8x32xf32>
    %241 = arith.mulf %240, %191 : vector<8x32xf32>
    %242 = vector.extract_strided_slice %237 {offsets = [0, 0], sizes = [8, 32], strides = [1, 1]} : vector<8x96xf32> to vector<8x32xf32>
    %243 = arith.mulf %242, %239 : vector<8x32xf32>
    %244 = arith.addf %241, %243 : vector<8x32xf32>
    %245 = vector.extract_strided_slice %237 {offsets = [0, 64], sizes = [8, 32], strides = [1, 1]} : vector<8x96xf32> to vector<8x32xf32>
    %246 = math.tanh %244 : vector<8x32xf32>
    %247 = arith.mulf %245, %246 : vector<8x32xf32>
    %248 = arith.index_cast %223 : i32 to index
    %c0_63 = arith.constant 0 : index
    %c128_64 = arith.constant 128 : index
    %249 = vector.load %arg17[%248, %c0_63, %c128_64] : memref<8x8x256xf32, #tpu.memory_space<vmem>>, vector<1x8x128xf32>
    %250 = vector.shape_cast %249 : vector<1x8x128xf32> to vector<8x128xf32>
    %251 = arith.addf %250, %227 : vector<8x128xf32>
    %252 = vector.extract_strided_slice %251 {offsets = [0, 0], sizes = [8, 96], strides = [1, 1]} : vector<8x128xf32> to vector<8x96xf32>
    %253 = arith.negf %252 : vector<8x96xf32>
    %254 = math.exp %253 : vector<8x96xf32>
    %cst_65 = arith.constant 1.000000e+00 : f32
    %255 = vector.broadcast %cst_65 : f32 to vector<8x96xf32>
    %256 = arith.addf %255, %254 : vector<8x96xf32>
    %257 = arith.divf %255, %256 : vector<8x96xf32>
    %258 = vector.extract_strided_slice %251 {offsets = [0, 96], sizes = [8, 32], strides = [1, 1]} : vector<8x128xf32> to vector<8x32xf32>
    %259 = math.tanh %258 : vector<8x32xf32>
    %260 = vector.extract_strided_slice %257 {offsets = [0, 32], sizes = [8, 32], strides = [1, 1]} : vector<8x96xf32> to vector<8x32xf32>
    %261 = arith.mulf %260, %211 : vector<8x32xf32>
    %262 = vector.extract_strided_slice %257 {offsets = [0, 0], sizes = [8, 32], strides = [1, 1]} : vector<8x96xf32> to vector<8x32xf32>
    %263 = arith.mulf %262, %259 : vector<8x32xf32>
    %264 = arith.addf %261, %263 : vector<8x32xf32>
    %265 = vector.extract_strided_slice %257 {offsets = [0, 64], sizes = [8, 32], strides = [1, 1]} : vector<8x96xf32> to vector<8x32xf32>
    %266 = math.tanh %264 : vector<8x32xf32>
    %267 = arith.mulf %265, %266 : vector<8x32xf32>
    %268 = arith.index_cast %c4_i32 : i32 to index
    %c0_66 = arith.constant 0 : index
    %c0_67 = arith.constant 0 : index
    %269 = vector.load %arg18[%268, %c0_66, %c0_67] : memref<8x8x32xf32, #tpu.memory_space<vmem>>, vector<1x8x32xf32>
    %270 = vector.shape_cast %269 : vector<1x8x32xf32> to vector<8x32xf32>
    %271 = vector.shape_cast %247 : vector<8x32xf32> to vector<1x8x32xf32>
    tpu.vector_store %arg18[%268, %c0_66, %c0_67], %271 {strides = array<i32>} : memref<8x8x32xf32, #tpu.memory_space<vmem>>, vector<1x8x32xf32>,
    %272 = arith.index_cast %223 : i32 to index
    %c0_68 = arith.constant 0 : index
    %c0_69 = arith.constant 0 : index
    %273 = vector.load %arg19[%272, %c0_68, %c0_69] : memref<8x8x32xf32, #tpu.memory_space<vmem>>, vector<1x8x32xf32>
    %274 = vector.shape_cast %273 : vector<1x8x32xf32> to vector<8x32xf32>
    %275 = vector.shape_cast %267 : vector<8x32xf32> to vector<1x8x32xf32>
    tpu.vector_store %arg19[%272, %c0_68, %c0_69], %275 {strides = array<i32>} : memref<8x8x32xf32, #tpu.memory_space<vmem>>, vector<1x8x32xf32>,
    %c5_i32 = arith.constant 5 : i32
    %c7_i32_70 = arith.constant 7 : i32
    %276 = arith.subi %c7_i32_70, %c5_i32 : i32
    %277 = tpu.concatenate %247, %267 in 1 : vector<8x32xf32>, vector<8x32xf32> -> vector<8x64xf32>
    %cst_71 = arith.constant dense<0.000000e+00> : vector<8x256xf32>
    %278 = tpu.matmul %277, %10, %cst_71 {dimension_numbers = #tpu.dot_dimension_numbers<[1], [0], [0], [1], [0, 0, 1, 1], [], []>} : vector<8x64xf32>, vector<64x256xf32>, vector<8x256xf32> -> vector<8x256xf32>
    %279 = vector.extract_strided_slice %278 {offsets = [0, 0], sizes = [8, 128], strides = [1, 1]} : vector<8x256xf32> to vector<8x128xf32>
    %280 = vector.extract_strided_slice %278 {offsets = [0, 128], sizes = [8, 128], strides = [1, 1]} : vector<8x256xf32> to vector<8x128xf32>
    %281 = arith.index_cast %c5_i32 : i32 to index
    %c0_72 = arith.constant 0 : index
    %c0_73 = arith.constant 0 : index
    %282 = vector.load %arg17[%281, %c0_72, %c0_73] : memref<8x8x256xf32, #tpu.memory_space<vmem>>, vector<1x8x128xf32>
    %283 = vector.shape_cast %282 : vector<1x8x128xf32> to vector<8x128xf32>
    %284 = arith.addf %283, %279 : vector<8x128xf32>
    %285 = vector.extract_strided_slice %284 {offsets = [0, 0], sizes = [8, 96], strides = [1, 1]} : vector<8x128xf32> to vector<8x96xf32>
    %286 = arith.negf %285 : vector<8x96xf32>
    %287 = math.exp %286 : vector<8x96xf32>
    %cst_74 = arith.constant 1.000000e+00 : f32
    %288 = vector.broadcast %cst_74 : f32 to vector<8x96xf32>
    %289 = arith.addf %288, %287 : vector<8x96xf32>
    %290 = arith.divf %288, %289 : vector<8x96xf32>
    %291 = vector.extract_strided_slice %284 {offsets = [0, 96], sizes = [8, 32], strides = [1, 1]} : vector<8x128xf32> to vector<8x32xf32>
    %292 = math.tanh %291 : vector<8x32xf32>
    %293 = vector.extract_strided_slice %290 {offsets = [0, 32], sizes = [8, 32], strides = [1, 1]} : vector<8x96xf32> to vector<8x32xf32>
    %294 = arith.mulf %293, %244 : vector<8x32xf32>
    %295 = vector.extract_strided_slice %290 {offsets = [0, 0], sizes = [8, 32], strides = [1, 1]} : vector<8x96xf32> to vector<8x32xf32>
    %296 = arith.mulf %295, %292 : vector<8x32xf32>
    %297 = arith.addf %294, %296 : vector<8x32xf32>
    %298 = vector.extract_strided_slice %290 {offsets = [0, 64], sizes = [8, 32], strides = [1, 1]} : vector<8x96xf32> to vector<8x32xf32>
    %299 = math.tanh %297 : vector<8x32xf32>
    %300 = arith.mulf %298, %299 : vector<8x32xf32>
    %301 = arith.index_cast %276 : i32 to index
    %c0_75 = arith.constant 0 : index
    %c128_76 = arith.constant 128 : index
    %302 = vector.load %arg17[%301, %c0_75, %c128_76] : memref<8x8x256xf32, #tpu.memory_space<vmem>>, vector<1x8x128xf32>
    %303 = vector.shape_cast %302 : vector<1x8x128xf32> to vector<8x128xf32>
    %304 = arith.addf %303, %280 : vector<8x128xf32>
    %305 = vector.extract_strided_slice %304 {offsets = [0, 0], sizes = [8, 96], strides = [1, 1]} : vector<8x128xf32> to vector<8x96xf32>
    %306 = arith.negf %305 : vector<8x96xf32>
    %307 = math.exp %306 : vector<8x96xf32>
    %cst_77 = arith.constant 1.000000e+00 : f32
    %308 = vector.broadcast %cst_77 : f32 to vector<8x96xf32>
    %309 = arith.addf %308, %307 : vector<8x96xf32>
    %310 = arith.divf %308, %309 : vector<8x96xf32>
    %311 = vector.extract_strided_slice %304 {offsets = [0, 96], sizes = [8, 32], strides = [1, 1]} : vector<8x128xf32> to vector<8x32xf32>
    %312 = math.tanh %311 : vector<8x32xf32>
    %313 = vector.extract_strided_slice %310 {offsets = [0, 32], sizes = [8, 32], strides = [1, 1]} : vector<8x96xf32> to vector<8x32xf32>
    %314 = arith.mulf %313, %264 : vector<8x32xf32>
    %315 = vector.extract_strided_slice %310 {offsets = [0, 0], sizes = [8, 32], strides = [1, 1]} : vector<8x96xf32> to vector<8x32xf32>
    %316 = arith.mulf %315, %312 : vector<8x32xf32>
    %317 = arith.addf %314, %316 : vector<8x32xf32>
    %318 = vector.extract_strided_slice %310 {offsets = [0, 64], sizes = [8, 32], strides = [1, 1]} : vector<8x96xf32> to vector<8x32xf32>
    %319 = math.tanh %317 : vector<8x32xf32>
    %320 = arith.mulf %318, %319 : vector<8x32xf32>
    %321 = arith.index_cast %c5_i32 : i32 to index
    %c0_78 = arith.constant 0 : index
    %c0_79 = arith.constant 0 : index
    %322 = vector.load %arg18[%321, %c0_78, %c0_79] : memref<8x8x32xf32, #tpu.memory_space<vmem>>, vector<1x8x32xf32>
    %323 = vector.shape_cast %322 : vector<1x8x32xf32> to vector<8x32xf32>
    %324 = vector.shape_cast %300 : vector<8x32xf32> to vector<1x8x32xf32>
    tpu.vector_store %arg18[%321, %c0_78, %c0_79], %324 {strides = array<i32>} : memref<8x8x32xf32, #tpu.memory_space<vmem>>, vector<1x8x32xf32>,
    %325 = arith.index_cast %276 : i32 to index
    %c0_80 = arith.constant 0 : index
    %c0_81 = arith.constant 0 : index
    %326 = vector.load %arg19[%325, %c0_80, %c0_81] : memref<8x8x32xf32, #tpu.memory_space<vmem>>, vector<1x8x32xf32>
    %327 = vector.shape_cast %326 : vector<1x8x32xf32> to vector<8x32xf32>
    %328 = vector.shape_cast %320 : vector<8x32xf32> to vector<1x8x32xf32>
    tpu.vector_store %arg19[%325, %c0_80, %c0_81], %328 {strides = array<i32>} : memref<8x8x32xf32, #tpu.memory_space<vmem>>, vector<1x8x32xf32>,
    %c6_i32 = arith.constant 6 : i32
    %c7_i32_82 = arith.constant 7 : i32
    %329 = arith.subi %c7_i32_82, %c6_i32 : i32
    %330 = tpu.concatenate %300, %320 in 1 : vector<8x32xf32>, vector<8x32xf32> -> vector<8x64xf32>
    %cst_83 = arith.constant dense<0.000000e+00> : vector<8x256xf32>
    %331 = tpu.matmul %330, %10, %cst_83 {dimension_numbers = #tpu.dot_dimension_numbers<[1], [0], [0], [1], [0, 0, 1, 1], [], []>} : vector<8x64xf32>, vector<64x256xf32>, vector<8x256xf32> -> vector<8x256xf32>
    %332 = vector.extract_strided_slice %331 {offsets = [0, 0], sizes = [8, 128], strides = [1, 1]} : vector<8x256xf32> to vector<8x128xf32>
    %333 = vector.extract_strided_slice %331 {offsets = [0, 128], sizes = [8, 128], strides = [1, 1]} : vector<8x256xf32> to vector<8x128xf32>
    %334 = arith.index_cast %c6_i32 : i32 to index
    %c0_84 = arith.constant 0 : index
    %c0_85 = arith.constant 0 : index
    %335 = vector.load %arg17[%334, %c0_84, %c0_85] : memref<8x8x256xf32, #tpu.memory_space<vmem>>, vector<1x8x128xf32>
    %336 = vector.shape_cast %335 : vector<1x8x128xf32> to vector<8x128xf32>
    %337 = arith.addf %336, %332 : vector<8x128xf32>
    %338 = vector.extract_strided_slice %337 {offsets = [0, 0], sizes = [8, 96], strides = [1, 1]} : vector<8x128xf32> to vector<8x96xf32>
    %339 = arith.negf %338 : vector<8x96xf32>
    %340 = math.exp %339 : vector<8x96xf32>
    %cst_86 = arith.constant 1.000000e+00 : f32
    %341 = vector.broadcast %cst_86 : f32 to vector<8x96xf32>
    %342 = arith.addf %341, %340 : vector<8x96xf32>
    %343 = arith.divf %341, %342 : vector<8x96xf32>
    %344 = vector.extract_strided_slice %337 {offsets = [0, 96], sizes = [8, 32], strides = [1, 1]} : vector<8x128xf32> to vector<8x32xf32>
    %345 = math.tanh %344 : vector<8x32xf32>
    %346 = vector.extract_strided_slice %343 {offsets = [0, 32], sizes = [8, 32], strides = [1, 1]} : vector<8x96xf32> to vector<8x32xf32>
    %347 = arith.mulf %346, %297 : vector<8x32xf32>
    %348 = vector.extract_strided_slice %343 {offsets = [0, 0], sizes = [8, 32], strides = [1, 1]} : vector<8x96xf32> to vector<8x32xf32>
    %349 = arith.mulf %348, %345 : vector<8x32xf32>
    %350 = arith.addf %347, %349 : vector<8x32xf32>
    %351 = vector.extract_strided_slice %343 {offsets = [0, 64], sizes = [8, 32], strides = [1, 1]} : vector<8x96xf32> to vector<8x32xf32>
    %352 = math.tanh %350 : vector<8x32xf32>
    %353 = arith.mulf %351, %352 : vector<8x32xf32>
    %354 = arith.index_cast %329 : i32 to index
    %c0_87 = arith.constant 0 : index
    %c128_88 = arith.constant 128 : index
    %355 = vector.load %arg17[%354, %c0_87, %c128_88] : memref<8x8x256xf32, #tpu.memory_space<vmem>>, vector<1x8x128xf32>
    %356 = vector.shape_cast %355 : vector<1x8x128xf32> to vector<8x128xf32>
    %357 = arith.addf %356, %333 : vector<8x128xf32>
    %358 = vector.extract_strided_slice %357 {offsets = [0, 0], sizes = [8, 96], strides = [1, 1]} : vector<8x128xf32> to vector<8x96xf32>
    %359 = arith.negf %358 : vector<8x96xf32>
    %360 = math.exp %359 : vector<8x96xf32>
    %cst_89 = arith.constant 1.000000e+00 : f32
    %361 = vector.broadcast %cst_89 : f32 to vector<8x96xf32>
    %362 = arith.addf %361, %360 : vector<8x96xf32>
    %363 = arith.divf %361, %362 : vector<8x96xf32>
    %364 = vector.extract_strided_slice %357 {offsets = [0, 96], sizes = [8, 32], strides = [1, 1]} : vector<8x128xf32> to vector<8x32xf32>
    %365 = math.tanh %364 : vector<8x32xf32>
    %366 = vector.extract_strided_slice %363 {offsets = [0, 32], sizes = [8, 32], strides = [1, 1]} : vector<8x96xf32> to vector<8x32xf32>
    %367 = arith.mulf %366, %317 : vector<8x32xf32>
    %368 = vector.extract_strided_slice %363 {offsets = [0, 0], sizes = [8, 32], strides = [1, 1]} : vector<8x96xf32> to vector<8x32xf32>
    %369 = arith.mulf %368, %365 : vector<8x32xf32>
    %370 = arith.addf %367, %369 : vector<8x32xf32>
    %371 = vector.extract_strided_slice %363 {offsets = [0, 64], sizes = [8, 32], strides = [1, 1]} : vector<8x96xf32> to vector<8x32xf32>
    %372 = math.tanh %370 : vector<8x32xf32>
    %373 = arith.mulf %371, %372 : vector<8x32xf32>
    %374 = arith.index_cast %c6_i32 : i32 to index
    %c0_90 = arith.constant 0 : index
    %c0_91 = arith.constant 0 : index
    %375 = vector.load %arg18[%374, %c0_90, %c0_91] : memref<8x8x32xf32, #tpu.memory_space<vmem>>, vector<1x8x32xf32>
    %376 = vector.shape_cast %375 : vector<1x8x32xf32> to vector<8x32xf32>
    %377 = vector.shape_cast %353 : vector<8x32xf32> to vector<1x8x32xf32>
    tpu.vector_store %arg18[%374, %c0_90, %c0_91], %377 {strides = array<i32>} : memref<8x8x32xf32, #tpu.memory_space<vmem>>, vector<1x8x32xf32>,
    %378 = arith.index_cast %329 : i32 to index
    %c0_92 = arith.constant 0 : index
    %c0_93 = arith.constant 0 : index
    %379 = vector.load %arg19[%378, %c0_92, %c0_93] : memref<8x8x32xf32, #tpu.memory_space<vmem>>, vector<1x8x32xf32>
    %380 = vector.shape_cast %379 : vector<1x8x32xf32> to vector<8x32xf32>
    %381 = vector.shape_cast %373 : vector<8x32xf32> to vector<1x8x32xf32>
    tpu.vector_store %arg19[%378, %c0_92, %c0_93], %381 {strides = array<i32>} : memref<8x8x32xf32, #tpu.memory_space<vmem>>, vector<1x8x32xf32>,
    %c7_i32_94 = arith.constant 7 : i32
    %c7_i32_95 = arith.constant 7 : i32
    %382 = arith.subi %c7_i32_95, %c7_i32_94 : i32
    %383 = tpu.concatenate %353, %373 in 1 : vector<8x32xf32>, vector<8x32xf32> -> vector<8x64xf32>
    %cst_96 = arith.constant dense<0.000000e+00> : vector<8x256xf32>
    %384 = tpu.matmul %383, %10, %cst_96 {dimension_numbers = #tpu.dot_dimension_numbers<[1], [0], [0], [1], [0, 0, 1, 1], [], []>} : vector<8x64xf32>, vector<64x256xf32>, vector<8x256xf32> -> vector<8x256xf32>
    %385 = vector.extract_strided_slice %384 {offsets = [0, 0], sizes = [8, 128], strides = [1, 1]} : vector<8x256xf32> to vector<8x128xf32>
    %386 = vector.extract_strided_slice %384 {offsets = [0, 128], sizes = [8, 128], strides = [1, 1]} : vector<8x256xf32> to vector<8x128xf32>
    %387 = arith.index_cast %c7_i32_94 : i32 to index
    %c0_97 = arith.constant 0 : index
    %c0_98 = arith.constant 0 : index
    %388 = vector.load %arg17[%387, %c0_97, %c0_98] : memref<8x8x256xf32, #tpu.memory_space<vmem>>, vector<1x8x128xf32>
    %389 = vector.shape_cast %388 : vector<1x8x128xf32> to vector<8x128xf32>
    %390 = arith.addf %389, %385 : vector<8x128xf32>
    %391 = vector.extract_strided_slice %390 {offsets = [0, 0], sizes = [8, 96], strides = [1, 1]} : vector<8x128xf32> to vector<8x96xf32>
    %392 = arith.negf %391 : vector<8x96xf32>
    %393 = math.exp %392 : vector<8x96xf32>
    %cst_99 = arith.constant 1.000000e+00 : f32
    %394 = vector.broadcast %cst_99 : f32 to vector<8x96xf32>
    %395 = arith.addf %394, %393 : vector<8x96xf32>
    %396 = arith.divf %394, %395 : vector<8x96xf32>
    %397 = vector.extract_strided_slice %390 {offsets = [0, 96], sizes = [8, 32], strides = [1, 1]} : vector<8x128xf32> to vector<8x32xf32>
    %398 = math.tanh %397 : vector<8x32xf32>
    %399 = vector.extract_strided_slice %396 {offsets = [0, 32], sizes = [8, 32], strides = [1, 1]} : vector<8x96xf32> to vector<8x32xf32>
    %400 = arith.mulf %399, %350 : vector<8x32xf32>
    %401 = vector.extract_strided_slice %396 {offsets = [0, 0], sizes = [8, 32], strides = [1, 1]} : vector<8x96xf32> to vector<8x32xf32>
    %402 = arith.mulf %401, %398 : vector<8x32xf32>
    %403 = arith.addf %400, %402 : vector<8x32xf32>
    %404 = vector.extract_strided_slice %396 {offsets = [0, 64], sizes = [8, 32], strides = [1, 1]} : vector<8x96xf32> to vector<8x32xf32>
    %405 = math.tanh %403 : vector<8x32xf32>
    %406 = arith.mulf %404, %405 : vector<8x32xf32>
    %407 = arith.index_cast %382 : i32 to index
    %c0_100 = arith.constant 0 : index
    %c128_101 = arith.constant 128 : index
    %408 = vector.load %arg17[%407, %c0_100, %c128_101] : memref<8x8x256xf32, #tpu.memory_space<vmem>>, vector<1x8x128xf32>
    %409 = vector.shape_cast %408 : vector<1x8x128xf32> to vector<8x128xf32>
    %410 = arith.addf %409, %386 : vector<8x128xf32>
    %411 = vector.extract_strided_slice %410 {offsets = [0, 0], sizes = [8, 96], strides = [1, 1]} : vector<8x128xf32> to vector<8x96xf32>
    %412 = arith.negf %411 : vector<8x96xf32>
    %413 = math.exp %412 : vector<8x96xf32>
    %cst_102 = arith.constant 1.000000e+00 : f32
    %414 = vector.broadcast %cst_102 : f32 to vector<8x96xf32>
    %415 = arith.addf %414, %413 : vector<8x96xf32>
    %416 = arith.divf %414, %415 : vector<8x96xf32>
    %417 = vector.extract_strided_slice %410 {offsets = [0, 96], sizes = [8, 32], strides = [1, 1]} : vector<8x128xf32> to vector<8x32xf32>
    %418 = math.tanh %417 : vector<8x32xf32>
    %419 = vector.extract_strided_slice %416 {offsets = [0, 32], sizes = [8, 32], strides = [1, 1]} : vector<8x96xf32> to vector<8x32xf32>
    %420 = arith.mulf %419, %370 : vector<8x32xf32>
    %421 = vector.extract_strided_slice %416 {offsets = [0, 0], sizes = [8, 32], strides = [1, 1]} : vector<8x96xf32> to vector<8x32xf32>
    %422 = arith.mulf %421, %418 : vector<8x32xf32>
    %423 = arith.addf %420, %422 : vector<8x32xf32>
    %424 = vector.extract_strided_slice %416 {offsets = [0, 64], sizes = [8, 32], strides = [1, 1]} : vector<8x96xf32> to vector<8x32xf32>
    %425 = math.tanh %423 : vector<8x32xf32>
    %426 = arith.mulf %424, %425 : vector<8x32xf32>
    %427 = arith.index_cast %c7_i32_94 : i32 to index
    %c0_103 = arith.constant 0 : index
    %c0_104 = arith.constant 0 : index
    %428 = vector.load %arg18[%427, %c0_103, %c0_104] : memref<8x8x32xf32, #tpu.memory_space<vmem>>, vector<1x8x32xf32>
    %429 = vector.shape_cast %428 : vector<1x8x32xf32> to vector<8x32xf32>
    %430 = vector.shape_cast %406 : vector<8x32xf32> to vector<1x8x32xf32>
    tpu.vector_store %arg18[%427, %c0_103, %c0_104], %430 {strides = array<i32>} : memref<8x8x32xf32, #tpu.memory_space<vmem>>, vector<1x8x32xf32>,
    %431 = arith.index_cast %382 : i32 to index
    %c0_105 = arith.constant 0 : index
    %c0_106 = arith.constant 0 : index
    %432 = vector.load %arg19[%431, %c0_105, %c0_106] : memref<8x8x32xf32, #tpu.memory_space<vmem>>, vector<1x8x32xf32>
    %433 = vector.shape_cast %432 : vector<1x8x32xf32> to vector<8x32xf32>
    %434 = vector.shape_cast %426 : vector<8x32xf32> to vector<1x8x32xf32>
    tpu.vector_store %arg19[%431, %c0_105, %c0_106], %434 {strides = array<i32>} : memref<8x8x32xf32, #tpu.memory_space<vmem>>, vector<1x8x32xf32>,
    %c8_i32 = arith.constant 8 : i32
    %c0_107 = arith.constant 0 : index
    %c0_108 = arith.constant 0 : index
    %c0_109 = arith.constant 0 : index
    %435 = vector.load %arg18[%c0_107, %c0_108, %c0_109] : memref<8x8x32xf32, #tpu.memory_space<vmem>>, vector<8x8x32xf32>
    %436 = vector.shape_cast %435 : vector<8x8x32xf32> to vector<64x32xf32>
    %c0_110 = arith.constant 0 : index
    %c0_111 = arith.constant 0 : index
    %c0_112 = arith.constant 0 : index
    %437 = vector.load %arg19[%c0_110, %c0_111, %c0_112] : memref<8x8x32xf32, #tpu.memory_space<vmem>>, vector<8x8x32xf32>
    %438 = vector.shape_cast %437 : vector<8x8x32xf32> to vector<64x32xf32>
    %c0_113 = arith.constant 0 : index
    %c0_114 = arith.constant 0 : index
    %439 = vector.load %arg5[%c0_113, %c0_114] : memref<64x128xf32, #tpu.memory_space<vmem>>, vector<32x128xf32>
    %cst_115 = arith.constant dense<0.000000e+00> : vector<64x128xf32>
    %440 = tpu.matmul %436, %439, %cst_115 {dimension_numbers = #tpu.dot_dimension_numbers<[1], [0], [0], [1], [0, 0, 1, 1], [], []>} : vector<64x32xf32>, vector<32x128xf32>, vector<64x128xf32> -> vector<64x128xf32>
    %c32 = arith.constant 32 : index
    %c0_116 = arith.constant 0 : index
    %441 = vector.load %arg5[%c32, %c0_116] : memref<64x128xf32, #tpu.memory_space<vmem>>, vector<32x128xf32>
    %cst_117 = arith.constant dense<0.000000e+00> : vector<64x128xf32>
    %442 = tpu.matmul %438, %441, %cst_117 {dimension_numbers = #tpu.dot_dimension_numbers<[1], [0], [0], [1], [0, 0, 1, 1], [], []>} : vector<64x32xf32>, vector<32x128xf32>, vector<64x128xf32> -> vector<64x128xf32>
    %443 = arith.addf %440, %442 : vector<64x128xf32>
    %c7 = arith.constant 7 : index
    %c0_118 = arith.constant 0 : index
    %c0_119 = arith.constant 0 : index
    %444 = vector.load %arg18[%c7, %c0_118, %c0_119] : memref<8x8x32xf32, #tpu.memory_space<vmem>>, vector<1x8x32xf32>
    %445 = vector.shape_cast %444 : vector<1x8x32xf32> to vector<8x32xf32>
    %c0_120 = arith.constant 0 : index
    %c0_121 = arith.constant 0 : index
    %446 = vector.load %arg6[%c0_120, %c0_121] : memref<64x128xf32, #tpu.memory_space<vmem>>, vector<32x128xf32>
    %cst_122 = arith.constant dense<0.000000e+00> : vector<8x128xf32>
    %447 = tpu.matmul %445, %446, %cst_122 {dimension_numbers = #tpu.dot_dimension_numbers<[1], [0], [0], [1], [0, 0, 1, 1], [], []>} : vector<8x32xf32>, vector<32x128xf32>, vector<8x128xf32> -> vector<8x128xf32>
    %c7_123 = arith.constant 7 : index
    %c0_124 = arith.constant 0 : index
    %c0_125 = arith.constant 0 : index
    %448 = vector.load %arg19[%c7_123, %c0_124, %c0_125] : memref<8x8x32xf32, #tpu.memory_space<vmem>>, vector<1x8x32xf32>
    %449 = vector.shape_cast %448 : vector<1x8x32xf32> to vector<8x32xf32>
    %c32_126 = arith.constant 32 : index
    %c0_127 = arith.constant 0 : index
    %450 = vector.load %arg6[%c32_126, %c0_127] : memref<64x128xf32, #tpu.memory_space<vmem>>, vector<32x128xf32>
    %cst_128 = arith.constant dense<0.000000e+00> : vector<8x128xf32>
    %451 = tpu.matmul %449, %450, %cst_128 {dimension_numbers = #tpu.dot_dimension_numbers<[1], [0], [0], [1], [0, 0, 1, 1], [], []>} : vector<8x32xf32>, vector<32x128xf32>, vector<8x128xf32> -> vector<8x128xf32>
    %452 = arith.addf %447, %451 : vector<8x128xf32>
    %c0_129 = arith.constant 0 : index
    %c0_130 = arith.constant 0 : index
    %453 = vector.load %arg8[%c0_129, %c0_130] : memref<1x128xf32, #tpu.memory_space<vmem>>, vector<1x128xf32>
    %454 = vector.broadcast %453 : vector<1x128xf32> to vector<64x128xf32>
    %455 = arith.addf %443, %454 : vector<64x128xf32>
    %456 = vector.shape_cast %455 : vector<64x128xf32> to vector<8x8x128xf32>
    %c0_131 = arith.constant 0 : index
    %c0_132 = arith.constant 0 : index
    %c0_133 = arith.constant 0 : index
    %457 = vector.load %arg17[%c0_131, %c0_132, %c0_133] : memref<8x8x256xf32, #tpu.memory_space<vmem>>, vector<8x8x128xf32>
    tpu.vector_store %arg17[%c0_131, %c0_132, %c0_133], %456 {strides = array<i32>} : memref<8x8x256xf32, #tpu.memory_space<vmem>>, vector<8x8x128xf32>,
    %c0_134 = arith.constant 0 : index
    %c0_135 = arith.constant 0 : index
    %458 = vector.load %arg9[%c0_134, %c0_135] : memref<1x128xf32, #tpu.memory_space<vmem>>, vector<1x128xf32>
    %459 = vector.broadcast %458 : vector<1x128xf32> to vector<8x128xf32>
    %460 = arith.addf %452, %459 : vector<8x128xf32>
    %461 = vector.extract_strided_slice %460 {offsets = [0, 0], sizes = [8, 96], strides = [1, 1]} : vector<8x128xf32> to vector<8x96xf32>
    %462 = arith.negf %461 : vector<8x96xf32>
    %463 = math.exp %462 : vector<8x96xf32>
    %cst_136 = arith.constant 1.000000e+00 : f32
    %464 = vector.broadcast %cst_136 : f32 to vector<8x96xf32>
    %465 = arith.addf %464, %463 : vector<8x96xf32>
    %466 = arith.divf %464, %465 : vector<8x96xf32>
    %467 = vector.extract_strided_slice %460 {offsets = [0, 96], sizes = [8, 32], strides = [1, 1]} : vector<8x128xf32> to vector<8x32xf32>
    %468 = math.tanh %467 : vector<8x32xf32>
    %469 = vector.extract_strided_slice %466 {offsets = [0, 32], sizes = [8, 32], strides = [1, 1]} : vector<8x96xf32> to vector<8x32xf32>
    %470 = arith.mulf %469, %0 : vector<8x32xf32>
    %471 = vector.extract_strided_slice %466 {offsets = [0, 0], sizes = [8, 32], strides = [1, 1]} : vector<8x96xf32> to vector<8x32xf32>
    %472 = arith.mulf %471, %468 : vector<8x32xf32>
    %473 = arith.addf %470, %472 : vector<8x32xf32>
    %474 = vector.extract_strided_slice %466 {offsets = [0, 64], sizes = [8, 32], strides = [1, 1]} : vector<8x96xf32> to vector<8x32xf32>
    %475 = math.tanh %473 : vector<8x32xf32>
    %476 = arith.mulf %474, %475 : vector<8x32xf32>
    %c0_137 = arith.constant 0 : index
    %c0_138 = arith.constant 0 : index
    %477 = vector.load %arg7[%c0_137, %c0_138] : memref<32x128xf32, #tpu.memory_space<vmem>>, vector<32x128xf32>
    %c0_i32_139 = arith.constant 0 : i32
    %478 = arith.index_cast %c0_i32_139 : i32 to index
    %c0_140 = arith.constant 0 : index
    %c0_141 = arith.constant 0 : index
    %479 = vector.load %arg17[%478, %c0_140, %c0_141] : memref<8x8x256xf32, #tpu.memory_space<vmem>>, vector<1x8x128xf32>
    %480 = vector.shape_cast %479 : vector<1x8x128xf32> to vector<8x128xf32>
    %cst_142 = arith.constant dense<0.000000e+00> : vector<8x128xf32>
    %481 = tpu.matmul %0, %477, %cst_142 {dimension_numbers = #tpu.dot_dimension_numbers<[1], [0], [0], [1], [0, 0, 1, 1], [], []>} : vector<8x32xf32>, vector<32x128xf32>, vector<8x128xf32> -> vector<8x128xf32>
    %482 = arith.addf %480, %481 : vector<8x128xf32>
    %483 = vector.extract_strided_slice %482 {offsets = [0, 0], sizes = [8, 96], strides = [1, 1]} : vector<8x128xf32> to vector<8x96xf32>
    %484 = arith.negf %483 : vector<8x96xf32>
    %485 = math.exp %484 : vector<8x96xf32>
    %cst_143 = arith.constant 1.000000e+00 : f32
    %486 = vector.broadcast %cst_143 : f32 to vector<8x96xf32>
    %487 = arith.addf %486, %485 : vector<8x96xf32>
    %488 = arith.divf %486, %487 : vector<8x96xf32>
    %489 = vector.extract_strided_slice %482 {offsets = [0, 96], sizes = [8, 32], strides = [1, 1]} : vector<8x128xf32> to vector<8x32xf32>
    %490 = math.tanh %489 : vector<8x32xf32>
    %491 = vector.extract_strided_slice %488 {offsets = [0, 32], sizes = [8, 32], strides = [1, 1]} : vector<8x96xf32> to vector<8x32xf32>
    %492 = arith.mulf %491, %0 : vector<8x32xf32>
    %493 = vector.extract_strided_slice %488 {offsets = [0, 0], sizes = [8, 32], strides = [1, 1]} : vector<8x96xf32> to vector<8x32xf32>
    %494 = arith.mulf %493, %490 : vector<8x32xf32>
    %495 = arith.addf %492, %494 : vector<8x32xf32>
    %496 = vector.extract_strided_slice %488 {offsets = [0, 64], sizes = [8, 32], strides = [1, 1]} : vector<8x96xf32> to vector<8x32xf32>
    %497 = math.tanh %495 : vector<8x32xf32>
    %498 = arith.mulf %496, %497 : vector<8x32xf32>
    %c1_i32_144 = arith.constant 1 : i32
    %499 = arith.index_cast %c1_i32_144 : i32 to index
    %c0_145 = arith.constant 0 : index
    %c0_146 = arith.constant 0 : index
    %500 = vector.load %arg17[%499, %c0_145, %c0_146] : memref<8x8x256xf32, #tpu.memory_space<vmem>>, vector<1x8x128xf32>
    %501 = vector.shape_cast %500 : vector<1x8x128xf32> to vector<8x128xf32>
    %cst_147 = arith.constant dense<0.000000e+00> : vector<8x128xf32>
    %502 = tpu.matmul %498, %477, %cst_147 {dimension_numbers = #tpu.dot_dimension_numbers<[1], [0], [0], [1], [0, 0, 1, 1], [], []>} : vector<8x32xf32>, vector<32x128xf32>, vector<8x128xf32> -> vector<8x128xf32>
    %503 = arith.addf %501, %502 : vector<8x128xf32>
    %504 = vector.extract_strided_slice %503 {offsets = [0, 0], sizes = [8, 96], strides = [1, 1]} : vector<8x128xf32> to vector<8x96xf32>
    %505 = arith.negf %504 : vector<8x96xf32>
    %506 = math.exp %505 : vector<8x96xf32>
    %cst_148 = arith.constant 1.000000e+00 : f32
    %507 = vector.broadcast %cst_148 : f32 to vector<8x96xf32>
    %508 = arith.addf %507, %506 : vector<8x96xf32>
    %509 = arith.divf %507, %508 : vector<8x96xf32>
    %510 = vector.extract_strided_slice %503 {offsets = [0, 96], sizes = [8, 32], strides = [1, 1]} : vector<8x128xf32> to vector<8x32xf32>
    %511 = math.tanh %510 : vector<8x32xf32>
    %512 = vector.extract_strided_slice %509 {offsets = [0, 32], sizes = [8, 32], strides = [1, 1]} : vector<8x96xf32> to vector<8x32xf32>
    %513 = arith.mulf %512, %495 : vector<8x32xf32>
    %514 = vector.extract_strided_slice %509 {offsets = [0, 0], sizes = [8, 32], strides = [1, 1]} : vector<8x96xf32> to vector<8x32xf32>
    %515 = arith.mulf %514, %511 : vector<8x32xf32>
    %516 = arith.addf %513, %515 : vector<8x32xf32>
    %517 = vector.extract_strided_slice %509 {offsets = [0, 64], sizes = [8, 32], strides = [1, 1]} : vector<8x96xf32> to vector<8x32xf32>
    %518 = math.tanh %516 : vector<8x32xf32>
    %519 = arith.mulf %517, %518 : vector<8x32xf32>
    %c2_i32_149 = arith.constant 2 : i32
    %520 = arith.index_cast %c2_i32_149 : i32 to index
    %c0_150 = arith.constant 0 : index
    %c0_151 = arith.constant 0 : index
    %521 = vector.load %arg17[%520, %c0_150, %c0_151] : memref<8x8x256xf32, #tpu.memory_space<vmem>>, vector<1x8x128xf32>
    %522 = vector.shape_cast %521 : vector<1x8x128xf32> to vector<8x128xf32>
    %cst_152 = arith.constant dense<0.000000e+00> : vector<8x128xf32>
    %523 = tpu.matmul %519, %477, %cst_152 {dimension_numbers = #tpu.dot_dimension_numbers<[1], [0], [0], [1], [0, 0, 1, 1], [], []>} : vector<8x32xf32>, vector<32x128xf32>, vector<8x128xf32> -> vector<8x128xf32>
    %524 = arith.addf %522, %523 : vector<8x128xf32>
    %525 = vector.extract_strided_slice %524 {offsets = [0, 0], sizes = [8, 96], strides = [1, 1]} : vector<8x128xf32> to vector<8x96xf32>
    %526 = arith.negf %525 : vector<8x96xf32>
    %527 = math.exp %526 : vector<8x96xf32>
    %cst_153 = arith.constant 1.000000e+00 : f32
    %528 = vector.broadcast %cst_153 : f32 to vector<8x96xf32>
    %529 = arith.addf %528, %527 : vector<8x96xf32>
    %530 = arith.divf %528, %529 : vector<8x96xf32>
    %531 = vector.extract_strided_slice %524 {offsets = [0, 96], sizes = [8, 32], strides = [1, 1]} : vector<8x128xf32> to vector<8x32xf32>
    %532 = math.tanh %531 : vector<8x32xf32>
    %533 = vector.extract_strided_slice %530 {offsets = [0, 32], sizes = [8, 32], strides = [1, 1]} : vector<8x96xf32> to vector<8x32xf32>
    %534 = arith.mulf %533, %516 : vector<8x32xf32>
    %535 = vector.extract_strided_slice %530 {offsets = [0, 0], sizes = [8, 32], strides = [1, 1]} : vector<8x96xf32> to vector<8x32xf32>
    %536 = arith.mulf %535, %532 : vector<8x32xf32>
    %537 = arith.addf %534, %536 : vector<8x32xf32>
    %538 = vector.extract_strided_slice %530 {offsets = [0, 64], sizes = [8, 32], strides = [1, 1]} : vector<8x96xf32> to vector<8x32xf32>
    %539 = math.tanh %537 : vector<8x32xf32>
    %540 = arith.mulf %538, %539 : vector<8x32xf32>
    %c3_i32_154 = arith.constant 3 : i32
    %541 = arith.index_cast %c3_i32_154 : i32 to index
    %c0_155 = arith.constant 0 : index
    %c0_156 = arith.constant 0 : index
    %542 = vector.load %arg17[%541, %c0_155, %c0_156] : memref<8x8x256xf32, #tpu.memory_space<vmem>>, vector<1x8x128xf32>
    %543 = vector.shape_cast %542 : vector<1x8x128xf32> to vector<8x128xf32>
    %cst_157 = arith.constant dense<0.000000e+00> : vector<8x128xf32>
    %544 = tpu.matmul %540, %477, %cst_157 {dimension_numbers = #tpu.dot_dimension_numbers<[1], [0], [0], [1], [0, 0, 1, 1], [], []>} : vector<8x32xf32>, vector<32x128xf32>, vector<8x128xf32> -> vector<8x128xf32>
    %545 = arith.addf %543, %544 : vector<8x128xf32>
    %546 = vector.extract_strided_slice %545 {offsets = [0, 0], sizes = [8, 96], strides = [1, 1]} : vector<8x128xf32> to vector<8x96xf32>
    %547 = arith.negf %546 : vector<8x96xf32>
    %548 = math.exp %547 : vector<8x96xf32>
    %cst_158 = arith.constant 1.000000e+00 : f32
    %549 = vector.broadcast %cst_158 : f32 to vector<8x96xf32>
    %550 = arith.addf %549, %548 : vector<8x96xf32>
    %551 = arith.divf %549, %550 : vector<8x96xf32>
    %552 = vector.extract_strided_slice %545 {offsets = [0, 96], sizes = [8, 32], strides = [1, 1]} : vector<8x128xf32> to vector<8x32xf32>
    %553 = math.tanh %552 : vector<8x32xf32>
    %554 = vector.extract_strided_slice %551 {offsets = [0, 32], sizes = [8, 32], strides = [1, 1]} : vector<8x96xf32> to vector<8x32xf32>
    %555 = arith.mulf %554, %537 : vector<8x32xf32>
    %556 = vector.extract_strided_slice %551 {offsets = [0, 0], sizes = [8, 32], strides = [1, 1]} : vector<8x96xf32> to vector<8x32xf32>
    %557 = arith.mulf %556, %553 : vector<8x32xf32>
    %558 = arith.addf %555, %557 : vector<8x32xf32>
    %559 = vector.extract_strided_slice %551 {offsets = [0, 64], sizes = [8, 32], strides = [1, 1]} : vector<8x96xf32> to vector<8x32xf32>
    %560 = math.tanh %558 : vector<8x32xf32>
    %561 = arith.mulf %559, %560 : vector<8x32xf32>
    %c4_i32_159 = arith.constant 4 : i32
    %562 = arith.index_cast %c4_i32_159 : i32 to index
    %c0_160 = arith.constant 0 : index
    %c0_161 = arith.constant 0 : index
    %563 = vector.load %arg17[%562, %c0_160, %c0_161] : memref<8x8x256xf32, #tpu.memory_space<vmem>>, vector<1x8x128xf32>
    %564 = vector.shape_cast %563 : vector<1x8x128xf32> to vector<8x128xf32>
    %cst_162 = arith.constant dense<0.000000e+00> : vector<8x128xf32>
    %565 = tpu.matmul %561, %477, %cst_162 {dimension_numbers = #tpu.dot_dimension_numbers<[1], [0], [0], [1], [0, 0, 1, 1], [], []>} : vector<8x32xf32>, vector<32x128xf32>, vector<8x128xf32> -> vector<8x128xf32>
    %566 = arith.addf %564, %565 : vector<8x128xf32>
    %567 = vector.extract_strided_slice %566 {offsets = [0, 0], sizes = [8, 96], strides = [1, 1]} : vector<8x128xf32> to vector<8x96xf32>
    %568 = arith.negf %567 : vector<8x96xf32>
    %569 = math.exp %568 : vector<8x96xf32>
    %cst_163 = arith.constant 1.000000e+00 : f32
    %570 = vector.broadcast %cst_163 : f32 to vector<8x96xf32>
    %571 = arith.addf %570, %569 : vector<8x96xf32>
    %572 = arith.divf %570, %571 : vector<8x96xf32>
    %573 = vector.extract_strided_slice %566 {offsets = [0, 96], sizes = [8, 32], strides = [1, 1]} : vector<8x128xf32> to vector<8x32xf32>
    %574 = math.tanh %573 : vector<8x32xf32>
    %575 = vector.extract_strided_slice %572 {offsets = [0, 32], sizes = [8, 32], strides = [1, 1]} : vector<8x96xf32> to vector<8x32xf32>
    %576 = arith.mulf %575, %558 : vector<8x32xf32>
    %577 = vector.extract_strided_slice %572 {offsets = [0, 0], sizes = [8, 32], strides = [1, 1]} : vector<8x96xf32> to vector<8x32xf32>
    %578 = arith.mulf %577, %574 : vector<8x32xf32>
    %579 = arith.addf %576, %578 : vector<8x32xf32>
    %580 = vector.extract_strided_slice %572 {offsets = [0, 64], sizes = [8, 32], strides = [1, 1]} : vector<8x96xf32> to vector<8x32xf32>
    %581 = math.tanh %579 : vector<8x32xf32>
    %582 = arith.mulf %580, %581 : vector<8x32xf32>
    %c5_i32_164 = arith.constant 5 : i32
    %583 = arith.index_cast %c5_i32_164 : i32 to index
    %c0_165 = arith.constant 0 : index
    %c0_166 = arith.constant 0 : index
    %584 = vector.load %arg17[%583, %c0_165, %c0_166] : memref<8x8x256xf32, #tpu.memory_space<vmem>>, vector<1x8x128xf32>
    %585 = vector.shape_cast %584 : vector<1x8x128xf32> to vector<8x128xf32>
    %cst_167 = arith.constant dense<0.000000e+00> : vector<8x128xf32>
    %586 = tpu.matmul %582, %477, %cst_167 {dimension_numbers = #tpu.dot_dimension_numbers<[1], [0], [0], [1], [0, 0, 1, 1], [], []>} : vector<8x32xf32>, vector<32x128xf32>, vector<8x128xf32> -> vector<8x128xf32>
    %587 = arith.addf %585, %586 : vector<8x128xf32>
    %588 = vector.extract_strided_slice %587 {offsets = [0, 0], sizes = [8, 96], strides = [1, 1]} : vector<8x128xf32> to vector<8x96xf32>
    %589 = arith.negf %588 : vector<8x96xf32>
    %590 = math.exp %589 : vector<8x96xf32>
    %cst_168 = arith.constant 1.000000e+00 : f32
    %591 = vector.broadcast %cst_168 : f32 to vector<8x96xf32>
    %592 = arith.addf %591, %590 : vector<8x96xf32>
    %593 = arith.divf %591, %592 : vector<8x96xf32>
    %594 = vector.extract_strided_slice %587 {offsets = [0, 96], sizes = [8, 32], strides = [1, 1]} : vector<8x128xf32> to vector<8x32xf32>
    %595 = math.tanh %594 : vector<8x32xf32>
    %596 = vector.extract_strided_slice %593 {offsets = [0, 32], sizes = [8, 32], strides = [1, 1]} : vector<8x96xf32> to vector<8x32xf32>
    %597 = arith.mulf %596, %579 : vector<8x32xf32>
    %598 = vector.extract_strided_slice %593 {offsets = [0, 0], sizes = [8, 32], strides = [1, 1]} : vector<8x96xf32> to vector<8x32xf32>
    %599 = arith.mulf %598, %595 : vector<8x32xf32>
    %600 = arith.addf %597, %599 : vector<8x32xf32>
    %601 = vector.extract_strided_slice %593 {offsets = [0, 64], sizes = [8, 32], strides = [1, 1]} : vector<8x96xf32> to vector<8x32xf32>
    %602 = math.tanh %600 : vector<8x32xf32>
    %603 = arith.mulf %601, %602 : vector<8x32xf32>
    %c6_i32_169 = arith.constant 6 : i32
    %604 = arith.index_cast %c6_i32_169 : i32 to index
    %c0_170 = arith.constant 0 : index
    %c0_171 = arith.constant 0 : index
    %605 = vector.load %arg17[%604, %c0_170, %c0_171] : memref<8x8x256xf32, #tpu.memory_space<vmem>>, vector<1x8x128xf32>
    %606 = vector.shape_cast %605 : vector<1x8x128xf32> to vector<8x128xf32>
    %cst_172 = arith.constant dense<0.000000e+00> : vector<8x128xf32>
    %607 = tpu.matmul %603, %477, %cst_172 {dimension_numbers = #tpu.dot_dimension_numbers<[1], [0], [0], [1], [0, 0, 1, 1], [], []>} : vector<8x32xf32>, vector<32x128xf32>, vector<8x128xf32> -> vector<8x128xf32>
    %608 = arith.addf %606, %607 : vector<8x128xf32>
    %609 = vector.extract_strided_slice %608 {offsets = [0, 0], sizes = [8, 96], strides = [1, 1]} : vector<8x128xf32> to vector<8x96xf32>
    %610 = arith.negf %609 : vector<8x96xf32>
    %611 = math.exp %610 : vector<8x96xf32>
    %cst_173 = arith.constant 1.000000e+00 : f32
    %612 = vector.broadcast %cst_173 : f32 to vector<8x96xf32>
    %613 = arith.addf %612, %611 : vector<8x96xf32>
    %614 = arith.divf %612, %613 : vector<8x96xf32>
    %615 = vector.extract_strided_slice %608 {offsets = [0, 96], sizes = [8, 32], strides = [1, 1]} : vector<8x128xf32> to vector<8x32xf32>
    %616 = math.tanh %615 : vector<8x32xf32>
    %617 = vector.extract_strided_slice %614 {offsets = [0, 32], sizes = [8, 32], strides = [1, 1]} : vector<8x96xf32> to vector<8x32xf32>
    %618 = arith.mulf %617, %600 : vector<8x32xf32>
    %619 = vector.extract_strided_slice %614 {offsets = [0, 0], sizes = [8, 32], strides = [1, 1]} : vector<8x96xf32> to vector<8x32xf32>
    %620 = arith.mulf %619, %616 : vector<8x32xf32>
    %621 = arith.addf %618, %620 : vector<8x32xf32>
    %622 = vector.extract_strided_slice %614 {offsets = [0, 64], sizes = [8, 32], strides = [1, 1]} : vector<8x96xf32> to vector<8x32xf32>
    %623 = math.tanh %621 : vector<8x32xf32>
    %624 = arith.mulf %622, %623 : vector<8x32xf32>
    %c7_i32_174 = arith.constant 7 : i32
    %625 = arith.index_cast %c7_i32_174 : i32 to index
    %c0_175 = arith.constant 0 : index
    %c0_176 = arith.constant 0 : index
    %626 = vector.load %arg17[%625, %c0_175, %c0_176] : memref<8x8x256xf32, #tpu.memory_space<vmem>>, vector<1x8x128xf32>
    %627 = vector.shape_cast %626 : vector<1x8x128xf32> to vector<8x128xf32>
    %cst_177 = arith.constant dense<0.000000e+00> : vector<8x128xf32>
    %628 = tpu.matmul %624, %477, %cst_177 {dimension_numbers = #tpu.dot_dimension_numbers<[1], [0], [0], [1], [0, 0, 1, 1], [], []>} : vector<8x32xf32>, vector<32x128xf32>, vector<8x128xf32> -> vector<8x128xf32>
    %629 = arith.addf %627, %628 : vector<8x128xf32>
    %630 = vector.extract_strided_slice %629 {offsets = [0, 0], sizes = [8, 96], strides = [1, 1]} : vector<8x128xf32> to vector<8x96xf32>
    %631 = arith.negf %630 : vector<8x96xf32>
    %632 = math.exp %631 : vector<8x96xf32>
    %cst_178 = arith.constant 1.000000e+00 : f32
    %633 = vector.broadcast %cst_178 : f32 to vector<8x96xf32>
    %634 = arith.addf %633, %632 : vector<8x96xf32>
    %635 = arith.divf %633, %634 : vector<8x96xf32>
    %636 = vector.extract_strided_slice %629 {offsets = [0, 96], sizes = [8, 32], strides = [1, 1]} : vector<8x128xf32> to vector<8x32xf32>
    %637 = math.tanh %636 : vector<8x32xf32>
    %638 = vector.extract_strided_slice %635 {offsets = [0, 32], sizes = [8, 32], strides = [1, 1]} : vector<8x96xf32> to vector<8x32xf32>
    %639 = arith.mulf %638, %621 : vector<8x32xf32>
    %640 = vector.extract_strided_slice %635 {offsets = [0, 0], sizes = [8, 32], strides = [1, 1]} : vector<8x96xf32> to vector<8x32xf32>
    %641 = arith.mulf %640, %637 : vector<8x32xf32>
    %642 = arith.addf %639, %641 : vector<8x32xf32>
    %643 = vector.extract_strided_slice %635 {offsets = [0, 64], sizes = [8, 32], strides = [1, 1]} : vector<8x96xf32> to vector<8x32xf32>
    %644 = math.tanh %642 : vector<8x32xf32>
    %645 = arith.mulf %643, %644 : vector<8x32xf32>
    %c8_i32_179 = arith.constant 8 : i32
    %646 = tpu.concatenate %645, %476 in 1 : vector<8x32xf32>, vector<8x32xf32> -> vector<8x64xf32>
    %cst_180 = arith.constant dense<0.000000e+00> : vector<8xf32>
    %647 = vector.multi_reduction <add>, %646, %cst_180 [1] : vector<8x64xf32> to vector<8xf32>
    %648 = vector.shape_cast %647 : vector<8xf32> to vector<8x1xf32>
    %cst_181 = arith.constant 6.400000e+01 : f32
    %649 = vector.broadcast %cst_181 : f32 to vector<8x1xf32>
    %650 = arith.divf %648, %649 : vector<8x1xf32>
    %651 = vector.broadcast %650 : vector<8x1xf32> to vector<8x64xf32>
    %652 = arith.subf %646, %651 : vector<8x64xf32>
    %653 = arith.mulf %652, %652 : vector<8x64xf32>
    %cst_182 = arith.constant dense<0.000000e+00> : vector<8xf32>
    %654 = vector.multi_reduction <add>, %653, %cst_182 [1] : vector<8x64xf32> to vector<8xf32>
    %655 = vector.shape_cast %654 : vector<8xf32> to vector<8x1xf32>
    %cst_183 = arith.constant 6.400000e+01 : f32
    %656 = vector.broadcast %cst_183 : f32 to vector<8x1xf32>
    %657 = arith.divf %655, %656 : vector<8x1xf32>
    %658 = vector.broadcast %650 : vector<8x1xf32> to vector<8x64xf32>
    %659 = arith.subf %646, %658 : vector<8x64xf32>
    %cst_184 = arith.constant 9.99999974E-6 : f32
    %660 = vector.broadcast %cst_184 : f32 to vector<8x1xf32>
    %661 = arith.addf %657, %660 : vector<8x1xf32>
    %662 = math.rsqrt %661 : vector<8x1xf32>
    %663 = vector.broadcast %662 : vector<8x1xf32> to vector<8x64xf32>
    %664 = arith.mulf %659, %663 : vector<8x64xf32>
    %c0_185 = arith.constant 0 : index
    %c0_186 = arith.constant 0 : index
    %665 = vector.load %arg10[%c0_185, %c0_186] : memref<1x64xf32, #tpu.memory_space<vmem>>, vector<1x64xf32>
    %666 = vector.broadcast %665 : vector<1x64xf32> to vector<8x64xf32>
    %667 = arith.mulf %664, %666 : vector<8x64xf32>
    %c0_187 = arith.constant 0 : index
    %c0_188 = arith.constant 0 : index
    %668 = vector.load %arg11[%c0_187, %c0_188] : memref<1x64xf32, #tpu.memory_space<vmem>>, vector<1x64xf32>
    %669 = vector.broadcast %668 : vector<1x64xf32> to vector<8x64xf32>
    %670 = arith.addf %667, %669 : vector<8x64xf32>
    %c0_189 = arith.constant 0 : index
    %c0_190 = arith.constant 0 : index
    %671 = vector.load %arg12[%c0_189, %c0_190] : memref<64x32xf32, #tpu.memory_space<vmem>>, vector<64x32xf32>
    %cst_191 = arith.constant dense<0.000000e+00> : vector<8x32xf32>
    %672 = tpu.matmul %670, %671, %cst_191 {dimension_numbers = #tpu.dot_dimension_numbers<[1], [0], [0], [1], [0, 0, 1, 1], [], []>} : vector<8x64xf32>, vector<64x32xf32>, vector<8x32xf32> -> vector<8x32xf32>
    %c0_192 = arith.constant 0 : index
    %c0_193 = arith.constant 0 : index
    %673 = vector.load %arg13[%c0_192, %c0_193] : memref<1x32xf32, #tpu.memory_space<vmem>>, vector<1x32xf32>
    %674 = vector.broadcast %673 : vector<1x32xf32> to vector<8x32xf32>
    %675 = arith.addf %672, %674 : vector<8x32xf32>
    %cst_194 = arith.constant 0.000000e+00 : f32
    %676 = vector.broadcast %cst_194 : f32 to vector<8x32xf32>
    %677 = arith.maximumf %675, %676 : vector<8x32xf32>
    %c0_195 = arith.constant 0 : index
    %c0_196 = arith.constant 0 : index
    %678 = vector.load %arg14[%c0_195, %c0_196] : memref<32x1xf32, #tpu.memory_space<vmem>>, vector<32x1xf32>
    %cst_197 = arith.constant dense<0.000000e+00> : vector<8x1xf32>
    %679 = tpu.matmul %677, %678, %cst_197 {dimension_numbers = #tpu.dot_dimension_numbers<[1], [0], [0], [1], [0, 0, 1, 1], [], []>} : vector<8x32xf32>, vector<32x1xf32>, vector<8x1xf32> -> vector<8x1xf32>
    %c0_198 = arith.constant 0 : index
    %c0_199 = arith.constant 0 : index
    %680 = vector.load %arg15[%c0_198, %c0_199] : memref<1x1xf32, #tpu.memory_space<vmem>>, vector<1x1xf32>
    %681 = vector.broadcast %680 : vector<1x1xf32> to vector<8x1xf32>
    %682 = arith.addf %679, %681 : vector<8x1xf32>
    %c0_200 = arith.constant 0 : index
    %c0_201 = arith.constant 0 : index
    %683 = vector.load %arg16[%c0_200, %c0_201] : memref<8x1xf32, #tpu.memory_space<vmem>>, vector<8x1xf32>
    tpu.vector_store %arg16[%c0_200, %c0_201], %682 {strides = array<i32>} : memref<8x1xf32, #tpu.memory_space<vmem>>, vector<8x1xf32>,
    return
  }
  func.func @transform_0(%arg0: i32) -> (i32, i32, i32) {
    %c0_i32 = arith.constant 0 : i32
    %c0_i32_0 = arith.constant 0 : i32
    %c0_i32_1 = arith.constant 0 : i32
    return %c0_i32, %arg0, %c0_i32_0 : i32, i32, i32
  }
  func.func @transform_1(%arg0: i32) -> (i32, i32) {
    %c0_i32 = arith.constant 0 : i32
    %c0_i32_0 = arith.constant 0 : i32
    %c0_i32_1 = arith.constant 0 : i32
    return %c0_i32, %c0_i32_0 : i32, i32
  }
  func.func @transform_2(%arg0: i32) -> (i32, i32) {
    %c0_i32 = arith.constant 0 : i32
    %c0_i32_0 = arith.constant 0 : i32
    %c0_i32_1 = arith.constant 0 : i32
    return %c0_i32, %c0_i32_0 : i32, i32
  }
  func.func @transform_3(%arg0: i32) -> (i32, i32) {
    %c0_i32 = arith.constant 0 : i32
    %c0_i32_0 = arith.constant 0 : i32
    %c0_i32_1 = arith.constant 0 : i32
    return %c0_i32, %c0_i32_0 : i32, i32
  }
  func.func @transform_4(%arg0: i32) -> (i32, i32) {
    %c0_i32 = arith.constant 0 : i32
    %c0_i32_0 = arith.constant 0 : i32
    %c0_i32_1 = arith.constant 0 : i32
    return %c0_i32, %c0_i32_0 : i32, i32
  }
  func.func @transform_5(%arg0: i32) -> (i32, i32) {
    %c0_i32 = arith.constant 0 : i32
    %c0_i32_0 = arith.constant 0 : i32
    %c0_i32_1 = arith.constant 0 : i32
    return %c0_i32, %c0_i32_0 : i32, i32
  }
  func.func @transform_6(%arg0: i32) -> (i32, i32) {
    %c0_i32 = arith.constant 0 : i32
    %c0_i32_0 = arith.constant 0 : i32
    %c0_i32_1 = arith.constant 0 : i32
    return %c0_i32, %c0_i32_0 : i32, i32
  }
  func.func @transform_7(%arg0: i32) -> (i32, i32) {
    %c0_i32 = arith.constant 0 : i32
    %c0_i32_0 = arith.constant 0 : i32
    %c0_i32_1 = arith.constant 0 : i32
    return %c0_i32, %c0_i32_0 : i32, i32
  }
  func.func @transform_8(%arg0: i32) -> (i32, i32) {
    %c0_i32 = arith.constant 0 : i32
    %c0_i32_0 = arith.constant 0 : i32
    %c0_i32_1 = arith.constant 0 : i32
    return %c0_i32, %c0_i32_0 : i32, i32
  }
  func.func @transform_9(%arg0: i32) -> (i32, i32) {
    %c0_i32 = arith.constant 0 : i32
    %c0_i32_0 = arith.constant 0 : i32
    %c0_i32_1 = arith.constant 0 : i32
    return %c0_i32, %c0_i32_0 : i32, i32
  }
  func.func @transform_10(%arg0: i32) -> (i32, i32) {
    %c0_i32 = arith.constant 0 : i32
    %c0_i32_0 = arith.constant 0 : i32
    %c0_i32_1 = arith.constant 0 : i32
    return %c0_i32, %c0_i32_0 : i32, i32
  }
  func.func @transform_11(%arg0: i32) -> (i32, i32) {
    %c0_i32 = arith.constant 0 : i32
    %c0_i32_0 = arith.constant 0 : i32
    %c0_i32_1 = arith.constant 0 : i32
    return %c0_i32, %c0_i32_0 : i32, i32
  }
  func.func @transform_12(%arg0: i32) -> (i32, i32) {
    %c0_i32 = arith.constant 0 : i32
    %c0_i32_0 = arith.constant 0 : i32
    %c0_i32_1 = arith.constant 0 : i32
    return %c0_i32, %c0_i32_0 : i32, i32
  }
  func.func @transform_13(%arg0: i32) -> (i32, i32) {
    %c0_i32 = arith.constant 0 : i32
    %c0_i32_0 = arith.constant 0 : i32
    %c0_i32_1 = arith.constant 0 : i32
    return %c0_i32, %c0_i32_0 : i32, i32
  }
  func.func @transform_14(%arg0: i32) -> (i32, i32) {
    %c0_i32 = arith.constant 0 : i32
    %c0_i32_0 = arith.constant 0 : i32
    %c0_i32_1 = arith.constant 0 : i32
    return %c0_i32, %c0_i32_0 : i32, i32
  }
  func.func @transform_15(%arg0: i32) -> (i32, i32) {
    %c0_i32 = arith.constant 0 : i32
    %c0_i32_0 = arith.constant 0 : i32
    return %arg0, %c0_i32 : i32, i32
  }
}

module attributes {stable_mosaic.version = 11 : i64} {
  func.func @kernel(%arg0: i32, %arg1: memref<8x8x16xf32, #tpu.memory_space<vmem>>, %arg2: memref<16x256xf32, #tpu.memory_space<vmem>>, %arg3: memref<64x256xf32, #tpu.memory_space<vmem>>, %arg4: memref<1x256xf32, #tpu.memory_space<vmem>>, %arg5: memref<64x128xf32, #tpu.memory_space<vmem>>, %arg6: memref<64x128xf32, #tpu.memory_space<vmem>>, %arg7: memref<32x128xf32, #tpu.memory_space<vmem>>, %arg8: memref<1x128xf32, #tpu.memory_space<vmem>>, %arg9: memref<1x128xf32, #tpu.memory_space<vmem>>, %arg10: memref<1x64xf32, #tpu.memory_space<vmem>>, %arg11: memref<1x64xf32, #tpu.memory_space<vmem>>, %arg12: memref<64x32xf32, #tpu.memory_space<vmem>>, %arg13: memref<1x32xf32, #tpu.memory_space<vmem>>, %arg14: memref<32x1xf32, #tpu.memory_space<vmem>>, %arg15: memref<1x1xf32, #tpu.memory_space<vmem>>, %arg16: memref<8x1xf32, #tpu.memory_space<vmem>>, %arg17: memref<8x8x256xf32, #tpu.memory_space<vmem>>, %arg18: memref<8x8x32xf32, #tpu.memory_space<vmem>>, %arg19: memref<8x8x32xf32, #tpu.memory_space<vmem>>) attributes {dimension_semantics = [#tpu.dimension_semantics<parallel>], iteration_bounds = array<i64: 1>, scalar_prefetch = 0 : i64, scratch_operands = 3 : i64, tpu.core_type = #tpu.core_type<tc>, window_params = [{transform_indices = @transform_0, window_bounds = array<i64: 8, 8, 16>}, {pipeline_mode = #tpu.pipeline_mode<synchronous>, transform_indices = @transform_1, window_bounds = array<i64: 16, 256>}, {pipeline_mode = #tpu.pipeline_mode<synchronous>, transform_indices = @transform_2, window_bounds = array<i64: 64, 256>}, {pipeline_mode = #tpu.pipeline_mode<synchronous>, transform_indices = @transform_3, window_bounds = array<i64: 1, 256>}, {pipeline_mode = #tpu.pipeline_mode<synchronous>, transform_indices = @transform_4, window_bounds = array<i64: 64, 128>}, {pipeline_mode = #tpu.pipeline_mode<synchronous>, transform_indices = @transform_5, window_bounds = array<i64: 64, 128>}, {pipeline_mode = #tpu.pipeline_mode<synchronous>, transform_indices = @transform_6, window_bounds = array<i64: 32, 128>}, {pipeline_mode = #tpu.pipeline_mode<synchronous>, transform_indices = @transform_7, window_bounds = array<i64: 1, 128>}, {pipeline_mode = #tpu.pipeline_mode<synchronous>, transform_indices = @transform_8, window_bounds = array<i64: 1, 128>}, {pipeline_mode = #tpu.pipeline_mode<synchronous>, transform_indices = @transform_9, window_bounds = array<i64: 1, 64>}, {pipeline_mode = #tpu.pipeline_mode<synchronous>, transform_indices = @transform_10, window_bounds = array<i64: 1, 64>}, {pipeline_mode = #tpu.pipeline_mode<synchronous>, transform_indices = @transform_11, window_bounds = array<i64: 64, 32>}, {pipeline_mode = #tpu.pipeline_mode<synchronous>, transform_indices = @transform_12, window_bounds = array<i64: 1, 32>}, {pipeline_mode = #tpu.pipeline_mode<synchronous>, transform_indices = @transform_13, window_bounds = array<i64: 32, 1>}, {pipeline_mode = #tpu.pipeline_mode<synchronous>, transform_indices = @transform_14, window_bounds = array<i64: 1, 1>}, {transform_indices = @transform_15, window_bounds = array<i64: 8, 1>}]} {
    %cst = arith.constant 0.000000e+00 : f32
    %0 = vector.broadcast %cst : f32 to vector<8x32xf32>
    %c0 = arith.constant 0 : index
    %c0_0 = arith.constant 0 : index
    %c0_1 = arith.constant 0 : index
    %1 = vector.load %arg1[%c0, %c0_0, %c0_1] : memref<8x8x16xf32, #tpu.memory_space<vmem>>, vector<8x8x16xf32>
    %2 = vector.shape_cast %1 : vector<8x8x16xf32> to vector<64x16xf32>
    %c0_2 = arith.constant 0 : index
    %c0_3 = arith.constant 0 : index
    %3 = vector.load %arg2[%c0_2, %c0_3] : memref<16x256xf32, #tpu.memory_space<vmem>>, vector<16x256xf32>
    %cst_4 = arith.constant dense<0.000000e+00> : vector<64x256xf32>
    %4 = tpu.matmul %2, %3, %cst_4 {dimension_numbers = #tpu.dot_dimension_numbers<[1], [0], [0], [1], [0, 0, 1, 1], [], []>} : vector<64x16xf32>, vector<16x256xf32>, vector<64x256xf32> -> vector<64x256xf32>
    %c0_5 = arith.constant 0 : index
    %c0_6 = arith.constant 0 : index
    %5 = vector.load %arg4[%c0_5, %c0_6] : memref<1x256xf32, #tpu.memory_space<vmem>>, vector<1x256xf32>
    %6 = vector.broadcast %5 : vector<1x256xf32> to vector<64x256xf32>
    %7 = arith.addf %4, %6 : vector<64x256xf32>
    %8 = vector.shape_cast %7 : vector<64x256xf32> to vector<8x8x256xf32>
    %c0_7 = arith.constant 0 : index
    %c0_8 = arith.constant 0 : index
    %c0_9 = arith.constant 0 : index
    %9 = vector.load %arg17[%c0_7, %c0_8, %c0_9] : memref<8x8x256xf32, #tpu.memory_space<vmem>>, vector<8x8x256xf32>
    tpu.vector_store %arg17[%c0_7, %c0_8, %c0_9], %8 {strides = array<i32>} : memref<8x8x256xf32, #tpu.memory_space<vmem>>, vector<8x8x256xf32>,
    %c0_10 = arith.constant 0 : index
    %c0_11 = arith.constant 0 : index
    %10 = vector.load %arg3[%c0_10, %c0_11] : memref<64x256xf32, #tpu.memory_space<vmem>>, vector<64x256xf32>
    %c0_i32 = arith.constant 0 : i32
    %c7_i32 = arith.constant 7 : i32
    %11 = arith.subi %c7_i32, %c0_i32 : i32
    %12 = tpu.concatenate %0, %0 in 1 : vector<8x32xf32>, vector<8x32xf32> -> vector<8x64xf32>
    %cst_12 = arith.constant dense<0.000000e+00> : vector<8x256xf32>
    %13 = tpu.matmul %12, %10, %cst_12 {dimension_numbers = #tpu.dot_dimension_numbers<[1], [0], [0], [1], [0, 0, 1, 1], [], []>} : vector<8x64xf32>, vector<64x256xf32>, vector<8x256xf32> -> vector<8x256xf32>
    %14 = vector.extract_strided_slice %13 {offsets = [0, 0], sizes = [8, 128], strides = [1, 1]} : vector<8x256xf32> to vector<8x128xf32>
    %15 = vector.extract_strided_slice %13 {offsets = [0, 128], sizes = [8, 128], strides = [1, 1]} : vector<8x256xf32> to vector<8x128xf32>
    %16 = arith.index_cast %c0_i32 : i32 to index
    %c0_13 = arith.constant 0 : index
    %c0_14 = arith.constant 0 : index
    %17 = vector.load %arg17[%16, %c0_13, %c0_14] : memref<8x8x256xf32, #tpu.memory_space<vmem>>, vector<1x8x128xf32>
    %18 = vector.shape_cast %17 : vector<1x8x128xf32> to vector<8x128xf32>
    %19 = arith.addf %18, %14 : vector<8x128xf32>
    %20 = vector.extract_strided_slice %19 {offsets = [0, 0], sizes = [8, 96], strides = [1, 1]} : vector<8x128xf32> to vector<8x96xf32>
    %21 = arith.negf %20 : vector<8x96xf32>
    %22 = math.exp %21 : vector<8x96xf32>
    %cst_15 = arith.constant 1.000000e+00 : f32
    %23 = vector.broadcast %cst_15 : f32 to vector<8x96xf32>
    %24 = arith.addf %23, %22 : vector<8x96xf32>
    %25 = arith.divf %23, %24 : vector<8x96xf32>
    %26 = vector.extract_strided_slice %19 {offsets = [0, 96], sizes = [8, 32], strides = [1, 1]} : vector<8x128xf32> to vector<8x32xf32>
    %27 = math.tanh %26 : vector<8x32xf32>
    %28 = vector.extract_strided_slice %25 {offsets = [0, 32], sizes = [8, 32], strides = [1, 1]} : vector<8x96xf32> to vector<8x32xf32>
    %29 = arith.mulf %28, %0 : vector<8x32xf32>
    %30 = vector.extract_strided_slice %25 {offsets = [0, 0], sizes = [8, 32], strides = [1, 1]} : vector<8x96xf32> to vector<8x32xf32>
    %31 = arith.mulf %30, %27 : vector<8x32xf32>
    %32 = arith.addf %29, %31 : vector<8x32xf32>
    %33 = vector.extract_strided_slice %25 {offsets = [0, 64], sizes = [8, 32], strides = [1, 1]} : vector<8x96xf32> to vector<8x32xf32>
    %34 = math.tanh %32 : vector<8x32xf32>
    %35 = arith.mulf %33, %34 : vector<8x32xf32>
    %36 = arith.index_cast %11 : i32 to index
    %c0_16 = arith.constant 0 : index
    %c128 = arith.constant 128 : index
    %37 = vector.load %arg17[%36, %c0_16, %c128] : memref<8x8x256xf32, #tpu.memory_space<vmem>>, vector<1x8x128xf32>
    %38 = vector.shape_cast %37 : vector<1x8x128xf32> to vector<8x128xf32>
    %39 = arith.addf %38, %15 : vector<8x128xf32>
    %40 = vector.extract_strided_slice %39 {offsets = [0, 0], sizes = [8, 96], strides = [1, 1]} : vector<8x128xf32> to vector<8x96xf32>
    %41 = arith.negf %40 : vector<8x96xf32>
    %42 = math.exp %41 : vector<8x96xf32>
    %cst_17 = arith.constant 1.000000e+00 : f32
    %43 = vector.broadcast %cst_17 : f32 to vector<8x96xf32>
    %44 = arith.addf %43, %42 : vector<8x96xf32>
    %45 = arith.divf %43, %44 : vector<8x96xf32>
    %46 = vector.extract_strided_slice %39 {offsets = [0, 96], sizes = [8, 32], strides = [1, 1]} : vector<8x128xf32> to vector<8x32xf32>
    %47 = math.tanh %46 : vector<8x32xf32>
    %48 = vector.extract_strided_slice %45 {offsets = [0, 32], sizes = [8, 32], strides = [1, 1]} : vector<8x96xf32> to vector<8x32xf32>
    %49 = arith.mulf %48, %0 : vector<8x32xf32>
    %50 = vector.extract_strided_slice %45 {offsets = [0, 0], sizes = [8, 32], strides = [1, 1]} : vector<8x96xf32> to vector<8x32xf32>
    %51 = arith.mulf %50, %47 : vector<8x32xf32>
    %52 = arith.addf %49, %51 : vector<8x32xf32>
    %53 = vector.extract_strided_slice %45 {offsets = [0, 64], sizes = [8, 32], strides = [1, 1]} : vector<8x96xf32> to vector<8x32xf32>
    %54 = math.tanh %52 : vector<8x32xf32>
    %55 = arith.mulf %53, %54 : vector<8x32xf32>
    %56 = arith.index_cast %c0_i32 : i32 to index
    %c0_18 = arith.constant 0 : index
    %c0_19 = arith.constant 0 : index
    %57 = vector.load %arg18[%56, %c0_18, %c0_19] : memref<8x8x32xf32, #tpu.memory_space<vmem>>, vector<1x8x32xf32>
    %58 = vector.shape_cast %57 : vector<1x8x32xf32> to vector<8x32xf32>
    %59 = vector.shape_cast %35 : vector<8x32xf32> to vector<1x8x32xf32>
    tpu.vector_store %arg18[%56, %c0_18, %c0_19], %59 {strides = array<i32>} : memref<8x8x32xf32, #tpu.memory_space<vmem>>, vector<1x8x32xf32>,
    %60 = arith.index_cast %11 : i32 to index
    %c0_20 = arith.constant 0 : index
    %c0_21 = arith.constant 0 : index
    %61 = vector.load %arg19[%60, %c0_20, %c0_21] : memref<8x8x32xf32, #tpu.memory_space<vmem>>, vector<1x8x32xf32>
    %62 = vector.shape_cast %61 : vector<1x8x32xf32> to vector<8x32xf32>
    %63 = vector.shape_cast %55 : vector<8x32xf32> to vector<1x8x32xf32>
    tpu.vector_store %arg19[%60, %c0_20, %c0_21], %63 {strides = array<i32>} : memref<8x8x32xf32, #tpu.memory_space<vmem>>, vector<1x8x32xf32>,
    %c1_i32 = arith.constant 1 : i32
    %c7_i32_22 = arith.constant 7 : i32
    %64 = arith.subi %c7_i32_22, %c1_i32 : i32
    %65 = tpu.concatenate %35, %55 in 1 : vector<8x32xf32>, vector<8x32xf32> -> vector<8x64xf32>
    %cst_23 = arith.constant dense<0.000000e+00> : vector<8x256xf32>
    %66 = tpu.matmul %65, %10, %cst_23 {dimension_numbers = #tpu.dot_dimension_numbers<[1], [0], [0], [1], [0, 0, 1, 1], [], []>} : vector<8x64xf32>, vector<64x256xf32>, vector<8x256xf32> -> vector<8x256xf32>
    %67 = vector.extract_strided_slice %66 {offsets = [0, 0], sizes = [8, 128], strides = [1, 1]} : vector<8x256xf32> to vector<8x128xf32>
    %68 = vector.extract_strided_slice %66 {offsets = [0, 128], sizes = [8, 128], strides = [1, 1]} : vector<8x256xf32> to vector<8x128xf32>
    %69 = arith.index_cast %c1_i32 : i32 to index
    %c0_24 = arith.constant 0 : index
    %c0_25 = arith.constant 0 : index
    %70 = vector.load %arg17[%69, %c0_24, %c0_25] : memref<8x8x256xf32, #tpu.memory_space<vmem>>, vector<1x8x128xf32>
    %71 = vector.shape_cast %70 : vector<1x8x128xf32> to vector<8x128xf32>
    %72 = arith.addf %71, %67 : vector<8x128xf32>
    %73 = vector.extract_strided_slice %72 {offsets = [0, 0], sizes = [8, 96], strides = [1, 1]} : vector<8x128xf32> to vector<8x96xf32>
    %74 = arith.negf %73 : vector<8x96xf32>
    %75 = math.exp %74 : vector<8x96xf32>
    %cst_26 = arith.constant 1.000000e+00 : f32
    %76 = vector.broadcast %cst_26 : f32 to vector<8x96xf32>
    %77 = arith.addf %76, %75 : vector<8x96xf32>
    %78 = arith.divf %76, %77 : vector<8x96xf32>
    %79 = vector.extract_strided_slice %72 {offsets = [0, 96], sizes = [8, 32], strides = [1, 1]} : vector<8x128xf32> to vector<8x32xf32>
    %80 = math.tanh %79 : vector<8x32xf32>
    %81 = vector.extract_strided_slice %78 {offsets = [0, 32], sizes = [8, 32], strides = [1, 1]} : vector<8x96xf32> to vector<8x32xf32>
    %82 = arith.mulf %81, %32 : vector<8x32xf32>
    %83 = vector.extract_strided_slice %78 {offsets = [0, 0], sizes = [8, 32], strides = [1, 1]} : vector<8x96xf32> to vector<8x32xf32>
    %84 = arith.mulf %83, %80 : vector<8x32xf32>
    %85 = arith.addf %82, %84 : vector<8x32xf32>
    %86 = vector.extract_strided_slice %78 {offsets = [0, 64], sizes = [8, 32], strides = [1, 1]} : vector<8x96xf32> to vector<8x32xf32>
    %87 = math.tanh %85 : vector<8x32xf32>
    %88 = arith.mulf %86, %87 : vector<8x32xf32>
    %89 = arith.index_cast %64 : i32 to index
    %c0_27 = arith.constant 0 : index
    %c128_28 = arith.constant 128 : index
    %90 = vector.load %arg17[%89, %c0_27, %c128_28] : memref<8x8x256xf32, #tpu.memory_space<vmem>>, vector<1x8x128xf32>
    %91 = vector.shape_cast %90 : vector<1x8x128xf32> to vector<8x128xf32>
    %92 = arith.addf %91, %68 : vector<8x128xf32>
    %93 = vector.extract_strided_slice %92 {offsets = [0, 0], sizes = [8, 96], strides = [1, 1]} : vector<8x128xf32> to vector<8x96xf32>
    %94 = arith.negf %93 : vector<8x96xf32>
    %95 = math.exp %94 : vector<8x96xf32>
    %cst_29 = arith.constant 1.000000e+00 : f32
    %96 = vector.broadcast %cst_29 : f32 to vector<8x96xf32>
    %97 = arith.addf %96, %95 : vector<8x96xf32>
    %98 = arith.divf %96, %97 : vector<8x96xf32>
    %99 = vector.extract_strided_slice %92 {offsets = [0, 96], sizes = [8, 32], strides = [1, 1]} : vector<8x128xf32> to vector<8x32xf32>
    %100 = math.tanh %99 : vector<8x32xf32>
    %101 = vector.extract_strided_slice %98 {offsets = [0, 32], sizes = [8, 32], strides = [1, 1]} : vector<8x96xf32> to vector<8x32xf32>
    %102 = arith.mulf %101, %52 : vector<8x32xf32>
    %103 = vector.extract_strided_slice %98 {offsets = [0, 0], sizes = [8, 32], strides = [1, 1]} : vector<8x96xf32> to vector<8x32xf32>
    %104 = arith.mulf %103, %100 : vector<8x32xf32>
    %105 = arith.addf %102, %104 : vector<8x32xf32>
    %106 = vector.extract_strided_slice %98 {offsets = [0, 64], sizes = [8, 32], strides = [1, 1]} : vector<8x96xf32> to vector<8x32xf32>
    %107 = math.tanh %105 : vector<8x32xf32>
    %108 = arith.mulf %106, %107 : vector<8x32xf32>
    %109 = arith.index_cast %c1_i32 : i32 to index
    %c0_30 = arith.constant 0 : index
    %c0_31 = arith.constant 0 : index
    %110 = vector.load %arg18[%109, %c0_30, %c0_31] : memref<8x8x32xf32, #tpu.memory_space<vmem>>, vector<1x8x32xf32>
    %111 = vector.shape_cast %110 : vector<1x8x32xf32> to vector<8x32xf32>
    %112 = vector.shape_cast %88 : vector<8x32xf32> to vector<1x8x32xf32>
    tpu.vector_store %arg18[%109, %c0_30, %c0_31], %112 {strides = array<i32>} : memref<8x8x32xf32, #tpu.memory_space<vmem>>, vector<1x8x32xf32>,
    %113 = arith.index_cast %64 : i32 to index
    %c0_32 = arith.constant 0 : index
    %c0_33 = arith.constant 0 : index
    %114 = vector.load %arg19[%113, %c0_32, %c0_33] : memref<8x8x32xf32, #tpu.memory_space<vmem>>, vector<1x8x32xf32>
    %115 = vector.shape_cast %114 : vector<1x8x32xf32> to vector<8x32xf32>
    %116 = vector.shape_cast %108 : vector<8x32xf32> to vector<1x8x32xf32>
    tpu.vector_store %arg19[%113, %c0_32, %c0_33], %116 {strides = array<i32>} : memref<8x8x32xf32, #tpu.memory_space<vmem>>, vector<1x8x32xf32>,
    %c2_i32 = arith.constant 2 : i32
    %c7_i32_34 = arith.constant 7 : i32
    %117 = arith.subi %c7_i32_34, %c2_i32 : i32
    %118 = tpu.concatenate %88, %108 in 1 : vector<8x32xf32>, vector<8x32xf32> -> vector<8x64xf32>
    %cst_35 = arith.constant dense<0.000000e+00> : vector<8x256xf32>
    %119 = tpu.matmul %118, %10, %cst_35 {dimension_numbers = #tpu.dot_dimension_numbers<[1], [0], [0], [1], [0, 0, 1, 1], [], []>} : vector<8x64xf32>, vector<64x256xf32>, vector<8x256xf32> -> vector<8x256xf32>
    %120 = vector.extract_strided_slice %119 {offsets = [0, 0], sizes = [8, 128], strides = [1, 1]} : vector<8x256xf32> to vector<8x128xf32>
    %121 = vector.extract_strided_slice %119 {offsets = [0, 128], sizes = [8, 128], strides = [1, 1]} : vector<8x256xf32> to vector<8x128xf32>
    %122 = arith.index_cast %c2_i32 : i32 to index
    %c0_36 = arith.constant 0 : index
    %c0_37 = arith.constant 0 : index
    %123 = vector.load %arg17[%122, %c0_36, %c0_37] : memref<8x8x256xf32, #tpu.memory_space<vmem>>, vector<1x8x128xf32>
    %124 = vector.shape_cast %123 : vector<1x8x128xf32> to vector<8x128xf32>
    %125 = arith.addf %124, %120 : vector<8x128xf32>
    %126 = vector.extract_strided_slice %125 {offsets = [0, 0], sizes = [8, 96], strides = [1, 1]} : vector<8x128xf32> to vector<8x96xf32>
    %127 = arith.negf %126 : vector<8x96xf32>
    %128 = math.exp %127 : vector<8x96xf32>
    %cst_38 = arith.constant 1.000000e+00 : f32
    %129 = vector.broadcast %cst_38 : f32 to vector<8x96xf32>
    %130 = arith.addf %129, %128 : vector<8x96xf32>
    %131 = arith.divf %129, %130 : vector<8x96xf32>
    %132 = vector.extract_strided_slice %125 {offsets = [0, 96], sizes = [8, 32], strides = [1, 1]} : vector<8x128xf32> to vector<8x32xf32>
    %133 = math.tanh %132 : vector<8x32xf32>
    %134 = vector.extract_strided_slice %131 {offsets = [0, 32], sizes = [8, 32], strides = [1, 1]} : vector<8x96xf32> to vector<8x32xf32>
    %135 = arith.mulf %134, %85 : vector<8x32xf32>
    %136 = vector.extract_strided_slice %131 {offsets = [0, 0], sizes = [8, 32], strides = [1, 1]} : vector<8x96xf32> to vector<8x32xf32>
    %137 = arith.mulf %136, %133 : vector<8x32xf32>
    %138 = arith.addf %135, %137 : vector<8x32xf32>
    %139 = vector.extract_strided_slice %131 {offsets = [0, 64], sizes = [8, 32], strides = [1, 1]} : vector<8x96xf32> to vector<8x32xf32>
    %140 = math.tanh %138 : vector<8x32xf32>
    %141 = arith.mulf %139, %140 : vector<8x32xf32>
    %142 = arith.index_cast %117 : i32 to index
    %c0_39 = arith.constant 0 : index
    %c128_40 = arith.constant 128 : index
    %143 = vector.load %arg17[%142, %c0_39, %c128_40] : memref<8x8x256xf32, #tpu.memory_space<vmem>>, vector<1x8x128xf32>
    %144 = vector.shape_cast %143 : vector<1x8x128xf32> to vector<8x128xf32>
    %145 = arith.addf %144, %121 : vector<8x128xf32>
    %146 = vector.extract_strided_slice %145 {offsets = [0, 0], sizes = [8, 96], strides = [1, 1]} : vector<8x128xf32> to vector<8x96xf32>
    %147 = arith.negf %146 : vector<8x96xf32>
    %148 = math.exp %147 : vector<8x96xf32>
    %cst_41 = arith.constant 1.000000e+00 : f32
    %149 = vector.broadcast %cst_41 : f32 to vector<8x96xf32>
    %150 = arith.addf %149, %148 : vector<8x96xf32>
    %151 = arith.divf %149, %150 : vector<8x96xf32>
    %152 = vector.extract_strided_slice %145 {offsets = [0, 96], sizes = [8, 32], strides = [1, 1]} : vector<8x128xf32> to vector<8x32xf32>
    %153 = math.tanh %152 : vector<8x32xf32>
    %154 = vector.extract_strided_slice %151 {offsets = [0, 32], sizes = [8, 32], strides = [1, 1]} : vector<8x96xf32> to vector<8x32xf32>
    %155 = arith.mulf %154, %105 : vector<8x32xf32>
    %156 = vector.extract_strided_slice %151 {offsets = [0, 0], sizes = [8, 32], strides = [1, 1]} : vector<8x96xf32> to vector<8x32xf32>
    %157 = arith.mulf %156, %153 : vector<8x32xf32>
    %158 = arith.addf %155, %157 : vector<8x32xf32>
    %159 = vector.extract_strided_slice %151 {offsets = [0, 64], sizes = [8, 32], strides = [1, 1]} : vector<8x96xf32> to vector<8x32xf32>
    %160 = math.tanh %158 : vector<8x32xf32>
    %161 = arith.mulf %159, %160 : vector<8x32xf32>
    %162 = arith.index_cast %c2_i32 : i32 to index
    %c0_42 = arith.constant 0 : index
    %c0_43 = arith.constant 0 : index
    %163 = vector.load %arg18[%162, %c0_42, %c0_43] : memref<8x8x32xf32, #tpu.memory_space<vmem>>, vector<1x8x32xf32>
    %164 = vector.shape_cast %163 : vector<1x8x32xf32> to vector<8x32xf32>
    %165 = vector.shape_cast %141 : vector<8x32xf32> to vector<1x8x32xf32>
    tpu.vector_store %arg18[%162, %c0_42, %c0_43], %165 {strides = array<i32>} : memref<8x8x32xf32, #tpu.memory_space<vmem>>, vector<1x8x32xf32>,
    %166 = arith.index_cast %117 : i32 to index
    %c0_44 = arith.constant 0 : index
    %c0_45 = arith.constant 0 : index
    %167 = vector.load %arg19[%166, %c0_44, %c0_45] : memref<8x8x32xf32, #tpu.memory_space<vmem>>, vector<1x8x32xf32>
    %168 = vector.shape_cast %167 : vector<1x8x32xf32> to vector<8x32xf32>
    %169 = vector.shape_cast %161 : vector<8x32xf32> to vector<1x8x32xf32>
    tpu.vector_store %arg19[%166, %c0_44, %c0_45], %169 {strides = array<i32>} : memref<8x8x32xf32, #tpu.memory_space<vmem>>, vector<1x8x32xf32>,
    %c3_i32 = arith.constant 3 : i32
    %c7_i32_46 = arith.constant 7 : i32
    %170 = arith.subi %c7_i32_46, %c3_i32 : i32
    %171 = tpu.concatenate %141, %161 in 1 : vector<8x32xf32>, vector<8x32xf32> -> vector<8x64xf32>
    %cst_47 = arith.constant dense<0.000000e+00> : vector<8x256xf32>
    %172 = tpu.matmul %171, %10, %cst_47 {dimension_numbers = #tpu.dot_dimension_numbers<[1], [0], [0], [1], [0, 0, 1, 1], [], []>} : vector<8x64xf32>, vector<64x256xf32>, vector<8x256xf32> -> vector<8x256xf32>
    %173 = vector.extract_strided_slice %172 {offsets = [0, 0], sizes = [8, 128], strides = [1, 1]} : vector<8x256xf32> to vector<8x128xf32>
    %174 = vector.extract_strided_slice %172 {offsets = [0, 128], sizes = [8, 128], strides = [1, 1]} : vector<8x256xf32> to vector<8x128xf32>
    %175 = arith.index_cast %c3_i32 : i32 to index
    %c0_48 = arith.constant 0 : index
    %c0_49 = arith.constant 0 : index
    %176 = vector.load %arg17[%175, %c0_48, %c0_49] : memref<8x8x256xf32, #tpu.memory_space<vmem>>, vector<1x8x128xf32>
    %177 = vector.shape_cast %176 : vector<1x8x128xf32> to vector<8x128xf32>
    %178 = arith.addf %177, %173 : vector<8x128xf32>
    %179 = vector.extract_strided_slice %178 {offsets = [0, 0], sizes = [8, 96], strides = [1, 1]} : vector<8x128xf32> to vector<8x96xf32>
    %180 = arith.negf %179 : vector<8x96xf32>
    %181 = math.exp %180 : vector<8x96xf32>
    %cst_50 = arith.constant 1.000000e+00 : f32
    %182 = vector.broadcast %cst_50 : f32 to vector<8x96xf32>
    %183 = arith.addf %182, %181 : vector<8x96xf32>
    %184 = arith.divf %182, %183 : vector<8x96xf32>
    %185 = vector.extract_strided_slice %178 {offsets = [0, 96], sizes = [8, 32], strides = [1, 1]} : vector<8x128xf32> to vector<8x32xf32>
    %186 = math.tanh %185 : vector<8x32xf32>
    %187 = vector.extract_strided_slice %184 {offsets = [0, 32], sizes = [8, 32], strides = [1, 1]} : vector<8x96xf32> to vector<8x32xf32>
    %188 = arith.mulf %187, %138 : vector<8x32xf32>
    %189 = vector.extract_strided_slice %184 {offsets = [0, 0], sizes = [8, 32], strides = [1, 1]} : vector<8x96xf32> to vector<8x32xf32>
    %190 = arith.mulf %189, %186 : vector<8x32xf32>
    %191 = arith.addf %188, %190 : vector<8x32xf32>
    %192 = vector.extract_strided_slice %184 {offsets = [0, 64], sizes = [8, 32], strides = [1, 1]} : vector<8x96xf32> to vector<8x32xf32>
    %193 = math.tanh %191 : vector<8x32xf32>
    %194 = arith.mulf %192, %193 : vector<8x32xf32>
    %195 = arith.index_cast %170 : i32 to index
    %c0_51 = arith.constant 0 : index
    %c128_52 = arith.constant 128 : index
    %196 = vector.load %arg17[%195, %c0_51, %c128_52] : memref<8x8x256xf32, #tpu.memory_space<vmem>>, vector<1x8x128xf32>
    %197 = vector.shape_cast %196 : vector<1x8x128xf32> to vector<8x128xf32>
    %198 = arith.addf %197, %174 : vector<8x128xf32>
    %199 = vector.extract_strided_slice %198 {offsets = [0, 0], sizes = [8, 96], strides = [1, 1]} : vector<8x128xf32> to vector<8x96xf32>
    %200 = arith.negf %199 : vector<8x96xf32>
    %201 = math.exp %200 : vector<8x96xf32>
    %cst_53 = arith.constant 1.000000e+00 : f32
    %202 = vector.broadcast %cst_53 : f32 to vector<8x96xf32>
    %203 = arith.addf %202, %201 : vector<8x96xf32>
    %204 = arith.divf %202, %203 : vector<8x96xf32>
    %205 = vector.extract_strided_slice %198 {offsets = [0, 96], sizes = [8, 32], strides = [1, 1]} : vector<8x128xf32> to vector<8x32xf32>
    %206 = math.tanh %205 : vector<8x32xf32>
    %207 = vector.extract_strided_slice %204 {offsets = [0, 32], sizes = [8, 32], strides = [1, 1]} : vector<8x96xf32> to vector<8x32xf32>
    %208 = arith.mulf %207, %158 : vector<8x32xf32>
    %209 = vector.extract_strided_slice %204 {offsets = [0, 0], sizes = [8, 32], strides = [1, 1]} : vector<8x96xf32> to vector<8x32xf32>
    %210 = arith.mulf %209, %206 : vector<8x32xf32>
    %211 = arith.addf %208, %210 : vector<8x32xf32>
    %212 = vector.extract_strided_slice %204 {offsets = [0, 64], sizes = [8, 32], strides = [1, 1]} : vector<8x96xf32> to vector<8x32xf32>
    %213 = math.tanh %211 : vector<8x32xf32>
    %214 = arith.mulf %212, %213 : vector<8x32xf32>
    %215 = arith.index_cast %c3_i32 : i32 to index
    %c0_54 = arith.constant 0 : index
    %c0_55 = arith.constant 0 : index
    %216 = vector.load %arg18[%215, %c0_54, %c0_55] : memref<8x8x32xf32, #tpu.memory_space<vmem>>, vector<1x8x32xf32>
    %217 = vector.shape_cast %216 : vector<1x8x32xf32> to vector<8x32xf32>
    %218 = vector.shape_cast %194 : vector<8x32xf32> to vector<1x8x32xf32>
    tpu.vector_store %arg18[%215, %c0_54, %c0_55], %218 {strides = array<i32>} : memref<8x8x32xf32, #tpu.memory_space<vmem>>, vector<1x8x32xf32>,
    %219 = arith.index_cast %170 : i32 to index
    %c0_56 = arith.constant 0 : index
    %c0_57 = arith.constant 0 : index
    %220 = vector.load %arg19[%219, %c0_56, %c0_57] : memref<8x8x32xf32, #tpu.memory_space<vmem>>, vector<1x8x32xf32>
    %221 = vector.shape_cast %220 : vector<1x8x32xf32> to vector<8x32xf32>
    %222 = vector.shape_cast %214 : vector<8x32xf32> to vector<1x8x32xf32>
    tpu.vector_store %arg19[%219, %c0_56, %c0_57], %222 {strides = array<i32>} : memref<8x8x32xf32, #tpu.memory_space<vmem>>, vector<1x8x32xf32>,
    %c4_i32 = arith.constant 4 : i32
    %c7_i32_58 = arith.constant 7 : i32
    %223 = arith.subi %c7_i32_58, %c4_i32 : i32
    %224 = tpu.concatenate %194, %214 in 1 : vector<8x32xf32>, vector<8x32xf32> -> vector<8x64xf32>
    %cst_59 = arith.constant dense<0.000000e+00> : vector<8x256xf32>
    %225 = tpu.matmul %224, %10, %cst_59 {dimension_numbers = #tpu.dot_dimension_numbers<[1], [0], [0], [1], [0, 0, 1, 1], [], []>} : vector<8x64xf32>, vector<64x256xf32>, vector<8x256xf32> -> vector<8x256xf32>
    %226 = vector.extract_strided_slice %225 {offsets = [0, 0], sizes = [8, 128], strides = [1, 1]} : vector<8x256xf32> to vector<8x128xf32>
    %227 = vector.extract_strided_slice %225 {offsets = [0, 128], sizes = [8, 128], strides = [1, 1]} : vector<8x256xf32> to vector<8x128xf32>
    %228 = arith.index_cast %c4_i32 : i32 to index
    %c0_60 = arith.constant 0 : index
    %c0_61 = arith.constant 0 : index
    %229 = vector.load %arg17[%228, %c0_60, %c0_61] : memref<8x8x256xf32, #tpu.memory_space<vmem>>, vector<1x8x128xf32>
    %230 = vector.shape_cast %229 : vector<1x8x128xf32> to vector<8x128xf32>
    %231 = arith.addf %230, %226 : vector<8x128xf32>
    %232 = vector.extract_strided_slice %231 {offsets = [0, 0], sizes = [8, 96], strides = [1, 1]} : vector<8x128xf32> to vector<8x96xf32>
    %233 = arith.negf %232 : vector<8x96xf32>
    %234 = math.exp %233 : vector<8x96xf32>
    %cst_62 = arith.constant 1.000000e+00 : f32
    %235 = vector.broadcast %cst_62 : f32 to vector<8x96xf32>
    %236 = arith.addf %235, %234 : vector<8x96xf32>
    %237 = arith.divf %235, %236 : vector<8x96xf32>
    %238 = vector.extract_strided_slice %231 {offsets = [0, 96], sizes = [8, 32], strides = [1, 1]} : vector<8x128xf32> to vector<8x32xf32>
    %239 = math.tanh %238 : vector<8x32xf32>
    %240 = vector.extract_strided_slice %237 {offsets = [0, 32], sizes = [8, 32], strides = [1, 1]} : vector<8x96xf32> to vector<8x32xf32>
    %241 = arith.mulf %240, %191 : vector<8x32xf32>
    %242 = vector.extract_strided_slice %237 {offsets = [0, 0], sizes = [8, 32], strides = [1, 1]} : vector<8x96xf32> to vector<8x32xf32>
    %243 = arith.mulf %242, %239 : vector<8x32xf32>
    %244 = arith.addf %241, %243 : vector<8x32xf32>
    %245 = vector.extract_strided_slice %237 {offsets = [0, 64], sizes = [8, 32], strides = [1, 1]} : vector<8x96xf32> to vector<8x32xf32>
    %246 = math.tanh %244 : vector<8x32xf32>
    %247 = arith.mulf %245, %246 : vector<8x32xf32>
    %248 = arith.index_cast %223 : i32 to index
    %c0_63 = arith.constant 0 : index
    %c128_64 = arith.constant 128 : index
    %249 = vector.load %arg17[%248, %c0_63, %c128_64] : memref<8x8x256xf32, #tpu.memory_space<vmem>>, vector<1x8x128xf32>
    %250 = vector.shape_cast %249 : vector<1x8x128xf32> to vector<8x128xf32>
    %251 = arith.addf %250, %227 : vector<8x128xf32>
    %252 = vector.extract_strided_slice %251 {offsets = [0, 0], sizes = [8, 96], strides = [1, 1]} : vector<8x128xf32> to vector<8x96xf32>
    %253 = arith.negf %252 : vector<8x96xf32>
    %254 = math.exp %253 : vector<8x96xf32>
    %cst_65 = arith.constant 1.000000e+00 : f32
    %255 = vector.broadcast %cst_65 : f32 to vector<8x96xf32>
    %256 = arith.addf %255, %254 : vector<8x96xf32>
    %257 = arith.divf %255, %256 : vector<8x96xf32>
    %258 = vector.extract_strided_slice %251 {offsets = [0, 96], sizes = [8, 32], strides = [1, 1]} : vector<8x128xf32> to vector<8x32xf32>
    %259 = math.tanh %258 : vector<8x32xf32>
    %260 = vector.extract_strided_slice %257 {offsets = [0, 32], sizes = [8, 32], strides = [1, 1]} : vector<8x96xf32> to vector<8x32xf32>
    %261 = arith.mulf %260, %211 : vector<8x32xf32>
    %262 = vector.extract_strided_slice %257 {offsets = [0, 0], sizes = [8, 32], strides = [1, 1]} : vector<8x96xf32> to vector<8x32xf32>
    %263 = arith.mulf %262, %259 : vector<8x32xf32>
    %264 = arith.addf %261, %263 : vector<8x32xf32>
    %265 = vector.extract_strided_slice %257 {offsets = [0, 64], sizes = [8, 32], strides = [1, 1]} : vector<8x96xf32> to vector<8x32xf32>
    %266 = math.tanh %264 : vector<8x32xf32>
    %267 = arith.mulf %265, %266 : vector<8x32xf32>
    %268 = arith.index_cast %c4_i32 : i32 to index
    %c0_66 = arith.constant 0 : index
    %c0_67 = arith.constant 0 : index
    %269 = vector.load %arg18[%268, %c0_66, %c0_67] : memref<8x8x32xf32, #tpu.memory_space<vmem>>, vector<1x8x32xf32>
    %270 = vector.shape_cast %269 : vector<1x8x32xf32> to vector<8x32xf32>
    %271 = vector.shape_cast %247 : vector<8x32xf32> to vector<1x8x32xf32>
    tpu.vector_store %arg18[%268, %c0_66, %c0_67], %271 {strides = array<i32>} : memref<8x8x32xf32, #tpu.memory_space<vmem>>, vector<1x8x32xf32>,
    %272 = arith.index_cast %223 : i32 to index
    %c0_68 = arith.constant 0 : index
    %c0_69 = arith.constant 0 : index
    %273 = vector.load %arg19[%272, %c0_68, %c0_69] : memref<8x8x32xf32, #tpu.memory_space<vmem>>, vector<1x8x32xf32>
    %274 = vector.shape_cast %273 : vector<1x8x32xf32> to vector<8x32xf32>
    %275 = vector.shape_cast %267 : vector<8x32xf32> to vector<1x8x32xf32>
    tpu.vector_store %arg19[%272, %c0_68, %c0_69], %275 {strides = array<i32>} : memref<8x8x32xf32, #tpu.memory_space<vmem>>, vector<1x8x32xf32>,
    %c5_i32 = arith.constant 5 : i32
    %c7_i32_70 = arith.constant 7 : i32
    %276 = arith.subi %c7_i32_70, %c5_i32 : i32
    %277 = tpu.concatenate %247, %267 in 1 : vector<8x32xf32>, vector<8x32xf32> -> vector<8x64xf32>
    %cst_71 = arith.constant dense<0.000000e+00> : vector<8x256xf32>
    %278 = tpu.matmul %277, %10, %cst_71 {dimension_numbers = #tpu.dot_dimension_numbers<[1], [0], [0], [1], [0, 0, 1, 1], [], []>} : vector<8x64xf32>, vector<64x256xf32>, vector<8x256xf32> -> vector<8x256xf32>
    %279 = vector.extract_strided_slice %278 {offsets = [0, 0], sizes = [8, 128], strides = [1, 1]} : vector<8x256xf32> to vector<8x128xf32>
    %280 = vector.extract_strided_slice %278 {offsets = [0, 128], sizes = [8, 128], strides = [1, 1]} : vector<8x256xf32> to vector<8x128xf32>
    %281 = arith.index_cast %c5_i32 : i32 to index
    %c0_72 = arith.constant 0 : index
    %c0_73 = arith.constant 0 : index
    %282 = vector.load %arg17[%281, %c0_72, %c0_73] : memref<8x8x256xf32, #tpu.memory_space<vmem>>, vector<1x8x128xf32>
    %283 = vector.shape_cast %282 : vector<1x8x128xf32> to vector<8x128xf32>
    %284 = arith.addf %283, %279 : vector<8x128xf32>
    %285 = vector.extract_strided_slice %284 {offsets = [0, 0], sizes = [8, 96], strides = [1, 1]} : vector<8x128xf32> to vector<8x96xf32>
    %286 = arith.negf %285 : vector<8x96xf32>
    %287 = math.exp %286 : vector<8x96xf32>
    %cst_74 = arith.constant 1.000000e+00 : f32
    %288 = vector.broadcast %cst_74 : f32 to vector<8x96xf32>
    %289 = arith.addf %288, %287 : vector<8x96xf32>
    %290 = arith.divf %288, %289 : vector<8x96xf32>
    %291 = vector.extract_strided_slice %284 {offsets = [0, 96], sizes = [8, 32], strides = [1, 1]} : vector<8x128xf32> to vector<8x32xf32>
    %292 = math.tanh %291 : vector<8x32xf32>
    %293 = vector.extract_strided_slice %290 {offsets = [0, 32], sizes = [8, 32], strides = [1, 1]} : vector<8x96xf32> to vector<8x32xf32>
    %294 = arith.mulf %293, %244 : vector<8x32xf32>
    %295 = vector.extract_strided_slice %290 {offsets = [0, 0], sizes = [8, 32], strides = [1, 1]} : vector<8x96xf32> to vector<8x32xf32>
    %296 = arith.mulf %295, %292 : vector<8x32xf32>
    %297 = arith.addf %294, %296 : vector<8x32xf32>
    %298 = vector.extract_strided_slice %290 {offsets = [0, 64], sizes = [8, 32], strides = [1, 1]} : vector<8x96xf32> to vector<8x32xf32>
    %299 = math.tanh %297 : vector<8x32xf32>
    %300 = arith.mulf %298, %299 : vector<8x32xf32>
    %301 = arith.index_cast %276 : i32 to index
    %c0_75 = arith.constant 0 : index
    %c128_76 = arith.constant 128 : index
    %302 = vector.load %arg17[%301, %c0_75, %c128_76] : memref<8x8x256xf32, #tpu.memory_space<vmem>>, vector<1x8x128xf32>
    %303 = vector.shape_cast %302 : vector<1x8x128xf32> to vector<8x128xf32>
    %304 = arith.addf %303, %280 : vector<8x128xf32>
    %305 = vector.extract_strided_slice %304 {offsets = [0, 0], sizes = [8, 96], strides = [1, 1]} : vector<8x128xf32> to vector<8x96xf32>
    %306 = arith.negf %305 : vector<8x96xf32>
    %307 = math.exp %306 : vector<8x96xf32>
    %cst_77 = arith.constant 1.000000e+00 : f32
    %308 = vector.broadcast %cst_77 : f32 to vector<8x96xf32>
    %309 = arith.addf %308, %307 : vector<8x96xf32>
    %310 = arith.divf %308, %309 : vector<8x96xf32>
    %311 = vector.extract_strided_slice %304 {offsets = [0, 96], sizes = [8, 32], strides = [1, 1]} : vector<8x128xf32> to vector<8x32xf32>
    %312 = math.tanh %311 : vector<8x32xf32>
    %313 = vector.extract_strided_slice %310 {offsets = [0, 32], sizes = [8, 32], strides = [1, 1]} : vector<8x96xf32> to vector<8x32xf32>
    %314 = arith.mulf %313, %264 : vector<8x32xf32>
    %315 = vector.extract_strided_slice %310 {offsets = [0, 0], sizes = [8, 32], strides = [1, 1]} : vector<8x96xf32> to vector<8x32xf32>
    %316 = arith.mulf %315, %312 : vector<8x32xf32>
    %317 = arith.addf %314, %316 : vector<8x32xf32>
    %318 = vector.extract_strided_slice %310 {offsets = [0, 64], sizes = [8, 32], strides = [1, 1]} : vector<8x96xf32> to vector<8x32xf32>
    %319 = math.tanh %317 : vector<8x32xf32>
    %320 = arith.mulf %318, %319 : vector<8x32xf32>
    %321 = arith.index_cast %c5_i32 : i32 to index
    %c0_78 = arith.constant 0 : index
    %c0_79 = arith.constant 0 : index
    %322 = vector.load %arg18[%321, %c0_78, %c0_79] : memref<8x8x32xf32, #tpu.memory_space<vmem>>, vector<1x8x32xf32>
    %323 = vector.shape_cast %322 : vector<1x8x32xf32> to vector<8x32xf32>
    %324 = vector.shape_cast %300 : vector<8x32xf32> to vector<1x8x32xf32>
    tpu.vector_store %arg18[%321, %c0_78, %c0_79], %324 {strides = array<i32>} : memref<8x8x32xf32, #tpu.memory_space<vmem>>, vector<1x8x32xf32>,
    %325 = arith.index_cast %276 : i32 to index
    %c0_80 = arith.constant 0 : index
    %c0_81 = arith.constant 0 : index
    %326 = vector.load %arg19[%325, %c0_80, %c0_81] : memref<8x8x32xf32, #tpu.memory_space<vmem>>, vector<1x8x32xf32>
    %327 = vector.shape_cast %326 : vector<1x8x32xf32> to vector<8x32xf32>
    %328 = vector.shape_cast %320 : vector<8x32xf32> to vector<1x8x32xf32>
    tpu.vector_store %arg19[%325, %c0_80, %c0_81], %328 {strides = array<i32>} : memref<8x8x32xf32, #tpu.memory_space<vmem>>, vector<1x8x32xf32>,
    %c6_i32 = arith.constant 6 : i32
    %c7_i32_82 = arith.constant 7 : i32
    %329 = arith.subi %c7_i32_82, %c6_i32 : i32
    %330 = tpu.concatenate %300, %320 in 1 : vector<8x32xf32>, vector<8x32xf32> -> vector<8x64xf32>
    %cst_83 = arith.constant dense<0.000000e+00> : vector<8x256xf32>
    %331 = tpu.matmul %330, %10, %cst_83 {dimension_numbers = #tpu.dot_dimension_numbers<[1], [0], [0], [1], [0, 0, 1, 1], [], []>} : vector<8x64xf32>, vector<64x256xf32>, vector<8x256xf32> -> vector<8x256xf32>
    %332 = vector.extract_strided_slice %331 {offsets = [0, 0], sizes = [8, 128], strides = [1, 1]} : vector<8x256xf32> to vector<8x128xf32>
    %333 = vector.extract_strided_slice %331 {offsets = [0, 128], sizes = [8, 128], strides = [1, 1]} : vector<8x256xf32> to vector<8x128xf32>
    %334 = arith.index_cast %c6_i32 : i32 to index
    %c0_84 = arith.constant 0 : index
    %c0_85 = arith.constant 0 : index
    %335 = vector.load %arg17[%334, %c0_84, %c0_85] : memref<8x8x256xf32, #tpu.memory_space<vmem>>, vector<1x8x128xf32>
    %336 = vector.shape_cast %335 : vector<1x8x128xf32> to vector<8x128xf32>
    %337 = arith.addf %336, %332 : vector<8x128xf32>
    %338 = vector.extract_strided_slice %337 {offsets = [0, 0], sizes = [8, 96], strides = [1, 1]} : vector<8x128xf32> to vector<8x96xf32>
    %339 = arith.negf %338 : vector<8x96xf32>
    %340 = math.exp %339 : vector<8x96xf32>
    %cst_86 = arith.constant 1.000000e+00 : f32
    %341 = vector.broadcast %cst_86 : f32 to vector<8x96xf32>
    %342 = arith.addf %341, %340 : vector<8x96xf32>
    %343 = arith.divf %341, %342 : vector<8x96xf32>
    %344 = vector.extract_strided_slice %337 {offsets = [0, 96], sizes = [8, 32], strides = [1, 1]} : vector<8x128xf32> to vector<8x32xf32>
    %345 = math.tanh %344 : vector<8x32xf32>
    %346 = vector.extract_strided_slice %343 {offsets = [0, 32], sizes = [8, 32], strides = [1, 1]} : vector<8x96xf32> to vector<8x32xf32>
    %347 = arith.mulf %346, %297 : vector<8x32xf32>
    %348 = vector.extract_strided_slice %343 {offsets = [0, 0], sizes = [8, 32], strides = [1, 1]} : vector<8x96xf32> to vector<8x32xf32>
    %349 = arith.mulf %348, %345 : vector<8x32xf32>
    %350 = arith.addf %347, %349 : vector<8x32xf32>
    %351 = vector.extract_strided_slice %343 {offsets = [0, 64], sizes = [8, 32], strides = [1, 1]} : vector<8x96xf32> to vector<8x32xf32>
    %352 = math.tanh %350 : vector<8x32xf32>
    %353 = arith.mulf %351, %352 : vector<8x32xf32>
    %354 = arith.index_cast %329 : i32 to index
    %c0_87 = arith.constant 0 : index
    %c128_88 = arith.constant 128 : index
    %355 = vector.load %arg17[%354, %c0_87, %c128_88] : memref<8x8x256xf32, #tpu.memory_space<vmem>>, vector<1x8x128xf32>
    %356 = vector.shape_cast %355 : vector<1x8x128xf32> to vector<8x128xf32>
    %357 = arith.addf %356, %333 : vector<8x128xf32>
    %358 = vector.extract_strided_slice %357 {offsets = [0, 0], sizes = [8, 96], strides = [1, 1]} : vector<8x128xf32> to vector<8x96xf32>
    %359 = arith.negf %358 : vector<8x96xf32>
    %360 = math.exp %359 : vector<8x96xf32>
    %cst_89 = arith.constant 1.000000e+00 : f32
    %361 = vector.broadcast %cst_89 : f32 to vector<8x96xf32>
    %362 = arith.addf %361, %360 : vector<8x96xf32>
    %363 = arith.divf %361, %362 : vector<8x96xf32>
    %364 = vector.extract_strided_slice %357 {offsets = [0, 96], sizes = [8, 32], strides = [1, 1]} : vector<8x128xf32> to vector<8x32xf32>
    %365 = math.tanh %364 : vector<8x32xf32>
    %366 = vector.extract_strided_slice %363 {offsets = [0, 32], sizes = [8, 32], strides = [1, 1]} : vector<8x96xf32> to vector<8x32xf32>
    %367 = arith.mulf %366, %317 : vector<8x32xf32>
    %368 = vector.extract_strided_slice %363 {offsets = [0, 0], sizes = [8, 32], strides = [1, 1]} : vector<8x96xf32> to vector<8x32xf32>
    %369 = arith.mulf %368, %365 : vector<8x32xf32>
    %370 = arith.addf %367, %369 : vector<8x32xf32>
    %371 = vector.extract_strided_slice %363 {offsets = [0, 64], sizes = [8, 32], strides = [1, 1]} : vector<8x96xf32> to vector<8x32xf32>
    %372 = math.tanh %370 : vector<8x32xf32>
    %373 = arith.mulf %371, %372 : vector<8x32xf32>
    %374 = arith.index_cast %c6_i32 : i32 to index
    %c0_90 = arith.constant 0 : index
    %c0_91 = arith.constant 0 : index
    %375 = vector.load %arg18[%374, %c0_90, %c0_91] : memref<8x8x32xf32, #tpu.memory_space<vmem>>, vector<1x8x32xf32>
    %376 = vector.shape_cast %375 : vector<1x8x32xf32> to vector<8x32xf32>
    %377 = vector.shape_cast %353 : vector<8x32xf32> to vector<1x8x32xf32>
    tpu.vector_store %arg18[%374, %c0_90, %c0_91], %377 {strides = array<i32>} : memref<8x8x32xf32, #tpu.memory_space<vmem>>, vector<1x8x32xf32>,
    %378 = arith.index_cast %329 : i32 to index
    %c0_92 = arith.constant 0 : index
    %c0_93 = arith.constant 0 : index
    %379 = vector.load %arg19[%378, %c0_92, %c0_93] : memref<8x8x32xf32, #tpu.memory_space<vmem>>, vector<1x8x32xf32>
    %380 = vector.shape_cast %379 : vector<1x8x32xf32> to vector<8x32xf32>
    %381 = vector.shape_cast %373 : vector<8x32xf32> to vector<1x8x32xf32>
    tpu.vector_store %arg19[%378, %c0_92, %c0_93], %381 {strides = array<i32>} : memref<8x8x32xf32, #tpu.memory_space<vmem>>, vector<1x8x32xf32>,
    %c7_i32_94 = arith.constant 7 : i32
    %c7_i32_95 = arith.constant 7 : i32
    %382 = arith.subi %c7_i32_95, %c7_i32_94 : i32
    %383 = tpu.concatenate %353, %373 in 1 : vector<8x32xf32>, vector<8x32xf32> -> vector<8x64xf32>
    %cst_96 = arith.constant dense<0.000000e+00> : vector<8x256xf32>
    %384 = tpu.matmul %383, %10, %cst_96 {dimension_numbers = #tpu.dot_dimension_numbers<[1], [0], [0], [1], [0, 0, 1, 1], [], []>} : vector<8x64xf32>, vector<64x256xf32>, vector<8x256xf32> -> vector<8x256xf32>
    %385 = vector.extract_strided_slice %384 {offsets = [0, 0], sizes = [8, 128], strides = [1, 1]} : vector<8x256xf32> to vector<8x128xf32>
    %386 = vector.extract_strided_slice %384 {offsets = [0, 128], sizes = [8, 128], strides = [1, 1]} : vector<8x256xf32> to vector<8x128xf32>
    %387 = arith.index_cast %c7_i32_94 : i32 to index
    %c0_97 = arith.constant 0 : index
    %c0_98 = arith.constant 0 : index
    %388 = vector.load %arg17[%387, %c0_97, %c0_98] : memref<8x8x256xf32, #tpu.memory_space<vmem>>, vector<1x8x128xf32>
    %389 = vector.shape_cast %388 : vector<1x8x128xf32> to vector<8x128xf32>
    %390 = arith.addf %389, %385 : vector<8x128xf32>
    %391 = vector.extract_strided_slice %390 {offsets = [0, 0], sizes = [8, 96], strides = [1, 1]} : vector<8x128xf32> to vector<8x96xf32>
    %392 = arith.negf %391 : vector<8x96xf32>
    %393 = math.exp %392 : vector<8x96xf32>
    %cst_99 = arith.constant 1.000000e+00 : f32
    %394 = vector.broadcast %cst_99 : f32 to vector<8x96xf32>
    %395 = arith.addf %394, %393 : vector<8x96xf32>
    %396 = arith.divf %394, %395 : vector<8x96xf32>
    %397 = vector.extract_strided_slice %390 {offsets = [0, 96], sizes = [8, 32], strides = [1, 1]} : vector<8x128xf32> to vector<8x32xf32>
    %398 = math.tanh %397 : vector<8x32xf32>
    %399 = vector.extract_strided_slice %396 {offsets = [0, 32], sizes = [8, 32], strides = [1, 1]} : vector<8x96xf32> to vector<8x32xf32>
    %400 = arith.mulf %399, %350 : vector<8x32xf32>
    %401 = vector.extract_strided_slice %396 {offsets = [0, 0], sizes = [8, 32], strides = [1, 1]} : vector<8x96xf32> to vector<8x32xf32>
    %402 = arith.mulf %401, %398 : vector<8x32xf32>
    %403 = arith.addf %400, %402 : vector<8x32xf32>
    %404 = vector.extract_strided_slice %396 {offsets = [0, 64], sizes = [8, 32], strides = [1, 1]} : vector<8x96xf32> to vector<8x32xf32>
    %405 = math.tanh %403 : vector<8x32xf32>
    %406 = arith.mulf %404, %405 : vector<8x32xf32>
    %407 = arith.index_cast %382 : i32 to index
    %c0_100 = arith.constant 0 : index
    %c128_101 = arith.constant 128 : index
    %408 = vector.load %arg17[%407, %c0_100, %c128_101] : memref<8x8x256xf32, #tpu.memory_space<vmem>>, vector<1x8x128xf32>
    %409 = vector.shape_cast %408 : vector<1x8x128xf32> to vector<8x128xf32>
    %410 = arith.addf %409, %386 : vector<8x128xf32>
    %411 = vector.extract_strided_slice %410 {offsets = [0, 0], sizes = [8, 96], strides = [1, 1]} : vector<8x128xf32> to vector<8x96xf32>
    %412 = arith.negf %411 : vector<8x96xf32>
    %413 = math.exp %412 : vector<8x96xf32>
    %cst_102 = arith.constant 1.000000e+00 : f32
    %414 = vector.broadcast %cst_102 : f32 to vector<8x96xf32>
    %415 = arith.addf %414, %413 : vector<8x96xf32>
    %416 = arith.divf %414, %415 : vector<8x96xf32>
    %417 = vector.extract_strided_slice %410 {offsets = [0, 96], sizes = [8, 32], strides = [1, 1]} : vector<8x128xf32> to vector<8x32xf32>
    %418 = math.tanh %417 : vector<8x32xf32>
    %419 = vector.extract_strided_slice %416 {offsets = [0, 32], sizes = [8, 32], strides = [1, 1]} : vector<8x96xf32> to vector<8x32xf32>
    %420 = arith.mulf %419, %370 : vector<8x32xf32>
    %421 = vector.extract_strided_slice %416 {offsets = [0, 0], sizes = [8, 32], strides = [1, 1]} : vector<8x96xf32> to vector<8x32xf32>
    %422 = arith.mulf %421, %418 : vector<8x32xf32>
    %423 = arith.addf %420, %422 : vector<8x32xf32>
    %424 = vector.extract_strided_slice %416 {offsets = [0, 64], sizes = [8, 32], strides = [1, 1]} : vector<8x96xf32> to vector<8x32xf32>
    %425 = math.tanh %423 : vector<8x32xf32>
    %426 = arith.mulf %424, %425 : vector<8x32xf32>
    %427 = arith.index_cast %c7_i32_94 : i32 to index
    %c0_103 = arith.constant 0 : index
    %c0_104 = arith.constant 0 : index
    %428 = vector.load %arg18[%427, %c0_103, %c0_104] : memref<8x8x32xf32, #tpu.memory_space<vmem>>, vector<1x8x32xf32>
    %429 = vector.shape_cast %428 : vector<1x8x32xf32> to vector<8x32xf32>
    %430 = vector.shape_cast %406 : vector<8x32xf32> to vector<1x8x32xf32>
    tpu.vector_store %arg18[%427, %c0_103, %c0_104], %430 {strides = array<i32>} : memref<8x8x32xf32, #tpu.memory_space<vmem>>, vector<1x8x32xf32>,
    %431 = arith.index_cast %382 : i32 to index
    %c0_105 = arith.constant 0 : index
    %c0_106 = arith.constant 0 : index
    %432 = vector.load %arg19[%431, %c0_105, %c0_106] : memref<8x8x32xf32, #tpu.memory_space<vmem>>, vector<1x8x32xf32>
    %433 = vector.shape_cast %432 : vector<1x8x32xf32> to vector<8x32xf32>
    %434 = vector.shape_cast %426 : vector<8x32xf32> to vector<1x8x32xf32>
    tpu.vector_store %arg19[%431, %c0_105, %c0_106], %434 {strides = array<i32>} : memref<8x8x32xf32, #tpu.memory_space<vmem>>, vector<1x8x32xf32>,
    %c8_i32 = arith.constant 8 : i32
    %c0_107 = arith.constant 0 : index
    %c0_108 = arith.constant 0 : index
    %c0_109 = arith.constant 0 : index
    %435 = vector.load %arg18[%c0_107, %c0_108, %c0_109] : memref<8x8x32xf32, #tpu.memory_space<vmem>>, vector<8x8x32xf32>
    %436 = vector.shape_cast %435 : vector<8x8x32xf32> to vector<64x32xf32>
    %c0_110 = arith.constant 0 : index
    %c0_111 = arith.constant 0 : index
    %c0_112 = arith.constant 0 : index
    %437 = vector.load %arg19[%c0_110, %c0_111, %c0_112] : memref<8x8x32xf32, #tpu.memory_space<vmem>>, vector<8x8x32xf32>
    %438 = vector.shape_cast %437 : vector<8x8x32xf32> to vector<64x32xf32>
    %c0_113 = arith.constant 0 : index
    %c0_114 = arith.constant 0 : index
    %439 = vector.load %arg5[%c0_113, %c0_114] : memref<64x128xf32, #tpu.memory_space<vmem>>, vector<32x128xf32>
    %cst_115 = arith.constant dense<0.000000e+00> : vector<64x128xf32>
    %440 = tpu.matmul %436, %439, %cst_115 {dimension_numbers = #tpu.dot_dimension_numbers<[1], [0], [0], [1], [0, 0, 1, 1], [], []>} : vector<64x32xf32>, vector<32x128xf32>, vector<64x128xf32> -> vector<64x128xf32>
    %c32 = arith.constant 32 : index
    %c0_116 = arith.constant 0 : index
    %441 = vector.load %arg5[%c32, %c0_116] : memref<64x128xf32, #tpu.memory_space<vmem>>, vector<32x128xf32>
    %cst_117 = arith.constant dense<0.000000e+00> : vector<64x128xf32>
    %442 = tpu.matmul %438, %441, %cst_117 {dimension_numbers = #tpu.dot_dimension_numbers<[1], [0], [0], [1], [0, 0, 1, 1], [], []>} : vector<64x32xf32>, vector<32x128xf32>, vector<64x128xf32> -> vector<64x128xf32>
    %443 = arith.addf %440, %442 : vector<64x128xf32>
    %c7 = arith.constant 7 : index
    %c0_118 = arith.constant 0 : index
    %c0_119 = arith.constant 0 : index
    %444 = vector.load %arg18[%c7, %c0_118, %c0_119] : memref<8x8x32xf32, #tpu.memory_space<vmem>>, vector<1x8x32xf32>
    %445 = vector.shape_cast %444 : vector<1x8x32xf32> to vector<8x32xf32>
    %c0_120 = arith.constant 0 : index
    %c0_121 = arith.constant 0 : index
    %446 = vector.load %arg6[%c0_120, %c0_121] : memref<64x128xf32, #tpu.memory_space<vmem>>, vector<32x128xf32>
    %cst_122 = arith.constant dense<0.000000e+00> : vector<8x128xf32>
    %447 = tpu.matmul %445, %446, %cst_122 {dimension_numbers = #tpu.dot_dimension_numbers<[1], [0], [0], [1], [0, 0, 1, 1], [], []>} : vector<8x32xf32>, vector<32x128xf32>, vector<8x128xf32> -> vector<8x128xf32>
    %c7_123 = arith.constant 7 : index
    %c0_124 = arith.constant 0 : index
    %c0_125 = arith.constant 0 : index
    %448 = vector.load %arg19[%c7_123, %c0_124, %c0_125] : memref<8x8x32xf32, #tpu.memory_space<vmem>>, vector<1x8x32xf32>
    %449 = vector.shape_cast %448 : vector<1x8x32xf32> to vector<8x32xf32>
    %c32_126 = arith.constant 32 : index
    %c0_127 = arith.constant 0 : index
    %450 = vector.load %arg6[%c32_126, %c0_127] : memref<64x128xf32, #tpu.memory_space<vmem>>, vector<32x128xf32>
    %cst_128 = arith.constant dense<0.000000e+00> : vector<8x128xf32>
    %451 = tpu.matmul %449, %450, %cst_128 {dimension_numbers = #tpu.dot_dimension_numbers<[1], [0], [0], [1], [0, 0, 1, 1], [], []>} : vector<8x32xf32>, vector<32x128xf32>, vector<8x128xf32> -> vector<8x128xf32>
    %452 = arith.addf %447, %451 : vector<8x128xf32>
    %c0_129 = arith.constant 0 : index
    %c0_130 = arith.constant 0 : index
    %453 = vector.load %arg8[%c0_129, %c0_130] : memref<1x128xf32, #tpu.memory_space<vmem>>, vector<1x128xf32>
    %454 = vector.broadcast %453 : vector<1x128xf32> to vector<64x128xf32>
    %455 = arith.addf %443, %454 : vector<64x128xf32>
    %456 = vector.shape_cast %455 : vector<64x128xf32> to vector<8x8x128xf32>
    %c0_131 = arith.constant 0 : index
    %c0_132 = arith.constant 0 : index
    %c0_133 = arith.constant 0 : index
    %457 = vector.load %arg17[%c0_131, %c0_132, %c0_133] : memref<8x8x256xf32, #tpu.memory_space<vmem>>, vector<8x8x128xf32>
    tpu.vector_store %arg17[%c0_131, %c0_132, %c0_133], %456 {strides = array<i32>} : memref<8x8x256xf32, #tpu.memory_space<vmem>>, vector<8x8x128xf32>,
    %c0_134 = arith.constant 0 : index
    %c0_135 = arith.constant 0 : index
    %458 = vector.load %arg9[%c0_134, %c0_135] : memref<1x128xf32, #tpu.memory_space<vmem>>, vector<1x128xf32>
    %459 = vector.broadcast %458 : vector<1x128xf32> to vector<8x128xf32>
    %460 = arith.addf %452, %459 : vector<8x128xf32>
    %461 = vector.extract_strided_slice %460 {offsets = [0, 0], sizes = [8, 96], strides = [1, 1]} : vector<8x128xf32> to vector<8x96xf32>
    %462 = arith.negf %461 : vector<8x96xf32>
    %463 = math.exp %462 : vector<8x96xf32>
    %cst_136 = arith.constant 1.000000e+00 : f32
    %464 = vector.broadcast %cst_136 : f32 to vector<8x96xf32>
    %465 = arith.addf %464, %463 : vector<8x96xf32>
    %466 = arith.divf %464, %465 : vector<8x96xf32>
    %467 = vector.extract_strided_slice %460 {offsets = [0, 96], sizes = [8, 32], strides = [1, 1]} : vector<8x128xf32> to vector<8x32xf32>
    %468 = math.tanh %467 : vector<8x32xf32>
    %469 = vector.extract_strided_slice %466 {offsets = [0, 32], sizes = [8, 32], strides = [1, 1]} : vector<8x96xf32> to vector<8x32xf32>
    %470 = arith.mulf %469, %0 : vector<8x32xf32>
    %471 = vector.extract_strided_slice %466 {offsets = [0, 0], sizes = [8, 32], strides = [1, 1]} : vector<8x96xf32> to vector<8x32xf32>
    %472 = arith.mulf %471, %468 : vector<8x32xf32>
    %473 = arith.addf %470, %472 : vector<8x32xf32>
    %474 = vector.extract_strided_slice %466 {offsets = [0, 64], sizes = [8, 32], strides = [1, 1]} : vector<8x96xf32> to vector<8x32xf32>
    %475 = math.tanh %473 : vector<8x32xf32>
    %476 = arith.mulf %474, %475 : vector<8x32xf32>
    %c0_137 = arith.constant 0 : index
    %c0_138 = arith.constant 0 : index
    %477 = vector.load %arg7[%c0_137, %c0_138] : memref<32x128xf32, #tpu.memory_space<vmem>>, vector<32x128xf32>
    %c0_i32_139 = arith.constant 0 : i32
    %478 = arith.index_cast %c0_i32_139 : i32 to index
    %c0_140 = arith.constant 0 : index
    %c0_141 = arith.constant 0 : index
    %479 = vector.load %arg17[%478, %c0_140, %c0_141] : memref<8x8x256xf32, #tpu.memory_space<vmem>>, vector<1x8x128xf32>
    %480 = vector.shape_cast %479 : vector<1x8x128xf32> to vector<8x128xf32>
    %cst_142 = arith.constant dense<0.000000e+00> : vector<8x128xf32>
    %481 = tpu.matmul %0, %477, %cst_142 {dimension_numbers = #tpu.dot_dimension_numbers<[1], [0], [0], [1], [0, 0, 1, 1], [], []>} : vector<8x32xf32>, vector<32x128xf32>, vector<8x128xf32> -> vector<8x128xf32>
    %482 = arith.addf %480, %481 : vector<8x128xf32>
    %483 = vector.extract_strided_slice %482 {offsets = [0, 0], sizes = [8, 96], strides = [1, 1]} : vector<8x128xf32> to vector<8x96xf32>
    %484 = arith.negf %483 : vector<8x96xf32>
    %485 = math.exp %484 : vector<8x96xf32>
    %cst_143 = arith.constant 1.000000e+00 : f32
    %486 = vector.broadcast %cst_143 : f32 to vector<8x96xf32>
    %487 = arith.addf %486, %485 : vector<8x96xf32>
    %488 = arith.divf %486, %487 : vector<8x96xf32>
    %489 = vector.extract_strided_slice %482 {offsets = [0, 96], sizes = [8, 32], strides = [1, 1]} : vector<8x128xf32> to vector<8x32xf32>
    %490 = math.tanh %489 : vector<8x32xf32>
    %491 = vector.extract_strided_slice %488 {offsets = [0, 32], sizes = [8, 32], strides = [1, 1]} : vector<8x96xf32> to vector<8x32xf32>
    %492 = arith.mulf %491, %0 : vector<8x32xf32>
    %493 = vector.extract_strided_slice %488 {offsets = [0, 0], sizes = [8, 32], strides = [1, 1]} : vector<8x96xf32> to vector<8x32xf32>
    %494 = arith.mulf %493, %490 : vector<8x32xf32>
    %495 = arith.addf %492, %494 : vector<8x32xf32>
    %496 = vector.extract_strided_slice %488 {offsets = [0, 64], sizes = [8, 32], strides = [1, 1]} : vector<8x96xf32> to vector<8x32xf32>
    %497 = math.tanh %495 : vector<8x32xf32>
    %498 = arith.mulf %496, %497 : vector<8x32xf32>
    %c1_i32_144 = arith.constant 1 : i32
    %499 = arith.index_cast %c1_i32_144 : i32 to index
    %c0_145 = arith.constant 0 : index
    %c0_146 = arith.constant 0 : index
    %500 = vector.load %arg17[%499, %c0_145, %c0_146] : memref<8x8x256xf32, #tpu.memory_space<vmem>>, vector<1x8x128xf32>
    %501 = vector.shape_cast %500 : vector<1x8x128xf32> to vector<8x128xf32>
    %cst_147 = arith.constant dense<0.000000e+00> : vector<8x128xf32>
    %502 = tpu.matmul %498, %477, %cst_147 {dimension_numbers = #tpu.dot_dimension_numbers<[1], [0], [0], [1], [0, 0, 1, 1], [], []>} : vector<8x32xf32>, vector<32x128xf32>, vector<8x128xf32> -> vector<8x128xf32>
    %503 = arith.addf %501, %502 : vector<8x128xf32>
    %504 = vector.extract_strided_slice %503 {offsets = [0, 0], sizes = [8, 96], strides = [1, 1]} : vector<8x128xf32> to vector<8x96xf32>
    %505 = arith.negf %504 : vector<8x96xf32>
    %506 = math.exp %505 : vector<8x96xf32>
    %cst_148 = arith.constant 1.000000e+00 : f32
    %507 = vector.broadcast %cst_148 : f32 to vector<8x96xf32>
    %508 = arith.addf %507, %506 : vector<8x96xf32>
    %509 = arith.divf %507, %508 : vector<8x96xf32>
    %510 = vector.extract_strided_slice %503 {offsets = [0, 96], sizes = [8, 32], strides = [1, 1]} : vector<8x128xf32> to vector<8x32xf32>
    %511 = math.tanh %510 : vector<8x32xf32>
    %512 = vector.extract_strided_slice %509 {offsets = [0, 32], sizes = [8, 32], strides = [1, 1]} : vector<8x96xf32> to vector<8x32xf32>
    %513 = arith.mulf %512, %495 : vector<8x32xf32>
    %514 = vector.extract_strided_slice %509 {offsets = [0, 0], sizes = [8, 32], strides = [1, 1]} : vector<8x96xf32> to vector<8x32xf32>
    %515 = arith.mulf %514, %511 : vector<8x32xf32>
    %516 = arith.addf %513, %515 : vector<8x32xf32>
    %517 = vector.extract_strided_slice %509 {offsets = [0, 64], sizes = [8, 32], strides = [1, 1]} : vector<8x96xf32> to vector<8x32xf32>
    %518 = math.tanh %516 : vector<8x32xf32>
    %519 = arith.mulf %517, %518 : vector<8x32xf32>
    %c2_i32_149 = arith.constant 2 : i32
    %520 = arith.index_cast %c2_i32_149 : i32 to index
    %c0_150 = arith.constant 0 : index
    %c0_151 = arith.constant 0 : index
    %521 = vector.load %arg17[%520, %c0_150, %c0_151] : memref<8x8x256xf32, #tpu.memory_space<vmem>>, vector<1x8x128xf32>
    %522 = vector.shape_cast %521 : vector<1x8x128xf32> to vector<8x128xf32>
    %cst_152 = arith.constant dense<0.000000e+00> : vector<8x128xf32>
    %523 = tpu.matmul %519, %477, %cst_152 {dimension_numbers = #tpu.dot_dimension_numbers<[1], [0], [0], [1], [0, 0, 1, 1], [], []>} : vector<8x32xf32>, vector<32x128xf32>, vector<8x128xf32> -> vector<8x128xf32>
    %524 = arith.addf %522, %523 : vector<8x128xf32>
    %525 = vector.extract_strided_slice %524 {offsets = [0, 0], sizes = [8, 96], strides = [1, 1]} : vector<8x128xf32> to vector<8x96xf32>
    %526 = arith.negf %525 : vector<8x96xf32>
    %527 = math.exp %526 : vector<8x96xf32>
    %cst_153 = arith.constant 1.000000e+00 : f32
    %528 = vector.broadcast %cst_153 : f32 to vector<8x96xf32>
    %529 = arith.addf %528, %527 : vector<8x96xf32>
    %530 = arith.divf %528, %529 : vector<8x96xf32>
    %531 = vector.extract_strided_slice %524 {offsets = [0, 96], sizes = [8, 32], strides = [1, 1]} : vector<8x128xf32> to vector<8x32xf32>
    %532 = math.tanh %531 : vector<8x32xf32>
    %533 = vector.extract_strided_slice %530 {offsets = [0, 32], sizes = [8, 32], strides = [1, 1]} : vector<8x96xf32> to vector<8x32xf32>
    %534 = arith.mulf %533, %516 : vector<8x32xf32>
    %535 = vector.extract_strided_slice %530 {offsets = [0, 0], sizes = [8, 32], strides = [1, 1]} : vector<8x96xf32> to vector<8x32xf32>
    %536 = arith.mulf %535, %532 : vector<8x32xf32>
    %537 = arith.addf %534, %536 : vector<8x32xf32>
    %538 = vector.extract_strided_slice %530 {offsets = [0, 64], sizes = [8, 32], strides = [1, 1]} : vector<8x96xf32> to vector<8x32xf32>
    %539 = math.tanh %537 : vector<8x32xf32>
    %540 = arith.mulf %538, %539 : vector<8x32xf32>
    %c3_i32_154 = arith.constant 3 : i32
    %541 = arith.index_cast %c3_i32_154 : i32 to index
    %c0_155 = arith.constant 0 : index
    %c0_156 = arith.constant 0 : index
    %542 = vector.load %arg17[%541, %c0_155, %c0_156] : memref<8x8x256xf32, #tpu.memory_space<vmem>>, vector<1x8x128xf32>
    %543 = vector.shape_cast %542 : vector<1x8x128xf32> to vector<8x128xf32>
    %cst_157 = arith.constant dense<0.000000e+00> : vector<8x128xf32>
    %544 = tpu.matmul %540, %477, %cst_157 {dimension_numbers = #tpu.dot_dimension_numbers<[1], [0], [0], [1], [0, 0, 1, 1], [], []>} : vector<8x32xf32>, vector<32x128xf32>, vector<8x128xf32> -> vector<8x128xf32>
    %545 = arith.addf %543, %544 : vector<8x128xf32>
    %546 = vector.extract_strided_slice %545 {offsets = [0, 0], sizes = [8, 96], strides = [1, 1]} : vector<8x128xf32> to vector<8x96xf32>
    %547 = arith.negf %546 : vector<8x96xf32>
    %548 = math.exp %547 : vector<8x96xf32>
    %cst_158 = arith.constant 1.000000e+00 : f32
    %549 = vector.broadcast %cst_158 : f32 to vector<8x96xf32>
    %550 = arith.addf %549, %548 : vector<8x96xf32>
    %551 = arith.divf %549, %550 : vector<8x96xf32>
    %552 = vector.extract_strided_slice %545 {offsets = [0, 96], sizes = [8, 32], strides = [1, 1]} : vector<8x128xf32> to vector<8x32xf32>
    %553 = math.tanh %552 : vector<8x32xf32>
    %554 = vector.extract_strided_slice %551 {offsets = [0, 32], sizes = [8, 32], strides = [1, 1]} : vector<8x96xf32> to vector<8x32xf32>
    %555 = arith.mulf %554, %537 : vector<8x32xf32>
    %556 = vector.extract_strided_slice %551 {offsets = [0, 0], sizes = [8, 32], strides = [1, 1]} : vector<8x96xf32> to vector<8x32xf32>
    %557 = arith.mulf %556, %553 : vector<8x32xf32>
    %558 = arith.addf %555, %557 : vector<8x32xf32>
    %559 = vector.extract_strided_slice %551 {offsets = [0, 64], sizes = [8, 32], strides = [1, 1]} : vector<8x96xf32> to vector<8x32xf32>
    %560 = math.tanh %558 : vector<8x32xf32>
    %561 = arith.mulf %559, %560 : vector<8x32xf32>
    %c4_i32_159 = arith.constant 4 : i32
    %562 = arith.index_cast %c4_i32_159 : i32 to index
    %c0_160 = arith.constant 0 : index
    %c0_161 = arith.constant 0 : index
    %563 = vector.load %arg17[%562, %c0_160, %c0_161] : memref<8x8x256xf32, #tpu.memory_space<vmem>>, vector<1x8x128xf32>
    %564 = vector.shape_cast %563 : vector<1x8x128xf32> to vector<8x128xf32>
    %cst_162 = arith.constant dense<0.000000e+00> : vector<8x128xf32>
    %565 = tpu.matmul %561, %477, %cst_162 {dimension_numbers = #tpu.dot_dimension_numbers<[1], [0], [0], [1], [0, 0, 1, 1], [], []>} : vector<8x32xf32>, vector<32x128xf32>, vector<8x128xf32> -> vector<8x128xf32>
    %566 = arith.addf %564, %565 : vector<8x128xf32>
    %567 = vector.extract_strided_slice %566 {offsets = [0, 0], sizes = [8, 96], strides = [1, 1]} : vector<8x128xf32> to vector<8x96xf32>
    %568 = arith.negf %567 : vector<8x96xf32>
    %569 = math.exp %568 : vector<8x96xf32>
    %cst_163 = arith.constant 1.000000e+00 : f32
    %570 = vector.broadcast %cst_163 : f32 to vector<8x96xf32>
    %571 = arith.addf %570, %569 : vector<8x96xf32>
    %572 = arith.divf %570, %571 : vector<8x96xf32>
    %573 = vector.extract_strided_slice %566 {offsets = [0, 96], sizes = [8, 32], strides = [1, 1]} : vector<8x128xf32> to vector<8x32xf32>
    %574 = math.tanh %573 : vector<8x32xf32>
    %575 = vector.extract_strided_slice %572 {offsets = [0, 32], sizes = [8, 32], strides = [1, 1]} : vector<8x96xf32> to vector<8x32xf32>
    %576 = arith.mulf %575, %558 : vector<8x32xf32>
    %577 = vector.extract_strided_slice %572 {offsets = [0, 0], sizes = [8, 32], strides = [1, 1]} : vector<8x96xf32> to vector<8x32xf32>
    %578 = arith.mulf %577, %574 : vector<8x32xf32>
    %579 = arith.addf %576, %578 : vector<8x32xf32>
    %580 = vector.extract_strided_slice %572 {offsets = [0, 64], sizes = [8, 32], strides = [1, 1]} : vector<8x96xf32> to vector<8x32xf32>
    %581 = math.tanh %579 : vector<8x32xf32>
    %582 = arith.mulf %580, %581 : vector<8x32xf32>
    %c5_i32_164 = arith.constant 5 : i32
    %583 = arith.index_cast %c5_i32_164 : i32 to index
    %c0_165 = arith.constant 0 : index
    %c0_166 = arith.constant 0 : index
    %584 = vector.load %arg17[%583, %c0_165, %c0_166] : memref<8x8x256xf32, #tpu.memory_space<vmem>>, vector<1x8x128xf32>
    %585 = vector.shape_cast %584 : vector<1x8x128xf32> to vector<8x128xf32>
    %cst_167 = arith.constant dense<0.000000e+00> : vector<8x128xf32>
    %586 = tpu.matmul %582, %477, %cst_167 {dimension_numbers = #tpu.dot_dimension_numbers<[1], [0], [0], [1], [0, 0, 1, 1], [], []>} : vector<8x32xf32>, vector<32x128xf32>, vector<8x128xf32> -> vector<8x128xf32>
    %587 = arith.addf %585, %586 : vector<8x128xf32>
    %588 = vector.extract_strided_slice %587 {offsets = [0, 0], sizes = [8, 96], strides = [1, 1]} : vector<8x128xf32> to vector<8x96xf32>
    %589 = arith.negf %588 : vector<8x96xf32>
    %590 = math.exp %589 : vector<8x96xf32>
    %cst_168 = arith.constant 1.000000e+00 : f32
    %591 = vector.broadcast %cst_168 : f32 to vector<8x96xf32>
    %592 = arith.addf %591, %590 : vector<8x96xf32>
    %593 = arith.divf %591, %592 : vector<8x96xf32>
    %594 = vector.extract_strided_slice %587 {offsets = [0, 96], sizes = [8, 32], strides = [1, 1]} : vector<8x128xf32> to vector<8x32xf32>
    %595 = math.tanh %594 : vector<8x32xf32>
    %596 = vector.extract_strided_slice %593 {offsets = [0, 32], sizes = [8, 32], strides = [1, 1]} : vector<8x96xf32> to vector<8x32xf32>
    %597 = arith.mulf %596, %579 : vector<8x32xf32>
    %598 = vector.extract_strided_slice %593 {offsets = [0, 0], sizes = [8, 32], strides = [1, 1]} : vector<8x96xf32> to vector<8x32xf32>
    %599 = arith.mulf %598, %595 : vector<8x32xf32>
    %600 = arith.addf %597, %599 : vector<8x32xf32>
    %601 = vector.extract_strided_slice %593 {offsets = [0, 64], sizes = [8, 32], strides = [1, 1]} : vector<8x96xf32> to vector<8x32xf32>
    %602 = math.tanh %600 : vector<8x32xf32>
    %603 = arith.mulf %601, %602 : vector<8x32xf32>
    %c6_i32_169 = arith.constant 6 : i32
    %604 = arith.index_cast %c6_i32_169 : i32 to index
    %c0_170 = arith.constant 0 : index
    %c0_171 = arith.constant 0 : index
    %605 = vector.load %arg17[%604, %c0_170, %c0_171] : memref<8x8x256xf32, #tpu.memory_space<vmem>>, vector<1x8x128xf32>
    %606 = vector.shape_cast %605 : vector<1x8x128xf32> to vector<8x128xf32>
    %cst_172 = arith.constant dense<0.000000e+00> : vector<8x128xf32>
    %607 = tpu.matmul %603, %477, %cst_172 {dimension_numbers = #tpu.dot_dimension_numbers<[1], [0], [0], [1], [0, 0, 1, 1], [], []>} : vector<8x32xf32>, vector<32x128xf32>, vector<8x128xf32> -> vector<8x128xf32>
    %608 = arith.addf %606, %607 : vector<8x128xf32>
    %609 = vector.extract_strided_slice %608 {offsets = [0, 0], sizes = [8, 96], strides = [1, 1]} : vector<8x128xf32> to vector<8x96xf32>
    %610 = arith.negf %609 : vector<8x96xf32>
    %611 = math.exp %610 : vector<8x96xf32>
    %cst_173 = arith.constant 1.000000e+00 : f32
    %612 = vector.broadcast %cst_173 : f32 to vector<8x96xf32>
    %613 = arith.addf %612, %611 : vector<8x96xf32>
    %614 = arith.divf %612, %613 : vector<8x96xf32>
    %615 = vector.extract_strided_slice %608 {offsets = [0, 96], sizes = [8, 32], strides = [1, 1]} : vector<8x128xf32> to vector<8x32xf32>
    %616 = math.tanh %615 : vector<8x32xf32>
    %617 = vector.extract_strided_slice %614 {offsets = [0, 32], sizes = [8, 32], strides = [1, 1]} : vector<8x96xf32> to vector<8x32xf32>
    %618 = arith.mulf %617, %600 : vector<8x32xf32>
    %619 = vector.extract_strided_slice %614 {offsets = [0, 0], sizes = [8, 32], strides = [1, 1]} : vector<8x96xf32> to vector<8x32xf32>
    %620 = arith.mulf %619, %616 : vector<8x32xf32>
    %621 = arith.addf %618, %620 : vector<8x32xf32>
    %622 = vector.extract_strided_slice %614 {offsets = [0, 64], sizes = [8, 32], strides = [1, 1]} : vector<8x96xf32> to vector<8x32xf32>
    %623 = math.tanh %621 : vector<8x32xf32>
    %624 = arith.mulf %622, %623 : vector<8x32xf32>
    %c7_i32_174 = arith.constant 7 : i32
    %625 = arith.index_cast %c7_i32_174 : i32 to index
    %c0_175 = arith.constant 0 : index
    %c0_176 = arith.constant 0 : index
    %626 = vector.load %arg17[%625, %c0_175, %c0_176] : memref<8x8x256xf32, #tpu.memory_space<vmem>>, vector<1x8x128xf32>
    %627 = vector.shape_cast %626 : vector<1x8x128xf32> to vector<8x128xf32>
    %cst_177 = arith.constant dense<0.000000e+00> : vector<8x128xf32>
    %628 = tpu.matmul %624, %477, %cst_177 {dimension_numbers = #tpu.dot_dimension_numbers<[1], [0], [0], [1], [0, 0, 1, 1], [], []>} : vector<8x32xf32>, vector<32x128xf32>, vector<8x128xf32> -> vector<8x128xf32>
    %629 = arith.addf %627, %628 : vector<8x128xf32>
    %630 = vector.extract_strided_slice %629 {offsets = [0, 0], sizes = [8, 96], strides = [1, 1]} : vector<8x128xf32> to vector<8x96xf32>
    %631 = arith.negf %630 : vector<8x96xf32>
    %632 = math.exp %631 : vector<8x96xf32>
    %cst_178 = arith.constant 1.000000e+00 : f32
    %633 = vector.broadcast %cst_178 : f32 to vector<8x96xf32>
    %634 = arith.addf %633, %632 : vector<8x96xf32>
    %635 = arith.divf %633, %634 : vector<8x96xf32>
    %636 = vector.extract_strided_slice %629 {offsets = [0, 96], sizes = [8, 32], strides = [1, 1]} : vector<8x128xf32> to vector<8x32xf32>
    %637 = math.tanh %636 : vector<8x32xf32>
    %638 = vector.extract_strided_slice %635 {offsets = [0, 32], sizes = [8, 32], strides = [1, 1]} : vector<8x96xf32> to vector<8x32xf32>
    %639 = arith.mulf %638, %621 : vector<8x32xf32>
    %640 = vector.extract_strided_slice %635 {offsets = [0, 0], sizes = [8, 32], strides = [1, 1]} : vector<8x96xf32> to vector<8x32xf32>
    %641 = arith.mulf %640, %637 : vector<8x32xf32>
    %642 = arith.addf %639, %641 : vector<8x32xf32>
    %643 = vector.extract_strided_slice %635 {offsets = [0, 64], sizes = [8, 32], strides = [1, 1]} : vector<8x96xf32> to vector<8x32xf32>
    %644 = math.tanh %642 : vector<8x32xf32>
    %645 = arith.mulf %643, %644 : vector<8x32xf32>
    %c8_i32_179 = arith.constant 8 : i32
    %646 = tpu.concatenate %645, %476 in 1 : vector<8x32xf32>, vector<8x32xf32> -> vector<8x64xf32>
    %cst_180 = arith.constant dense<0.000000e+00> : vector<8xf32>
    %647 = vector.multi_reduction <add>, %646, %cst_180 [1] : vector<8x64xf32> to vector<8xf32>
    %648 = vector.shape_cast %647 : vector<8xf32> to vector<8x1xf32>
    %cst_181 = arith.constant 6.400000e+01 : f32
    %649 = vector.broadcast %cst_181 : f32 to vector<8x1xf32>
    %650 = arith.divf %648, %649 : vector<8x1xf32>
    %651 = vector.broadcast %650 : vector<8x1xf32> to vector<8x64xf32>
    %652 = arith.subf %646, %651 : vector<8x64xf32>
    %653 = arith.mulf %652, %652 : vector<8x64xf32>
    %cst_182 = arith.constant dense<0.000000e+00> : vector<8xf32>
    %654 = vector.multi_reduction <add>, %653, %cst_182 [1] : vector<8x64xf32> to vector<8xf32>
    %655 = vector.shape_cast %654 : vector<8xf32> to vector<8x1xf32>
    %cst_183 = arith.constant 6.400000e+01 : f32
    %656 = vector.broadcast %cst_183 : f32 to vector<8x1xf32>
    %657 = arith.divf %655, %656 : vector<8x1xf32>
    %658 = vector.broadcast %650 : vector<8x1xf32> to vector<8x64xf32>
    %659 = arith.subf %646, %658 : vector<8x64xf32>
    %cst_184 = arith.constant 9.99999974E-6 : f32
    %660 = vector.broadcast %cst_184 : f32 to vector<8x1xf32>
    %661 = arith.addf %657, %660 : vector<8x1xf32>
    %662 = math.rsqrt %661 : vector<8x1xf32>
    %663 = vector.broadcast %662 : vector<8x1xf32> to vector<8x64xf32>
    %664 = arith.mulf %659, %663 : vector<8x64xf32>
    %c0_185 = arith.constant 0 : index
    %c0_186 = arith.constant 0 : index
    %665 = vector.load %arg10[%c0_185, %c0_186] : memref<1x64xf32, #tpu.memory_space<vmem>>, vector<1x64xf32>
    %666 = vector.broadcast %665 : vector<1x64xf32> to vector<8x64xf32>
    %667 = arith.mulf %664, %666 : vector<8x64xf32>
    %c0_187 = arith.constant 0 : index
    %c0_188 = arith.constant 0 : index
    %668 = vector.load %arg11[%c0_187, %c0_188] : memref<1x64xf32, #tpu.memory_space<vmem>>, vector<1x64xf32>
    %669 = vector.broadcast %668 : vector<1x64xf32> to vector<8x64xf32>
    %670 = arith.addf %667, %669 : vector<8x64xf32>
    %c0_189 = arith.constant 0 : index
    %c0_190 = arith.constant 0 : index
    %671 = vector.load %arg12[%c0_189, %c0_190] : memref<64x32xf32, #tpu.memory_space<vmem>>, vector<64x32xf32>
    %cst_191 = arith.constant dense<0.000000e+00> : vector<8x32xf32>
    %672 = tpu.matmul %670, %671, %cst_191 {dimension_numbers = #tpu.dot_dimension_numbers<[1], [0], [0], [1], [0, 0, 1, 1], [], []>} : vector<8x64xf32>, vector<64x32xf32>, vector<8x32xf32> -> vector<8x32xf32>
    %c0_192 = arith.constant 0 : index
    %c0_193 = arith.constant 0 : index
    %673 = vector.load %arg13[%c0_192, %c0_193] : memref<1x32xf32, #tpu.memory_space<vmem>>, vector<1x32xf32>
    %674 = vector.broadcast %673 : vector<1x32xf32> to vector<8x32xf32>
    %675 = arith.addf %672, %674 : vector<8x32xf32>
    %cst_194 = arith.constant 0.000000e+00 : f32
    %676 = vector.broadcast %cst_194 : f32 to vector<8x32xf32>
    %677 = arith.maximumf %675, %676 : vector<8x32xf32>
    %c0_195 = arith.constant 0 : index
    %c0_196 = arith.constant 0 : index
    %678 = vector.load %arg14[%c0_195, %c0_196] : memref<32x1xf32, #tpu.memory_space<vmem>>, vector<32x1xf32>
    %cst_197 = arith.constant dense<0.000000e+00> : vector<8x1xf32>
    %679 = tpu.matmul %677, %678, %cst_197 {dimension_numbers = #tpu.dot_dimension_numbers<[1], [0], [0], [1], [0, 0, 1, 1], [], []>} : vector<8x32xf32>, vector<32x1xf32>, vector<8x1xf32> -> vector<8x1xf32>
    %c0_198 = arith.constant 0 : index
    %c0_199 = arith.constant 0 : index
    %680 = vector.load %arg15[%c0_198, %c0_199] : memref<1x1xf32, #tpu.memory_space<vmem>>, vector<1x1xf32>
    %681 = vector.broadcast %680 : vector<1x1xf32> to vector<8x1xf32>
    %682 = arith.addf %679, %681 : vector<8x1xf32>
    %c0_200 = arith.constant 0 : index
    %c0_201 = arith.constant 0 : index
    %683 = vector.load %arg16[%c0_200, %c0_201] : memref<8x1xf32, #tpu.memory_space<vmem>>, vector<8x1xf32>
    tpu.vector_store %arg16[%c0_200, %c0_201], %682 {strides = array<i32>} : memref<8x1xf32, #tpu.memory_space<vmem>>, vector<8x1xf32>,
    return
  }
  func.func @transform_0(%arg0: i32) -> (i32, i32, i32) {
    %c0_i32 = arith.constant 0 : i32
    %c0_i32_0 = arith.constant 0 : i32
    %c0_i32_1 = arith.constant 0 : i32
    return %c0_i32, %arg0, %c0_i32_0 : i32, i32, i32
  }
  func.func @transform_1(%arg0: i32) -> (i32, i32) {
    %c0_i32 = arith.constant 0 : i32
    %c0_i32_0 = arith.constant 0 : i32
    %c0_i32_1 = arith.constant 0 : i32
    return %c0_i32, %c0_i32_0 : i32, i32
  }
  func.func @transform_2(%arg0: i32) -> (i32, i32) {
    %c0_i32 = arith.constant 0 : i32
    %c0_i32_0 = arith.constant 0 : i32
    %c0_i32_1 = arith.constant 0 : i32
    return %c0_i32, %c0_i32_0 : i32, i32
  }
  func.func @transform_3(%arg0: i32) -> (i32, i32) {
    %c0_i32 = arith.constant 0 : i32
    %c0_i32_0 = arith.constant 0 : i32
    %c0_i32_1 = arith.constant 0 : i32
    return %c0_i32, %c0_i32_0 : i32, i32
  }
  func.func @transform_4(%arg0: i32) -> (i32, i32) {
    %c0_i32 = arith.constant 0 : i32
    %c0_i32_0 = arith.constant 0 : i32
    %c0_i32_1 = arith.constant 0 : i32
    return %c0_i32, %c0_i32_0 : i32, i32
  }
  func.func @transform_5(%arg0: i32) -> (i32, i32) {
    %c0_i32 = arith.constant 0 : i32
    %c0_i32_0 = arith.constant 0 : i32
    %c0_i32_1 = arith.constant 0 : i32
    return %c0_i32, %c0_i32_0 : i32, i32
  }
  func.func @transform_6(%arg0: i32) -> (i32, i32) {
    %c0_i32 = arith.constant 0 : i32
    %c0_i32_0 = arith.constant 0 : i32
    %c0_i32_1 = arith.constant 0 : i32
    return %c0_i32, %c0_i32_0 : i32, i32
  }
  func.func @transform_7(%arg0: i32) -> (i32, i32) {
    %c0_i32 = arith.constant 0 : i32
    %c0_i32_0 = arith.constant 0 : i32
    %c0_i32_1 = arith.constant 0 : i32
    return %c0_i32, %c0_i32_0 : i32, i32
  }
  func.func @transform_8(%arg0: i32) -> (i32, i32) {
    %c0_i32 = arith.constant 0 : i32
    %c0_i32_0 = arith.constant 0 : i32
    %c0_i32_1 = arith.constant 0 : i32
    return %c0_i32, %c0_i32_0 : i32, i32
  }
  func.func @transform_9(%arg0: i32) -> (i32, i32) {
    %c0_i32 = arith.constant 0 : i32
    %c0_i32_0 = arith.constant 0 : i32
    %c0_i32_1 = arith.constant 0 : i32
    return %c0_i32, %c0_i32_0 : i32, i32
  }
  func.func @transform_10(%arg0: i32) -> (i32, i32) {
    %c0_i32 = arith.constant 0 : i32
    %c0_i32_0 = arith.constant 0 : i32
    %c0_i32_1 = arith.constant 0 : i32
    return %c0_i32, %c0_i32_0 : i32, i32
  }
  func.func @transform_11(%arg0: i32) -> (i32, i32) {
    %c0_i32 = arith.constant 0 : i32
    %c0_i32_0 = arith.constant 0 : i32
    %c0_i32_1 = arith.constant 0 : i32
    return %c0_i32, %c0_i32_0 : i32, i32
  }
  func.func @transform_12(%arg0: i32) -> (i32, i32) {
    %c0_i32 = arith.constant 0 : i32
    %c0_i32_0 = arith.constant 0 : i32
    %c0_i32_1 = arith.constant 0 : i32
    return %c0_i32, %c0_i32_0 : i32, i32
  }
  func.func @transform_13(%arg0: i32) -> (i32, i32) {
    %c0_i32 = arith.constant 0 : i32
    %c0_i32_0 = arith.constant 0 : i32
    %c0_i32_1 = arith.constant 0 : i32
    return %c0_i32, %c0_i32_0 : i32, i32
  }
  func.func @transform_14(%arg0: i32) -> (i32, i32) {
    %c0_i32 = arith.constant 0 : i32
    %c0_i32_0 = arith.constant 0 : i32
    %c0_i32_1 = arith.constant 0 : i32
    return %c0_i32, %c0_i32_0 : i32, i32
  }
  func.func @transform_15(%arg0: i32) -> (i32, i32) {
    %c0_i32 = arith.constant 0 : i32
    %c0_i32_0 = arith.constant 0 : i32
    return %arg0, %c0_i32 : i32, i32
  }
}

</mosaic_0001>

<bundles_post_ra>
// kernel: _forward_impl.1
= control target key start
LH: loop header
LB: loop body
LE: loop exit
PB: predicated region body
PF: predicated region fallthrough
CT: control target
= control target key end

     0   :  { %s3442_s0 = inlined_call_operand.vmem [shape: f32[8,8,16], index: 0, kind: input, shape index: {}]   ;;  %s3443_s1 = inlined_call_operand.hbm [shape: f32[16,256], index: 1, kind: input, shape index: {}]   ;;  %s3444_s2 = inlined_call_operand.vmem [shape: f32[64,256], index: 2, kind: input, shape index: {}]   ;;  %s3445_s3 = inlined_call_operand.vmem [shape: f32[1,256], index: 3, kind: input, shape index: {}]   ;;  %s3446_s4 = inlined_call_operand.vmem [shape: f32[64,128], index: 4, kind: input, shape index: {}]   ;;  %s3447_s5 = inlined_call_operand.hbm [shape: f32[64,128], index: 5, kind: input, shape index: {}]   ;;  %s3448_s6 = inlined_call_operand.hbm [shape: f32[32,128], index: 6, kind: input, shape index: {}]   ;;  %s3449_s7 = inlined_call_operand.vmem [shape: f32[1,128], index: 7, kind: input, shape index: {}]   ;;  %s3450_s8 = inlined_call_operand.vmem [shape: f32[1,128], index: 8, kind: input, shape index: {}]   ;;  %s3451_s9 = inlined_call_operand.vmem [shape: f32[1,64], index: 9, kind: input, shape index: {}]   ;;  %s3452_s10 = inlined_call_operand.vmem [shape: f32[1,64], index: 10, kind: input, shape index: {}]   ;;  %s3453_s11 = inlined_call_operand.vmem [shape: f32[64,32], index: 11, kind: input, shape index: {}]   ;;  %s3454_s12 = inlined_call_operand.vmem [shape: f32[1,32], index: 12, kind: input, shape index: {}]   ;;  %s3455_s13 = inlined_call_operand.vmem [shape: f32[32,1], index: 13, kind: input, shape index: {}]   ;;  %s3456_s14 = inlined_call_operand.<no memory space> [shape: f32[1,1], index: 14, kind: input, shape index: {}]   ;;  %s3457_s15 = inlined_call_operand.vmem [shape: f32[8,1], index: 15, kind: output, shape index: {}]  }
   0x1   :  { %v20_v0 = vstv %s3456_s14 }
   0x2   :  { %21 = vst [vmem:[#allocation5] sm:$0x1] %v20_v0 }
   0x3   :  { %22 = vsyncpa [#allocation7], 0 }
   0x4   :  { %23 = vsyncpa [#allocation9], 0  ;;  %s49_s22 = sshll.u32 %s3447_s5, 4  ;;  %s2643_s23 = smov [#allocation8]   ;;  %s50_s22 = int_to_ptr.hbm [resolvable:$true] %s49_s22 }
   0x5   :  { %s51_s24 = sshll.u32 %s2643_s23, 4  ;;  %s30_s27 = sshll.u32 %s3443_s1, 4  ;;  %s52_s24 = int_to_ptr.vmem [resolvable:$true] %s51_s24  ;;  %s31_s27 = int_to_ptr.hbm [resolvable:$true] %s30_s27 }
   0x6   :  { %s2644_s28 = smov 128   ;;  %s2645_s29 = smov 8  }
   0x7   :  { %57 = dma.hbm_to_vmem [thread:$0]  %s50_s22, 1024, %s52_s24, [#allocation9], %s2644_s28, %s2644_s28, %s2645_s29  }
   0x8   :  { %s2646_s14 = smov [#allocation6]   ;;  %s2647_s16 = smov 256  }
   0x9   :  { %s32_s30 = sshll.u32 %s2646_s14, 4  ;;  %s2648_s17 = smov 16   ;;  %s33_s30 = int_to_ptr.vmem [resolvable:$true] %s32_s30 }
   0xa   :  { %38 = dma.hbm_to_vmem [thread:$0]  %s31_s27, 512, %s33_s30, [#allocation7], %s2647_s16, %s2647_s16, %s2648_s17  }
   0xb   :  { %s62_s19 = sshll.u32 %s3448_s6, 4  ;;  %s2649_s20 = smov [#allocation10]   ;;  %s63_s19 = int_to_ptr.hbm [resolvable:$true] %s62_s19 }
   0xc   :  { %s64_s21 = sshll.u32 %s2649_s20, 4  ;;  %s65_s21 = int_to_ptr.vmem [resolvable:$true] %s64_s21 }
   0xd   :  { %70 = dma.hbm_to_vmem [thread:$0]  %s63_s19, 512, %s65_s21, [#allocation9], %s2644_s28, %s2644_s28, %s2645_s29  }
   0xe   :  { %2639 = dma.done.wait [#allocation7], 512  }
   0xf   :  { %2640 = vsyncadd [#allocation7], 4294966784 }
  0x10   :  { %2641 = dma.done.wait [#allocation9], 1536  }
  0x11   :  { %2642 = vsyncadd [#allocation9], 4294965760  ;;  %v110_v1 = vld [vmem:[#allocation6 + $0x18] sm:$0xff]  ;;  %v2750_v2 = vld [vmem:[%s3444_s2 + $0x70] sm:$0xff]  ;;  %vm117_vm0 = vcmask 130048   ;;  %v2650_v20 = vmov 0.0  }
  0x12   :  { %v108_v3 = vld [vmem:[#allocation6 + $0x8] sm:$0xff]  ;;  %197 = vmatpush.msra.mxu1 %v110_v1  ;;  %268 = vmatpush.msra.mxu2 %v2750_v2  ;;  %v2756_v4 = vld [vmem:[%s3444_s2 + $0x60] sm:$0xff]  ;;  %v109_v8 = vld [vmem:[#allocation6 + $0x10] sm:$0xff]  ;;  %s2653_s30 = smov 96   ;;  %vm383_vm9 = vcmask 261120   ;;  %vm256_vm10 = vcmask 523264  }
  0x13   :  { %v99_v5 = vld [vmem:[%s3442_s0] sm:$0xff]  ;;  %v2764_v6 = vld [vmem:[%s3444_s2 + $0x50] sm:$0xff]  ;;  %156 = vmatpush.msra.mxu0 %v109_v8  ;;  %v2777_v10 = vld [vmem:[%s3444_s2 + $0x78] sm:$0xff] }
  0x14   :  { %198 = vmatpush.msra.mxu1 %v108_v3  ;;  %269 = vmatpush.msra.mxu2 %v2756_v4  ;;  %v2771_v7 = vld [vmem:[%s3444_s2 + $0x40] sm:$0xff]  ;;  %v2782_v11 = vld [vmem:[%s3444_s2 + $0x30] sm:$0xff]  ;;  %v2788_v12 = vld [vmem:[%s3444_s2 + $0x68] sm:$0xff] }
  0x15   :  { %2271 = vmatmul.msk.f32.vlgmr.msra.gmra.mxu1 %vm117_vm0, %v99_v5  ;;  %v107_v9 = vld [vmem:[#allocation6] sm:$0xff]  ;;  %288 = vmatpush.msra.mxu3 %v2777_v10  ;;  %v2807_v15 = vld [vmem:[%s3444_s2 + $0x10] sm:$0xff]  ;;  %v2820_v17 = vld [vmem:[%s3444_s2 + $0x58] sm:$0xff] }
  0x16   :  { %270 = vmatpush.msra.mxu2 %v2764_v6  ;;  %843 = vmatpush.msrb.mxu1 %v2777_v10  ;;  %v2795_v13 = vld [vmem:[%s3444_s2 + $0x20] sm:$0xff]  ;;  %v100_v14 = vld [vmem:[%s3442_s0 + $0x8] sm:$0xff]  ;;  %v2833_v19 = vld [vmem:[%s3444_s2 + $0x38] sm:$0xff] }
  0x17   :  { %157 = vmatpush.msra.mxu0 %v107_v9  ;;  %289 = vmatpush.msra.mxu3 %v2788_v12  ;;  %v2815_v16 = vld [vmem:[%s3444_s2] sm:$0xff]  ;;  %v2825_v18 = vld [vmem:[%s3444_s2 + $0x48] sm:$0xff]  ;;  %v101_v22 = vld [vmem:[%s3442_s0 + $0x10] sm:$0xff] }
  0x18   :  { %271 = vmatpush.msra.mxu2 %v2771_v7  ;;  %2263 = vmatmul.msk.f32.vlgmr.msra.gmra.mxu0 %vm117_vm0, %v99_v5  ;;  %v2843_v21 = vld [vmem:[%s3444_s2 + $0x28] sm:$0xff]  ;;  %v2859_v23 = vld [vmem:[%s3444_s2 + $0x18] sm:$0xff]  ;;  %v103_v26 = vld [vmem:[%s3442_s0 + $0x20] sm:$0xff] }
  0x19   :  { %844 = vmatpush.msrb.mxu1 %v2788_v12  ;;  %823 = vmatpush.msrb.mxu0 %v2750_v2  ;;  %v2864_v24 = vld [vmem:[%s3444_s2 + $0x8] sm:$0xff]  ;;  %v102_v25 = vld [vmem:[%s3442_s0 + $0x18] sm:$0xff]  ;;  %v105_v28 = vld [vmem:[%s3442_s0 + $0x30] sm:$0xff] }
  0x1a   :  { %272 = vmatpush.msra.mxu2 %v2782_v11  ;;  %290 = vmatpush.msra.mxu3 %v2820_v17  ;;  %v104_v27 = vld [vmem:[%s3442_s0 + $0x28] sm:$0xff]  ;;  %v106_v29 = vld [vmem:[%s3442_s0 + $0x38] sm:$0xff]  ;;  %v111_v30 = vld [vmem:[%s3445_s3] sm:$0x3]  ;;  %s2651_s0 = smov 32   ;;  %s2652_s3 = smov 64  }
  0x1b   :  { %824 = vmatpush.msrb.mxu0 %v2756_v4  ;;  %845 = vmatpush.msrb.mxu1 %v2820_v17  ;;  %v114_v31 = vperm.slane %v111_v30, 1  ;;  %v2956_v36 = vperm.slane %v111_v30, 0 }
  0x1c   :  { %273 = vmatpush.msra.mxu2 %v2795_v13  ;;  %291 = vmatpush.msra.mxu3 %v2825_v18 }
  0x1d   :  { %2272 = vmatmul.msk.f32.gmra.mxu1 %vm117_vm0, %v100_v14  ;;  %825 = vmatpush.msrb.mxu0 %v2764_v6 }
  0x1e   :  { %274 = vmatpush.msra.mxu2 %v2807_v15  ;;  %292 = vmatpush.msra.mxu3 %v2833_v19 }
  0x1f   :  { %846 = vmatpush.msrb.mxu1 %v2825_v18  ;;  %826 = vmatpush.msrb.mxu0 %v2771_v7 }
  0x20   :  { %275 = vmatpush.msra.mxu2 %v2815_v16  ;;  %2264 = vmatmul.msk.f32.gmra.mxu0 %vm117_vm0, %v100_v14 }
  0x21   :  { %276 = vmatmul.f32.vlgmr.msra.gmra.mxu2 %v2650_v20  ;;  %293 = vmatpush.msra.mxu3 %v2843_v21 }
  0x22   :  { %406 = vmatpush.msrb.mxu2 %v2750_v2  ;;  %827 = vmatpush.msrb.mxu0 %v2782_v11 }
  0x23   :  { %294 = vmatpush.msra.mxu3 %v2859_v23  ;;  %847 = vmatpush.msrb.mxu1 %v2833_v19 }
  0x24   :  { %407 = vmatpush.msrb.mxu2 %v2756_v4  ;;  %828 = vmatpush.msrb.mxu0 %v2795_v13 }
  0x25   :  { %2273 = vmatmul.msk.f32.gmra.mxu1 %vm117_vm0, %v101_v22  ;;  %295 = vmatpush.msra.mxu3 %v2864_v24 }
  0x26   :  { %408 = vmatpush.msrb.mxu2 %v2764_v6  ;;  %296 = vmatmul.f32.vlgmr.msra.gmra.mxu3 %v2650_v20 }
  0x27   :  { %426 = vmatpush.msrb.mxu3 %v2777_v10  ;;  %848 = vmatpush.msrb.mxu1 %v2843_v21 }
  0x28   :  { %409 = vmatpush.msrb.mxu2 %v2771_v7  ;;  %2265 = vmatmul.msk.f32.gmra.mxu0 %vm117_vm0, %v101_v22 }
  0x29   :  { %829 = vmatpush.msrb.mxu0 %v2807_v15  ;;  %427 = vmatpush.msrb.mxu3 %v2788_v12 }
  0x2a   :  { %410 = vmatpush.msrb.mxu2 %v2782_v11  ;;  %849 = vmatpush.msrb.mxu1 %v2859_v23 }
  0x2b   :  { %830 = vmatpush.msrb.mxu0 %v2815_v16  ;;  %428 = vmatpush.msrb.mxu3 %v2820_v17 }
  0x2c   :  { %411 = vmatpush.msrb.mxu2 %v2795_v13  ;;  %850 = vmatpush.msrb.mxu1 %v2864_v24 }
  0x2d   :  { %2274 = vmatmul.msk.f32.gmra.mxu1 %vm117_vm0, %v102_v25  ;;  %1097 = vmatpush.msra.mxu0 %v2750_v2 }
  0x2e   :  { %412 = vmatpush.msrb.mxu2 %v2807_v15  ;;  %429 = vmatpush.msrb.mxu3 %v2825_v18 }
  0x2f   :  { %1117 = vmatpush.msra.mxu1 %v2777_v10  ;;  %1098 = vmatpush.msra.mxu0 %v2756_v4 }
  0x30   :  { %413 = vmatpush.msrb.mxu2 %v2815_v16  ;;  %2266 = vmatmul.msk.f32.gmra.mxu0 %vm117_vm0, %v102_v25 }
  0x31   :  { %430 = vmatpush.msrb.mxu3 %v2833_v19  ;;  %1118 = vmatpush.msra.mxu1 %v2788_v12 }
  0x32   :  { %545 = vmatpush.msra.mxu2 %v2750_v2  ;;  %1099 = vmatpush.msra.mxu0 %v2764_v6 }
  0x33   :  { %431 = vmatpush.msrb.mxu3 %v2843_v21  ;;  %1119 = vmatpush.msra.mxu1 %v2820_v17 }
  0x34   :  { %546 = vmatpush.msra.mxu2 %v2756_v4  ;;  %1100 = vmatpush.msra.mxu0 %v2771_v7 }
  0x35   :  { %2275 = vmatmul.msk.f32.gmra.mxu1 %vm117_vm0, %v103_v26  ;;  %432 = vmatpush.msrb.mxu3 %v2859_v23 }
  0x36   :  { %547 = vmatpush.msra.mxu2 %v2764_v6  ;;  %1120 = vmatpush.msra.mxu1 %v2825_v18 }
  0x37   :  { %433 = vmatpush.msrb.mxu3 %v2864_v24  ;;  %1101 = vmatpush.msra.mxu0 %v2782_v11 }
  0x38   :  { %548 = vmatpush.msra.mxu2 %v2771_v7  ;;  %2267 = vmatmul.msk.f32.gmra.mxu0 %vm117_vm0, %v103_v26 }
  0x39   :  { %565 = vmatpush.msra.mxu3 %v2777_v10  ;;  %1121 = vmatpush.msra.mxu1 %v2833_v19 }
  0x3a   :  { %549 = vmatpush.msra.mxu2 %v2782_v11  ;;  %1102 = vmatpush.msra.mxu0 %v2795_v13 }
  0x3b   :  { %566 = vmatpush.msra.mxu3 %v2788_v12  ;;  %1122 = vmatpush.msra.mxu1 %v2843_v21 }
  0x3c   :  { %550 = vmatpush.msra.mxu2 %v2795_v13  ;;  %1103 = vmatpush.msra.mxu0 %v2807_v15 }
  0x3d   :  { %2276 = vmatmul.msk.f32.gmra.mxu1 %vm117_vm0, %v104_v27  ;;  %567 = vmatpush.msra.mxu3 %v2820_v17 }
  0x3e   :  { %551 = vmatpush.msra.mxu2 %v2807_v15  ;;  %1123 = vmatpush.msra.mxu1 %v2859_v23 }
  0x3f   :  { %568 = vmatpush.msra.mxu3 %v2825_v18  ;;  %1104 = vmatpush.msra.mxu0 %v2815_v16 }
  0x40   :  { %552 = vmatpush.msra.mxu2 %v2815_v16  ;;  %2268 = vmatmul.msk.f32.gmra.mxu0 %vm117_vm0, %v104_v27 }
  0x41   :  { %569 = vmatpush.msra.mxu3 %v2833_v19  ;;  %1124 = vmatpush.msra.mxu1 %v2864_v24 }
  0x43   :  { %570 = vmatpush.msra.mxu3 %v2843_v21 }
  0x45   :  { %2277 = vmatmul.msk.f32.gmra.mxu1 %vm117_vm0, %v105_v28  ;;  %571 = vmatpush.msra.mxu3 %v2859_v23 }
  0x47   :  { %572 = vmatpush.msra.mxu3 %v2864_v24 }
  0x48   :  { %2269 = vmatmul.msk.f32.gmra.mxu0 %vm117_vm0, %v105_v28 }
  0x4d   :  { %2278 = vmatmul.msk.f32.gmra.mxu1 %vm117_vm0, %v106_v29 }
  0x50   :  { %2270 = vmatmul.msk.f32.gmra.mxu0 %vm117_vm0, %v106_v29 }
  0x92   :  { %v200_v32 = vpop.f32.mrf.mxu1 }
  0x93   :  { %v2952_v33 = vadd.f32 %v200_v32, %v114_v31 }
  0x95   :  { %v159_v37 = vpop.f32.mrf.mxu0 }
  0x96   :  { %v160_v38 = vadd.f32 %v159_v37, %v2956_v36 }
  0x9a   :  { %v203_v34 = vpop.f32.mrf.mxu1 }
  0x9b   :  { %v2954_v35 = vadd.f32 %v203_v34, %v114_v31 }
  0xa2   :  { %v206_v39 = vpop.f32.mrf.mxu1 }
  0xa3   :  { %v2959_v40 = vadd.f32 %v206_v39, %v114_v31 }
  0xa4   :  { %v277_v41 = vpop.f32.mrf.mxu2 }
  0xa5   :  { %v301_v42 = vadd.f32 %v277_v41, %v160_v38 }
  0xa7   :  { %2363 = vtanh.f32 %v301_v42  ;;  %v2279_v57 = vmul.f32 -1.442695, %v301_v42 }
  0xa9   :  { %v297_v53 = vpop.f32.mrf.mxu3 }
  0xaa   :  { %v209_v43 = vpop.f32.mrf.mxu1 }
  0xab   :  { %v2961_v44 = vadd.f32 %v209_v43, %v114_v31 }
  0xad   :  { %v2364_v45 = vpop.eup %2363 }
  0xae   :  { %324 = vrot.lane.b32.xlu0 %v2364_v45, %s2651_s0 }
  0xb2   :  { %v212_v46 = vpop.f32.mrf.mxu1 }
  0xb3   :  { %v2964_v47 = vadd.f32 %v212_v46, %v114_v31 }
  0xba   :  { %v215_v48 = vpop.f32.mrf.mxu1 }
  0xbb   :  { %v2966_v49 = vadd.f32 %v215_v48, %v114_v31 }
  0xc2   :  { %v218_v50 = vpop.f32.mrf.mxu1 }
  0xc3   :  { %v2968_v51 = vadd.f32 %v218_v50, %v114_v31 }
  0xca   :  { %v221_v52 = vpop.f32.mrf.mxu1 }
  0xcb   :  { %v222_v54 = vadd.f32 %v221_v52, %v114_v31 }
  0xcd   :  { %v341_v55 = vadd.f32 %v297_v53, %v222_v54 }
  0xcf   :  { %2365 = vtanh.f32 %v341_v55  ;;  %v2280_v5 = vmul.f32 -1.442695, %v341_v55 }
  0xd0   :  { %2367 = vpow2.f32 %v2279_v57 }
  0xd5   :  { %v2366_v56 = vpop.eup %2365 }
  0xd6   :  { %364 = vrot.lane.b32.xlu0 %v2366_v56, %s2651_s0  ;;  %v2368_v58 = vpop.eup %2367 }
  0xd7   :  { %v305_v59 = vadd.f32 1.0, %v2368_v58 }
  0xd9   :  { %2369 = vrcp.f32 %v305_v59  ;;  %vm311_vm1 = vweird.f32 %v305_v59  ;;  %v317_v0 = vand.u32 2147483648, %v305_v59  ;;  %v315_v3 = vand.u32 2147483647, %v305_v59 }
  0xda   :  { %2371 = vpow2.f32 %v2280_v5 }
  0xdb   :  { %v318_v8 = vor.u32 1.1754944e-38, %v317_v0  ;;  %vm316_vm4 = vcmp.eq.f32.partialorder %v315_v3, 8.507059e+37 }
  0xdf   :  { %v2370_v60 = vpop.eup %2369 }
  0xe0   :  { %v307_v61 = vmul.f32 %v2370_v60, %v305_v59  ;;  %vm312_vm2 = vweird.f32 %v2370_v60  ;;  %v2372_v26 = vpop.eup %2371 }
  0xe1   :  { %vm313_vm3 = vmor %vm311_vm1, %vm312_vm2  ;;  %v345_v27 = vadd.f32 1.0, %v2372_v26 }
  0xe2   :  { %v308_v62 = vsub.f32 1.0, %v307_v61 }
  0xe3   :  { %2373 = vrcp.f32 %v345_v27  ;;  %v357_v34 = vand.u32 2147483648, %v345_v27  ;;  %vm351_vm6 = vweird.f32 %v345_v27  ;;  %v355_v37 = vand.u32 2147483647, %v345_v27 }
  0xe4   :  { %v309_v63 = vmul.f32 %v2370_v60, %v308_v62 }
  0xe5   :  { %v358_v39 = vor.u32 1.1754944e-38, %v357_v34  ;;  %vm356_vm8 = vcmp.eq.f32.partialorder %v355_v37, 8.507059e+37 }
  0xe6   :  { %v310_v1 = vadd.f32 %v2370_v60, %v309_v63  ;;  %v162_v63 = vpop.f32.mrf.mxu0 }
  0xe7   :  { %v163_v0 = vadd.f32 %v162_v63, %v2956_v36 }
  0xe8   :  { %v314_v9 = vsel %vm313_vm3, %v2370_v60, %v310_v1 }
  0xe9   :  { %v319_v22 = vsel %vm316_vm4, %v318_v8, %v314_v9  ;;  %v2374_v28 = vpop.eup %2373 }
  0xea   :  { %v347_v29 = vmul.f32 %v2374_v28, %v345_v27  ;;  %vm352_vm5 = vweird.f32 %v2374_v28  ;;  %v322_v45 = vmul.f32 0.0, %v319_v22 }
  0xeb   :  { %vm353_vm7 = vmor %vm351_vm6, %vm352_vm5 }
  0xec   :  { %v348_v30 = vsub.f32 1.0, %v347_v29 }
  0xee   :  { %v349_v31 = vmul.f32 %v2374_v28, %v348_v30 }
  0xf0   :  { %v350_v32 = vadd.f32 %v2374_v28, %v349_v31 }
  0xf2   :  { %v354_v38 = vsel %vm353_vm7, %v2374_v28, %v350_v32 }
  0xf3   :  { %v359_v41 = vsel %vm356_vm8, %v358_v39, %v354_v38 }
  0xf4   :  { %v362_v52 = vmul.f32 0.0, %v359_v41 }
 0x120   :  { %v325_v14 = vpop.permute.xlu0 %324 }
 0x121   :  { %v327_v25 = vmul.f32 %v325_v14, %v319_v22 }
 0x123   :  { %329 = vrot.lane.b32.xlu1 %v327_v25, %s2651_s0 }
 0x148   :  { %v365_v42 = vpop.permute.xlu0 %364 }
 0x149   :  { %v367_v43 = vmul.f32 %v365_v42, %v359_v41 }
 0x14b   :  { %369 = vrot.lane.b32.xlu1 %v367_v43, %s2651_s0 }
 0x195   :  { %v330_v46 = vpop.permute.xlu1 %329 }
 0x196   :  { %v2973_v48 = vadd.f32 %v330_v46, %v322_v45 }
 0x198   :  { %2375 = vtanh.f32 %v2973_v48 }
 0x19e   :  { %v2376_v50 = vpop.eup %2375 }
 0x19f   :  { %335 = vrot.lane.b32.xlu2 %v2376_v50, %s2651_s0 }
 0x1bd   :  { %v370_v53 = vpop.permute.xlu1 %369 }
 0x1be   :  { %v2977_v54 = vadd.f32 %v370_v53, %v362_v52 }
 0x1c0   :  { %2377 = vtanh.f32 %v2977_v54 }
 0x1c6   :  { %v2378_v55 = vpop.eup %2377 }
 0x1c7   :  { %375 = vrot.lane.b32.xlu2 %v2378_v55, %s2651_s0 }
 0x1f9   :  { %v336_v56 = vpop.permute.xlu2 %335 }
 0x1fa   :  { %v338_v57 = vmul.f32 %v336_v56, %v319_v22 }
 0x1fc   :  { %380 = vrot.lane.b32.xlu0 %v338_v57, %s2652_s3 }
 0x221   :  { %v376_v58 = vpop.permute.xlu2 %375 }
 0x222   :  { %v2982_v59 = vmul.f32 %v376_v58, %v359_v41 }
 0x224   :  { %391 = vrot.lane.b32.xlu1 %v2982_v59, %s2653_s30 }
 0x26e   :  { %v381_v60 = vpop.permute.xlu0 %380 }
 0x26f   :  { %384 = vst.msk [vmem:[#allocation3] sm:$0xff] %vm383_vm9, %v381_v60 }
 0x296   :  { %v392_v61 = vpop.permute.xlu1 %391 }
 0x297   :  { %v394_v62 = vsel %vm383_vm9, %v381_v60, %v392_v61 }
 0x298   :  { %2281 = vmatmul.msk.f32.vlgmr.msrb.gmra.mxu2 %vm256_vm10, %v394_v62  ;;  %2282 = vmatmul.msk.f32.vlgmr.msrb.gmra.mxu3 %vm256_vm10, %v394_v62 }
 0x299   :  { %684 = vmatpush.msrb.mxu2 %v2750_v2  ;;  %704 = vmatpush.msrb.mxu3 %v2777_v10 }
 0x29b   :  { %685 = vmatpush.msrb.mxu2 %v2756_v4  ;;  %705 = vmatpush.msrb.mxu3 %v2788_v12 }
 0x29d   :  { %686 = vmatpush.msrb.mxu2 %v2764_v6  ;;  %706 = vmatpush.msrb.mxu3 %v2820_v17 }
 0x29f   :  { %687 = vmatpush.msrb.mxu2 %v2771_v7  ;;  %707 = vmatpush.msrb.mxu3 %v2825_v18 }
 0x2a1   :  { %688 = vmatpush.msrb.mxu2 %v2782_v11  ;;  %708 = vmatpush.msrb.mxu3 %v2833_v19 }
 0x2a3   :  { %689 = vmatpush.msrb.mxu2 %v2795_v13  ;;  %709 = vmatpush.msrb.mxu3 %v2843_v21 }
 0x2a5   :  { %690 = vmatpush.msrb.mxu2 %v2807_v15  ;;  %710 = vmatpush.msrb.mxu3 %v2859_v23 }
 0x2a7   :  { %691 = vmatpush.msrb.mxu2 %v2815_v16  ;;  %711 = vmatpush.msrb.mxu3 %v2864_v24 }
 0x31b   :  { %v415_v1 = vpop.f32.mrf.mxu2  ;;  %v435_v3 = vpop.f32.mrf.mxu3 }
 0x31c   :  { %v440_v5 = vadd.f32 %v415_v1, %v163_v0  ;;  %v480_v8 = vadd.f32 %v435_v3, %v2968_v51 }
 0x31e   :  { %2379 = vtanh.f32 %v440_v5  ;;  %v2283_v22 = vmul.f32 -1.442695, %v440_v5  ;;  %v2284_v28 = vmul.f32 -1.442695, %v480_v8 }
 0x31f   :  { %2381 = vtanh.f32 %v480_v8 }
 0x320   :  { %2383 = vpow2.f32 %v2283_v22 }
 0x324   :  { %v2380_v9 = vpop.eup %2379 }
 0x325   :  { %v2382_v14 = vpop.eup %2381  ;;  %463 = vrot.lane.b32.xlu2 %v2380_v9, %s2651_s0 }
 0x326   :  { %503 = vrot.lane.b32.xlu0 %v2382_v14, %s2651_s0  ;;  %v2384_v25 = vpop.eup %2383 }
 0x327   :  { %v444_v26 = vadd.f32 1.0, %v2384_v25 }
 0x329   :  { %2385 = vrcp.f32 %v444_v26  ;;  %v456_v37 = vand.u32 2147483648, %v444_v26  ;;  %vm450_vm12 = vweird.f32 %v444_v26  ;;  %v454_v38 = vand.u32 2147483647, %v444_v26 }
 0x32a   :  { %2387 = vpow2.f32 %v2284_v28 }
 0x32b   :  { %v457_v41 = vor.u32 1.1754944e-38, %v456_v37  ;;  %vm455_vm14 = vcmp.eq.f32.partialorder %v454_v38, 8.507059e+37 }
 0x32f   :  { %v2386_v27 = vpop.eup %2385 }
 0x330   :  { %v446_v29 = vmul.f32 %v2386_v27, %v444_v26  ;;  %v2388_v51 = vpop.eup %2387  ;;  %vm451_vm11 = vweird.f32 %v2386_v27 }
 0x331   :  { %v484_v32 = vadd.f32 1.0, %v2388_v51  ;;  %vm452_vm13 = vmor %vm450_vm12, %vm451_vm11 }
 0x332   :  { %v447_v30 = vsub.f32 1.0, %v446_v29 }
 0x333   :  { %2389 = vrcp.f32 %v484_v32  ;;  %v496_v56 = vand.u32 2147483648, %v484_v32  ;;  %vm490_vm0 = vweird.f32 %v484_v32  ;;  %v494_v57 = vand.u32 2147483647, %v484_v32 }
 0x334   :  { %v448_v31 = vmul.f32 %v2386_v27, %v447_v30  ;;  %v165_v30 = vpop.f32.mrf.mxu0 }
 0x335   :  { %v497_v60 = vor.u32 1.1754944e-38, %v496_v56  ;;  %vm495_vm2 = vcmp.eq.f32.partialorder %v494_v57, 8.507059e+37 }
 0x336   :  { %v449_v34 = vadd.f32 %v2386_v27, %v448_v31  ;;  %v166_v31 = vadd.f32 %v165_v30, %v2956_v36 }
 0x338   :  { %v453_v39 = vsel %vm452_vm13, %v2386_v27, %v449_v34 }
 0x339   :  { %v458_v43 = vsel %vm455_vm14, %v457_v41, %v453_v39  ;;  %v2390_v46 = vpop.eup %2389 }
 0x33a   :  { %v486_v50 = vmul.f32 %v2390_v46, %v484_v32  ;;  %vm491_vm15 = vweird.f32 %v2390_v46  ;;  %v461_v0 = vmul.f32 %v458_v43, %v2973_v48 }
 0x33b   :  { %vm492_vm1 = vmor %vm490_vm0, %vm491_vm15 }
 0x33c   :  { %v487_v52 = vsub.f32 1.0, %v486_v50 }
 0x33e   :  { %v488_v53 = vmul.f32 %v2390_v46, %v487_v52 }
 0x340   :  { %v489_v55 = vadd.f32 %v2390_v46, %v488_v53 }
 0x342   :  { %v493_v58 = vsel %vm492_vm1, %v2390_v46, %v489_v55 }
 0x343   :  { %v498_v62 = vsel %vm495_vm2, %v497_v60, %v493_v58 }
 0x344   :  { %v501_v1 = vmul.f32 %v498_v62, %v2977_v54 }
 0x37f   :  { %v464_v42 = vpop.permute.xlu2 %463 }
 0x380   :  { %v466_v45 = vmul.f32 %v464_v42, %v458_v43 }
 0x382   :  { %468 = vrot.lane.b32.xlu1 %v466_v45, %s2651_s0 }
 0x398   :  { %v504_v61 = vpop.permute.xlu0 %503 }
 0x399   :  { %v506_v63 = vmul.f32 %v504_v61, %v498_v62 }
 0x39b   :  { %508 = vrot.lane.b32.xlu2 %v506_v63, %s2651_s0 }
 0x3f4   :  { %v469_v3 = vpop.permute.xlu1 %468 }
 0x3f5   :  { %v509_v5 = vpop.permute.xlu2 %508  ;;  %v3014_v8 = vadd.f32 %v469_v3, %v461_v0 }
 0x3f6   :  { %v3016_v9 = vadd.f32 %v509_v5, %v501_v1 }
 0x3f7   :  { %2391 = vtanh.f32 %v3014_v8 }
 0x3f8   :  { %2393 = vtanh.f32 %v3016_v9 }
 0x3fd   :  { %v2392_v14 = vpop.eup %2391 }
 0x3fe   :  { %v2394_v22 = vpop.eup %2393  ;;  %474 = vrot.lane.b32.xlu0 %v2392_v14, %s2651_s0 }
 0x3ff   :  { %514 = vrot.lane.b32.xlu1 %v2394_v22, %s2651_s0 }
 0x470   :  { %v475_v25 = vpop.permute.xlu0 %474 }
 0x471   :  { %v515_v48 = vpop.permute.xlu1 %514  ;;  %v477_v26 = vmul.f32 %v475_v25, %v458_v43 }
 0x472   :  { %v3022_v54 = vmul.f32 %v515_v48, %v498_v62 }
 0x473   :  { %519 = vrot.lane.b32.xlu2 %v477_v26, %s2652_s3 }
 0x474   :  { %530 = vrot.lane.b32.xlu0 %v3022_v54, %s2653_s30 }
 0x4cd   :  { %v520_v27 = vpop.permute.xlu2 %519 }
 0x4ce   :  { %523 = vst.msk [vmem:[#allocation3 + $0x8] sm:$0xff] %vm383_vm9, %v520_v27 }
 0x4e6   :  { %v531_v28 = vpop.permute.xlu0 %530 }
 0x4e7   :  { %v533_v29 = vsel %vm383_vm9, %v520_v27, %v531_v28 }
 0x4e8   :  { %2285 = vmatmul.msk.f32.vlgmr.msra.gmra.mxu2 %vm256_vm10, %v533_v29  ;;  %2286 = vmatmul.msk.f32.vlgmr.msra.gmra.mxu3 %vm256_vm10, %v533_v29 }
 0x4e9   :  { %960 = vmatpush.msra.mxu2 %v2750_v2  ;;  %980 = vmatpush.msra.mxu3 %v2777_v10 }
 0x4eb   :  { %961 = vmatpush.msra.mxu2 %v2756_v4  ;;  %981 = vmatpush.msra.mxu3 %v2788_v12 }
 0x4ed   :  { %962 = vmatpush.msra.mxu2 %v2764_v6  ;;  %982 = vmatpush.msra.mxu3 %v2820_v17 }
 0x4ef   :  { %963 = vmatpush.msra.mxu2 %v2771_v7  ;;  %983 = vmatpush.msra.mxu3 %v2825_v18 }
 0x4f1   :  { %964 = vmatpush.msra.mxu2 %v2782_v11  ;;  %984 = vmatpush.msra.mxu3 %v2833_v19 }
 0x4f3   :  { %965 = vmatpush.msra.mxu2 %v2795_v13  ;;  %985 = vmatpush.msra.mxu3 %v2843_v21 }
 0x4f5   :  { %966 = vmatpush.msra.mxu2 %v2807_v15  ;;  %986 = vmatpush.msra.mxu3 %v2859_v23 }
 0x4f7   :  { %967 = vmatpush.msra.mxu2 %v2815_v16  ;;  %987 = vmatpush.msra.mxu3 %v2864_v24 }
 0x56b   :  { %v554_v51 = vpop.f32.mrf.mxu2  ;;  %v574_v32 = vpop.f32.mrf.mxu3 }
 0x56c   :  { %v579_v34 = vadd.f32 %v554_v51, %v166_v31  ;;  %v619_v37 = vadd.f32 %v574_v32, %v2966_v49 }
 0x56e   :  { %2395 = vtanh.f32 %v579_v34  ;;  %v2288_v41 = vmul.f32 -1.442695, %v619_v37  ;;  %v2287_v46 = vmul.f32 -1.442695, %v579_v34 }
 0x56f   :  { %2397 = vtanh.f32 %v619_v37 }
 0x570   :  { %2399 = vpow2.f32 %v2288_v41 }
 0x574   :  { %v2396_v38 = vpop.eup %2395 }
 0x575   :  { %v2398_v39 = vpop.eup %2397  ;;  %602 = vrot.lane.b32.xlu1 %v2396_v38, %s2651_s0 }
 0x576   :  { %642 = vrot.lane.b32.xlu2 %v2398_v39, %s2651_s0  ;;  %v2400_v42 = vpop.eup %2399 }
 0x577   :  { %v623_v43 = vadd.f32 1.0, %v2400_v42 }
 0x579   :  { %2401 = vrcp.f32 %v623_v43  ;;  %v635_v57 = vand.u32 2147483648, %v623_v43  ;;  %vm629_vm4 = vweird.f32 %v623_v43  ;;  %v633_v58 = vand.u32 2147483647, %v623_v43 }
 0x57a   :  { %2403 = vpow2.f32 %v2287_v46 }
 0x57b   :  { %v636_v61 = vor.u32 1.1754944e-38, %v635_v57  ;;  %vm634_vm6 = vcmp.eq.f32.partialorder %v633_v58, 8.507059e+37 }
 0x57f   :  { %v2402_v45 = vpop.eup %2401 }
 0x580   :  { %v625_v50 = vmul.f32 %v2402_v45, %v623_v43  ;;  %v2404_v53 = vpop.eup %2403  ;;  %vm630_vm3 = vweird.f32 %v2402_v45 }
 0x581   :  { %v583_v55 = vadd.f32 1.0, %v2404_v53  ;;  %vm631_vm5 = vmor %vm629_vm4, %vm630_vm3 }
 0x582   :  { %v626_v52 = vsub.f32 1.0, %v625_v50 }
 0x583   :  { %2405 = vrcp.f32 %v583_v55  ;;  %v595_v25 = vand.u32 2147483648, %v583_v55  ;;  %vm589_vm8 = vweird.f32 %v583_v55  ;;  %v593_v48 = vand.u32 2147483647, %v583_v55 }
 0x584   :  { %v627_v49 = vmul.f32 %v2402_v45, %v626_v52 }
 0x585   :  { %v596_v27 = vor.u32 1.1754944e-38, %v595_v25  ;;  %vm594_vm12 = vcmp.eq.f32.partialorder %v593_v48, 8.507059e+37 }
 0x586   :  { %v628_v56 = vadd.f32 %v2402_v45, %v627_v49 }
 0x588   :  { %v632_v60 = vsel %vm631_vm5, %v2402_v45, %v628_v56 }
 0x589   :  { %v637_v63 = vsel %vm634_vm6, %v636_v61, %v632_v60  ;;  %v2406_v0 = vpop.eup %2405 }
 0x58a   :  { %v585_v3 = vmul.f32 %v2406_v0, %v583_v55  ;;  %vm590_vm7 = vweird.f32 %v2406_v0  ;;  %v640_v31 = vmul.f32 %v637_v63, %v3016_v9 }
 0x58b   :  { %vm591_vm11 = vmor %vm589_vm8, %vm590_vm7 }
 0x58c   :  { %v586_v5 = vsub.f32 1.0, %v585_v3 }
 0x58e   :  { %v587_v14 = vmul.f32 %v2406_v0, %v586_v5 }
 0x590   :  { %v588_v22 = vadd.f32 %v2406_v0, %v587_v14 }
 0x592   :  { %v592_v26 = vsel %vm591_vm11, %v2406_v0, %v588_v22 }
 0x593   :  { %v597_v29 = vsel %vm594_vm12, %v596_v27, %v592_v26 }
 0x594   :  { %v600_v37 = vmul.f32 %v597_v29, %v3014_v8 }
 0x5d0   :  { %v643_v62 = vpop.permute.xlu2 %642 }
 0x5d1   :  { %v645_v1 = vmul.f32 %v643_v62, %v637_v63 }
 0x5d3   :  { %647 = vrot.lane.b32.xlu1 %v645_v1, %s2651_s0 }
 0x5e7   :  { %v603_v28 = vpop.permute.xlu1 %602 }
 0x5e8   :  { %v605_v30 = vmul.f32 %v603_v28, %v597_v29 }
 0x5ea   :  { %607 = vrot.lane.b32.xlu0 %v605_v30, %s2651_s0 }
 0x645   :  { %v648_v51 = vpop.permute.xlu1 %647 }
 0x646   :  { %v3054_v32 = vadd.f32 %v648_v51, %v640_v31 }
 0x648   :  { %2407 = vtanh.f32 %v3054_v32 }
 0x64e   :  { %v2408_v34 = vpop.eup %2407 }
 0x64f   :  { %653 = vrot.lane.b32.xlu0 %v2408_v34, %s2651_s0 }
 0x65c   :  { %v608_v38 = vpop.permute.xlu0 %607 }
 0x65d   :  { %v3059_v39 = vadd.f32 %v608_v38, %v600_v37 }
 0x65f   :  { %2409 = vtanh.f32 %v3059_v39 }
 0x665   :  { %v2410_v41 = vpop.eup %2409 }
 0x666   :  { %613 = vrot.lane.b32.xlu2 %v2410_v41, %s2651_s0 }
 0x6c0   :  { %v614_v42 = vpop.permute.xlu2 %613 }
 0x6c1   :  { %v654_v9 = vpop.permute.xlu0 %653  ;;  %v616_v43 = vmul.f32 %v614_v42, %v597_v29 }
 0x6c2   :  { %v3063_v45 = vmul.f32 %v654_v9, %v637_v63 }
 0x6c3   :  { %658 = vrot.lane.b32.xlu1 %v616_v43, %s2652_s3 }
 0x6c4   :  { %669 = vrot.lane.b32.xlu2 %v3063_v45, %s2653_s30 }
 0x71e   :  { %v670_v46 = vpop.permute.xlu2 %669 }
 0x735   :  { %v659_v8 = vpop.permute.xlu1 %658 }
 0x736   :  { %662 = vst.msk [vmem:[#allocation3 + $0x10] sm:$0xff] %vm383_vm9, %v659_v8  ;;  %v672_v50 = vsel %vm383_vm9, %v659_v8, %v670_v46 }
 0x737   :  { %2289 = vmatmul.msk.f32.vlgmr.msrb.gmra.mxu2 %vm256_vm10, %v672_v50  ;;  %2290 = vmatmul.msk.f32.vlgmr.msrb.gmra.mxu3 %vm256_vm10, %v672_v50 }
 0x738   :  { %1234 = vmatpush.msrb.mxu2 %v2750_v2  ;;  %1254 = vmatpush.msrb.mxu3 %v2777_v10  ;;  %v168_v2 = vpop.f32.mrf.mxu0 }
 0x73a   :  { %1235 = vmatpush.msrb.mxu2 %v2756_v4  ;;  %1255 = vmatpush.msrb.mxu3 %v2788_v12  ;;  %v169_v4 = vadd.f32 %v168_v2, %v2956_v36 }
 0x73c   :  { %1236 = vmatpush.msrb.mxu2 %v2764_v6  ;;  %1256 = vmatpush.msrb.mxu3 %v2820_v17 }
 0x73e   :  { %1237 = vmatpush.msrb.mxu2 %v2771_v7  ;;  %1257 = vmatpush.msrb.mxu3 %v2825_v18 }
 0x740   :  { %1238 = vmatpush.msrb.mxu2 %v2782_v11  ;;  %1258 = vmatpush.msrb.mxu3 %v2833_v19  ;;  %v171_v8 = vpop.f32.mrf.mxu0 }
 0x742   :  { %1239 = vmatpush.msrb.mxu2 %v2795_v13  ;;  %1259 = vmatpush.msrb.mxu3 %v2843_v21 }
 0x744   :  { %1240 = vmatpush.msrb.mxu2 %v2807_v15  ;;  %1260 = vmatpush.msrb.mxu3 %v2859_v23 }
 0x746   :  { %1241 = vmatpush.msrb.mxu2 %v2815_v16  ;;  %1261 = vmatpush.msrb.mxu3 %v2864_v24 }
 0x748   :  { %v3113_v50 = vpop.f32.mrf.mxu0 }
 0x750   :  { %v3115_v2 = vpop.f32.mrf.mxu0 }
 0x7ba   :  { %v693_v6 = vpop.f32.mrf.mxu2  ;;  %v713_v7 = vpop.f32.mrf.mxu3 }
 0x7bb   :  { %v718_v10 = vadd.f32 %v693_v6, %v169_v4  ;;  %v758_v11 = vadd.f32 %v713_v7, %v2964_v47  ;;  %v3117_v4 = vpop.f32.mrf.mxu0  ;;  %v172_v6 = vadd.f32 %v171_v8, %v2956_v36 }
 0x7bd   :  { %2411 = vtanh.f32 %v718_v10  ;;  %v2291_v15 = vmul.f32 -1.442695, %v718_v10  ;;  %v2292_v16 = vmul.f32 -1.442695, %v758_v11 }
 0x7be   :  { %2413 = vtanh.f32 %v758_v11 }
 0x7bf   :  { %2415 = vpow2.f32 %v2291_v15 }
 0x7c0   :  { %2417 = vpow2.f32 %v2292_v16 }
 0x7c3   :  { %v2412_v12 = vpop.eup %2411 }
 0x7c4   :  { %v2414_v13 = vpop.eup %2413  ;;  %741 = vrot.lane.b32.xlu0 %v2412_v12, %s2651_s0 }
 0x7c5   :  { %781 = vrot.lane.b32.xlu1 %v2414_v13, %s2651_s0  ;;  %v2416_v17 = vpop.eup %2415 }
 0x7c6   :  { %v2418_v18 = vpop.eup %2417  ;;  %v722_v19 = vadd.f32 1.0, %v2416_v17 }
 0x7c7   :  { %v762_v21 = vadd.f32 1.0, %v2418_v18 }
 0x7c8   :  { %2419 = vrcp.f32 %v722_v19  ;;  %v734_v60 = vand.u32 2147483648, %v722_v19  ;;  %vm728_vm15 = vweird.f32 %v722_v19  ;;  %v732_v62 = vand.u32 2147483647, %v722_v19 }
 0x7c9   :  { %2421 = vrcp.f32 %v762_v21  ;;  %v774_v61 = vand.u32 2147483648, %v762_v21  ;;  %vm768_vm0 = vweird.f32 %v762_v21  ;;  %v772_v63 = vand.u32 2147483647, %v762_v21 }
 0x7ca   :  { %v735_v3 = vor.u32 1.1754944e-38, %v734_v60  ;;  %vm733_vm3 = vcmp.eq.f32.partialorder %v732_v62, 8.507059e+37 }
 0x7cb   :  { %v775_v5 = vor.u32 1.1754944e-38, %v774_v61  ;;  %vm773_vm4 = vcmp.eq.f32.partialorder %v772_v63, 8.507059e+37 }
 0x7ce   :  { %v2420_v23 = vpop.eup %2419 }
 0x7cf   :  { %v2422_v24 = vpop.eup %2421  ;;  %v724_v47 = vmul.f32 %v2420_v23, %v722_v19  ;;  %vm729_vm13 = vweird.f32 %v2420_v23 }
 0x7d0   :  { %v764_v52 = vmul.f32 %v2422_v24, %v762_v21  ;;  %vm769_vm14 = vweird.f32 %v2422_v24  ;;  %vm730_vm1 = vmor %vm728_vm15, %vm729_vm13 }
 0x7d1   :  { %v725_v53 = vsub.f32 1.0, %v724_v47  ;;  %vm770_vm2 = vmor %vm768_vm0, %vm769_vm14 }
 0x7d2   :  { %v765_v49 = vsub.f32 1.0, %v764_v52 }
 0x7d3   :  { %v726_v55 = vmul.f32 %v2420_v23, %v725_v53 }
 0x7d4   :  { %v766_v56 = vmul.f32 %v2422_v24, %v765_v49 }
 0x7d5   :  { %v727_v57 = vadd.f32 %v2420_v23, %v726_v55 }
 0x7d6   :  { %v767_v58 = vadd.f32 %v2422_v24, %v766_v56 }
 0x7d7   :  { %v731_v0 = vsel %vm730_vm1, %v2420_v23, %v727_v57 }
 0x7d8   :  { %v771_v1 = vsel %vm770_vm2, %v2422_v24, %v767_v58  ;;  %v736_v22 = vsel %vm733_vm3, %v735_v3, %v731_v0 }
 0x7d9   :  { %v776_v48 = vsel %vm773_vm4, %v775_v5, %v771_v1  ;;  %v739_v28 = vmul.f32 %v736_v22, %v3059_v39 }
 0x7da   :  { %v779_v51 = vmul.f32 %v776_v48, %v3054_v32 }
 0x836   :  { %v742_v14 = vpop.permute.xlu0 %741 }
 0x837   :  { %v782_v25 = vpop.permute.xlu1 %781  ;;  %v744_v26 = vmul.f32 %v742_v14, %v736_v22 }
 0x838   :  { %v784_v27 = vmul.f32 %v782_v25, %v776_v48 }
 0x839   :  { %746 = vrot.lane.b32.xlu2 %v744_v26, %s2651_s0 }
 0x83a   :  { %786 = vrot.lane.b32.xlu0 %v784_v27, %s2651_s0 }
 0x893   :  { %v747_v29 = vpop.permute.xlu2 %746 }
 0x894   :  { %v3095_v30 = vadd.f32 %v747_v29, %v739_v28 }
 0x896   :  { %2423 = vtanh.f32 %v3095_v30 }
 0x89c   :  { %v2424_v31 = vpop.eup %2423 }
 0x89d   :  { %752 = vrot.lane.b32.xlu1 %v2424_v31, %s2651_s0 }
 0x8ac   :  { %v787_v34 = vpop.permute.xlu0 %786 }
 0x8ad   :  { %v3100_v37 = vadd.f32 %v787_v34, %v779_v51 }
 0x8af   :  { %2425 = vtanh.f32 %v3100_v37 }
 0x8b5   :  { %v2426_v38 = vpop.eup %2425 }
 0x8b6   :  { %792 = vrot.lane.b32.xlu2 %v2426_v38, %s2651_s0 }
 0x90f   :  { %v753_v41 = vpop.permute.xlu1 %752 }
 0x910   :  { %v793_v39 = vpop.permute.xlu2 %792  ;;  %v755_v42 = vmul.f32 %v753_v41, %v736_v22 }
 0x911   :  { %v3104_v9 = vmul.f32 %v793_v39, %v776_v48 }
 0x912   :  { %797 = vrot.lane.b32.xlu0 %v755_v42, %s2652_s3 }
 0x913   :  { %808 = vrot.lane.b32.xlu1 %v3104_v9, %s2653_s30 }
 0x984   :  { %v798_v43 = vpop.permute.xlu0 %797 }
 0x985   :  { %801 = vst.msk [vmem:[#allocation3 + $0x18] sm:$0xff] %vm383_vm9, %v798_v43  ;;  %v809_v32 = vpop.permute.xlu1 %808 }
 0x986   :  { %v811_v46 = vsel %vm383_vm9, %v798_v43, %v809_v32 }
 0x987   :  { %2293 = vmatmul.msk.f32.vlgmr.msrb.gmra.mxu0 %vm256_vm10, %v811_v46  ;;  %2294 = vmatmul.msk.f32.vlgmr.msrb.gmra.mxu1 %vm256_vm10, %v811_v46 }
 0xa04   :  { %v832_v7 = vpop.f32.mrf.mxu0  ;;  %v852_v10 = vpop.f32.mrf.mxu1 }
 0xa05   :  { %v856_v11 = vadd.f32 %v832_v7, %v172_v6  ;;  %v895_v12 = vadd.f32 %v852_v10, %v2961_v44  ;;  %v175_v6 = vadd.f32 %v3113_v50, %v2956_v36 }
 0xa07   :  { %2427 = vtanh.f32 %v856_v11  ;;  %v2295_v16 = vmul.f32 -1.442695, %v856_v11  ;;  %v2296_v21 = vmul.f32 -1.442695, %v895_v12 }
 0xa08   :  { %2429 = vtanh.f32 %v895_v12 }
 0xa09   :  { %2431 = vpow2.f32 %v2295_v16 }
 0xa0d   :  { %v2428_v13 = vpop.eup %2427 }
 0xa0e   :  { %v2430_v15 = vpop.eup %2429  ;;  %879 = vrot.lane.b32.xlu2 %v2428_v13, %s2651_s0 }
 0xa0f   :  { %918 = vrot.lane.b32.xlu0 %v2430_v15, %s2651_s0  ;;  %v2432_v17 = vpop.eup %2431 }
 0xa10   :  { %v860_v18 = vadd.f32 1.0, %v2432_v17 }
 0xa12   :  { %2433 = vrcp.f32 %v860_v18  ;;  %v872_v49 = vand.u32 2147483648, %v860_v18  ;;  %vm866_vm6 = vweird.f32 %v860_v18  ;;  %v870_v55 = vand.u32 2147483647, %v860_v18 }
 0xa13   :  { %2435 = vpow2.f32 %v2296_v21 }
 0xa14   :  { %v873_v57 = vor.u32 1.1754944e-38, %v872_v49  ;;  %vm871_vm8 = vcmp.eq.f32.partialorder %v870_v55, 8.507059e+37 }
 0xa18   :  { %v2434_v19 = vpop.eup %2433 }
 0xa19   :  { %v862_v23 = vmul.f32 %v2434_v19, %v860_v18  ;;  %v2436_v44 = vpop.eup %2435  ;;  %vm867_vm5 = vweird.f32 %v2434_v19 }
 0xa1a   :  { %v899_v52 = vadd.f32 1.0, %v2436_v44  ;;  %vm868_vm7 = vmor %vm866_vm6, %vm867_vm5 }
 0xa1b   :  { %v863_v24 = vsub.f32 1.0, %v862_v23 }
 0xa1c   :  { %2437 = vrcp.f32 %v899_v52  ;;  %v911_v5 = vand.u32 2147483648, %v899_v52  ;;  %vm905_vm12 = vweird.f32 %v899_v52  ;;  %v909_v14 = vand.u32 2147483647, %v899_v52 }
 0xa1d   :  { %v864_v47 = vmul.f32 %v2434_v19, %v863_v24 }
 0xa1e   :  { %v912_v25 = vor.u32 1.1754944e-38, %v911_v5  ;;  %vm910_vm14 = vcmp.eq.f32.partialorder %v909_v14, 8.507059e+37 }
 0xa1f   :  { %v865_v53 = vadd.f32 %v2434_v19, %v864_v47 }
 0xa21   :  { %v869_v56 = vsel %vm868_vm7, %v2434_v19, %v865_v53 }
 0xa22   :  { %v874_v60 = vsel %vm871_vm8, %v873_v57, %v869_v56  ;;  %v2438_v62 = vpop.eup %2437 }
 0xa23   :  { %v901_v63 = vmul.f32 %v2438_v62, %v899_v52  ;;  %vm906_vm11 = vweird.f32 %v2438_v62  ;;  %v877_v28 = vmul.f32 %v874_v60, %v3095_v30 }
 0xa24   :  { %vm907_vm13 = vmor %vm905_vm12, %vm906_vm11 }
 0xa25   :  { %v902_v0 = vsub.f32 1.0, %v901_v63 }
 0xa27   :  { %v903_v1 = vmul.f32 %v2438_v62, %v902_v0 }
 0xa29   :  { %v904_v3 = vadd.f32 %v2438_v62, %v903_v1 }
 0xa2b   :  { %v908_v22 = vsel %vm907_vm13, %v2438_v62, %v904_v3 }
 0xa2c   :  { %v913_v26 = vsel %vm910_vm14, %v912_v25, %v908_v22 }
 0xa2d   :  { %v916_v29 = vmul.f32 %v913_v26, %v3100_v37 }
 0xa68   :  { %v880_v58 = vpop.permute.xlu2 %879 }
 0xa69   :  { %v882_v61 = vmul.f32 %v880_v58, %v874_v60 }
 0xa6b   :  { %884 = vrot.lane.b32.xlu1 %v882_v61, %s2651_s0 }
 0xa81   :  { %v919_v48 = vpop.permute.xlu0 %918 }
 0xa82   :  { %v921_v27 = vmul.f32 %v919_v48, %v913_v26 }
 0xa84   :  { %923 = vrot.lane.b32.xlu2 %v921_v27, %s2651_s0 }
 0xadd   :  { %v885_v31 = vpop.permute.xlu1 %884 }
 0xade   :  { %v924_v51 = vpop.permute.xlu2 %923  ;;  %v3127_v34 = vadd.f32 %v885_v31, %v877_v28 }
 0xadf   :  { %v3129_v38 = vadd.f32 %v924_v51, %v916_v29 }
 0xae0   :  { %2439 = vtanh.f32 %v3127_v34 }
 0xae1   :  { %2441 = vtanh.f32 %v3129_v38 }
 0xae6   :  { %v2440_v41 = vpop.eup %2439 }
 0xae7   :  { %v2442_v39 = vpop.eup %2441  ;;  %890 = vrot.lane.b32.xlu0 %v2440_v41, %s2651_s0 }
 0xae8   :  { %929 = vrot.lane.b32.xlu1 %v2442_v39, %s2651_s0 }
 0xb59   :  { %v891_v42 = vpop.permute.xlu0 %890 }
 0xb5a   :  { %v930_v30 = vpop.permute.xlu1 %929  ;;  %v893_v43 = vmul.f32 %v891_v42, %v874_v60 }
 0xb5b   :  { %v3135_v37 = vmul.f32 %v930_v30, %v913_v26 }
 0xb5c   :  { %934 = vrot.lane.b32.xlu2 %v893_v43, %s2652_s3 }
 0xb5d   :  { %945 = vrot.lane.b32.xlu0 %v3135_v37, %s2653_s30 }
 0xbb6   :  { %v935_v32 = vpop.permute.xlu2 %934 }
 0xbb7   :  { %938 = vst.msk [vmem:[#allocation3 + $0x20] sm:$0xff] %vm383_vm9, %v935_v32 }
 0xbcf   :  { %v946_v46 = vpop.permute.xlu0 %945 }
 0xbd0   :  { %v948_v8 = vsel %vm383_vm9, %v935_v32, %v946_v46  ;;  %v1373_v32 = vld [vmem:[%s3446_s4 + $0x10] sm:$0xff]  ;;  %v1372_v46 = vld [vmem:[%s3446_s4 + $0x8] sm:$0xff] }
 0xbd1   :  { %2297 = vmatmul.msk.f32.vlgmr.msra.gmra.mxu2 %vm256_vm10, %v948_v8  ;;  %2298 = vmatmul.msk.f32.vlgmr.msra.gmra.mxu3 %vm256_vm10, %v948_v8  ;;  %v1371_v8 = vld [vmem:[%s3446_s4] sm:$0xff] }
 0xc54   :  { %v969_v7 = vpop.f32.mrf.mxu2  ;;  %v989_v10 = vpop.f32.mrf.mxu3 }
 0xc55   :  { %v993_v11 = vadd.f32 %v969_v7, %v175_v6  ;;  %v1032_v12 = vadd.f32 %v989_v10, %v2959_v40 }
 0xc57   :  { %2443 = vtanh.f32 %v993_v11  ;;  %v2300_v16 = vmul.f32 -1.442695, %v1032_v12  ;;  %v2299_v50 = vmul.f32 -1.442695, %v993_v11  ;;  %v1355_v11 = vld [vmem:[#allocation3] sm:$0xff] }
 0xc58   :  { %2445 = vtanh.f32 %v1032_v12  ;;  %v1356_v12 = vld [vmem:[#allocation3 + $0x8] sm:$0xff] }
 0xc59   :  { %2447 = vpow2.f32 %v2300_v16  ;;  %v1359_v16 = vld [vmem:[#allocation3 + $0x20] sm:$0xff] }
 0xc5d   :  { %v2444_v13 = vpop.eup %2443 }
 0xc5e   :  { %v2446_v15 = vpop.eup %2445  ;;  %1016 = vrot.lane.b32.xlu1 %v2444_v13, %s2651_s0  ;;  %v1357_v13 = vld [vmem:[#allocation3 + $0x10] sm:$0xff] }
 0xc5f   :  { %1055 = vrot.lane.b32.xlu2 %v2446_v15, %s2651_s0  ;;  %v2448_v17 = vpop.eup %2447  ;;  %v1358_v15 = vld [vmem:[#allocation3 + $0x18] sm:$0xff] }
 0xc60   :  { %v1036_v18 = vadd.f32 1.0, %v2448_v17 }
 0xc62   :  { %2449 = vrcp.f32 %v1036_v18  ;;  %v1048_v52 = vand.u32 2147483648, %v1036_v18  ;;  %vm1042_vm0 = vweird.f32 %v1036_v18  ;;  %v1046_v53 = vand.u32 2147483647, %v1036_v18 }
 0xc63   :  { %2451 = vpow2.f32 %v2299_v50 }
 0xc64   :  { %v1049_v55 = vor.u32 1.1754944e-38, %v1048_v52  ;;  %vm1047_vm2 = vcmp.eq.f32.partialorder %v1046_v53, 8.507059e+37 }
 0xc68   :  { %v2450_v19 = vpop.eup %2449 }
 0xc69   :  { %v1038_v21 = vmul.f32 %v2450_v19, %v1036_v18  ;;  %v2452_v24 = vpop.eup %2451  ;;  %vm1043_vm15 = vweird.f32 %v2450_v19  ;;  %v178_v18 = vadd.f32 %v3115_v2, %v2956_v36 }
 0xc6a   :  { %v997_v47 = vadd.f32 1.0, %v2452_v24  ;;  %vm1044_vm1 = vmor %vm1042_vm0, %vm1043_vm15 }
 0xc6b   :  { %v1039_v23 = vsub.f32 1.0, %v1038_v21 }
 0xc6c   :  { %2453 = vrcp.f32 %v997_v47  ;;  %v1009_v1 = vand.u32 2147483648, %v997_v47  ;;  %vm1003_vm4 = vweird.f32 %v997_v47  ;;  %v1007_v3 = vand.u32 2147483647, %v997_v47 }
 0xc6d   :  { %v1040_v40 = vmul.f32 %v2450_v19, %v1039_v23 }
 0xc6e   :  { %v1010_v14 = vor.u32 1.1754944e-38, %v1009_v1  ;;  %vm1008_vm6 = vcmp.eq.f32.partialorder %v1007_v3, 8.507059e+37 }
 0xc6f   :  { %v1041_v44 = vadd.f32 %v2450_v19, %v1040_v40 }
 0xc71   :  { %v1045_v49 = vsel %vm1044_vm1, %v2450_v19, %v1041_v44 }
 0xc72   :  { %v1050_v57 = vsel %vm1047_vm2, %v1049_v55, %v1045_v49  ;;  %v2454_v58 = vpop.eup %2453 }
 0xc73   :  { %v999_v61 = vmul.f32 %v2454_v58, %v997_v47  ;;  %vm1004_vm3 = vweird.f32 %v2454_v58  ;;  %v1053_v26 = vmul.f32 %v1050_v57, %v3129_v38 }
 0xc74   :  { %vm1005_vm5 = vmor %vm1003_vm4, %vm1004_vm3 }
 0xc75   :  { %v1000_v62 = vsub.f32 1.0, %v999_v61 }
 0xc77   :  { %v1001_v63 = vmul.f32 %v2454_v58, %v1000_v62 }
 0xc79   :  { %v1002_v0 = vadd.f32 %v2454_v58, %v1001_v63 }
 0xc7b   :  { %v1006_v5 = vsel %vm1005_vm5, %v2454_v58, %v1002_v0 }
 0xc7c   :  { %v1011_v25 = vsel %vm1008_vm6, %v1010_v14, %v1006_v5 }
 0xc7d   :  { %v1014_v31 = vmul.f32 %v1011_v25, %v3127_v34  ;;  %v1374_v34 = vld [vmem:[%s3446_s4 + $0x18] sm:$0xff] }
 0xc7e   :  { %1480 = vmatpush.msrb.mxu1 %v1374_v34 }
 0xc80   :  { %1481 = vmatpush.msrb.mxu1 %v1373_v32 }
 0xc82   :  { %1482 = vmatpush.msrb.mxu1 %v1372_v46 }
 0xc84   :  { %1483 = vmatpush.msrb.mxu1 %v1371_v8 }
 0xcb9   :  { %v1056_v56 = vpop.permute.xlu2 %1055 }
 0xcba   :  { %v1058_v60 = vmul.f32 %v1056_v56, %v1050_v57 }
 0xcbc   :  { %1060 = vrot.lane.b32.xlu1 %v1058_v60, %s2651_s0 }
 0xcd0   :  { %v1017_v22 = vpop.permute.xlu1 %1016 }
 0xcd1   :  { %v1019_v48 = vmul.f32 %v1017_v22, %v1011_v25 }
 0xcd3   :  { %1021 = vrot.lane.b32.xlu0 %v1019_v48, %s2651_s0 }
 0xd2e   :  { %v1061_v27 = vpop.permute.xlu1 %1060 }
 0xd2f   :  { %v3152_v28 = vadd.f32 %v1061_v27, %v1053_v26 }
 0xd31   :  { %2455 = vtanh.f32 %v3152_v28 }
 0xd37   :  { %v2456_v29 = vpop.eup %2455 }
 0xd38   :  { %1066 = vrot.lane.b32.xlu0 %v2456_v29, %s2651_s0 }
 0xd45   :  { %v1022_v51 = vpop.permute.xlu0 %1021 }
 0xd46   :  { %v3157_v41 = vadd.f32 %v1022_v51, %v1014_v31 }
 0xd48   :  { %2457 = vtanh.f32 %v3157_v41 }
 0xd4e   :  { %v2458_v39 = vpop.eup %2457 }
 0xd4f   :  { %1027 = vrot.lane.b32.xlu2 %v2458_v39, %s2651_s0 }
 0xda9   :  { %v1028_v42 = vpop.permute.xlu2 %1027 }
 0xdaa   :  { %v1067_v38 = vpop.permute.xlu0 %1066  ;;  %v1030_v30 = vmul.f32 %v1028_v42, %v1011_v25 }
 0xdab   :  { %v3161_v43 = vmul.f32 %v1067_v38, %v1050_v57 }
 0xdac   :  { %1071 = vrot.lane.b32.xlu1 %v1030_v30, %s2652_s3 }
 0xdad   :  { %1082 = vrot.lane.b32.xlu2 %v3161_v43, %s2653_s30 }
 0xe07   :  { %v1083_v6 = vpop.permute.xlu2 %1082 }
 0xe1e   :  { %v1072_v7 = vpop.permute.xlu1 %1071 }
 0xe1f   :  { %1075 = vst.msk [vmem:[#allocation3 + $0x28] sm:$0xff] %vm383_vm9, %v1072_v7  ;;  %v1085_v10 = vsel %vm383_vm9, %v1072_v7, %v1083_v6 }
 0xe20   :  { %2301 = vmatmul.msk.f32.vlgmr.msra.gmra.mxu0 %vm256_vm10, %v1085_v10  ;;  %2302 = vmatmul.msk.f32.vlgmr.msra.gmra.mxu1 %vm256_vm10, %v1085_v10 }
 0xe26   :  { %v1360_v17 = vld [vmem:[#allocation3 + $0x28] sm:$0xff] }
 0xe28   :  { %2317 = vmatmul.msk.f32.vlgmr.msrb.gmra.mxu1 %vm383_vm9, %v1355_v11 }
 0xe30   :  { %2318 = vmatmul.msk.f32.gmra.mxu1 %vm383_vm9, %v1356_v12 }
 0xe38   :  { %2319 = vmatmul.msk.f32.gmra.mxu1 %vm383_vm9, %v1357_v13 }
 0xe40   :  { %2320 = vmatmul.msk.f32.gmra.mxu1 %vm383_vm9, %v1358_v15 }
 0xe48   :  { %2321 = vmatmul.msk.f32.gmra.mxu1 %vm383_vm9, %v1359_v16 }
 0xe50   :  { %2322 = vmatmul.msk.f32.gmra.mxu1 %vm383_vm9, %v1360_v17 }
 0xe9d   :  { %v1106_v19 = vpop.f32.mrf.mxu0  ;;  %v1126_v50 = vpop.f32.mrf.mxu1 }
 0xe9e   :  { %v1130_v21 = vadd.f32 %v1106_v19, %v178_v18  ;;  %v1169_v23 = vadd.f32 %v1126_v50, %v2954_v35 }
 0xea0   :  { %2459 = vtanh.f32 %v1130_v21  ;;  %v2303_v47 = vmul.f32 -1.442695, %v1130_v21  ;;  %v2304_v44 = vmul.f32 -1.442695, %v1169_v23 }
 0xea1   :  { %2461 = vtanh.f32 %v1169_v23 }
 0xea2   :  { %2463 = vpow2.f32 %v2303_v47 }
 0xea3   :  { %2465 = vpow2.f32 %v2304_v44  ;;  %v1516_v44 = vld [vmem:[#allocation8 + $0x28] sm:$0xff] }
 0xea6   :  { %v2460_v24 = vpop.eup %2459 }
 0xea7   :  { %v2462_v40 = vpop.eup %2461  ;;  %1153 = vrot.lane.b32.xlu0 %v2460_v24, %s2651_s0  ;;  %v1518_v24 = vld [vmem:[#allocation8 + $0x38] sm:$0xff] }
 0xea8   :  { %1192 = vrot.lane.b32.xlu1 %v2462_v40, %s2651_s0  ;;  %v2464_v52 = vpop.eup %2463  ;;  %v1517_v40 = vld [vmem:[#allocation8 + $0x30] sm:$0xff]  ;;  %1534 = vmatpush.msra.mxu2 %v1518_v24 }
 0xea9   :  { %v2466_v53 = vpop.eup %2465  ;;  %v1134_v2 = vadd.f32 1.0, %v2464_v52 }
 0xeaa   :  { %v1173_v49 = vadd.f32 1.0, %v2466_v53  ;;  %1535 = vmatpush.msra.mxu2 %v1517_v40 }
 0xeab   :  { %2467 = vrcp.f32 %v1134_v2  ;;  %v1146_v1 = vand.u32 2147483648, %v1134_v2  ;;  %vm1140_vm11 = vweird.f32 %v1134_v2  ;;  %v1144_v5 = vand.u32 2147483647, %v1134_v2 }
 0xeac   :  { %2469 = vrcp.f32 %v1173_v49  ;;  %v1185_v3 = vand.u32 2147483648, %v1173_v49  ;;  %vm1179_vm12 = vweird.f32 %v1173_v49  ;;  %v1183_v14 = vand.u32 2147483647, %v1173_v49  ;;  %1536 = vmatpush.msra.mxu2 %v1516_v44 }
 0xead   :  { %v1147_v48 = vor.u32 1.1754944e-38, %v1146_v1  ;;  %vm1145_vm15 = vcmp.eq.f32.partialorder %v1144_v5, 8.507059e+37  ;;  %v181_v5 = vadd.f32 %v3117_v4, %v2956_v36 }
 0xeae   :  { %v1186_v26 = vor.u32 1.1754944e-38, %v1185_v3  ;;  %vm1184_vm0 = vcmp.eq.f32.partialorder %v1183_v14, 8.507059e+37 }
 0xeb1   :  { %v2468_v55 = vpop.eup %2467 }
 0xeb2   :  { %v2470_v35 = vpop.eup %2469  ;;  %v1136_v56 = vmul.f32 %v2468_v55, %v1134_v2  ;;  %vm1141_vm7 = vweird.f32 %v2468_v55 }
 0xeb3   :  { %v1175_v57 = vmul.f32 %v2470_v35, %v1173_v49  ;;  %vm1180_vm8 = vweird.f32 %v2470_v35  ;;  %vm1142_vm13 = vmor %vm1140_vm11, %vm1141_vm7 }
 0xeb4   :  { %v1137_v58 = vsub.f32 1.0, %v1136_v56  ;;  %vm1181_vm14 = vmor %vm1179_vm12, %vm1180_vm8 }
 0xeb5   :  { %v1176_v60 = vsub.f32 1.0, %v1175_v57 }
 0xeb6   :  { %v1138_v61 = vmul.f32 %v2468_v55, %v1137_v58 }
 0xeb7   :  { %v1177_v62 = vmul.f32 %v2470_v35, %v1176_v60 }
 0xeb8   :  { %v1139_v63 = vadd.f32 %v2468_v55, %v1138_v61 }
 0xeb9   :  { %v1178_v0 = vadd.f32 %v2470_v35, %v1177_v62 }
 0xeba   :  { %v1143_v22 = vsel %vm1142_vm13, %v2468_v55, %v1139_v63 }
 0xebb   :  { %v1182_v25 = vsel %vm1181_vm14, %v2470_v35, %v1178_v0  ;;  %v1148_v29 = vsel %vm1145_vm15, %v1147_v48, %v1143_v22 }
 0xebc   :  { %v1187_v51 = vsel %vm1184_vm0, %v1186_v26, %v1182_v25  ;;  %v1151_v38 = vmul.f32 %v1148_v29, %v3157_v41 }
 0xebd   :  { %v1190_v46 = vmul.f32 %v1187_v51, %v3152_v28 }
 0xf19   :  { %v1154_v27 = vpop.permute.xlu0 %1153 }
 0xf1a   :  { %v1193_v31 = vpop.permute.xlu1 %1192  ;;  %v1156_v39 = vmul.f32 %v1154_v27, %v1148_v29 }
 0xf1b   :  { %v1195_v42 = vmul.f32 %v1193_v31, %v1187_v51 }
 0xf1c   :  { %1158 = vrot.lane.b32.xlu2 %v1156_v39, %s2651_s0 }
 0xf1d   :  { %1197 = vrot.lane.b32.xlu0 %v1195_v42, %s2651_s0 }
 0xf76   :  { %v1159_v30 = vpop.permute.xlu2 %1158 }
 0xf77   :  { %v3196_v34 = vadd.f32 %v1159_v30, %v1151_v38 }
 0xf79   :  { %2471 = vtanh.f32 %v3196_v34 }
 0xf7f   :  { %v2472_v32 = vpop.eup %2471 }
 0xf80   :  { %1164 = vrot.lane.b32.xlu1 %v2472_v32, %s2651_s0 }
 0xf8f   :  { %v1198_v8 = vpop.permute.xlu0 %1197 }
 0xf90   :  { %v1200_v6 = vadd.f32 %v1198_v8, %v1190_v46 }
 0xf92   :  { %2473 = vtanh.f32 %v1200_v6 }
 0xf98   :  { %v2474_v7 = vpop.eup %2473 }
 0xf99   :  { %1203 = vrot.lane.b32.xlu2 %v2474_v7, %s2651_s0 }
 0xff2   :  { %v1165_v10 = vpop.permute.xlu1 %1164 }
 0xff3   :  { %v1204_v11 = vpop.permute.xlu2 %1203  ;;  %v1167_v12 = vmul.f32 %v1165_v10, %v1148_v29  ;;  %v3226_v29 = vld [vmem:[#allocation10 + $0x18] sm:$0xff] }
 0xff4   :  { %v3202_v41 = vmul.f32 %v1204_v11, %v1187_v51  ;;  %v1378_v11 = vld [vmem:[%s3446_s4 + $0x38] sm:$0xff] }
 0xff5   :  { %1208 = vrot.lane.b32.xlu0 %v1167_v12, %s2652_s3  ;;  %v3237_v12 = vld [vmem:[#allocation10 + $0x10] sm:$0xff]  ;;  %1415 = vmatpush.msrb.mxu0 %v1378_v11 }
 0xff6   :  { %1219 = vrot.lane.b32.xlu1 %v3202_v41, %s2653_s30 }
0x1067   :  { %v1209_v13 = vpop.permute.xlu0 %1208 }
0x1068   :  { %1212 = vst.msk [vmem:[#allocation3 + $0x30] sm:$0xff] %vm383_vm9, %v1209_v13  ;;  %v1220_v28 = vpop.permute.xlu1 %1219 }
0x1069   :  { %v1222_v15 = vsel %vm383_vm9, %v1209_v13, %v1220_v28  ;;  %v1377_v13 = vld [vmem:[%s3446_s4 + $0x30] sm:$0xff] }
0x106a   :  { %2305 = vmatmul.msk.f32.vlgmr.msrb.gmra.mxu2 %vm256_vm10, %v1222_v15  ;;  %2306 = vmatmul.msk.f32.vlgmr.msrb.gmra.mxu3 %vm256_vm10, %v1222_v15  ;;  %v3243_v28 = vld [vmem:[#allocation10 + $0x8] sm:$0xff] }
0x106b   :  { %v1376_v15 = vld [vmem:[%s3446_s4 + $0x28] sm:$0xff]  ;;  %1416 = vmatpush.msrb.mxu0 %v1377_v13 }
0x106d   :  { %1417 = vmatpush.msrb.mxu0 %v1376_v15 }
0x106f   :  { %v1361_v16 = vld [vmem:[#allocation3 + $0x30] sm:$0xff] }
0x1070   :  { %2323 = vmatmul.msk.f32.gmra.mxu1 %vm383_vm9, %v1361_v16  ;;  %v3248_v16 = vld [vmem:[#allocation10] sm:$0xff] }
0x10ed   :  { %v1263_v17 = vpop.f32.mrf.mxu3  ;;  %v1243_v3 = vpop.f32.mrf.mxu2 }
0x10ee   :  { %v1306_v18 = vadd.f32 %v1263_v17, %v2952_v33  ;;  %v1515_v33 = vld [vmem:[#allocation8 + $0x20] sm:$0xff]  ;;  %v1267_v14 = vadd.f32 %v1243_v3, %v181_v5 }
0x10ef   :  { %1537 = vmatpush.msra.mxu2 %v1515_v33  ;;  %v1375_v17 = vld [vmem:[%s3446_s4 + $0x20] sm:$0xff] }
0x10f0   :  { %2475 = vtanh.f32 %v1306_v18  ;;  %v2308_v50 = vmul.f32 -1.442695, %v1306_v18  ;;  %v2307_v48 = vmul.f32 -1.442695, %v1267_v14  ;;  %1418 = vmatpush.msrb.mxu0 %v1375_v17 }
0x10f1   :  { %1646 = vmatpush.msrb.mxu2 %v3226_v29 }
0x10f2   :  { %2477 = vpow2.f32 %v2308_v50  ;;  %v3271_v50 = vld [vmem:[%s3449_s7] ss:$0 sm:$0xff] }
0x10f3   :  { %1647 = vmatpush.msrb.mxu2 %v3237_v12 }
0x10f5   :  { %1648 = vmatpush.msrb.mxu2 %v3243_v28 }
0x10f6   :  { %v2476_v19 = vpop.eup %2475 }
0x10f7   :  { %1329 = vrot.lane.b32.xlu2 %v2476_v19, %s2651_s0  ;;  %1649 = vmatpush.msrb.mxu2 %v3248_v16 }
0x10f8   :  { %v2478_v21 = vpop.eup %2477 }
0x10f9   :  { %v1310_v23 = vadd.f32 1.0, %v2478_v21  ;;  %v1485_v21 = vpop.f32.mrf.mxu1 }
0x10fb   :  { %2479 = vrcp.f32 %v1310_v23  ;;  %vm1316_vm2 = vweird.f32 %v1310_v23  ;;  %v1320_v55 = vand.u32 2147483647, %v1310_v23 }
0x10fd   :  { %vm1321_vm4 = vcmp.eq.f32.partialorder %v1320_v55, 8.507059e+37 }
0x10ff   :  { %386 = vrot.lane.b32.xlu2 %v2982_v59, %s2652_s3  ;;  %v1322_v59 = vand.u32 2147483648, %v1310_v23 }
0x1101   :  { %v2480_v47 = vpop.eup %2479  ;;  %v1323_v56 = vor.u32 1.1754944e-38, %v1322_v59 }
0x1102   :  { %v1312_v52 = vmul.f32 %v2480_v47, %v1310_v23  ;;  %vm1317_vm1 = vweird.f32 %v2480_v47 }
0x1103   :  { %vm1318_vm3 = vmor %vm1316_vm2, %vm1317_vm1 }
0x1104   :  { %v1313_v53 = vsub.f32 1.0, %v1312_v52 }
0x1106   :  { %v1314_v2 = vmul.f32 %v2480_v47, %v1313_v53 }
0x1108   :  { %v1315_v49 = vadd.f32 %v2480_v47, %v1314_v2 }
0x110a   :  { %v1319_v35 = vsel %vm1318_vm3, %v2480_v47, %v1315_v49 }
0x110b   :  { %v1324_v58 = vsel %vm1321_vm4, %v1323_v56, %v1319_v35 }
0x110c   :  { %v1327_v63 = vmul.f32 %v1324_v58, %v1200_v6 }
0x1151   :  { %v1330_v57 = vpop.permute.xlu2 %1329 }
0x1152   :  { %v1332_v60 = vmul.f32 %v1330_v57, %v1324_v58 }
0x1154   :  { %1334 = vrot.lane.b32.xlu0 %v1332_v60, %s2651_s0 }
0x1159   :  { %v387_v61 = vpop.permute.xlu2 %386 }
0x115a   :  { %390 = vst.msk [vmem:[#allocation4 + $0x38] sm:$0xff] %vm383_vm9, %v387_v61 }
0x1161   :  { %v3218_v62 = vld [vmem:[#allocation4 + $0x38] sm:$0xff] }
0x1162   :  { %2325 = vmatmul.msk.f32.vlgmr.msra.gmra.mxu2 %vm383_vm9, %v3218_v62 }
0x1163   :  { %1774 = vmatpush.msra.mxu2 %v3226_v29 }
0x1165   :  { %1775 = vmatpush.msra.mxu2 %v3237_v12 }
0x1167   :  { %1776 = vmatpush.msra.mxu2 %v3243_v28 }
0x1169   :  { %1777 = vmatpush.msra.mxu2 %v3248_v16 }
0x116a   :  { %1650 = vmatmul.f32.vlgmr.msrb.gmra.mxu2 %v2650_v20 }
0x116b   :  { %1902 = vmatpush.msrb.mxu2 %v3226_v29 }
0x116d   :  { %1903 = vmatpush.msrb.mxu2 %v3237_v12 }
0x116f   :  { %1904 = vmatpush.msrb.mxu2 %v3243_v28 }
0x1171   :  { %1905 = vmatpush.msrb.mxu2 %v3248_v16 }
0x11c6   :  { %v1335_v0 = vpop.permute.xlu0 %1334 }
0x11c7   :  { %v1337_v1 = vadd.f32 %v1335_v0, %v1327_v63 }
0x11c9   :  { %2481 = vtanh.f32 %v1337_v1 }
0x11ca   :  { %2483 = vtanh.f32 %v1267_v14 }
0x11cb   :  { %2485 = vpow2.f32 %v2307_v48 }
0x11cf   :  { %v2482_v22 = vpop.eup %2481 }
0x11d0   :  { %1340 = vrot.lane.b32.xlu1 %v2482_v22, %s2651_s0  ;;  %v2484_v25 = vpop.eup %2483 }
0x11d1   :  { %v2486_v26 = vpop.eup %2485 }
0x11d2   :  { %v1271_v27 = vadd.f32 1.0, %v2486_v26  ;;  %v1513_v26 = vld [vmem:[#allocation8 + $0x18] sm:$0xff] }
0x11d3   :  { %1557 = vmatpush.msra.mxu3 %v1513_v26 }
0x11d4   :  { %2487 = vrcp.f32 %v1271_v27  ;;  %v1283_v30 = vand.u32 2147483648, %v1271_v27  ;;  %vm1277_vm6 = vweird.f32 %v1271_v27  ;;  %v1281_v32 = vand.u32 2147483647, %v1271_v27 }
0x11d6   :  { %v1284_v8 = vor.u32 1.1754944e-38, %v1283_v30  ;;  %vm1282_vm8 = vcmp.eq.f32.partialorder %v1281_v32, 8.507059e+37 }
0x11d8   :  { %1290 = vrot.lane.b32.xlu1 %v2484_v25, %s2651_s0 }
0x11da   :  { %v2488_v31 = vpop.eup %2487 }
0x11db   :  { %v1273_v51 = vmul.f32 %v2488_v31, %v1271_v27  ;;  %vm1278_vm5 = vweird.f32 %v2488_v31  ;;  %v1512_v27 = vld [vmem:[#allocation8 + $0x10] sm:$0xff] }
0x11dc   :  { %vm1279_vm7 = vmor %vm1277_vm6, %vm1278_vm5  ;;  %1558 = vmatpush.msra.mxu3 %v1512_v27 }
0x11dd   :  { %v1274_v36 = vsub.f32 1.0, %v1273_v51  ;;  %v1510_v51 = vld [vmem:[#allocation8] sm:$0xff] }
0x11df   :  { %v1275_v4 = vmul.f32 %v2488_v31, %v1274_v36 }
0x11e1   :  { %v1276_v38 = vadd.f32 %v2488_v31, %v1275_v4 }
0x11e3   :  { %v1280_v46 = vsel %vm1279_vm7, %v2488_v31, %v1276_v38  ;;  %v1511_v31 = vld [vmem:[#allocation8 + $0x8] sm:$0xff] }
0x11e4   :  { %v3230_v7 = vsel %vm1282_vm8, %v1284_v8, %v1280_v46  ;;  %1559 = vmatpush.msra.mxu3 %v1511_v31 }
0x11e5   :  { %v3266_v19 = vpop.f32.mrf.mxu2  ;;  %v1288_v33 = vmul.f32 %v3230_v7, %v3196_v34 }
0x11e6   :  { %1560 = vmatpush.msra.mxu3 %v1510_v51 }
0x11e8   :  { %1710 = vmatpush.msrb.mxu3 %v3226_v29 }
0x11ea   :  { %1711 = vmatpush.msrb.mxu3 %v3237_v12 }
0x11ec   :  { %1712 = vmatpush.msrb.mxu3 %v3243_v28 }
0x11ed   :  { %v1651_v40 = vpop.f32.mrf.mxu2 }
0x11ee   :  { %1713 = vmatpush.msrb.mxu3 %v3248_v16 }
0x1242   :  { %v1341_v39 = vpop.permute.xlu1 %1340 }
0x1243   :  { %v1343_v42 = vmul.f32 %v1341_v39, %v1324_v58 }
0x1245   :  { %1351 = vrot.lane.b32.xlu0 %v1343_v42, %s2652_s3 }
0x124a   :  { %v1291_v6 = vpop.permute.xlu1 %1290 }
0x124b   :  { %v1293_v10 = vmul.f32 %v1291_v6, %v3230_v7 }
0x124d   :  { %1295 = vrot.lane.b32.xlu0 %v1293_v10, %s2651_s0  ;;  %v1488_v10 = vpop.f32.mrf.mxu1 }
0x12b7   :  { %v1352_v18 = vpop.permute.xlu0 %1351 }
0x12b8   :  { %1354 = vst.msk [vmem:[#allocation4] sm:$0xff] %vm383_vm9, %v1352_v18 }
0x12bf   :  { %v1363_v20 = vld [vmem:[#allocation4] sm:$0xff]  ;;  %v1296_v52 = vpop.permute.xlu0 %1295 }
0x12c0   :  { %2309 = vmatmul.msk.f32.vlgmr.msrb.gmra.mxu0 %vm383_vm9, %v1363_v20  ;;  %v1298_v53 = vadd.f32 %v1296_v52, %v1288_v33 }
0x133d   :  { %v1420_v23 = vpop.f32.mrf.mxu0 }
0x133e   :  { %v1486_v24 = vadd.f32 %v1485_v21, %v1420_v23 }
0x1340   :  { %v1569_v47 = vadd.f32 %v3271_v50, %v1486_v24 }
0x1342   :  { %v1654_v44 = vadd.f32 %v1651_v40, %v1569_v47 }
0x1344   :  { %2489 = vtanh.f32 %v1654_v44  ;;  %v2328_v59 = vmul.f32 -1.442695, %v1654_v44 }
0x1345   :  { %2491 = vtanh.f32 %v1298_v53 }
0x1346   :  { %2493 = vpow2.f32 %v2328_v59 }
0x134a   :  { %v2490_v2 = vpop.eup %2489 }
0x134b   :  { %1677 = vrot.lane.b32.xlu2 %v2490_v2, %s2651_s0  ;;  %v2492_v49 = vpop.eup %2491 }
0x134c   :  { %v2494_v55 = vpop.eup %2493 }
0x134d   :  { %v1658_v35 = vadd.f32 1.0, %v2494_v55 }
0x134f   :  { %2495 = vrcp.f32 %v1658_v35  ;;  %v1670_v61 = vand.u32 2147483648, %v1658_v35  ;;  %vm1664_vm12 = vweird.f32 %v1658_v35  ;;  %v1668_v63 = vand.u32 2147483647, %v1658_v35 }
0x1351   :  { %v1671_v1 = vor.u32 1.1754944e-38, %v1670_v61  ;;  %vm1669_vm14 = vcmp.eq.f32.partialorder %v1668_v63, 8.507059e+37 }
0x1353   :  { %1301 = vrot.lane.b32.xlu2 %v2492_v49, %s2651_s0 }
0x1355   :  { %v2496_v56 = vpop.eup %2495 }
0x1356   :  { %v1660_v57 = vmul.f32 %v2496_v56, %v1658_v35  ;;  %vm1665_vm11 = vweird.f32 %v2496_v56 }
0x1357   :  { %vm1666_vm13 = vmor %vm1664_vm12, %vm1665_vm11 }
0x1358   :  { %v1661_v58 = vsub.f32 1.0, %v1660_v57 }
0x135a   :  { %v1662_v34 = vmul.f32 %v2496_v56, %v1661_v58 }
0x135b   :  { %1214 = vrot.lane.b32.xlu2 %v3202_v41, %s2652_s3 }
0x135c   :  { %v1663_v60 = vadd.f32 %v2496_v56, %v1662_v34 }
0x135e   :  { %v1667_v0 = vsel %vm1666_vm13, %v2496_v56, %v1663_v60 }
0x135f   :  { %v1672_v41 = vsel %vm1669_vm14, %v1671_v1, %v1667_v0 }
0x1360   :  { %v1675_v36 = vmul.f32 0.0, %v1672_v41 }
0x13a5   :  { %v1678_v3 = vpop.permute.xlu2 %1677 }
0x13a6   :  { %v1680_v5 = vmul.f32 %v1678_v3, %v1672_v41  ;;  %v1491_v3 = vpop.f32.mrf.mxu1 }
0x13a8   :  { %1682 = vrot.lane.b32.xlu1 %v1680_v5, %s2651_s0 }
0x13ad   :  { %v1302_v14 = vpop.permute.xlu2 %1301 }
0x13ae   :  { %v1304_v22 = vmul.f32 %v1302_v14, %v3230_v7 }
0x13b0   :  { %1345 = vrot.lane.b32.xlu1 %v1304_v22, %s2652_s3 }
0x13b5   :  { %v1215_v25 = vpop.permute.xlu2 %1214 }
0x13b6   :  { %1218 = vst.msk [vmem:[#allocation4 + $0x8] sm:$0xff] %vm383_vm9, %v1215_v25 }
0x13bd   :  { %v1364_v48 = vld [vmem:[#allocation4 + $0x8] sm:$0xff] }
0x13be   :  { %2310 = vmatmul.msk.f32.gmra.mxu0 %vm383_vm9, %v1364_v48 }
0x141a   :  { %v1683_v4 = vpop.permute.xlu1 %1682 }
0x141b   :  { %v1685_v39 = vadd.f32 %v1683_v4, %v1675_v36 }
0x141d   :  { %2497 = vtanh.f32 %v1685_v39 }
0x1422   :  { %v1346_v42 = vpop.permute.xlu1 %1345 }
0x1423   :  { %v2498_v38 = vpop.eup %2497  ;;  %1349 = vst.msk [vmem:[#allocation3 + $0x38] sm:$0xff] %vm383_vm9, %v1346_v42 }
0x1424   :  { %1688 = vrot.lane.b32.xlu0 %v2498_v38, %s2651_s0 }
0x142a   :  { %v1362_v30 = vld [vmem:[#allocation3 + $0x38] sm:$0xff] }
0x142b   :  { %2324 = vmatmul.msk.f32.gmra.mxu1 %vm383_vm9, %v1362_v30  ;;  %2326 = vmatmul.msk.f32.vlgmr.msra.gmra.mxu3 %vm383_vm9, %v1362_v30 }
0x142c   :  { %1838 = vmatpush.msra.mxu3 %v3226_v29 }
0x142e   :  { %1839 = vmatpush.msra.mxu3 %v3237_v12 }
0x1430   :  { %1840 = vmatpush.msra.mxu3 %v3243_v28 }
0x1432   :  { %1841 = vmatpush.msra.mxu3 %v3248_v16 }
0x143b   :  { %v1423_v6 = vpop.f32.mrf.mxu0 }
0x143c   :  { %v1489_v11 = vadd.f32 %v1488_v10, %v1423_v6 }
0x143e   :  { %v1570_v13 = vadd.f32 %v3271_v50, %v1489_v11 }
0x1496   :  { %v1689_v32 = vpop.permute.xlu0 %1688 }
0x1497   :  { %v1691_v46 = vmul.f32 %v1689_v32, %v1672_v41 }
0x1499   :  { %1694 = vrot.lane.b32.xlu0 %v1691_v46, %s2652_s3 }
0x14ae   :  { %v3303_v7 = vpop.f32.mrf.mxu3 }
0x150b   :  { %v1695_v8 = vpop.permute.xlu0 %1694 }
0x150c   :  { %2329 = vmatmul.msk.f32.vlgmr.msrb.gmra.mxu3 %vm383_vm9, %v1695_v8 }
0x150d   :  { %1966 = vmatpush.msrb.mxu3 %v3226_v29 }
0x150f   :  { %1967 = vmatpush.msrb.mxu3 %v3237_v12 }
0x1511   :  { %1968 = vmatpush.msrb.mxu3 %v3243_v28 }
0x1513   :  { %1969 = vmatpush.msrb.mxu3 %v3248_v16 }
0x158f   :  { %v1715_v15 = vpop.f32.mrf.mxu3 }
0x1590   :  { %v1718_v17 = vadd.f32 %v1715_v15, %v1570_v13 }
0x1592   :  { %2499 = vtanh.f32 %v1718_v17  ;;  %v2330_v20 = vmul.f32 -1.442695, %v1718_v17 }
0x1594   :  { %2501 = vpow2.f32 %v2330_v20 }
0x1598   :  { %v2500_v18 = vpop.eup %2499 }
0x1599   :  { %1741 = vrot.lane.b32.xlu1 %v2500_v18, %s2651_s0 }
0x159a   :  { %v2502_v21 = vpop.eup %2501 }
0x159b   :  { %v1722_v23 = vadd.f32 1.0, %v2502_v21 }
0x159d   :  { %2503 = vrcp.f32 %v1722_v23  ;;  %v1734_v33 = vand.u32 2147483648, %v1722_v23  ;;  %vm1728_vm0 = vweird.f32 %v1722_v23  ;;  %v1732_v53 = vand.u32 2147483647, %v1722_v23 }
0x159f   :  { %v1735_v49 = vor.u32 1.1754944e-38, %v1734_v33  ;;  %vm1733_vm2 = vcmp.eq.f32.partialorder %v1732_v53, 8.507059e+37 }
0x15a1   :  { %1077 = vrot.lane.b32.xlu1 %v3161_v43, %s2652_s3 }
0x15a3   :  { %v2504_v24 = vpop.eup %2503 }
0x15a4   :  { %v1724_v40 = vmul.f32 %v2504_v24, %v1722_v23  ;;  %vm1729_vm15 = vweird.f32 %v2504_v24 }
0x15a5   :  { %vm1730_vm1 = vmor %vm1728_vm0, %vm1729_vm15 }
0x15a6   :  { %v1725_v47 = vsub.f32 1.0, %v1724_v40 }
0x15a8   :  { %v1726_v44 = vmul.f32 %v2504_v24, %v1725_v47 }
0x15aa   :  { %v1727_v52 = vadd.f32 %v2504_v24, %v1726_v44 }
0x15ac   :  { %v1731_v2 = vsel %vm1730_vm1, %v2504_v24, %v1727_v52  ;;  %v1494_v24 = vpop.f32.mrf.mxu1 }
0x15ad   :  { %v1736_v43 = vsel %vm1733_vm2, %v1735_v49, %v1731_v2 }
0x15ae   :  { %v1739_v57 = vmul.f32 %v1736_v43, %v1685_v39 }
0x160b   :  { %v1742_v59 = vpop.permute.xlu1 %1741 }
0x160c   :  { %v1744_v55 = vmul.f32 %v1742_v59, %v1736_v43 }
0x160e   :  { %1746 = vrot.lane.b32.xlu2 %v1744_v55, %s2651_s0 }
0x1613   :  { %v1078_v35 = vpop.permute.xlu1 %1077 }
0x1614   :  { %1081 = vst.msk [vmem:[#allocation4 + $0x10] sm:$0xff] %vm383_vm9, %v1078_v35 }
0x161b   :  { %v1365_v56 = vld [vmem:[#allocation4 + $0x10] sm:$0xff] }
0x161c   :  { %2311 = vmatmul.msk.f32.gmra.mxu0 %vm383_vm9, %v1365_v56 }
0x1668   :  { %v1747_v58 = vpop.permute.xlu2 %1746 }
0x1669   :  { %v1749_v34 = vadd.f32 %v1747_v58, %v1739_v57 }
0x166b   :  { %2505 = vtanh.f32 %v1749_v34 }
0x1671   :  { %v2506_v60 = vpop.eup %2505 }
0x1672   :  { %1752 = vrot.lane.b32.xlu0 %v2506_v60, %s2651_s0 }
0x1699   :  { %v1426_v1 = vpop.f32.mrf.mxu0 }
0x169a   :  { %v1492_v41 = vadd.f32 %v1491_v3, %v1426_v1 }
0x169c   :  { %v1571_v5 = vadd.f32 %v3271_v50, %v1492_v41 }
0x16e4   :  { %v1753_v61 = vpop.permute.xlu0 %1752 }
0x16e5   :  { %v1755_v63 = vmul.f32 %v1753_v61, %v1736_v43 }
0x16e7   :  { %1758 = vrot.lane.b32.xlu2 %v1755_v63, %s2652_s3 }
0x1741   :  { %v1759_v0 = vpop.permute.xlu2 %1758 }
0x1742   :  { %2331 = vmatmul.msk.f32.vlgmr.msra.gmra.mxu2 %vm383_vm9, %v1759_v0 }
0x1743   :  { %2030 = vmatpush.msra.mxu2 %v3226_v29 }
0x1745   :  { %2031 = vmatpush.msra.mxu2 %v3237_v12 }
0x1747   :  { %2032 = vmatpush.msra.mxu2 %v3243_v28 }
0x1749   :  { %2033 = vmatpush.msra.mxu2 %v3248_v16 }
0x17c5   :  { %v1779_v14 = vpop.f32.mrf.mxu2 }
0x17c6   :  { %v1782_v22 = vadd.f32 %v1779_v14, %v1571_v5 }
0x17c8   :  { %2507 = vtanh.f32 %v1782_v22  ;;  %v2332_v48 = vmul.f32 -1.442695, %v1782_v22  ;;  %v1497_v22 = vpop.f32.mrf.mxu1 }
0x17ca   :  { %2509 = vpow2.f32 %v2332_v48 }
0x17ce   :  { %v2508_v25 = vpop.eup %2507 }
0x17cf   :  { %1805 = vrot.lane.b32.xlu0 %v2508_v25, %s2651_s0 }
0x17d0   :  { %v2510_v26 = vpop.eup %2509 }
0x17d1   :  { %v1786_v27 = vadd.f32 1.0, %v2510_v26 }
0x17d3   :  { %2511 = vrcp.f32 %v1786_v27  ;;  %v1798_v42 = vand.u32 2147483648, %v1786_v27  ;;  %vm1792_vm4 = vweird.f32 %v1786_v27  ;;  %v1796_v38 = vand.u32 2147483647, %v1786_v27 }
0x17d5   :  { %v1799_v32 = vor.u32 1.1754944e-38, %v1798_v42  ;;  %vm1797_vm6 = vcmp.eq.f32.partialorder %v1796_v38, 8.507059e+37 }
0x17d7   :  { %940 = vrot.lane.b32.xlu0 %v3135_v37, %s2652_s3 }
0x17d9   :  { %v2512_v31 = vpop.eup %2511 }
0x17da   :  { %v1788_v51 = vmul.f32 %v2512_v31, %v1786_v27  ;;  %vm1793_vm3 = vweird.f32 %v2512_v31 }
0x17db   :  { %vm1794_vm5 = vmor %vm1792_vm4, %vm1793_vm3 }
0x17dc   :  { %v1789_v36 = vsub.f32 1.0, %v1788_v51 }
0x17de   :  { %v1790_v4 = vmul.f32 %v2512_v31, %v1789_v36 }
0x17e0   :  { %v1791_v39 = vadd.f32 %v2512_v31, %v1790_v4 }
0x17e2   :  { %v1795_v30 = vsel %vm1794_vm5, %v2512_v31, %v1791_v39 }
0x17e3   :  { %v1800_v37 = vsel %vm1797_vm6, %v1799_v32, %v1795_v30 }
0x17e4   :  { %v1803_v11 = vmul.f32 %v1800_v37, %v1749_v34 }
0x1841   :  { %v1806_v46 = vpop.permute.xlu0 %1805 }
0x1842   :  { %v1808_v8 = vmul.f32 %v1806_v46, %v1800_v37 }
0x1844   :  { %1810 = vrot.lane.b32.xlu1 %v1808_v8, %s2651_s0 }
0x1849   :  { %v941_v6 = vpop.permute.xlu0 %940 }
0x184a   :  { %944 = vst.msk [vmem:[#allocation4 + $0x18] sm:$0xff] %vm383_vm9, %v941_v6 }
0x1851   :  { %v1366_v10 = vld [vmem:[#allocation4 + $0x18] sm:$0xff] }
0x1852   :  { %2312 = vmatmul.msk.f32.gmra.mxu0 %vm383_vm9, %v1366_v10 }
0x18b6   :  { %v1811_v13 = vpop.permute.xlu1 %1810 }
0x18b7   :  { %v1813_v15 = vadd.f32 %v1811_v13, %v1803_v11 }
0x18b9   :  { %2513 = vtanh.f32 %v1813_v15 }
0x18bf   :  { %v2514_v17 = vpop.eup %2513 }
0x18c0   :  { %1816 = vrot.lane.b32.xlu2 %v2514_v17, %s2651_s0 }
0x18cf   :  { %v1429_v23 = vpop.f32.mrf.mxu0 }
0x18d0   :  { %v1495_v40 = vadd.f32 %v1494_v24, %v1429_v23 }
0x18d2   :  { %v1572_v47 = vadd.f32 %v3271_v50, %v1495_v40 }
0x191a   :  { %v1817_v18 = vpop.permute.xlu2 %1816 }
0x191b   :  { %v1819_v20 = vmul.f32 %v1817_v18, %v1800_v37 }
0x191d   :  { %1822 = vrot.lane.b32.xlu1 %v1819_v20, %s2652_s3 }
0x198f   :  { %v1823_v21 = vpop.permute.xlu1 %1822 }
0x1990   :  { %2333 = vmatmul.msk.f32.vlgmr.msra.gmra.mxu3 %vm383_vm9, %v1823_v21 }
0x1991   :  { %2094 = vmatpush.msra.mxu3 %v3226_v29 }
0x1993   :  { %2095 = vmatpush.msra.mxu3 %v3237_v12 }
0x1995   :  { %2096 = vmatpush.msra.mxu3 %v3243_v28 }
0x1997   :  { %2097 = vmatpush.msra.mxu3 %v3248_v16 }
0x1a13   :  { %v1843_v44 = vpop.f32.mrf.mxu3 }
0x1a14   :  { %v1846_v52 = vadd.f32 %v1843_v44, %v1572_v47  ;;  %v1500_v44 = vpop.f32.mrf.mxu1 }
0x1a16   :  { %2515 = vtanh.f32 %v1846_v52  ;;  %v2334_v29 = vmul.f32 -1.442695, %v1846_v52 }
0x1a18   :  { %2517 = vpow2.f32 %v2334_v29 }
0x1a1c   :  { %v2516_v33 = vpop.eup %2515 }
0x1a1d   :  { %1869 = vrot.lane.b32.xlu2 %v2516_v33, %s2651_s0 }
0x1a1e   :  { %v2518_v12 = vpop.eup %2517 }
0x1a1f   :  { %v1850_v28 = vadd.f32 1.0, %v2518_v12 }
0x1a21   :  { %2519 = vrcp.f32 %v1850_v28  ;;  %v1862_v43 = vand.u32 2147483648, %v1850_v28  ;;  %vm1856_vm8 = vweird.f32 %v1850_v28  ;;  %v1860_v55 = vand.u32 2147483647, %v1850_v28 }
0x1a23   :  { %v1863_v56 = vor.u32 1.1754944e-38, %v1862_v43  ;;  %vm1861_vm12 = vcmp.eq.f32.partialorder %v1860_v55, 8.507059e+37 }
0x1a25   :  { %803 = vrot.lane.b32.xlu2 %v3104_v9, %s2652_s3 }
0x1a27   :  { %v2520_v16 = vpop.eup %2519 }
0x1a28   :  { %v1852_v53 = vmul.f32 %v2520_v16, %v1850_v28  ;;  %vm1857_vm7 = vweird.f32 %v2520_v16 }
0x1a29   :  { %vm1858_vm11 = vmor %vm1856_vm8, %vm1857_vm7 }
0x1a2a   :  { %v1853_v2 = vsub.f32 1.0, %v1852_v53 }
0x1a2c   :  { %v1854_v49 = vmul.f32 %v2520_v16, %v1853_v2 }
0x1a2e   :  { %v1855_v59 = vadd.f32 %v2520_v16, %v1854_v49 }
0x1a30   :  { %v1859_v35 = vsel %vm1858_vm11, %v2520_v16, %v1855_v59 }
0x1a31   :  { %v1864_v9 = vsel %vm1861_vm12, %v1863_v56, %v1859_v35 }
0x1a32   :  { %v1867_v61 = vmul.f32 %v1864_v9, %v1813_v15 }
0x1a77   :  { %v1870_v57 = vpop.permute.xlu2 %1869 }
0x1a78   :  { %v1872_v58 = vmul.f32 %v1870_v57, %v1864_v9 }
0x1a7a   :  { %1874 = vrot.lane.b32.xlu0 %v1872_v58, %s2651_s0 }
0x1a7f   :  { %v804_v34 = vpop.permute.xlu2 %803 }
0x1a80   :  { %807 = vst.msk [vmem:[#allocation4 + $0x20] sm:$0xff] %vm383_vm9, %v804_v34 }
0x1a87   :  { %v1367_v60 = vld [vmem:[#allocation4 + $0x20] sm:$0xff] }
0x1a88   :  { %2313 = vmatmul.msk.f32.gmra.mxu0 %vm383_vm9, %v1367_v60 }
0x1aec   :  { %v1875_v63 = vpop.permute.xlu0 %1874 }
0x1aed   :  { %v1877_v0 = vadd.f32 %v1875_v63, %v1867_v61 }
0x1aef   :  { %2521 = vtanh.f32 %v1877_v0 }
0x1af5   :  { %v2522_v1 = vpop.eup %2521 }
0x1af6   :  { %1880 = vrot.lane.b32.xlu1 %v2522_v1, %s2651_s0 }
0x1b05   :  { %v1432_v14 = vpop.f32.mrf.mxu0 }
0x1b06   :  { %v1498_v25 = vadd.f32 %v1497_v22, %v1432_v14 }
0x1b08   :  { %v1573_v48 = vadd.f32 %v3271_v50, %v1498_v25 }
0x1b68   :  { %v1881_v3 = vpop.permute.xlu1 %1880 }
0x1b69   :  { %v1883_v41 = vmul.f32 %v1881_v3, %v1864_v9 }
0x1b6b   :  { %1886 = vrot.lane.b32.xlu0 %v1883_v41, %s2652_s3 }
0x1bdd   :  { %v1887_v5 = vpop.permute.xlu0 %1886 }
0x1bde   :  { %2335 = vmatmul.msk.f32.vlgmr.msrb.gmra.mxu2 %vm383_vm9, %v1887_v5 }
0x1c61   :  { %v1907_v26 = vpop.f32.mrf.mxu2 }
0x1c62   :  { %v1910_v27 = vadd.f32 %v1907_v26, %v1573_v48  ;;  %v1503_v48 = vpop.f32.mrf.mxu1 }
0x1c64   :  { %2523 = vtanh.f32 %v1910_v27  ;;  %v2336_v51 = vmul.f32 -1.442695, %v1910_v27 }
0x1c66   :  { %2525 = vpow2.f32 %v2336_v51 }
0x1c6a   :  { %v2524_v31 = vpop.eup %2523 }
0x1c6b   :  { %1933 = vrot.lane.b32.xlu1 %v2524_v31, %s2651_s0 }
0x1c6c   :  { %v2526_v36 = vpop.eup %2525 }
0x1c6d   :  { %v1914_v4 = vadd.f32 1.0, %v2526_v36 }
0x1c6f   :  { %2527 = vrcp.f32 %v1914_v4  ;;  %v1926_v46 = vand.u32 2147483648, %v1914_v4  ;;  %vm1920_vm14 = vweird.f32 %v1914_v4  ;;  %v1924_v37 = vand.u32 2147483647, %v1914_v4 }
0x1c71   :  { %v1927_v6 = vor.u32 1.1754944e-38, %v1926_v46  ;;  %vm1925_vm0 = vcmp.eq.f32.partialorder %v1924_v37, 8.507059e+37 }
0x1c73   :  { %664 = vrot.lane.b32.xlu1 %v3063_v45, %s2652_s3 }
0x1c75   :  { %v2528_v39 = vpop.eup %2527 }
0x1c76   :  { %v1916_v42 = vmul.f32 %v2528_v39, %v1914_v4  ;;  %vm1921_vm13 = vweird.f32 %v2528_v39 }
0x1c77   :  { %vm1922_vm15 = vmor %vm1920_vm14, %vm1921_vm13 }
0x1c78   :  { %v1917_v38 = vsub.f32 1.0, %v1916_v42 }
0x1c7a   :  { %v1918_v30 = vmul.f32 %v2528_v39, %v1917_v38 }
0x1c7c   :  { %v1919_v32 = vadd.f32 %v2528_v39, %v1918_v30 }
0x1c7e   :  { %v1923_v8 = vsel %vm1922_vm15, %v2528_v39, %v1919_v32 }
0x1c7f   :  { %v1928_v45 = vsel %vm1925_vm0, %v1927_v6, %v1923_v8  ;;  %v1563_v6 = vadd.f32 %v3303_v7, %v3266_v19 }
0x1c80   :  { %v1931_v17 = vmul.f32 %v1928_v45, %v1877_v0 }
0x1cdd   :  { %v1934_v10 = vpop.permute.xlu1 %1933 }
0x1cde   :  { %v1936_v11 = vmul.f32 %v1934_v10, %v1928_v45  ;;  %v2358_v10 = vld [vmem:[%s3450_s8] ss:$0 sm:$0xff] }
0x1ce0   :  { %1938 = vrot.lane.b32.xlu2 %v1936_v11, %s2651_s0 }
0x1ce5   :  { %v665_v13 = vpop.permute.xlu1 %664 }
0x1ce6   :  { %668 = vst.msk [vmem:[#allocation4 + $0x28] sm:$0xff] %vm383_vm9, %v665_v13  ;;  %v1589_v13 = vadd.f32 %v2358_v10, %v1563_v6 }
0x1ced   :  { %v1368_v15 = vld [vmem:[#allocation4 + $0x28] sm:$0xff] }
0x1cee   :  { %2314 = vmatmul.msk.f32.gmra.mxu0 %vm383_vm9, %v1368_v15 }
0x1d3a   :  { %v1939_v18 = vpop.permute.xlu2 %1938 }
0x1d3b   :  { %v1941_v20 = vadd.f32 %v1939_v18, %v1931_v17 }
0x1d3d   :  { %2529 = vtanh.f32 %v1941_v20 }
0x1d43   :  { %v2530_v21 = vpop.eup %2529 }
0x1d44   :  { %1944 = vrot.lane.b32.xlu0 %v2530_v21, %s2651_s0 }
0x1d6b   :  { %v1435_v47 = vpop.f32.mrf.mxu0 }
0x1d6c   :  { %v1501_v52 = vadd.f32 %v1500_v44, %v1435_v47 }
0x1d6e   :  { %v1574_v33 = vadd.f32 %v3271_v50, %v1501_v52 }
0x1db6   :  { %v1945_v23 = vpop.permute.xlu0 %1944 }
0x1db7   :  { %v1947_v24 = vmul.f32 %v1945_v23, %v1928_v45 }
0x1db9   :  { %1950 = vrot.lane.b32.xlu2 %v1947_v24, %s2652_s3  ;;  %v2327_v24 = vmul.f32 -1.442695, %v1589_v13 }
0x1e13   :  { %v1951_v40 = vpop.permute.xlu2 %1950 }
0x1e14   :  { %2337 = vmatmul.msk.f32.vlgmr.msrb.gmra.mxu3 %vm383_vm9, %v1951_v40 }
0x1e97   :  { %v1971_v29 = vpop.f32.mrf.mxu3 }
0x1e98   :  { %v1974_v12 = vadd.f32 %v1971_v29, %v1574_v33 }
0x1e9a   :  { %2531 = vtanh.f32 %v1974_v12  ;;  %v2338_v16 = vmul.f32 -1.442695, %v1974_v12 }
0x1e9c   :  { %2533 = vpow2.f32 %v2338_v16 }
0x1ea0   :  { %v2532_v28 = vpop.eup %2531 }
0x1ea1   :  { %1997 = vrot.lane.b32.xlu0 %v2532_v28, %s2651_s0 }
0x1ea2   :  { %v2534_v53 = vpop.eup %2533 }
0x1ea3   :  { %v1978_v2 = vadd.f32 1.0, %v2534_v53 }
0x1ea5   :  { %2535 = vrcp.f32 %v1978_v2  ;;  %v1990_v56 = vand.u32 2147483648, %v1978_v2  ;;  %vm1984_vm2 = vweird.f32 %v1978_v2  ;;  %v1988_v57 = vand.u32 2147483647, %v1978_v2 }
0x1ea7   :  { %v1991_v58 = vor.u32 1.1754944e-38, %v1990_v56  ;;  %vm1989_vm4 = vcmp.eq.f32.partialorder %v1988_v57, 8.507059e+37 }
0x1ea9   :  { %525 = vrot.lane.b32.xlu0 %v3022_v54, %s2652_s3 }
0x1eab   :  { %v2536_v49 = vpop.eup %2535 }
0x1eac   :  { %v1980_v59 = vmul.f32 %v2536_v49, %v1978_v2  ;;  %vm1985_vm1 = vweird.f32 %v2536_v49 }
0x1ead   :  { %vm1986_vm3 = vmor %vm1984_vm2, %vm1985_vm1 }
0x1eae   :  { %v1981_v43 = vsub.f32 1.0, %v1980_v59 }
0x1eb0   :  { %v1982_v55 = vmul.f32 %v2536_v49, %v1981_v43 }
0x1eb2   :  { %v1983_v35 = vadd.f32 %v2536_v49, %v1982_v55 }
0x1eb4   :  { %v1987_v9 = vsel %vm1986_vm3, %v2536_v49, %v1983_v35 }
0x1eb5   :  { %v1992_v54 = vsel %vm1989_vm4, %v1991_v58, %v1987_v9  ;;  %v1506_v9 = vpop.f32.mrf.mxu1 }
0x1eb6   :  { %v1995_v0 = vmul.f32 %v1992_v54, %v1941_v20 }
0x1f13   :  { %v1998_v34 = vpop.permute.xlu0 %1997 }
0x1f14   :  { %v2000_v60 = vmul.f32 %v1998_v34, %v1992_v54 }
0x1f16   :  { %2002 = vrot.lane.b32.xlu1 %v2000_v60, %s2651_s0 }
0x1f1b   :  { %v526_v61 = vpop.permute.xlu0 %525 }
0x1f1c   :  { %529 = vst.msk [vmem:[#allocation4 + $0x30] sm:$0xff] %vm383_vm9, %v526_v61 }
0x1f23   :  { %v1369_v63 = vld [vmem:[#allocation4 + $0x30] sm:$0xff] }
0x1f24   :  { %2315 = vmatmul.msk.f32.gmra.mxu0 %vm383_vm9, %v1369_v63 }
0x1f2c   :  { %2316 = vmatmul.msk.f32.gmra.mxu0 %vm383_vm9, %v3218_v62 }
0x1f88   :  { %v2003_v1 = vpop.permute.xlu1 %2002 }
0x1f89   :  { %v2005_v3 = vadd.f32 %v2003_v1, %v1995_v0 }
0x1f8b   :  { %2537 = vtanh.f32 %v2005_v3 }
0x1f91   :  { %v2538_v41 = vpop.eup %2537 }
0x1f92   :  { %2008 = vrot.lane.b32.xlu2 %v2538_v41, %s2651_s0 }
0x1fa1   :  { %v1438_v25 = vpop.f32.mrf.mxu0 }
0x1fa2   :  { %v1504_v26 = vadd.f32 %v1503_v48, %v1438_v25 }
0x1fa4   :  { %v1575_v27 = vadd.f32 %v3271_v50, %v1504_v26 }
0x1fa9   :  { %v1441_v57 = vpop.f32.mrf.mxu0 }
0x1faa   :  { %v1507_v58 = vadd.f32 %v1506_v9, %v1441_v57 }
0x1fac   :  { %v1576_v34 = vadd.f32 %v3271_v50, %v1507_v58 }
0x1fec   :  { %v2009_v5 = vpop.permute.xlu2 %2008 }
0x1fed   :  { %v2011_v14 = vmul.f32 %v2009_v5, %v1992_v54 }
0x1fef   :  { %2014 = vrot.lane.b32.xlu1 %v2011_v14, %s2652_s3 }
0x2061   :  { %v2015_v22 = vpop.permute.xlu1 %2014 }
0x2062   :  { %2339 = vmatmul.msk.f32.vlgmr.msra.gmra.mxu2 %vm383_vm9, %v2015_v22 }
0x20e5   :  { %v2035_v62 = vpop.f32.mrf.mxu2 }
0x20e6   :  { %v2038_v31 = vadd.f32 %v2035_v62, %v1575_v27 }
0x20e8   :  { %2539 = vtanh.f32 %v2038_v31  ;;  %v2340_v36 = vmul.f32 -1.442695, %v2038_v31 }
0x20ea   :  { %2541 = vpow2.f32 %v2340_v36 }
0x20ee   :  { %v2540_v51 = vpop.eup %2539 }
0x20ef   :  { %2061 = vrot.lane.b32.xlu2 %v2540_v51, %s2651_s0 }
0x20f0   :  { %v2542_v4 = vpop.eup %2541 }
0x20f1   :  { %v2042_v39 = vadd.f32 1.0, %v2542_v4 }
0x20f3   :  { %2543 = vrcp.f32 %v2042_v39  ;;  %v2054_v37 = vand.u32 2147483648, %v2042_v39  ;;  %vm2048_vm6 = vweird.f32 %v2042_v39  ;;  %v2052_v8 = vand.u32 2147483647, %v2042_v39 }
0x20f4   :  { %2545 = vtanh.f32 %v1589_v13 }
0x20f5   :  { %v2055_v11 = vor.u32 1.1754944e-38, %v2054_v37  ;;  %vm2053_vm8 = vcmp.eq.f32.partialorder %v2052_v8, 8.507059e+37 }
0x20f9   :  { %v2544_v42 = vpop.eup %2543 }
0x20fa   :  { %v2044_v38 = vmul.f32 %v2544_v42, %v2042_v39  ;;  %vm2049_vm5 = vweird.f32 %v2544_v42  ;;  %v2546_v20 = vpop.eup %2545 }
0x20fb   :  { %vm2050_vm7 = vmor %vm2048_vm6, %vm2049_vm5 }
0x20fc   :  { %v2045_v30 = vsub.f32 1.0, %v2044_v38 }
0x20fe   :  { %v2046_v32 = vmul.f32 %v2544_v42, %v2045_v30 }
0x2100   :  { %v2047_v46 = vadd.f32 %v2544_v42, %v2046_v32 }
0x2102   :  { %v2051_v45 = vsel %vm2050_vm7, %v2544_v42, %v2047_v46 }
0x2103   :  { %v2056_v17 = vsel %vm2053_vm8, %v2055_v11, %v2051_v45 }
0x2104   :  { %v2059_v21 = vmul.f32 %v2056_v17, %v2005_v3 }
0x2149   :  { %v2062_v15 = vpop.permute.xlu2 %2061 }
0x214a   :  { %v2064_v18 = vmul.f32 %v2062_v15, %v2056_v17  ;;  %v2654_v15 = vmov 64.0  }
0x214c   :  { %2066 = vrot.lane.b32.xlu0 %v2064_v18, %s2651_s0 }
0x2154   :  { %1612 = vrot.lane.b32.xlu0 %v2546_v20, %s2651_s0 }
0x21be   :  { %v2067_v19 = vpop.permute.xlu0 %2066 }
0x21bf   :  { %v3374_v7 = vadd.f32 %v2067_v19, %v2059_v21 }
0x21c1   :  { %2547 = vtanh.f32 %v3374_v7 }
0x21c2   :  { %2549 = vpow2.f32 %v2327_v24 }
0x21c6   :  { %v1613_v43 = vpop.permute.xlu0 %1612 }
0x21c7   :  { %v2548_v23 = vpop.eup %2547 }
0x21c8   :  { %2072 = vrot.lane.b32.xlu1 %v2548_v23, %s2651_s0  ;;  %v2550_v40 = vpop.eup %2549 }
0x21c9   :  { %v1593_v47 = vadd.f32 1.0, %v2550_v40 }
0x21cb   :  { %2551 = vrcp.f32 %v1593_v47  ;;  %v1605_v53 = vand.u32 2147483648, %v1593_v47  ;;  %vm1599_vm12 = vweird.f32 %v1593_v47  ;;  %v1603_v2 = vand.u32 2147483647, %v1593_v47 }
0x21cd   :  { %v1606_v59 = vor.u32 1.1754944e-38, %v1605_v53  ;;  %vm1604_vm14 = vcmp.eq.f32.partialorder %v1603_v2, 8.507059e+37  ;;  %v2189_v53 = vld [vmem:[%s3453_s11 + $0x8] sm:$0xff]  ;;  %v2188_v2 = vld [vmem:[%s3453_s11] sm:$0xff] }
0x21d1   :  { %v2552_v44 = vpop.eup %2551 }
0x21d2   :  { %v1595_v52 = vmul.f32 %v2552_v44, %v1593_v47  ;;  %vm1600_vm11 = vweird.f32 %v2552_v44 }
0x21d3   :  { %vm1601_vm13 = vmor %vm1599_vm12, %vm1600_vm11 }
0x21d4   :  { %v1596_v33 = vsub.f32 1.0, %v1595_v52  ;;  %v2195_v52 = vld [vmem:[%s3453_s11 + $0x38] sm:$0xff] }
0x21d5   :  { %2211 = vmatpush.msrb.mxu2 %v2195_v52 }
0x21d6   :  { %v1597_v29 = vmul.f32 %v2552_v44, %v1596_v33  ;;  %v2194_v33 = vld [vmem:[%s3453_s11 + $0x30] sm:$0xff] }
0x21d7   :  { %2212 = vmatpush.msrb.mxu2 %v2194_v33 }
0x21d8   :  { %v1598_v28 = vadd.f32 %v2552_v44, %v1597_v29  ;;  %v2193_v29 = vld [vmem:[%s3453_s11 + $0x28] sm:$0xff] }
0x21d9   :  { %2213 = vmatpush.msrb.mxu2 %v2193_v29 }
0x21da   :  { %v1602_v49 = vsel %vm1601_vm13, %v2552_v44, %v1598_v28  ;;  %v2191_v28 = vld [vmem:[%s3453_s11 + $0x18] sm:$0xff] }
0x21db   :  { %v1607_v55 = vsel %vm1604_vm14, %v1606_v59, %v1602_v49  ;;  %v2227_v49 = vld [vmem:[%s3455_s13 + $0x18] sm:$0xff]  ;;  %v2226_v59 = vld [vmem:[%s3455_s13 + $0x10] sm:$0xff] }
0x21dc   :  { %v1615_v35 = vmul.f32 %v1613_v43, %v1607_v55  ;;  %v1610_v63 = vmul.f32 0.0, %v1607_v55  ;;  %2247 = vmatpush.msrb.mxu3 %v2227_v49 }
0x21de   :  { %2248 = vmatpush.msrb.mxu3 %v2226_v59 }
0x223a   :  { %v2073_v12 = vpop.permute.xlu1 %2072 }
0x223b   :  { %v2075_v16 = vmul.f32 %v2073_v12, %v2056_v17  ;;  %v2192_v12 = vld [vmem:[%s3453_s11 + $0x20] sm:$0xff] }
0x223c   :  { %2214 = vmatpush.msrb.mxu2 %v2192_v12 }
0x223d   :  { %2078 = vrot.lane.b32.xlu2 %v2075_v16, %s2652_s3  ;;  %v2190_v16 = vld [vmem:[%s3453_s11 + $0x10] sm:$0xff] }
0x223e   :  { %2215 = vmatpush.msrb.mxu2 %v2191_v28 }
0x2240   :  { %2216 = vmatpush.msrb.mxu2 %v2190_v16 }
0x2242   :  { %2217 = vmatpush.msrb.mxu2 %v2189_v53 }
0x2244   :  { %2218 = vmatpush.msrb.mxu2 %v2188_v2 }
0x2245   :  { %1617 = vrot.lane.b32.xlu2 %v1615_v35, %s2651_s0 }
0x2297   :  { %v2079_v56 = vpop.permute.xlu2 %2078 }
0x2298   :  { %2341 = vmatmul.msk.f32.vlgmr.msra.gmra.mxu3 %vm383_vm9, %v2079_v56 }
0x229f   :  { %v1618_v61 = vpop.permute.xlu2 %1617 }
0x22a0   :  { %v1620_v0 = vadd.f32 %v1618_v61, %v1610_v63 }
0x231b   :  { %v2099_v54 = vpop.f32.mrf.mxu3 }
0x231c   :  { %v2102_v60 = vadd.f32 %v2099_v54, %v1576_v34 }
0x231e   :  { %2553 = vtanh.f32 %v2102_v60  ;;  %v2342_v41 = vmul.f32 -1.442695, %v2102_v60  ;;  %v2359_v60 = vld [vmem:[%s3451_s9] ss:$0 sm:$0xff] }
0x231f   :  { %2555 = vtanh.f32 %v1620_v0  ;;  %v2360_v0 = vld [vmem:[%s3452_s10] ss:$0 sm:$0xff] }
0x2320   :  { %2557 = vpow2.f32 %v2342_v41  ;;  %v2225_v41 = vld [vmem:[%s3455_s13 + $0x8] sm:$0xff] }
0x2321   :  { %2249 = vmatpush.msrb.mxu3 %v2225_v41 }
0x2324   :  { %v2554_v1 = vpop.eup %2553 }
0x2325   :  { %2125 = vrot.lane.b32.xlu1 %v2554_v1, %s2651_s0  ;;  %v2556_v3 = vpop.eup %2555 }
0x2326   :  { %v2558_v5 = vpop.eup %2557 }
0x2327   :  { %v2106_v14 = vadd.f32 1.0, %v2558_v5  ;;  %v2224_v5 = vld [vmem:[%s3455_s13] sm:$0xff] }
0x2328   :  { %2250 = vmatpush.msrb.mxu3 %v2224_v5 }
0x2329   :  { %2559 = vrcp.f32 %v2106_v14  ;;  %v2118_v27 = vand.u32 2147483648, %v2106_v14  ;;  %vm2112_vm0 = vweird.f32 %v2106_v14  ;;  %v2116_v62 = vand.u32 2147483647, %v2106_v14 }
0x232b   :  { %v2119_v51 = vor.u32 1.1754944e-38, %v2118_v27  ;;  %vm2117_vm2 = vcmp.eq.f32.partialorder %v2116_v62, 8.507059e+37 }
0x232d   :  { %1623 = vrot.lane.b32.xlu1 %v2556_v3, %s2651_s0 }
0x232f   :  { %v2560_v22 = vpop.eup %2559 }
0x2330   :  { %v2108_v50 = vmul.f32 %v2560_v22, %v2106_v14  ;;  %vm2113_vm15 = vweird.f32 %v2560_v22  ;;  %v2361_v14 = vld [vmem:[%s3454_s12] ss:$0 sm:$0xff] }
0x2331   :  { %vm2114_vm1 = vmor %vm2112_vm0, %vm2113_vm15 }
0x2332   :  { %v2109_v25 = vsub.f32 1.0, %v2108_v50 }
0x2334   :  { %v2110_v48 = vmul.f32 %v2560_v22, %v2109_v25 }
0x2336   :  { %v2111_v26 = vadd.f32 %v2560_v22, %v2110_v48  ;;  %v2362_v48 = vld [vmem:[#allocation5] ss:$0 sm:$0xff] }
0x2338   :  { %v2115_v31 = vsel %vm2114_vm1, %v2560_v22, %v2111_v26 }
0x2339   :  { %v2120_v4 = vsel %vm2117_vm2, %v2119_v51, %v2115_v31 }
0x233a   :  { %v2123_v30 = vmul.f32 %v2120_v4, %v3374_v7 }
0x2397   :  { %v2126_v36 = vpop.permute.xlu1 %2125 }
0x2398   :  { %v2128_v39 = vmul.f32 %v2126_v36, %v2120_v4 }
0x239a   :  { %2130 = vrot.lane.b32.xlu0 %v2128_v39, %s2651_s0 }
0x239f   :  { %v1624_v42 = vpop.permute.xlu1 %1623 }
0x23a0   :  { %v1626_v38 = vmul.f32 %v1624_v42, %v1607_v55 }
0x23a2   :  { %2145 = vrot.lane.b32.xlu1 %v1626_v38, %s2653_s30 }
0x240c   :  { %v2131_v32 = vpop.permute.xlu0 %2130 }
0x240d   :  { %v2133_v46 = vadd.f32 %v2131_v32, %v2123_v30 }
0x240f   :  { %2561 = vtanh.f32 %v2133_v46 }
0x2410   :  { %2563 = vrcp.f32 %v2654_v15 }
0x2414   :  { %v2146_v10 = vpop.permute.xlu1 %2145 }
0x2415   :  { %v2562_v37 = vpop.eup %2561 }
0x2416   :  { %2136 = vrot.lane.b32.xlu2 %v2562_v37, %s2651_s0  ;;  %v2564_v17 = vpop.eup %2563 }
0x2417   :  { %v2153_v18 = vmul.f32 64.0, %v2564_v17  ;;  %vm2157_vm3 = vweird.f32 %v2564_v17 }
0x2419   :  { %v2154_v20 = vsub.f32 1.0, %v2153_v18 }
0x241b   :  { %v2155_v21 = vmul.f32 %v2564_v17, %v2154_v20 }
0x241d   :  { %v2156_v19 = vadd.f32 %v2564_v17, %v2155_v21 }
0x241f   :  { %v2158_v7 = vsel %vm2157_vm3, %v2564_v17, %v2156_v19 }
0x2470   :  { %v2137_v8 = vpop.permute.xlu2 %2136 }
0x2471   :  { %v2139_v6 = vmul.f32 %v2137_v8, %v2120_v4 }
0x2473   :  { %2141 = vrot.lane.b32.xlu0 %v2139_v6, %s2652_s3 }
0x24e5   :  { %v2142_v45 = vpop.permute.xlu0 %2141 }
0x24e6   :  { %v2148_v11 = vsel %vm383_vm9, %v2142_v45, %v2146_v10 }
0x24e7   :  { %v2149_v13 = vsel %vm256_vm10, %v2148_v11, 0.0 }
0x24e8   :  { %2150 = vadd.xlane.f32.xlu2 %v2149_v13 }
0x255b   :  { %v2151_v23 = vpop.xlane.xlu2 %2150 }
0x255c   :  { %v2159_v24 = vmul.f32 %v2158_v7, %v2151_v23 }
0x255e   :  { %v2160_v40 = vsub.f32 %v2148_v11, %v2159_v24 }
0x2560   :  { %v2161_v47 = vmul.f32 %v2160_v40, %v2160_v40 }
0x2562   :  { %v2162_v44 = vsel %vm256_vm10, %v2161_v47, 0.0 }
0x2563   :  { %2163 = vadd.xlane.f32.xlu0 %v2162_v44 }
0x25d6   :  { %v2164_v43 = vpop.xlane.xlu0 %2163 }
0x25d7   :  { %v2165_v55 = vmul.f32 %v2164_v43, %v2158_v7 }
0x25d9   :  { %v2166_v35 = vadd.f32 1e-05, %v2165_v55 }
0x25db   :  { %2565 = vrsqrt.f32 %v2166_v35  ;;  %vm2173_vm5 = vweird.f32 %v2166_v35 }
0x25e1   :  { %v2566_v56 = vpop.eup %2565 }
0x25e2   :  { %v2168_v57 = vmul.f32 %v2566_v56, %v2166_v35  ;;  %vm2174_vm4 = vweird.f32 %v2566_v56 }
0x25e3   :  { %vm2175_vm6 = vmor %vm2173_vm5, %vm2174_vm4 }
0x25e4   :  { %v2169_v9 = vmul.f32 %v2566_v56, %v2168_v57 }
0x25e6   :  { %v2170_v58 = vmul.f32 0.5, %v2169_v9 }
0x25e8   :  { %v2171_v34 = vsub.f32 1.5, %v2170_v58 }
0x25ea   :  { %v2172_v54 = vmul.f32 %v2566_v56, %v2171_v34 }
0x25ec   :  { %v2176_v61 = vsel %vm2175_vm6, %v2566_v56, %v2172_v54 }
0x25ed   :  { %v2177_v63 = vmul.f32 %v2176_v61, %v2160_v40 }
0x25ef   :  { %v2182_v1 = vmul.f32 %v2359_v60, %v2177_v63 }
0x25f1   :  { %v2187_v3 = vadd.f32 %v2360_v0, %v2182_v1 }
0x25f3   :  { %2343 = vmatmul.msk.f32.vlgmr.msrb.gmra.mxu2 %vm256_vm10, %v2187_v3  ;;  %vm2255_vm10 = vcmask 7168  }
0x2676   :  { %v2220_v22 = vpop.f32.mrf.mxu2 }
0x2677   :  { %v2221_v50 = vadd.f32 %v2361_v14, %v2220_v22 }
0x2679   :  { %v2223_v25 = vmax.f32 %v2221_v50, 0.0 }
0x267b   :  { %2344 = vmatmul.msk.f32.vlgmr.msrb.gmra.mxu3 %vm383_vm9, %v2223_v25 }
0x26fe   :  { %v2252_v26 = vpop.f32.mrf.mxu3 }
0x26ff   :  { %v2253_v27 = vadd.f32 %v2362_v48, %v2252_v26 }
0x2701   :  { %2256 = vst.msk [vmem:[%s3457_s15] sm:$0xff] %vm2255_vm10, %v2253_v27 }
0x2702   :  { %2261 = vsyncpa [#allocation7], 1 }
0x2703   :  { %2262 = vsyncpa [#allocation9], 1 }

// kernel: _forward_impl.1
= control target key start
LH: loop header
LB: loop body
LE: loop exit
PB: predicated region body
PF: predicated region fallthrough
CT: control target
= control target key end

     0   :  { %s3442_s0 = inlined_call_operand.vmem [shape: f32[8,8,16], index: 0, kind: input, shape index: {}]   ;;  %s3443_s1 = inlined_call_operand.hbm [shape: f32[16,256], index: 1, kind: input, shape index: {}]   ;;  %s3444_s2 = inlined_call_operand.vmem [shape: f32[64,256], index: 2, kind: input, shape index: {}]   ;;  %s3445_s3 = inlined_call_operand.vmem [shape: f32[1,256], index: 3, kind: input, shape index: {}]   ;;  %s3446_s4 = inlined_call_operand.vmem [shape: f32[64,128], index: 4, kind: input, shape index: {}]   ;;  %s3447_s5 = inlined_call_operand.hbm [shape: f32[64,128], index: 5, kind: input, shape index: {}]   ;;  %s3448_s6 = inlined_call_operand.hbm [shape: f32[32,128], index: 6, kind: input, shape index: {}]   ;;  %s3449_s7 = inlined_call_operand.vmem [shape: f32[1,128], index: 7, kind: input, shape index: {}]   ;;  %s3450_s8 = inlined_call_operand.vmem [shape: f32[1,128], index: 8, kind: input, shape index: {}]   ;;  %s3451_s9 = inlined_call_operand.vmem [shape: f32[1,64], index: 9, kind: input, shape index: {}]   ;;  %s3452_s10 = inlined_call_operand.vmem [shape: f32[1,64], index: 10, kind: input, shape index: {}]   ;;  %s3453_s11 = inlined_call_operand.vmem [shape: f32[64,32], index: 11, kind: input, shape index: {}]   ;;  %s3454_s12 = inlined_call_operand.vmem [shape: f32[1,32], index: 12, kind: input, shape index: {}]   ;;  %s3455_s13 = inlined_call_operand.vmem [shape: f32[32,1], index: 13, kind: input, shape index: {}]   ;;  %s3456_s14 = inlined_call_operand.<no memory space> [shape: f32[1,1], index: 14, kind: input, shape index: {}]   ;;  %s3457_s15 = inlined_call_operand.vmem [shape: f32[8,1], index: 15, kind: output, shape index: {}]  }
   0x1   :  { %v20_v0 = vstv %s3456_s14 }
   0x2   :  { %21 = vst [vmem:[#allocation5] sm:$0x1] %v20_v0 }
   0x3   :  { %22 = vsyncpa [#allocation7], 0 }
   0x4   :  { %23 = vsyncpa [#allocation9], 0  ;;  %s49_s22 = sshll.u32 %s3447_s5, 4  ;;  %s2643_s23 = smov [#allocation8]   ;;  %s50_s22 = int_to_ptr.hbm [resolvable:$true] %s49_s22 }
   0x5   :  { %s51_s24 = sshll.u32 %s2643_s23, 4  ;;  %s30_s27 = sshll.u32 %s3443_s1, 4  ;;  %s52_s24 = int_to_ptr.vmem [resolvable:$true] %s51_s24  ;;  %s31_s27 = int_to_ptr.hbm [resolvable:$true] %s30_s27 }
   0x6   :  { %s2644_s28 = smov 128   ;;  %s2645_s29 = smov 8  }
   0x7   :  { %57 = dma.hbm_to_vmem [thread:$0]  %s50_s22, 1024, %s52_s24, [#allocation9], %s2644_s28, %s2644_s28, %s2645_s29  }
   0x8   :  { %s2646_s14 = smov [#allocation6]   ;;  %s2647_s16 = smov 256  }
   0x9   :  { %s32_s30 = sshll.u32 %s2646_s14, 4  ;;  %s2648_s17 = smov 16   ;;  %s33_s30 = int_to_ptr.vmem [resolvable:$true] %s32_s30 }
   0xa   :  { %38 = dma.hbm_to_vmem [thread:$0]  %s31_s27, 512, %s33_s30, [#allocation7], %s2647_s16, %s2647_s16, %s2648_s17  }
   0xb   :  { %s62_s19 = sshll.u32 %s3448_s6, 4  ;;  %s2649_s20 = smov [#allocation10]   ;;  %s63_s19 = int_to_ptr.hbm [resolvable:$true] %s62_s19 }
   0xc   :  { %s64_s21 = sshll.u32 %s2649_s20, 4  ;;  %s65_s21 = int_to_ptr.vmem [resolvable:$true] %s64_s21 }
   0xd   :  { %70 = dma.hbm_to_vmem [thread:$0]  %s63_s19, 512, %s65_s21, [#allocation9], %s2644_s28, %s2644_s28, %s2645_s29  }
   0xe   :  { %2639 = dma.done.wait [#allocation7], 512  }
   0xf   :  { %2640 = vsyncadd [#allocation7], 4294966784 }
  0x10   :  { %2641 = dma.done.wait [#allocation9], 1536  }
  0x11   :  { %2642 = vsyncadd [#allocation9], 4294965760  ;;  %v110_v1 = vld [vmem:[#allocation6 + $0x18] sm:$0xff]  ;;  %v2750_v2 = vld [vmem:[%s3444_s2 + $0x70] sm:$0xff]  ;;  %vm117_vm0 = vcmask 130048   ;;  %v2650_v20 = vmov 0.0  }
  0x12   :  { %v108_v3 = vld [vmem:[#allocation6 + $0x8] sm:$0xff]  ;;  %197 = vmatpush.msra.mxu1 %v110_v1  ;;  %268 = vmatpush.msra.mxu2 %v2750_v2  ;;  %v2756_v4 = vld [vmem:[%s3444_s2 + $0x60] sm:$0xff]  ;;  %v109_v8 = vld [vmem:[#allocation6 + $0x10] sm:$0xff]  ;;  %s2653_s30 = smov 96   ;;  %vm383_vm9 = vcmask 261120   ;;  %vm256_vm10 = vcmask 523264  }
  0x13   :  { %v99_v5 = vld [vmem:[%s3442_s0] sm:$0xff]  ;;  %v2764_v6 = vld [vmem:[%s3444_s2 + $0x50] sm:$0xff]  ;;  %156 = vmatpush.msra.mxu0 %v109_v8  ;;  %v2777_v10 = vld [vmem:[%s3444_s2 + $0x78] sm:$0xff] }
  0x14   :  { %198 = vmatpush.msra.mxu1 %v108_v3  ;;  %269 = vmatpush.msra.mxu2 %v2756_v4  ;;  %v2771_v7 = vld [vmem:[%s3444_s2 + $0x40] sm:$0xff]  ;;  %v2782_v11 = vld [vmem:[%s3444_s2 + $0x30] sm:$0xff]  ;;  %v2788_v12 = vld [vmem:[%s3444_s2 + $0x68] sm:$0xff] }
  0x15   :  { %2271 = vmatmul.msk.f32.vlgmr.msra.gmra.mxu1 %vm117_vm0, %v99_v5  ;;  %v107_v9 = vld [vmem:[#allocation6] sm:$0xff]  ;;  %288 = vmatpush.msra.mxu3 %v2777_v10  ;;  %v2807_v15 = vld [vmem:[%s3444_s2 + $0x10] sm:$0xff]  ;;  %v2820_v17 = vld [vmem:[%s3444_s2 + $0x58] sm:$0xff] }
  0x16   :  { %270 = vmatpush.msra.mxu2 %v2764_v6  ;;  %843 = vmatpush.msrb.mxu1 %v2777_v10  ;;  %v2795_v13 = vld [vmem:[%s3444_s2 + $0x20] sm:$0xff]  ;;  %v100_v14 = vld [vmem:[%s3442_s0 + $0x8] sm:$0xff]  ;;  %v2833_v19 = vld [vmem:[%s3444_s2 + $0x38] sm:$0xff] }
  0x17   :  { %157 = vmatpush.msra.mxu0 %v107_v9  ;;  %289 = vmatpush.msra.mxu3 %v2788_v12  ;;  %v2815_v16 = vld [vmem:[%s3444_s2] sm:$0xff]  ;;  %v2825_v18 = vld [vmem:[%s3444_s2 + $0x48] sm:$0xff]  ;;  %v101_v22 = vld [vmem:[%s3442_s0 + $0x10] sm:$0xff] }
  0x18   :  { %271 = vmatpush.msra.mxu2 %v2771_v7  ;;  %2263 = vmatmul.msk.f32.vlgmr.msra.gmra.mxu0 %vm117_vm0, %v99_v5  ;;  %v2843_v21 = vld [vmem:[%s3444_s2 + $0x28] sm:$0xff]  ;;  %v2859_v23 = vld [vmem:[%s3444_s2 + $0x18] sm:$0xff]  ;;  %v103_v26 = vld [vmem:[%s3442_s0 + $0x20] sm:$0xff] }
  0x19   :  { %844 = vmatpush.msrb.mxu1 %v2788_v12  ;;  %823 = vmatpush.msrb.mxu0 %v2750_v2  ;;  %v2864_v24 = vld [vmem:[%s3444_s2 + $0x8] sm:$0xff]  ;;  %v102_v25 = vld [vmem:[%s3442_s0 + $0x18] sm:$0xff]  ;;  %v105_v28 = vld [vmem:[%s3442_s0 + $0x30] sm:$0xff] }
  0x1a   :  { %272 = vmatpush.msra.mxu2 %v2782_v11  ;;  %290 = vmatpush.msra.mxu3 %v2820_v17  ;;  %v104_v27 = vld [vmem:[%s3442_s0 + $0x28] sm:$0xff]  ;;  %v106_v29 = vld [vmem:[%s3442_s0 + $0x38] sm:$0xff]  ;;  %v111_v30 = vld [vmem:[%s3445_s3] sm:$0x3]  ;;  %s2651_s0 = smov 32   ;;  %s2652_s3 = smov 64  }
  0x1b   :  { %824 = vmatpush.msrb.mxu0 %v2756_v4  ;;  %845 = vmatpush.msrb.mxu1 %v2820_v17  ;;  %v114_v31 = vperm.slane %v111_v30, 1  ;;  %v2956_v36 = vperm.slane %v111_v30, 0 }
  0x1c   :  { %273 = vmatpush.msra.mxu2 %v2795_v13  ;;  %291 = vmatpush.msra.mxu3 %v2825_v18 }
  0x1d   :  { %2272 = vmatmul.msk.f32.gmra.mxu1 %vm117_vm0, %v100_v14  ;;  %825 = vmatpush.msrb.mxu0 %v2764_v6 }
  0x1e   :  { %274 = vmatpush.msra.mxu2 %v2807_v15  ;;  %292 = vmatpush.msra.mxu3 %v2833_v19 }
  0x1f   :  { %846 = vmatpush.msrb.mxu1 %v2825_v18  ;;  %826 = vmatpush.msrb.mxu0 %v2771_v7 }
  0x20   :  { %275 = vmatpush.msra.mxu2 %v2815_v16  ;;  %2264 = vmatmul.msk.f32.gmra.mxu0 %vm117_vm0, %v100_v14 }
  0x21   :  { %276 = vmatmul.f32.vlgmr.msra.gmra.mxu2 %v2650_v20  ;;  %293 = vmatpush.msra.mxu3 %v2843_v21 }
  0x22   :  { %406 = vmatpush.msrb.mxu2 %v2750_v2  ;;  %827 = vmatpush.msrb.mxu0 %v2782_v11 }
  0x23   :  { %294 = vmatpush.msra.mxu3 %v2859_v23  ;;  %847 = vmatpush.msrb.mxu1 %v2833_v19 }
  0x24   :  { %407 = vmatpush.msrb.mxu2 %v2756_v4  ;;  %828 = vmatpush.msrb.mxu0 %v2795_v13 }
  0x25   :  { %2273 = vmatmul.msk.f32.gmra.mxu1 %vm117_vm0, %v101_v22  ;;  %295 = vmatpush.msra.mxu3 %v2864_v24 }
  0x26   :  { %408 = vmatpush.msrb.mxu2 %v2764_v6  ;;  %296 = vmatmul.f32.vlgmr.msra.gmra.mxu3 %v2650_v20 }
  0x27   :  { %426 = vmatpush.msrb.mxu3 %v2777_v10  ;;  %848 = vmatpush.msrb.mxu1 %v2843_v21 }
  0x28   :  { %409 = vmatpush.msrb.mxu2 %v2771_v7  ;;  %2265 = vmatmul.msk.f32.gmra.mxu0 %vm117_vm0, %v101_v22 }
  0x29   :  { %829 = vmatpush.msrb.mxu0 %v2807_v15  ;;  %427 = vmatpush.msrb.mxu3 %v2788_v12 }
  0x2a   :  { %410 = vmatpush.msrb.mxu2 %v2782_v11  ;;  %849 = vmatpush.msrb.mxu1 %v2859_v23 }
  0x2b   :  { %830 = vmatpush.msrb.mxu0 %v2815_v16  ;;  %428 = vmatpush.msrb.mxu3 %v2820_v17 }
  0x2c   :  { %411 = vmatpush.msrb.mxu2 %v2795_v13  ;;  %850 = vmatpush.msrb.mxu1 %v2864_v24 }
  0x2d   :  { %2274 = vmatmul.msk.f32.gmra.mxu1 %vm117_vm0, %v102_v25  ;;  %1097 = vmatpush.msra.mxu0 %v2750_v2 }
  0x2e   :  { %412 = vmatpush.msrb.mxu2 %v2807_v15  ;;  %429 = vmatpush.msrb.mxu3 %v2825_v18 }
  0x2f   :  { %1117 = vmatpush.msra.mxu1 %v2777_v10  ;;  %1098 = vmatpush.msra.mxu0 %v2756_v4 }
  0x30   :  { %413 = vmatpush.msrb.mxu2 %v2815_v16  ;;  %2266 = vmatmul.msk.f32.gmra.mxu0 %vm117_vm0, %v102_v25 }
  0x31   :  { %430 = vmatpush.msrb.mxu3 %v2833_v19  ;;  %1118 = vmatpush.msra.mxu1 %v2788_v12 }
  0x32   :  { %545 = vmatpush.msra.mxu2 %v2750_v2  ;;  %1099 = vmatpush.msra.mxu0 %v2764_v6 }
  0x33   :  { %431 = vmatpush.msrb.mxu3 %v2843_v21  ;;  %1119 = vmatpush.msra.mxu1 %v2820_v17 }
  0x34   :  { %546 = vmatpush.msra.mxu2 %v2756_v4  ;;  %1100 = vmatpush.msra.mxu0 %v2771_v7 }
  0x35   :  { %2275 = vmatmul.msk.f32.gmra.mxu1 %vm117_vm0, %v103_v26  ;;  %432 = vmatpush.msrb.mxu3 %v2859_v23 }
  0x36   :  { %547 = vmatpush.msra.mxu2 %v2764_v6  ;;  %1120 = vmatpush.msra.mxu1 %v2825_v18 }
  0x37   :  { %433 = vmatpush.msrb.mxu3 %v2864_v24  ;;  %1101 = vmatpush.msra.mxu0 %v2782_v11 }
  0x38   :  { %548 = vmatpush.msra.mxu2 %v2771_v7  ;;  %2267 = vmatmul.msk.f32.gmra.mxu0 %vm117_vm0, %v103_v26 }
  0x39   :  { %565 = vmatpush.msra.mxu3 %v2777_v10  ;;  %1121 = vmatpush.msra.mxu1 %v2833_v19 }
  0x3a   :  { %549 = vmatpush.msra.mxu2 %v2782_v11  ;;  %1102 = vmatpush.msra.mxu0 %v2795_v13 }
  0x3b   :  { %566 = vmatpush.msra.mxu3 %v2788_v12  ;;  %1122 = vmatpush.msra.mxu1 %v2843_v21 }
  0x3c   :  { %550 = vmatpush.msra.mxu2 %v2795_v13  ;;  %1103 = vmatpush.msra.mxu0 %v2807_v15 }
  0x3d   :  { %2276 = vmatmul.msk.f32.gmra.mxu1 %vm117_vm0, %v104_v27  ;;  %567 = vmatpush.msra.mxu3 %v2820_v17 }
  0x3e   :  { %551 = vmatpush.msra.mxu2 %v2807_v15  ;;  %1123 = vmatpush.msra.mxu1 %v2859_v23 }
  0x3f   :  { %568 = vmatpush.msra.mxu3 %v2825_v18  ;;  %1104 = vmatpush.msra.mxu0 %v2815_v16 }
  0x40   :  { %552 = vmatpush.msra.mxu2 %v2815_v16  ;;  %2268 = vmatmul.msk.f32.gmra.mxu0 %vm117_vm0, %v104_v27 }
  0x41   :  { %569 = vmatpush.msra.mxu3 %v2833_v19  ;;  %1124 = vmatpush.msra.mxu1 %v2864_v24 }
  0x43   :  { %570 = vmatpush.msra.mxu3 %v2843_v21 }
  0x45   :  { %2277 = vmatmul.msk.f32.gmra.mxu1 %vm117_vm0, %v105_v28  ;;  %571 = vmatpush.msra.mxu3 %v2859_v23 }
  0x47   :  { %572 = vmatpush.msra.mxu3 %v2864_v24 }
  0x48   :  { %2269 = vmatmul.msk.f32.gmra.mxu0 %vm117_vm0, %v105_v28 }
  0x4d   :  { %2278 = vmatmul.msk.f32.gmra.mxu1 %vm117_vm0, %v106_v29 }
  0x50   :  { %2270 = vmatmul.msk.f32.gmra.mxu0 %vm117_vm0, %v106_v29 }
  0x92   :  { %v200_v32 = vpop.f32.mrf.mxu1 }
  0x93   :  { %v2952_v33 = vadd.f32 %v200_v32, %v114_v31 }
  0x95   :  { %v159_v37 = vpop.f32.mrf.mxu0 }
  0x96   :  { %v160_v38 = vadd.f32 %v159_v37, %v2956_v36 }
  0x9a   :  { %v203_v34 = vpop.f32.mrf.mxu1 }
  0x9b   :  { %v2954_v35 = vadd.f32 %v203_v34, %v114_v31 }
  0xa2   :  { %v206_v39 = vpop.f32.mrf.mxu1 }
  0xa3   :  { %v2959_v40 = vadd.f32 %v206_v39, %v114_v31 }
  0xa4   :  { %v277_v41 = vpop.f32.mrf.mxu2 }
  0xa5   :  { %v301_v42 = vadd.f32 %v277_v41, %v160_v38 }
  0xa7   :  { %2363 = vtanh.f32 %v301_v42  ;;  %v2279_v57 = vmul.f32 -1.442695, %v301_v42 }
  0xa9   :  { %v297_v53 = vpop.f32.mrf.mxu3 }
  0xaa   :  { %v209_v43 = vpop.f32.mrf.mxu1 }
  0xab   :  { %v2961_v44 = vadd.f32 %v209_v43, %v114_v31 }
  0xad   :  { %v2364_v45 = vpop.eup %2363 }
  0xae   :  { %324 = vrot.lane.b32.xlu0 %v2364_v45, %s2651_s0 }
  0xb2   :  { %v212_v46 = vpop.f32.mrf.mxu1 }
  0xb3   :  { %v2964_v47 = vadd.f32 %v212_v46, %v114_v31 }
  0xba   :  { %v215_v48 = vpop.f32.mrf.mxu1 }
  0xbb   :  { %v2966_v49 = vadd.f32 %v215_v48, %v114_v31 }
  0xc2   :  { %v218_v50 = vpop.f32.mrf.mxu1 }
  0xc3   :  { %v2968_v51 = vadd.f32 %v218_v50, %v114_v31 }
  0xca   :  { %v221_v52 = vpop.f32.mrf.mxu1 }
  0xcb   :  { %v222_v54 = vadd.f32 %v221_v52, %v114_v31 }
  0xcd   :  { %v341_v55 = vadd.f32 %v297_v53, %v222_v54 }
  0xcf   :  { %2365 = vtanh.f32 %v341_v55  ;;  %v2280_v5 = vmul.f32 -1.442695, %v341_v55 }
  0xd0   :  { %2367 = vpow2.f32 %v2279_v57 }
  0xd5   :  { %v2366_v56 = vpop.eup %2365 }
  0xd6   :  { %364 = vrot.lane.b32.xlu0 %v2366_v56, %s2651_s0  ;;  %v2368_v58 = vpop.eup %2367 }
  0xd7   :  { %v305_v59 = vadd.f32 1.0, %v2368_v58 }
  0xd9   :  { %2369 = vrcp.f32 %v305_v59  ;;  %vm311_vm1 = vweird.f32 %v305_v59  ;;  %v317_v0 = vand.u32 2147483648, %v305_v59  ;;  %v315_v3 = vand.u32 2147483647, %v305_v59 }
  0xda   :  { %2371 = vpow2.f32 %v2280_v5 }
  0xdb   :  { %v318_v8 = vor.u32 1.1754944e-38, %v317_v0  ;;  %vm316_vm4 = vcmp.eq.f32.partialorder %v315_v3, 8.507059e+37 }
  0xdf   :  { %v2370_v60 = vpop.eup %2369 }
  0xe0   :  { %v307_v61 = vmul.f32 %v2370_v60, %v305_v59  ;;  %vm312_vm2 = vweird.f32 %v2370_v60  ;;  %v2372_v26 = vpop.eup %2371 }
  0xe1   :  { %vm313_vm3 = vmor %vm311_vm1, %vm312_vm2  ;;  %v345_v27 = vadd.f32 1.0, %v2372_v26 }
  0xe2   :  { %v308_v62 = vsub.f32 1.0, %v307_v61 }
  0xe3   :  { %2373 = vrcp.f32 %v345_v27  ;;  %v357_v34 = vand.u32 2147483648, %v345_v27  ;;  %vm351_vm6 = vweird.f32 %v345_v27  ;;  %v355_v37 = vand.u32 2147483647, %v345_v27 }
  0xe4   :  { %v309_v63 = vmul.f32 %v2370_v60, %v308_v62 }
  0xe5   :  { %v358_v39 = vor.u32 1.1754944e-38, %v357_v34  ;;  %vm356_vm8 = vcmp.eq.f32.partialorder %v355_v37, 8.507059e+37 }
  0xe6   :  { %v310_v1 = vadd.f32 %v2370_v60, %v309_v63  ;;  %v162_v63 = vpop.f32.mrf.mxu0 }
  0xe7   :  { %v163_v0 = vadd.f32 %v162_v63, %v2956_v36 }
  0xe8   :  { %v314_v9 = vsel %vm313_vm3, %v2370_v60, %v310_v1 }
  0xe9   :  { %v319_v22 = vsel %vm316_vm4, %v318_v8, %v314_v9  ;;  %v2374_v28 = vpop.eup %2373 }
  0xea   :  { %v347_v29 = vmul.f32 %v2374_v28, %v345_v27  ;;  %vm352_vm5 = vweird.f32 %v2374_v28  ;;  %v322_v45 = vmul.f32 0.0, %v319_v22 }
  0xeb   :  { %vm353_vm7 = vmor %vm351_vm6, %vm352_vm5 }
  0xec   :  { %v348_v30 = vsub.f32 1.0, %v347_v29 }
  0xee   :  { %v349_v31 = vmul.f32 %v2374_v28, %v348_v30 }
  0xf0   :  { %v350_v32 = vadd.f32 %v2374_v28, %v349_v31 }
  0xf2   :  { %v354_v38 = vsel %vm353_vm7, %v2374_v28, %v350_v32 }
  0xf3   :  { %v359_v41 = vsel %vm356_vm8, %v358_v39, %v354_v38 }
  0xf4   :  { %v362_v52 = vmul.f32 0.0, %v359_v41 }
 0x120   :  { %v325_v14 = vpop.permute.xlu0 %324 }
 0x121   :  { %v327_v25 = vmul.f32 %v325_v14, %v319_v22 }
 0x123   :  { %329 = vrot.lane.b32.xlu1 %v327_v25, %s2651_s0 }
 0x148   :  { %v365_v42 = vpop.permute.xlu0 %364 }
 0x149   :  { %v367_v43 = vmul.f32 %v365_v42, %v359_v41 }
 0x14b   :  { %369 = vrot.lane.b32.xlu1 %v367_v43, %s2651_s0 }
 0x195   :  { %v330_v46 = vpop.permute.xlu1 %329 }
 0x196   :  { %v2973_v48 = vadd.f32 %v330_v46, %v322_v45 }
 0x198   :  { %2375 = vtanh.f32 %v2973_v48 }
 0x19e   :  { %v2376_v50 = vpop.eup %2375 }
 0x19f   :  { %335 = vrot.lane.b32.xlu2 %v2376_v50, %s2651_s0 }
 0x1bd   :  { %v370_v53 = vpop.permute.xlu1 %369 }
 0x1be   :  { %v2977_v54 = vadd.f32 %v370_v53, %v362_v52 }
 0x1c0   :  { %2377 = vtanh.f32 %v2977_v54 }
 0x1c6   :  { %v2378_v55 = vpop.eup %2377 }
 0x1c7   :  { %375 = vrot.lane.b32.xlu2 %v2378_v55, %s2651_s0 }
 0x1f9   :  { %v336_v56 = vpop.permute.xlu2 %335 }
 0x1fa   :  { %v338_v57 = vmul.f32 %v336_v56, %v319_v22 }
 0x1fc   :  { %380 = vrot.lane.b32.xlu0 %v338_v57, %s2652_s3 }
 0x221   :  { %v376_v58 = vpop.permute.xlu2 %375 }
 0x222   :  { %v2982_v59 = vmul.f32 %v376_v58, %v359_v41 }
 0x224   :  { %391 = vrot.lane.b32.xlu1 %v2982_v59, %s2653_s30 }
 0x26e   :  { %v381_v60 = vpop.permute.xlu0 %380 }
 0x26f   :  { %384 = vst.msk [vmem:[#allocation3] sm:$0xff] %vm383_vm9, %v381_v60 }
 0x296   :  { %v392_v61 = vpop.permute.xlu1 %391 }
 0x297   :  { %v394_v62 = vsel %vm383_vm9, %v381_v60, %v392_v61 }
 0x298   :  { %2281 = vmatmul.msk.f32.vlgmr.msrb.gmra.mxu2 %vm256_vm10, %v394_v62  ;;  %2282 = vmatmul.msk.f32.vlgmr.msrb.gmra.mxu3 %vm256_vm10, %v394_v62 }
 0x299   :  { %684 = vmatpush.msrb.mxu2 %v2750_v2  ;;  %704 = vmatpush.msrb.mxu3 %v2777_v10 }
 0x29b   :  { %685 = vmatpush.msrb.mxu2 %v2756_v4  ;;  %705 = vmatpush.msrb.mxu3 %v2788_v12 }
 0x29d   :  { %686 = vmatpush.msrb.mxu2 %v2764_v6  ;;  %706 = vmatpush.msrb.mxu3 %v2820_v17 }
 0x29f   :  { %687 = vmatpush.msrb.mxu2 %v2771_v7  ;;  %707 = vmatpush.msrb.mxu3 %v2825_v18 }
 0x2a1   :  { %688 = vmatpush.msrb.mxu2 %v2782_v11  ;;  %708 = vmatpush.msrb.mxu3 %v2833_v19 }
 0x2a3   :  { %689 = vmatpush.msrb.mxu2 %v2795_v13  ;;  %709 = vmatpush.msrb.mxu3 %v2843_v21 }
 0x2a5   :  { %690 = vmatpush.msrb.mxu2 %v2807_v15  ;;  %710 = vmatpush.msrb.mxu3 %v2859_v23 }
 0x2a7   :  { %691 = vmatpush.msrb.mxu2 %v2815_v16  ;;  %711 = vmatpush.msrb.mxu3 %v2864_v24 }
 0x31b   :  { %v415_v1 = vpop.f32.mrf.mxu2  ;;  %v435_v3 = vpop.f32.mrf.mxu3 }
 0x31c   :  { %v440_v5 = vadd.f32 %v415_v1, %v163_v0  ;;  %v480_v8 = vadd.f32 %v435_v3, %v2968_v51 }
 0x31e   :  { %2379 = vtanh.f32 %v440_v5  ;;  %v2283_v22 = vmul.f32 -1.442695, %v440_v5  ;;  %v2284_v28 = vmul.f32 -1.442695, %v480_v8 }
 0x31f   :  { %2381 = vtanh.f32 %v480_v8 }
 0x320   :  { %2383 = vpow2.f32 %v2283_v22 }
 0x324   :  { %v2380_v9 = vpop.eup %2379 }
 0x325   :  { %v2382_v14 = vpop.eup %2381  ;;  %463 = vrot.lane.b32.xlu2 %v2380_v9, %s2651_s0 }
 0x326   :  { %503 = vrot.lane.b32.xlu0 %v2382_v14, %s2651_s0  ;;  %v2384_v25 = vpop.eup %2383 }
 0x327   :  { %v444_v26 = vadd.f32 1.0, %v2384_v25 }
 0x329   :  { %2385 = vrcp.f32 %v444_v26  ;;  %v456_v37 = vand.u32 2147483648, %v444_v26  ;;  %vm450_vm12 = vweird.f32 %v444_v26  ;;  %v454_v38 = vand.u32 2147483647, %v444_v26 }
 0x32a   :  { %2387 = vpow2.f32 %v2284_v28 }
 0x32b   :  { %v457_v41 = vor.u32 1.1754944e-38, %v456_v37  ;;  %vm455_vm14 = vcmp.eq.f32.partialorder %v454_v38, 8.507059e+37 }
 0x32f   :  { %v2386_v27 = vpop.eup %2385 }
 0x330   :  { %v446_v29 = vmul.f32 %v2386_v27, %v444_v26  ;;  %v2388_v51 = vpop.eup %2387  ;;  %vm451_vm11 = vweird.f32 %v2386_v27 }
 0x331   :  { %v484_v32 = vadd.f32 1.0, %v2388_v51  ;;  %vm452_vm13 = vmor %vm450_vm12, %vm451_vm11 }
 0x332   :  { %v447_v30 = vsub.f32 1.0, %v446_v29 }
 0x333   :  { %2389 = vrcp.f32 %v484_v32  ;;  %v496_v56 = vand.u32 2147483648, %v484_v32  ;;  %vm490_vm0 = vweird.f32 %v484_v32  ;;  %v494_v57 = vand.u32 2147483647, %v484_v32 }
 0x334   :  { %v448_v31 = vmul.f32 %v2386_v27, %v447_v30  ;;  %v165_v30 = vpop.f32.mrf.mxu0 }
 0x335   :  { %v497_v60 = vor.u32 1.1754944e-38, %v496_v56  ;;  %vm495_vm2 = vcmp.eq.f32.partialorder %v494_v57, 8.507059e+37 }
 0x336   :  { %v449_v34 = vadd.f32 %v2386_v27, %v448_v31  ;;  %v166_v31 = vadd.f32 %v165_v30, %v2956_v36 }
 0x338   :  { %v453_v39 = vsel %vm452_vm13, %v2386_v27, %v449_v34 }
 0x339   :  { %v458_v43 = vsel %vm455_vm14, %v457_v41, %v453_v39  ;;  %v2390_v46 = vpop.eup %2389 }
 0x33a   :  { %v486_v50 = vmul.f32 %v2390_v46, %v484_v32  ;;  %vm491_vm15 = vweird.f32 %v2390_v46  ;;  %v461_v0 = vmul.f32 %v458_v43, %v2973_v48 }
 0x33b   :  { %vm492_vm1 = vmor %vm490_vm0, %vm491_vm15 }
 0x33c   :  { %v487_v52 = vsub.f32 1.0, %v486_v50 }
 0x33e   :  { %v488_v53 = vmul.f32 %v2390_v46, %v487_v52 }
 0x340   :  { %v489_v55 = vadd.f32 %v2390_v46, %v488_v53 }
 0x342   :  { %v493_v58 = vsel %vm492_vm1, %v2390_v46, %v489_v55 }
 0x343   :  { %v498_v62 = vsel %vm495_vm2, %v497_v60, %v493_v58 }
 0x344   :  { %v501_v1 = vmul.f32 %v498_v62, %v2977_v54 }
 0x37f   :  { %v464_v42 = vpop.permute.xlu2 %463 }
 0x380   :  { %v466_v45 = vmul.f32 %v464_v42, %v458_v43 }
 0x382   :  { %468 = vrot.lane.b32.xlu1 %v466_v45, %s2651_s0 }
 0x398   :  { %v504_v61 = vpop.permute.xlu0 %503 }
 0x399   :  { %v506_v63 = vmul.f32 %v504_v61, %v498_v62 }
 0x39b   :  { %508 = vrot.lane.b32.xlu2 %v506_v63, %s2651_s0 }
 0x3f4   :  { %v469_v3 = vpop.permute.xlu1 %468 }
 0x3f5   :  { %v509_v5 = vpop.permute.xlu2 %508  ;;  %v3014_v8 = vadd.f32 %v469_v3, %v461_v0 }
 0x3f6   :  { %v3016_v9 = vadd.f32 %v509_v5, %v501_v1 }
 0x3f7   :  { %2391 = vtanh.f32 %v3014_v8 }
 0x3f8   :  { %2393 = vtanh.f32 %v3016_v9 }
 0x3fd   :  { %v2392_v14 = vpop.eup %2391 }
 0x3fe   :  { %v2394_v22 = vpop.eup %2393  ;;  %474 = vrot.lane.b32.xlu0 %v2392_v14, %s2651_s0 }
 0x3ff   :  { %514 = vrot.lane.b32.xlu1 %v2394_v22, %s2651_s0 }
 0x470   :  { %v475_v25 = vpop.permute.xlu0 %474 }
 0x471   :  { %v515_v48 = vpop.permute.xlu1 %514  ;;  %v477_v26 = vmul.f32 %v475_v25, %v458_v43 }
 0x472   :  { %v3022_v54 = vmul.f32 %v515_v48, %v498_v62 }
 0x473   :  { %519 = vrot.lane.b32.xlu2 %v477_v26, %s2652_s3 }
 0x474   :  { %530 = vrot.lane.b32.xlu0 %v3022_v54, %s2653_s30 }
 0x4cd   :  { %v520_v27 = vpop.permute.xlu2 %519 }
 0x4ce   :  { %523 = vst.msk [vmem:[#allocation3 + $0x8] sm:$0xff] %vm383_vm9, %v520_v27 }
 0x4e6   :  { %v531_v28 = vpop.permute.xlu0 %530 }
 0x4e7   :  { %v533_v29 = vsel %vm383_vm9, %v520_v27, %v531_v28 }
 0x4e8   :  { %2285 = vmatmul.msk.f32.vlgmr.msra.gmra.mxu2 %vm256_vm10, %v533_v29  ;;  %2286 = vmatmul.msk.f32.vlgmr.msra.gmra.mxu3 %vm256_vm10, %v533_v29 }
 0x4e9   :  { %960 = vmatpush.msra.mxu2 %v2750_v2  ;;  %980 = vmatpush.msra.mxu3 %v2777_v10 }
 0x4eb   :  { %961 = vmatpush.msra.mxu2 %v2756_v4  ;;  %981 = vmatpush.msra.mxu3 %v2788_v12 }
 0x4ed   :  { %962 = vmatpush.msra.mxu2 %v2764_v6  ;;  %982 = vmatpush.msra.mxu3 %v2820_v17 }
 0x4ef   :  { %963 = vmatpush.msra.mxu2 %v2771_v7  ;;  %983 = vmatpush.msra.mxu3 %v2825_v18 }
 0x4f1   :  { %964 = vmatpush.msra.mxu2 %v2782_v11  ;;  %984 = vmatpush.msra.mxu3 %v2833_v19 }
 0x4f3   :  { %965 = vmatpush.msra.mxu2 %v2795_v13  ;;  %985 = vmatpush.msra.mxu3 %v2843_v21 }
 0x4f5   :  { %966 = vmatpush.msra.mxu2 %v2807_v15  ;;  %986 = vmatpush.msra.mxu3 %v2859_v23 }
 0x4f7   :  { %967 = vmatpush.msra.mxu2 %v2815_v16  ;;  %987 = vmatpush.msra.mxu3 %v2864_v24 }
 0x56b   :  { %v554_v51 = vpop.f32.mrf.mxu2  ;;  %v574_v32 = vpop.f32.mrf.mxu3 }
 0x56c   :  { %v579_v34 = vadd.f32 %v554_v51, %v166_v31  ;;  %v619_v37 = vadd.f32 %v574_v32, %v2966_v49 }
 0x56e   :  { %2395 = vtanh.f32 %v579_v34  ;;  %v2288_v41 = vmul.f32 -1.442695, %v619_v37  ;;  %v2287_v46 = vmul.f32 -1.442695, %v579_v34 }
 0x56f   :  { %2397 = vtanh.f32 %v619_v37 }
 0x570   :  { %2399 = vpow2.f32 %v2288_v41 }
 0x574   :  { %v2396_v38 = vpop.eup %2395 }
 0x575   :  { %v2398_v39 = vpop.eup %2397  ;;  %602 = vrot.lane.b32.xlu1 %v2396_v38, %s2651_s0 }
 0x576   :  { %642 = vrot.lane.b32.xlu2 %v2398_v39, %s2651_s0  ;;  %v2400_v42 = vpop.eup %2399 }
 0x577   :  { %v623_v43 = vadd.f32 1.0, %v2400_v42 }
 0x579   :  { %2401 = vrcp.f32 %v623_v43  ;;  %v635_v57 = vand.u32 2147483648, %v623_v43  ;;  %vm629_vm4 = vweird.f32 %v623_v43  ;;  %v633_v58 = vand.u32 2147483647, %v623_v43 }
 0x57a   :  { %2403 = vpow2.f32 %v2287_v46 }
 0x57b   :  { %v636_v61 = vor.u32 1.1754944e-38, %v635_v57  ;;  %vm634_vm6 = vcmp.eq.f32.partialorder %v633_v58, 8.507059e+37 }
 0x57f   :  { %v2402_v45 = vpop.eup %2401 }
 0x580   :  { %v625_v50 = vmul.f32 %v2402_v45, %v623_v43  ;;  %v2404_v53 = vpop.eup %2403  ;;  %vm630_vm3 = vweird.f32 %v2402_v45 }
 0x581   :  { %v583_v55 = vadd.f32 1.0, %v2404_v53  ;;  %vm631_vm5 = vmor %vm629_vm4, %vm630_vm3 }
 0x582   :  { %v626_v52 = vsub.f32 1.0, %v625_v50 }
 0x583   :  { %2405 = vrcp.f32 %v583_v55  ;;  %v595_v25 = vand.u32 2147483648, %v583_v55  ;;  %vm589_vm8 = vweird.f32 %v583_v55  ;;  %v593_v48 = vand.u32 2147483647, %v583_v55 }
 0x584   :  { %v627_v49 = vmul.f32 %v2402_v45, %v626_v52 }
 0x585   :  { %v596_v27 = vor.u32 1.1754944e-38, %v595_v25  ;;  %vm594_vm12 = vcmp.eq.f32.partialorder %v593_v48, 8.507059e+37 }
 0x586   :  { %v628_v56 = vadd.f32 %v2402_v45, %v627_v49 }
 0x588   :  { %v632_v60 = vsel %vm631_vm5, %v2402_v45, %v628_v56 }
 0x589   :  { %v637_v63 = vsel %vm634_vm6, %v636_v61, %v632_v60  ;;  %v2406_v0 = vpop.eup %2405 }
 0x58a   :  { %v585_v3 = vmul.f32 %v2406_v0, %v583_v55  ;;  %vm590_vm7 = vweird.f32 %v2406_v0  ;;  %v640_v31 = vmul.f32 %v637_v63, %v3016_v9 }
 0x58b   :  { %vm591_vm11 = vmor %vm589_vm8, %vm590_vm7 }
 0x58c   :  { %v586_v5 = vsub.f32 1.0, %v585_v3 }
 0x58e   :  { %v587_v14 = vmul.f32 %v2406_v0, %v586_v5 }
 0x590   :  { %v588_v22 = vadd.f32 %v2406_v0, %v587_v14 }
 0x592   :  { %v592_v26 = vsel %vm591_vm11, %v2406_v0, %v588_v22 }
 0x593   :  { %v597_v29 = vsel %vm594_vm12, %v596_v27, %v592_v26 }
 0x594   :  { %v600_v37 = vmul.f32 %v597_v29, %v3014_v8 }
 0x5d0   :  { %v643_v62 = vpop.permute.xlu2 %642 }
 0x5d1   :  { %v645_v1 = vmul.f32 %v643_v62, %v637_v63 }
 0x5d3   :  { %647 = vrot.lane.b32.xlu1 %v645_v1, %s2651_s0 }
 0x5e7   :  { %v603_v28 = vpop.permute.xlu1 %602 }
 0x5e8   :  { %v605_v30 = vmul.f32 %v603_v28, %v597_v29 }
 0x5ea   :  { %607 = vrot.lane.b32.xlu0 %v605_v30, %s2651_s0 }
 0x645   :  { %v648_v51 = vpop.permute.xlu1 %647 }
 0x646   :  { %v3054_v32 = vadd.f32 %v648_v51, %v640_v31 }
 0x648   :  { %2407 = vtanh.f32 %v3054_v32 }
 0x64e   :  { %v2408_v34 = vpop.eup %2407 }
 0x64f   :  { %653 = vrot.lane.b32.xlu0 %v2408_v34, %s2651_s0 }
 0x65c   :  { %v608_v38 = vpop.permute.xlu0 %607 }
 0x65d   :  { %v3059_v39 = vadd.f32 %v608_v38, %v600_v37 }
 0x65f   :  { %2409 = vtanh.f32 %v3059_v39 }
 0x665   :  { %v2410_v41 = vpop.eup %2409 }
 0x666   :  { %613 = vrot.lane.b32.xlu2 %v2410_v41, %s2651_s0 }
 0x6c0   :  { %v614_v42 = vpop.permute.xlu2 %613 }
 0x6c1   :  { %v654_v9 = vpop.permute.xlu0 %653  ;;  %v616_v43 = vmul.f32 %v614_v42, %v597_v29 }
 0x6c2   :  { %v3063_v45 = vmul.f32 %v654_v9, %v637_v63 }
 0x6c3   :  { %658 = vrot.lane.b32.xlu1 %v616_v43, %s2652_s3 }
 0x6c4   :  { %669 = vrot.lane.b32.xlu2 %v3063_v45, %s2653_s30 }
 0x71e   :  { %v670_v46 = vpop.permute.xlu2 %669 }
 0x735   :  { %v659_v8 = vpop.permute.xlu1 %658 }
 0x736   :  { %662 = vst.msk [vmem:[#allocation3 + $0x10] sm:$0xff] %vm383_vm9, %v659_v8  ;;  %v672_v50 = vsel %vm383_vm9, %v659_v8, %v670_v46 }
 0x737   :  { %2289 = vmatmul.msk.f32.vlgmr.msrb.gmra.mxu2 %vm256_vm10, %v672_v50  ;;  %2290 = vmatmul.msk.f32.vlgmr.msrb.gmra.mxu3 %vm256_vm10, %v672_v50 }
 0x738   :  { %1234 = vmatpush.msrb.mxu2 %v2750_v2  ;;  %1254 = vmatpush.msrb.mxu3 %v2777_v10  ;;  %v168_v2 = vpop.f32.mrf.mxu0 }
 0x73a   :  { %1235 = vmatpush.msrb.mxu2 %v2756_v4  ;;  %1255 = vmatpush.msrb.mxu3 %v2788_v12  ;;  %v169_v4 = vadd.f32 %v168_v2, %v2956_v36 }
 0x73c   :  { %1236 = vmatpush.msrb.mxu2 %v2764_v6  ;;  %1256 = vmatpush.msrb.mxu3 %v2820_v17 }
 0x73e   :  { %1237 = vmatpush.msrb.mxu2 %v2771_v7  ;;  %1257 = vmatpush.msrb.mxu3 %v2825_v18 }
 0x740   :  { %1238 = vmatpush.msrb.mxu2 %v2782_v11  ;;  %1258 = vmatpush.msrb.mxu3 %v2833_v19  ;;  %v171_v8 = vpop.f32.mrf.mxu0 }
 0x742   :  { %1239 = vmatpush.msrb.mxu2 %v2795_v13  ;;  %1259 = vmatpush.msrb.mxu3 %v2843_v21 }
 0x744   :  { %1240 = vmatpush.msrb.mxu2 %v2807_v15  ;;  %1260 = vmatpush.msrb.mxu3 %v2859_v23 }
 0x746   :  { %1241 = vmatpush.msrb.mxu2 %v2815_v16  ;;  %1261 = vmatpush.msrb.mxu3 %v2864_v24 }
 0x748   :  { %v3113_v50 = vpop.f32.mrf.mxu0 }
 0x750   :  { %v3115_v2 = vpop.f32.mrf.mxu0 }
 0x7ba   :  { %v693_v6 = vpop.f32.mrf.mxu2  ;;  %v713_v7 = vpop.f32.mrf.mxu3 }
 0x7bb   :  { %v718_v10 = vadd.f32 %v693_v6, %v169_v4  ;;  %v758_v11 = vadd.f32 %v713_v7, %v2964_v47  ;;  %v3117_v4 = vpop.f32.mrf.mxu0  ;;  %v172_v6 = vadd.f32 %v171_v8, %v2956_v36 }
 0x7bd   :  { %2411 = vtanh.f32 %v718_v10  ;;  %v2291_v15 = vmul.f32 -1.442695, %v718_v10  ;;  %v2292_v16 = vmul.f32 -1.442695, %v758_v11 }
 0x7be   :  { %2413 = vtanh.f32 %v758_v11 }
 0x7bf   :  { %2415 = vpow2.f32 %v2291_v15 }
 0x7c0   :  { %2417 = vpow2.f32 %v2292_v16 }
 0x7c3   :  { %v2412_v12 = vpop.eup %2411 }
 0x7c4   :  { %v2414_v13 = vpop.eup %2413  ;;  %741 = vrot.lane.b32.xlu0 %v2412_v12, %s2651_s0 }
 0x7c5   :  { %781 = vrot.lane.b32.xlu1 %v2414_v13, %s2651_s0  ;;  %v2416_v17 = vpop.eup %2415 }
 0x7c6   :  { %v2418_v18 = vpop.eup %2417  ;;  %v722_v19 = vadd.f32 1.0, %v2416_v17 }
 0x7c7   :  { %v762_v21 = vadd.f32 1.0, %v2418_v18 }
 0x7c8   :  { %2419 = vrcp.f32 %v722_v19  ;;  %v734_v60 = vand.u32 2147483648, %v722_v19  ;;  %vm728_vm15 = vweird.f32 %v722_v19  ;;  %v732_v62 = vand.u32 2147483647, %v722_v19 }
 0x7c9   :  { %2421 = vrcp.f32 %v762_v21  ;;  %v774_v61 = vand.u32 2147483648, %v762_v21  ;;  %vm768_vm0 = vweird.f32 %v762_v21  ;;  %v772_v63 = vand.u32 2147483647, %v762_v21 }
 0x7ca   :  { %v735_v3 = vor.u32 1.1754944e-38, %v734_v60  ;;  %vm733_vm3 = vcmp.eq.f32.partialorder %v732_v62, 8.507059e+37 }
 0x7cb   :  { %v775_v5 = vor.u32 1.1754944e-38, %v774_v61  ;;  %vm773_vm4 = vcmp.eq.f32.partialorder %v772_v63, 8.507059e+37 }
 0x7ce   :  { %v2420_v23 = vpop.eup %2419 }
 0x7cf   :  { %v2422_v24 = vpop.eup %2421  ;;  %v724_v47 = vmul.f32 %v2420_v23, %v722_v19  ;;  %vm729_vm13 = vweird.f32 %v2420_v23 }
 0x7d0   :  { %v764_v52 = vmul.f32 %v2422_v24, %v762_v21  ;;  %vm769_vm14 = vweird.f32 %v2422_v24  ;;  %vm730_vm1 = vmor %vm728_vm15, %vm729_vm13 }
 0x7d1   :  { %v725_v53 = vsub.f32 1.0, %v724_v47  ;;  %vm770_vm2 = vmor %vm768_vm0, %vm769_vm14 }
 0x7d2   :  { %v765_v49 = vsub.f32 1.0, %v764_v52 }
 0x7d3   :  { %v726_v55 = vmul.f32 %v2420_v23, %v725_v53 }
 0x7d4   :  { %v766_v56 = vmul.f32 %v2422_v24, %v765_v49 }
 0x7d5   :  { %v727_v57 = vadd.f32 %v2420_v23, %v726_v55 }
 0x7d6   :  { %v767_v58 = vadd.f32 %v2422_v24, %v766_v56 }
 0x7d7   :  { %v731_v0 = vsel %vm730_vm1, %v2420_v23, %v727_v57 }
 0x7d8   :  { %v771_v1 = vsel %vm770_vm2, %v2422_v24, %v767_v58  ;;  %v736_v22 = vsel %vm733_vm3, %v735_v3, %v731_v0 }
 0x7d9   :  { %v776_v48 = vsel %vm773_vm4, %v775_v5, %v771_v1  ;;  %v739_v28 = vmul.f32 %v736_v22, %v3059_v39 }
 0x7da   :  { %v779_v51 = vmul.f32 %v776_v48, %v3054_v32 }
 0x836   :  { %v742_v14 = vpop.permute.xlu0 %741 }
 0x837   :  { %v782_v25 = vpop.permute.xlu1 %781  ;;  %v744_v26 = vmul.f32 %v742_v14, %v736_v22 }
 0x838   :  { %v784_v27 = vmul.f32 %v782_v25, %v776_v48 }
 0x839   :  { %746 = vrot.lane.b32.xlu2 %v744_v26, %s2651_s0 }
 0x83a   :  { %786 = vrot.lane.b32.xlu0 %v784_v27, %s2651_s0 }
 0x893   :  { %v747_v29 = vpop.permute.xlu2 %746 }
 0x894   :  { %v3095_v30 = vadd.f32 %v747_v29, %v739_v28 }
 0x896   :  { %2423 = vtanh.f32 %v3095_v30 }
 0x89c   :  { %v2424_v31 = vpop.eup %2423 }
 0x89d   :  { %752 = vrot.lane.b32.xlu1 %v2424_v31, %s2651_s0 }
 0x8ac   :  { %v787_v34 = vpop.permute.xlu0 %786 }
 0x8ad   :  { %v3100_v37 = vadd.f32 %v787_v34, %v779_v51 }
 0x8af   :  { %2425 = vtanh.f32 %v3100_v37 }
 0x8b5   :  { %v2426_v38 = vpop.eup %2425 }
 0x8b6   :  { %792 = vrot.lane.b32.xlu2 %v2426_v38, %s2651_s0 }
 0x90f   :  { %v753_v41 = vpop.permute.xlu1 %752 }
 0x910   :  { %v793_v39 = vpop.permute.xlu2 %792  ;;  %v755_v42 = vmul.f32 %v753_v41, %v736_v22 }
 0x911   :  { %v3104_v9 = vmul.f32 %v793_v39, %v776_v48 }
 0x912   :  { %797 = vrot.lane.b32.xlu0 %v755_v42, %s2652_s3 }
 0x913   :  { %808 = vrot.lane.b32.xlu1 %v3104_v9, %s2653_s30 }
 0x984   :  { %v798_v43 = vpop.permute.xlu0 %797 }
 0x985   :  { %801 = vst.msk [vmem:[#allocation3 + $0x18] sm:$0xff] %vm383_vm9, %v798_v43  ;;  %v809_v32 = vpop.permute.xlu1 %808 }
 0x986   :  { %v811_v46 = vsel %vm383_vm9, %v798_v43, %v809_v32 }
 0x987   :  { %2293 = vmatmul.msk.f32.vlgmr.msrb.gmra.mxu0 %vm256_vm10, %v811_v46  ;;  %2294 = vmatmul.msk.f32.vlgmr.msrb.gmra.mxu1 %vm256_vm10, %v811_v46 }
 0xa04   :  { %v832_v7 = vpop.f32.mrf.mxu0  ;;  %v852_v10 = vpop.f32.mrf.mxu1 }
 0xa05   :  { %v856_v11 = vadd.f32 %v832_v7, %v172_v6  ;;  %v895_v12 = vadd.f32 %v852_v10, %v2961_v44  ;;  %v175_v6 = vadd.f32 %v3113_v50, %v2956_v36 }
 0xa07   :  { %2427 = vtanh.f32 %v856_v11  ;;  %v2295_v16 = vmul.f32 -1.442695, %v856_v11  ;;  %v2296_v21 = vmul.f32 -1.442695, %v895_v12 }
 0xa08   :  { %2429 = vtanh.f32 %v895_v12 }
 0xa09   :  { %2431 = vpow2.f32 %v2295_v16 }
 0xa0d   :  { %v2428_v13 = vpop.eup %2427 }
 0xa0e   :  { %v2430_v15 = vpop.eup %2429  ;;  %879 = vrot.lane.b32.xlu2 %v2428_v13, %s2651_s0 }
 0xa0f   :  { %918 = vrot.lane.b32.xlu0 %v2430_v15, %s2651_s0  ;;  %v2432_v17 = vpop.eup %2431 }
 0xa10   :  { %v860_v18 = vadd.f32 1.0, %v2432_v17 }
 0xa12   :  { %2433 = vrcp.f32 %v860_v18  ;;  %v872_v49 = vand.u32 2147483648, %v860_v18  ;;  %vm866_vm6 = vweird.f32 %v860_v18  ;;  %v870_v55 = vand.u32 2147483647, %v860_v18 }
 0xa13   :  { %2435 = vpow2.f32 %v2296_v21 }
 0xa14   :  { %v873_v57 = vor.u32 1.1754944e-38, %v872_v49  ;;  %vm871_vm8 = vcmp.eq.f32.partialorder %v870_v55, 8.507059e+37 }
 0xa18   :  { %v2434_v19 = vpop.eup %2433 }
 0xa19   :  { %v862_v23 = vmul.f32 %v2434_v19, %v860_v18  ;;  %v2436_v44 = vpop.eup %2435  ;;  %vm867_vm5 = vweird.f32 %v2434_v19 }
 0xa1a   :  { %v899_v52 = vadd.f32 1.0, %v2436_v44  ;;  %vm868_vm7 = vmor %vm866_vm6, %vm867_vm5 }
 0xa1b   :  { %v863_v24 = vsub.f32 1.0, %v862_v23 }
 0xa1c   :  { %2437 = vrcp.f32 %v899_v52  ;;  %v911_v5 = vand.u32 2147483648, %v899_v52  ;;  %vm905_vm12 = vweird.f32 %v899_v52  ;;  %v909_v14 = vand.u32 2147483647, %v899_v52 }
 0xa1d   :  { %v864_v47 = vmul.f32 %v2434_v19, %v863_v24 }
 0xa1e   :  { %v912_v25 = vor.u32 1.1754944e-38, %v911_v5  ;;  %vm910_vm14 = vcmp.eq.f32.partialorder %v909_v14, 8.507059e+37 }
 0xa1f   :  { %v865_v53 = vadd.f32 %v2434_v19, %v864_v47 }
 0xa21   :  { %v869_v56 = vsel %vm868_vm7, %v2434_v19, %v865_v53 }
 0xa22   :  { %v874_v60 = vsel %vm871_vm8, %v873_v57, %v869_v56  ;;  %v2438_v62 = vpop.eup %2437 }
 0xa23   :  { %v901_v63 = vmul.f32 %v2438_v62, %v899_v52  ;;  %vm906_vm11 = vweird.f32 %v2438_v62  ;;  %v877_v28 = vmul.f32 %v874_v60, %v3095_v30 }
 0xa24   :  { %vm907_vm13 = vmor %vm905_vm12, %vm906_vm11 }
 0xa25   :  { %v902_v0 = vsub.f32 1.0, %v901_v63 }
 0xa27   :  { %v903_v1 = vmul.f32 %v2438_v62, %v902_v0 }
 0xa29   :  { %v904_v3 = vadd.f32 %v2438_v62, %v903_v1 }
 0xa2b   :  { %v908_v22 = vsel %vm907_vm13, %v2438_v62, %v904_v3 }
 0xa2c   :  { %v913_v26 = vsel %vm910_vm14, %v912_v25, %v908_v22 }
 0xa2d   :  { %v916_v29 = vmul.f32 %v913_v26, %v3100_v37 }
 0xa68   :  { %v880_v58 = vpop.permute.xlu2 %879 }
 0xa69   :  { %v882_v61 = vmul.f32 %v880_v58, %v874_v60 }
 0xa6b   :  { %884 = vrot.lane.b32.xlu1 %v882_v61, %s2651_s0 }
 0xa81   :  { %v919_v48 = vpop.permute.xlu0 %918 }
 0xa82   :  { %v921_v27 = vmul.f32 %v919_v48, %v913_v26 }
 0xa84   :  { %923 = vrot.lane.b32.xlu2 %v921_v27, %s2651_s0 }
 0xadd   :  { %v885_v31 = vpop.permute.xlu1 %884 }
 0xade   :  { %v924_v51 = vpop.permute.xlu2 %923  ;;  %v3127_v34 = vadd.f32 %v885_v31, %v877_v28 }
 0xadf   :  { %v3129_v38 = vadd.f32 %v924_v51, %v916_v29 }
 0xae0   :  { %2439 = vtanh.f32 %v3127_v34 }
 0xae1   :  { %2441 = vtanh.f32 %v3129_v38 }
 0xae6   :  { %v2440_v41 = vpop.eup %2439 }
 0xae7   :  { %v2442_v39 = vpop.eup %2441  ;;  %890 = vrot.lane.b32.xlu0 %v2440_v41, %s2651_s0 }
 0xae8   :  { %929 = vrot.lane.b32.xlu1 %v2442_v39, %s2651_s0 }
 0xb59   :  { %v891_v42 = vpop.permute.xlu0 %890 }
 0xb5a   :  { %v930_v30 = vpop.permute.xlu1 %929  ;;  %v893_v43 = vmul.f32 %v891_v42, %v874_v60 }
 0xb5b   :  { %v3135_v37 = vmul.f32 %v930_v30, %v913_v26 }
 0xb5c   :  { %934 = vrot.lane.b32.xlu2 %v893_v43, %s2652_s3 }
 0xb5d   :  { %945 = vrot.lane.b32.xlu0 %v3135_v37, %s2653_s30 }
 0xbb6   :  { %v935_v32 = vpop.permute.xlu2 %934 }
 0xbb7   :  { %938 = vst.msk [vmem:[#allocation3 + $0x20] sm:$0xff] %vm383_vm9, %v935_v32 }
 0xbcf   :  { %v946_v46 = vpop.permute.xlu0 %945 }
 0xbd0   :  { %v948_v8 = vsel %vm383_vm9, %v935_v32, %v946_v46  ;;  %v1373_v32 = vld [vmem:[%s3446_s4 + $0x10] sm:$0xff]  ;;  %v1372_v46 = vld [vmem:[%s3446_s4 + $0x8] sm:$0xff] }
 0xbd1   :  { %2297 = vmatmul.msk.f32.vlgmr.msra.gmra.mxu2 %vm256_vm10, %v948_v8  ;;  %2298 = vmatmul.msk.f32.vlgmr.msra.gmra.mxu3 %vm256_vm10, %v948_v8  ;;  %v1371_v8 = vld [vmem:[%s3446_s4] sm:$0xff] }
 0xc54   :  { %v969_v7 = vpop.f32.mrf.mxu2  ;;  %v989_v10 = vpop.f32.mrf.mxu3 }
 0xc55   :  { %v993_v11 = vadd.f32 %v969_v7, %v175_v6  ;;  %v1032_v12 = vadd.f32 %v989_v10, %v2959_v40 }
 0xc57   :  { %2443 = vtanh.f32 %v993_v11  ;;  %v2300_v16 = vmul.f32 -1.442695, %v1032_v12  ;;  %v2299_v50 = vmul.f32 -1.442695, %v993_v11  ;;  %v1355_v11 = vld [vmem:[#allocation3] sm:$0xff] }
 0xc58   :  { %2445 = vtanh.f32 %v1032_v12  ;;  %v1356_v12 = vld [vmem:[#allocation3 + $0x8] sm:$0xff] }
 0xc59   :  { %2447 = vpow2.f32 %v2300_v16  ;;  %v1359_v16 = vld [vmem:[#allocation3 + $0x20] sm:$0xff] }
 0xc5d   :  { %v2444_v13 = vpop.eup %2443 }
 0xc5e   :  { %v2446_v15 = vpop.eup %2445  ;;  %1016 = vrot.lane.b32.xlu1 %v2444_v13, %s2651_s0  ;;  %v1357_v13 = vld [vmem:[#allocation3 + $0x10] sm:$0xff] }
 0xc5f   :  { %1055 = vrot.lane.b32.xlu2 %v2446_v15, %s2651_s0  ;;  %v2448_v17 = vpop.eup %2447  ;;  %v1358_v15 = vld [vmem:[#allocation3 + $0x18] sm:$0xff] }
 0xc60   :  { %v1036_v18 = vadd.f32 1.0, %v2448_v17 }
 0xc62   :  { %2449 = vrcp.f32 %v1036_v18  ;;  %v1048_v52 = vand.u32 2147483648, %v1036_v18  ;;  %vm1042_vm0 = vweird.f32 %v1036_v18  ;;  %v1046_v53 = vand.u32 2147483647, %v1036_v18 }
 0xc63   :  { %2451 = vpow2.f32 %v2299_v50 }
 0xc64   :  { %v1049_v55 = vor.u32 1.1754944e-38, %v1048_v52  ;;  %vm1047_vm2 = vcmp.eq.f32.partialorder %v1046_v53, 8.507059e+37 }
 0xc68   :  { %v2450_v19 = vpop.eup %2449 }
 0xc69   :  { %v1038_v21 = vmul.f32 %v2450_v19, %v1036_v18  ;;  %v2452_v24 = vpop.eup %2451  ;;  %vm1043_vm15 = vweird.f32 %v2450_v19  ;;  %v178_v18 = vadd.f32 %v3115_v2, %v2956_v36 }
 0xc6a   :  { %v997_v47 = vadd.f32 1.0, %v2452_v24  ;;  %vm1044_vm1 = vmor %vm1042_vm0, %vm1043_vm15 }
 0xc6b   :  { %v1039_v23 = vsub.f32 1.0, %v1038_v21 }
 0xc6c   :  { %2453 = vrcp.f32 %v997_v47  ;;  %v1009_v1 = vand.u32 2147483648, %v997_v47  ;;  %vm1003_vm4 = vweird.f32 %v997_v47  ;;  %v1007_v3 = vand.u32 2147483647, %v997_v47 }
 0xc6d   :  { %v1040_v40 = vmul.f32 %v2450_v19, %v1039_v23 }
 0xc6e   :  { %v1010_v14 = vor.u32 1.1754944e-38, %v1009_v1  ;;  %vm1008_vm6 = vcmp.eq.f32.partialorder %v1007_v3, 8.507059e+37 }
 0xc6f   :  { %v1041_v44 = vadd.f32 %v2450_v19, %v1040_v40 }
 0xc71   :  { %v1045_v49 = vsel %vm1044_vm1, %v2450_v19, %v1041_v44 }
 0xc72   :  { %v1050_v57 = vsel %vm1047_vm2, %v1049_v55, %v1045_v49  ;;  %v2454_v58 = vpop.eup %2453 }
 0xc73   :  { %v999_v61 = vmul.f32 %v2454_v58, %v997_v47  ;;  %vm1004_vm3 = vweird.f32 %v2454_v58  ;;  %v1053_v26 = vmul.f32 %v1050_v57, %v3129_v38 }
 0xc74   :  { %vm1005_vm5 = vmor %vm1003_vm4, %vm1004_vm3 }
 0xc75   :  { %v1000_v62 = vsub.f32 1.0, %v999_v61 }
 0xc77   :  { %v1001_v63 = vmul.f32 %v2454_v58, %v1000_v62 }
 0xc79   :  { %v1002_v0 = vadd.f32 %v2454_v58, %v1001_v63 }
 0xc7b   :  { %v1006_v5 = vsel %vm1005_vm5, %v2454_v58, %v1002_v0 }
 0xc7c   :  { %v1011_v25 = vsel %vm1008_vm6, %v1010_v14, %v1006_v5 }
 0xc7d   :  { %v1014_v31 = vmul.f32 %v1011_v25, %v3127_v34  ;;  %v1374_v34 = vld [vmem:[%s3446_s4 + $0x18] sm:$0xff] }
 0xc7e   :  { %1480 = vmatpush.msrb.mxu1 %v1374_v34 }
 0xc80   :  { %1481 = vmatpush.msrb.mxu1 %v1373_v32 }
 0xc82   :  { %1482 = vmatpush.msrb.mxu1 %v1372_v46 }
 0xc84   :  { %1483 = vmatpush.msrb.mxu1 %v1371_v8 }
 0xcb9   :  { %v1056_v56 = vpop.permute.xlu2 %1055 }
 0xcba   :  { %v1058_v60 = vmul.f32 %v1056_v56, %v1050_v57 }
 0xcbc   :  { %1060 = vrot.lane.b32.xlu1 %v1058_v60, %s2651_s0 }
 0xcd0   :  { %v1017_v22 = vpop.permute.xlu1 %1016 }
 0xcd1   :  { %v1019_v48 = vmul.f32 %v1017_v22, %v1011_v25 }
 0xcd3   :  { %1021 = vrot.lane.b32.xlu0 %v1019_v48, %s2651_s0 }
 0xd2e   :  { %v1061_v27 = vpop.permute.xlu1 %1060 }
 0xd2f   :  { %v3152_v28 = vadd.f32 %v1061_v27, %v1053_v26 }
 0xd31   :  { %2455 = vtanh.f32 %v3152_v28 }
 0xd37   :  { %v2456_v29 = vpop.eup %2455 }
 0xd38   :  { %1066 = vrot.lane.b32.xlu0 %v2456_v29, %s2651_s0 }
 0xd45   :  { %v1022_v51 = vpop.permute.xlu0 %1021 }
 0xd46   :  { %v3157_v41 = vadd.f32 %v1022_v51, %v1014_v31 }
 0xd48   :  { %2457 = vtanh.f32 %v3157_v41 }
 0xd4e   :  { %v2458_v39 = vpop.eup %2457 }
 0xd4f   :  { %1027 = vrot.lane.b32.xlu2 %v2458_v39, %s2651_s0 }
 0xda9   :  { %v1028_v42 = vpop.permute.xlu2 %1027 }
 0xdaa   :  { %v1067_v38 = vpop.permute.xlu0 %1066  ;;  %v1030_v30 = vmul.f32 %v1028_v42, %v1011_v25 }
 0xdab   :  { %v3161_v43 = vmul.f32 %v1067_v38, %v1050_v57 }
 0xdac   :  { %1071 = vrot.lane.b32.xlu1 %v1030_v30, %s2652_s3 }
 0xdad   :  { %1082 = vrot.lane.b32.xlu2 %v3161_v43, %s2653_s30 }
 0xe07   :  { %v1083_v6 = vpop.permute.xlu2 %1082 }
 0xe1e   :  { %v1072_v7 = vpop.permute.xlu1 %1071 }
 0xe1f   :  { %1075 = vst.msk [vmem:[#allocation3 + $0x28] sm:$0xff] %vm383_vm9, %v1072_v7  ;;  %v1085_v10 = vsel %vm383_vm9, %v1072_v7, %v1083_v6 }
 0xe20   :  { %2301 = vmatmul.msk.f32.vlgmr.msra.gmra.mxu0 %vm256_vm10, %v1085_v10  ;;  %2302 = vmatmul.msk.f32.vlgmr.msra.gmra.mxu1 %vm256_vm10, %v1085_v10 }
 0xe26   :  { %v1360_v17 = vld [vmem:[#allocation3 + $0x28] sm:$0xff] }
 0xe28   :  { %2317 = vmatmul.msk.f32.vlgmr.msrb.gmra.mxu1 %vm383_vm9, %v1355_v11 }
 0xe30   :  { %2318 = vmatmul.msk.f32.gmra.mxu1 %vm383_vm9, %v1356_v12 }
 0xe38   :  { %2319 = vmatmul.msk.f32.gmra.mxu1 %vm383_vm9, %v1357_v13 }
 0xe40   :  { %2320 = vmatmul.msk.f32.gmra.mxu1 %vm383_vm9, %v1358_v15 }
 0xe48   :  { %2321 = vmatmul.msk.f32.gmra.mxu1 %vm383_vm9, %v1359_v16 }
 0xe50   :  { %2322 = vmatmul.msk.f32.gmra.mxu1 %vm383_vm9, %v1360_v17 }
 0xe9d   :  { %v1106_v19 = vpop.f32.mrf.mxu0  ;;  %v1126_v50 = vpop.f32.mrf.mxu1 }
 0xe9e   :  { %v1130_v21 = vadd.f32 %v1106_v19, %v178_v18  ;;  %v1169_v23 = vadd.f32 %v1126_v50, %v2954_v35 }
 0xea0   :  { %2459 = vtanh.f32 %v1130_v21  ;;  %v2303_v47 = vmul.f32 -1.442695, %v1130_v21  ;;  %v2304_v44 = vmul.f32 -1.442695, %v1169_v23 }
 0xea1   :  { %2461 = vtanh.f32 %v1169_v23 }
 0xea2   :  { %2463 = vpow2.f32 %v2303_v47 }
 0xea3   :  { %2465 = vpow2.f32 %v2304_v44  ;;  %v1516_v44 = vld [vmem:[#allocation8 + $0x28] sm:$0xff] }
 0xea6   :  { %v2460_v24 = vpop.eup %2459 }
 0xea7   :  { %v2462_v40 = vpop.eup %2461  ;;  %1153 = vrot.lane.b32.xlu0 %v2460_v24, %s2651_s0  ;;  %v1518_v24 = vld [vmem:[#allocation8 + $0x38] sm:$0xff] }
 0xea8   :  { %1192 = vrot.lane.b32.xlu1 %v2462_v40, %s2651_s0  ;;  %v2464_v52 = vpop.eup %2463  ;;  %v1517_v40 = vld [vmem:[#allocation8 + $0x30] sm:$0xff]  ;;  %1534 = vmatpush.msra.mxu2 %v1518_v24 }
 0xea9   :  { %v2466_v53 = vpop.eup %2465  ;;  %v1134_v2 = vadd.f32 1.0, %v2464_v52 }
 0xeaa   :  { %v1173_v49 = vadd.f32 1.0, %v2466_v53  ;;  %1535 = vmatpush.msra.mxu2 %v1517_v40 }
 0xeab   :  { %2467 = vrcp.f32 %v1134_v2  ;;  %v1146_v1 = vand.u32 2147483648, %v1134_v2  ;;  %vm1140_vm11 = vweird.f32 %v1134_v2  ;;  %v1144_v5 = vand.u32 2147483647, %v1134_v2 }
 0xeac   :  { %2469 = vrcp.f32 %v1173_v49  ;;  %v1185_v3 = vand.u32 2147483648, %v1173_v49  ;;  %vm1179_vm12 = vweird.f32 %v1173_v49  ;;  %v1183_v14 = vand.u32 2147483647, %v1173_v49  ;;  %1536 = vmatpush.msra.mxu2 %v1516_v44 }
 0xead   :  { %v1147_v48 = vor.u32 1.1754944e-38, %v1146_v1  ;;  %vm1145_vm15 = vcmp.eq.f32.partialorder %v1144_v5, 8.507059e+37  ;;  %v181_v5 = vadd.f32 %v3117_v4, %v2956_v36 }
 0xeae   :  { %v1186_v26 = vor.u32 1.1754944e-38, %v1185_v3  ;;  %vm1184_vm0 = vcmp.eq.f32.partialorder %v1183_v14, 8.507059e+37 }
 0xeb1   :  { %v2468_v55 = vpop.eup %2467 }
 0xeb2   :  { %v2470_v35 = vpop.eup %2469  ;;  %v1136_v56 = vmul.f32 %v2468_v55, %v1134_v2  ;;  %vm1141_vm7 = vweird.f32 %v2468_v55 }
 0xeb3   :  { %v1175_v57 = vmul.f32 %v2470_v35, %v1173_v49  ;;  %vm1180_vm8 = vweird.f32 %v2470_v35  ;;  %vm1142_vm13 = vmor %vm1140_vm11, %vm1141_vm7 }
 0xeb4   :  { %v1137_v58 = vsub.f32 1.0, %v1136_v56  ;;  %vm1181_vm14 = vmor %vm1179_vm12, %vm1180_vm8 }
 0xeb5   :  { %v1176_v60 = vsub.f32 1.0, %v1175_v57 }
 0xeb6   :  { %v1138_v61 = vmul.f32 %v2468_v55, %v1137_v58 }
 0xeb7   :  { %v1177_v62 = vmul.f32 %v2470_v35, %v1176_v60 }
 0xeb8   :  { %v1139_v63 = vadd.f32 %v2468_v55, %v1138_v61 }
 0xeb9   :  { %v1178_v0 = vadd.f32 %v2470_v35, %v1177_v62 }
 0xeba   :  { %v1143_v22 = vsel %vm1142_vm13, %v2468_v55, %v1139_v63 }
 0xebb   :  { %v1182_v25 = vsel %vm1181_vm14, %v2470_v35, %v1178_v0  ;;  %v1148_v29 = vsel %vm1145_vm15, %v1147_v48, %v1143_v22 }
 0xebc   :  { %v1187_v51 = vsel %vm1184_vm0, %v1186_v26, %v1182_v25  ;;  %v1151_v38 = vmul.f32 %v1148_v29, %v3157_v41 }
 0xebd   :  { %v1190_v46 = vmul.f32 %v1187_v51, %v3152_v28 }
 0xf19   :  { %v1154_v27 = vpop.permute.xlu0 %1153 }
 0xf1a   :  { %v1193_v31 = vpop.permute.xlu1 %1192  ;;  %v1156_v39 = vmul.f32 %v1154_v27, %v1148_v29 }
 0xf1b   :  { %v1195_v42 = vmul.f32 %v1193_v31, %v1187_v51 }
 0xf1c   :  { %1158 = vrot.lane.b32.xlu2 %v1156_v39, %s2651_s0 }
 0xf1d   :  { %1197 = vrot.lane.b32.xlu0 %v1195_v42, %s2651_s0 }
 0xf76   :  { %v1159_v30 = vpop.permute.xlu2 %1158 }
 0xf77   :  { %v3196_v34 = vadd.f32 %v1159_v30, %v1151_v38 }
 0xf79   :  { %2471 = vtanh.f32 %v3196_v34 }
 0xf7f   :  { %v2472_v32 = vpop.eup %2471 }
 0xf80   :  { %1164 = vrot.lane.b32.xlu1 %v2472_v32, %s2651_s0 }
 0xf8f   :  { %v1198_v8 = vpop.permute.xlu0 %1197 }
 0xf90   :  { %v1200_v6 = vadd.f32 %v1198_v8, %v1190_v46 }
 0xf92   :  { %2473 = vtanh.f32 %v1200_v6 }
 0xf98   :  { %v2474_v7 = vpop.eup %2473 }
 0xf99   :  { %1203 = vrot.lane.b32.xlu2 %v2474_v7, %s2651_s0 }
 0xff2   :  { %v1165_v10 = vpop.permute.xlu1 %1164 }
 0xff3   :  { %v1204_v11 = vpop.permute.xlu2 %1203  ;;  %v1167_v12 = vmul.f32 %v1165_v10, %v1148_v29  ;;  %v3226_v29 = vld [vmem:[#allocation10 + $0x18] sm:$0xff] }
 0xff4   :  { %v3202_v41 = vmul.f32 %v1204_v11, %v1187_v51  ;;  %v1378_v11 = vld [vmem:[%s3446_s4 + $0x38] sm:$0xff] }
 0xff5   :  { %1208 = vrot.lane.b32.xlu0 %v1167_v12, %s2652_s3  ;;  %v3237_v12 = vld [vmem:[#allocation10 + $0x10] sm:$0xff]  ;;  %1415 = vmatpush.msrb.mxu0 %v1378_v11 }
 0xff6   :  { %1219 = vrot.lane.b32.xlu1 %v3202_v41, %s2653_s30 }
0x1067   :  { %v1209_v13 = vpop.permute.xlu0 %1208 }
0x1068   :  { %1212 = vst.msk [vmem:[#allocation3 + $0x30] sm:$0xff] %vm383_vm9, %v1209_v13  ;;  %v1220_v28 = vpop.permute.xlu1 %1219 }
0x1069   :  { %v1222_v15 = vsel %vm383_vm9, %v1209_v13, %v1220_v28  ;;  %v1377_v13 = vld [vmem:[%s3446_s4 + $0x30] sm:$0xff] }
0x106a   :  { %2305 = vmatmul.msk.f32.vlgmr.msrb.gmra.mxu2 %vm256_vm10, %v1222_v15  ;;  %2306 = vmatmul.msk.f32.vlgmr.msrb.gmra.mxu3 %vm256_vm10, %v1222_v15  ;;  %v3243_v28 = vld [vmem:[#allocation10 + $0x8] sm:$0xff] }
0x106b   :  { %v1376_v15 = vld [vmem:[%s3446_s4 + $0x28] sm:$0xff]  ;;  %1416 = vmatpush.msrb.mxu0 %v1377_v13 }
0x106d   :  { %1417 = vmatpush.msrb.mxu0 %v1376_v15 }
0x106f   :  { %v1361_v16 = vld [vmem:[#allocation3 + $0x30] sm:$0xff] }
0x1070   :  { %2323 = vmatmul.msk.f32.gmra.mxu1 %vm383_vm9, %v1361_v16  ;;  %v3248_v16 = vld [vmem:[#allocation10] sm:$0xff] }
0x10ed   :  { %v1263_v17 = vpop.f32.mrf.mxu3  ;;  %v1243_v3 = vpop.f32.mrf.mxu2 }
0x10ee   :  { %v1306_v18 = vadd.f32 %v1263_v17, %v2952_v33  ;;  %v1515_v33 = vld [vmem:[#allocation8 + $0x20] sm:$0xff]  ;;  %v1267_v14 = vadd.f32 %v1243_v3, %v181_v5 }
0x10ef   :  { %1537 = vmatpush.msra.mxu2 %v1515_v33  ;;  %v1375_v17 = vld [vmem:[%s3446_s4 + $0x20] sm:$0xff] }
0x10f0   :  { %2475 = vtanh.f32 %v1306_v18  ;;  %v2308_v50 = vmul.f32 -1.442695, %v1306_v18  ;;  %v2307_v48 = vmul.f32 -1.442695, %v1267_v14  ;;  %1418 = vmatpush.msrb.mxu0 %v1375_v17 }
0x10f1   :  { %1646 = vmatpush.msrb.mxu2 %v3226_v29 }
0x10f2   :  { %2477 = vpow2.f32 %v2308_v50  ;;  %v3271_v50 = vld [vmem:[%s3449_s7] ss:$0 sm:$0xff] }
0x10f3   :  { %1647 = vmatpush.msrb.mxu2 %v3237_v12 }
0x10f5   :  { %1648 = vmatpush.msrb.mxu2 %v3243_v28 }
0x10f6   :  { %v2476_v19 = vpop.eup %2475 }
0x10f7   :  { %1329 = vrot.lane.b32.xlu2 %v2476_v19, %s2651_s0  ;;  %1649 = vmatpush.msrb.mxu2 %v3248_v16 }
0x10f8   :  { %v2478_v21 = vpop.eup %2477 }
0x10f9   :  { %v1310_v23 = vadd.f32 1.0, %v2478_v21  ;;  %v1485_v21 = vpop.f32.mrf.mxu1 }
0x10fb   :  { %2479 = vrcp.f32 %v1310_v23  ;;  %vm1316_vm2 = vweird.f32 %v1310_v23  ;;  %v1320_v55 = vand.u32 2147483647, %v1310_v23 }
0x10fd   :  { %vm1321_vm4 = vcmp.eq.f32.partialorder %v1320_v55, 8.507059e+37 }
0x10ff   :  { %386 = vrot.lane.b32.xlu2 %v2982_v59, %s2652_s3  ;;  %v1322_v59 = vand.u32 2147483648, %v1310_v23 }
0x1101   :  { %v2480_v47 = vpop.eup %2479  ;;  %v1323_v56 = vor.u32 1.1754944e-38, %v1322_v59 }
0x1102   :  { %v1312_v52 = vmul.f32 %v2480_v47, %v1310_v23  ;;  %vm1317_vm1 = vweird.f32 %v2480_v47 }
0x1103   :  { %vm1318_vm3 = vmor %vm1316_vm2, %vm1317_vm1 }
0x1104   :  { %v1313_v53 = vsub.f32 1.0, %v1312_v52 }
0x1106   :  { %v1314_v2 = vmul.f32 %v2480_v47, %v1313_v53 }
0x1108   :  { %v1315_v49 = vadd.f32 %v2480_v47, %v1314_v2 }
0x110a   :  { %v1319_v35 = vsel %vm1318_vm3, %v2480_v47, %v1315_v49 }
0x110b   :  { %v1324_v58 = vsel %vm1321_vm4, %v1323_v56, %v1319_v35 }
0x110c   :  { %v1327_v63 = vmul.f32 %v1324_v58, %v1200_v6 }
0x1151   :  { %v1330_v57 = vpop.permute.xlu2 %1329 }
0x1152   :  { %v1332_v60 = vmul.f32 %v1330_v57, %v1324_v58 }
0x1154   :  { %1334 = vrot.lane.b32.xlu0 %v1332_v60, %s2651_s0 }
0x1159   :  { %v387_v61 = vpop.permute.xlu2 %386 }
0x115a   :  { %390 = vst.msk [vmem:[#allocation4 + $0x38] sm:$0xff] %vm383_vm9, %v387_v61 }
0x1161   :  { %v3218_v62 = vld [vmem:[#allocation4 + $0x38] sm:$0xff] }
0x1162   :  { %2325 = vmatmul.msk.f32.vlgmr.msra.gmra.mxu2 %vm383_vm9, %v3218_v62 }
0x1163   :  { %1774 = vmatpush.msra.mxu2 %v3226_v29 }
0x1165   :  { %1775 = vmatpush.msra.mxu2 %v3237_v12 }
0x1167   :  { %1776 = vmatpush.msra.mxu2 %v3243_v28 }
0x1169   :  { %1777 = vmatpush.msra.mxu2 %v3248_v16 }
0x116a   :  { %1650 = vmatmul.f32.vlgmr.msrb.gmra.mxu2 %v2650_v20 }
0x116b   :  { %1902 = vmatpush.msrb.mxu2 %v3226_v29 }
0x116d   :  { %1903 = vmatpush.msrb.mxu2 %v3237_v12 }
0x116f   :  { %1904 = vmatpush.msrb.mxu2 %v3243_v28 }
0x1171   :  { %1905 = vmatpush.msrb.mxu2 %v3248_v16 }
0x11c6   :  { %v1335_v0 = vpop.permute.xlu0 %1334 }
0x11c7   :  { %v1337_v1 = vadd.f32 %v1335_v0, %v1327_v63 }
0x11c9   :  { %2481 = vtanh.f32 %v1337_v1 }
0x11ca   :  { %2483 = vtanh.f32 %v1267_v14 }
0x11cb   :  { %2485 = vpow2.f32 %v2307_v48 }
0x11cf   :  { %v2482_v22 = vpop.eup %2481 }
0x11d0   :  { %1340 = vrot.lane.b32.xlu1 %v2482_v22, %s2651_s0  ;;  %v2484_v25 = vpop.eup %2483 }
0x11d1   :  { %v2486_v26 = vpop.eup %2485 }
0x11d2   :  { %v1271_v27 = vadd.f32 1.0, %v2486_v26  ;;  %v1513_v26 = vld [vmem:[#allocation8 + $0x18] sm:$0xff] }
0x11d3   :  { %1557 = vmatpush.msra.mxu3 %v1513_v26 }
0x11d4   :  { %2487 = vrcp.f32 %v1271_v27  ;;  %v1283_v30 = vand.u32 2147483648, %v1271_v27  ;;  %vm1277_vm6 = vweird.f32 %v1271_v27  ;;  %v1281_v32 = vand.u32 2147483647, %v1271_v27 }
0x11d6   :  { %v1284_v8 = vor.u32 1.1754944e-38, %v1283_v30  ;;  %vm1282_vm8 = vcmp.eq.f32.partialorder %v1281_v32, 8.507059e+37 }
0x11d8   :  { %1290 = vrot.lane.b32.xlu1 %v2484_v25, %s2651_s0 }
0x11da   :  { %v2488_v31 = vpop.eup %2487 }
0x11db   :  { %v1273_v51 = vmul.f32 %v2488_v31, %v1271_v27  ;;  %vm1278_vm5 = vweird.f32 %v2488_v31  ;;  %v1512_v27 = vld [vmem:[#allocation8 + $0x10] sm:$0xff] }
0x11dc   :  { %vm1279_vm7 = vmor %vm1277_vm6, %vm1278_vm5  ;;  %1558 = vmatpush.msra.mxu3 %v1512_v27 }
0x11dd   :  { %v1274_v36 = vsub.f32 1.0, %v1273_v51  ;;  %v1510_v51 = vld [vmem:[#allocation8] sm:$0xff] }
0x11df   :  { %v1275_v4 = vmul.f32 %v2488_v31, %v1274_v36 }
0x11e1   :  { %v1276_v38 = vadd.f32 %v2488_v31, %v1275_v4 }
0x11e3   :  { %v1280_v46 = vsel %vm1279_vm7, %v2488_v31, %v1276_v38  ;;  %v1511_v31 = vld [vmem:[#allocation8 + $0x8] sm:$0xff] }
0x11e4   :  { %v3230_v7 = vsel %vm1282_vm8, %v1284_v8, %v1280_v46  ;;  %1559 = vmatpush.msra.mxu3 %v1511_v31 }
0x11e5   :  { %v3266_v19 = vpop.f32.mrf.mxu2  ;;  %v1288_v33 = vmul.f32 %v3230_v7, %v3196_v34 }
0x11e6   :  { %1560 = vmatpush.msra.mxu3 %v1510_v51 }
0x11e8   :  { %1710 = vmatpush.msrb.mxu3 %v3226_v29 }
0x11ea   :  { %1711 = vmatpush.msrb.mxu3 %v3237_v12 }
0x11ec   :  { %1712 = vmatpush.msrb.mxu3 %v3243_v28 }
0x11ed   :  { %v1651_v40 = vpop.f32.mrf.mxu2 }
0x11ee   :  { %1713 = vmatpush.msrb.mxu3 %v3248_v16 }
0x1242   :  { %v1341_v39 = vpop.permute.xlu1 %1340 }
0x1243   :  { %v1343_v42 = vmul.f32 %v1341_v39, %v1324_v58 }
0x1245   :  { %1351 = vrot.lane.b32.xlu0 %v1343_v42, %s2652_s3 }
0x124a   :  { %v1291_v6 = vpop.permute.xlu1 %1290 }
0x124b   :  { %v1293_v10 = vmul.f32 %v1291_v6, %v3230_v7 }
0x124d   :  { %1295 = vrot.lane.b32.xlu0 %v1293_v10, %s2651_s0  ;;  %v1488_v10 = vpop.f32.mrf.mxu1 }
0x12b7   :  { %v1352_v18 = vpop.permute.xlu0 %1351 }
0x12b8   :  { %1354 = vst.msk [vmem:[#allocation4] sm:$0xff] %vm383_vm9, %v1352_v18 }
0x12bf   :  { %v1363_v20 = vld [vmem:[#allocation4] sm:$0xff]  ;;  %v1296_v52 = vpop.permute.xlu0 %1295 }
0x12c0   :  { %2309 = vmatmul.msk.f32.vlgmr.msrb.gmra.mxu0 %vm383_vm9, %v1363_v20  ;;  %v1298_v53 = vadd.f32 %v1296_v52, %v1288_v33 }
0x133d   :  { %v1420_v23 = vpop.f32.mrf.mxu0 }
0x133e   :  { %v1486_v24 = vadd.f32 %v1485_v21, %v1420_v23 }
0x1340   :  { %v1569_v47 = vadd.f32 %v3271_v50, %v1486_v24 }
0x1342   :  { %v1654_v44 = vadd.f32 %v1651_v40, %v1569_v47 }
0x1344   :  { %2489 = vtanh.f32 %v1654_v44  ;;  %v2328_v59 = vmul.f32 -1.442695, %v1654_v44 }
0x1345   :  { %2491 = vtanh.f32 %v1298_v53 }
0x1346   :  { %2493 = vpow2.f32 %v2328_v59 }
0x134a   :  { %v2490_v2 = vpop.eup %2489 }
0x134b   :  { %1677 = vrot.lane.b32.xlu2 %v2490_v2, %s2651_s0  ;;  %v2492_v49 = vpop.eup %2491 }
0x134c   :  { %v2494_v55 = vpop.eup %2493 }
0x134d   :  { %v1658_v35 = vadd.f32 1.0, %v2494_v55 }
0x134f   :  { %2495 = vrcp.f32 %v1658_v35  ;;  %v1670_v61 = vand.u32 2147483648, %v1658_v35  ;;  %vm1664_vm12 = vweird.f32 %v1658_v35  ;;  %v1668_v63 = vand.u32 2147483647, %v1658_v35 }
0x1351   :  { %v1671_v1 = vor.u32 1.1754944e-38, %v1670_v61  ;;  %vm1669_vm14 = vcmp.eq.f32.partialorder %v1668_v63, 8.507059e+37 }
0x1353   :  { %1301 = vrot.lane.b32.xlu2 %v2492_v49, %s2651_s0 }
0x1355   :  { %v2496_v56 = vpop.eup %2495 }
0x1356   :  { %v1660_v57 = vmul.f32 %v2496_v56, %v1658_v35  ;;  %vm1665_vm11 = vweird.f32 %v2496_v56 }
0x1357   :  { %vm1666_vm13 = vmor %vm1664_vm12, %vm1665_vm11 }
0x1358   :  { %v1661_v58 = vsub.f32 1.0, %v1660_v57 }
0x135a   :  { %v1662_v34 = vmul.f32 %v2496_v56, %v1661_v58 }
0x135b   :  { %1214 = vrot.lane.b32.xlu2 %v3202_v41, %s2652_s3 }
0x135c   :  { %v1663_v60 = vadd.f32 %v2496_v56, %v1662_v34 }
0x135e   :  { %v1667_v0 = vsel %vm1666_vm13, %v2496_v56, %v1663_v60 }
0x135f   :  { %v1672_v41 = vsel %vm1669_vm14, %v1671_v1, %v1667_v0 }
0x1360   :  { %v1675_v36 = vmul.f32 0.0, %v1672_v41 }
0x13a5   :  { %v1678_v3 = vpop.permute.xlu2 %1677 }
0x13a6   :  { %v1680_v5 = vmul.f32 %v1678_v3, %v1672_v41  ;;  %v1491_v3 = vpop.f32.mrf.mxu1 }
0x13a8   :  { %1682 = vrot.lane.b32.xlu1 %v1680_v5, %s2651_s0 }
0x13ad   :  { %v1302_v14 = vpop.permute.xlu2 %1301 }
0x13ae   :  { %v1304_v22 = vmul.f32 %v1302_v14, %v3230_v7 }
0x13b0   :  { %1345 = vrot.lane.b32.xlu1 %v1304_v22, %s2652_s3 }
0x13b5   :  { %v1215_v25 = vpop.permute.xlu2 %1214 }
0x13b6   :  { %1218 = vst.msk [vmem:[#allocation4 + $0x8] sm:$0xff] %vm383_vm9, %v1215_v25 }
0x13bd   :  { %v1364_v48 = vld [vmem:[#allocation4 + $0x8] sm:$0xff] }
0x13be   :  { %2310 = vmatmul.msk.f32.gmra.mxu0 %vm383_vm9, %v1364_v48 }
0x141a   :  { %v1683_v4 = vpop.permute.xlu1 %1682 }
0x141b   :  { %v1685_v39 = vadd.f32 %v1683_v4, %v1675_v36 }
0x141d   :  { %2497 = vtanh.f32 %v1685_v39 }
0x1422   :  { %v1346_v42 = vpop.permute.xlu1 %1345 }
0x1423   :  { %v2498_v38 = vpop.eup %2497  ;;  %1349 = vst.msk [vmem:[#allocation3 + $0x38] sm:$0xff] %vm383_vm9, %v1346_v42 }
0x1424   :  { %1688 = vrot.lane.b32.xlu0 %v2498_v38, %s2651_s0 }
0x142a   :  { %v1362_v30 = vld [vmem:[#allocation3 + $0x38] sm:$0xff] }
0x142b   :  { %2324 = vmatmul.msk.f32.gmra.mxu1 %vm383_vm9, %v1362_v30  ;;  %2326 = vmatmul.msk.f32.vlgmr.msra.gmra.mxu3 %vm383_vm9, %v1362_v30 }
0x142c   :  { %1838 = vmatpush.msra.mxu3 %v3226_v29 }
0x142e   :  { %1839 = vmatpush.msra.mxu3 %v3237_v12 }
0x1430   :  { %1840 = vmatpush.msra.mxu3 %v3243_v28 }
0x1432   :  { %1841 = vmatpush.msra.mxu3 %v3248_v16 }
0x143b   :  { %v1423_v6 = vpop.f32.mrf.mxu0 }
0x143c   :  { %v1489_v11 = vadd.f32 %v1488_v10, %v1423_v6 }
0x143e   :  { %v1570_v13 = vadd.f32 %v3271_v50, %v1489_v11 }
0x1496   :  { %v1689_v32 = vpop.permute.xlu0 %1688 }
0x1497   :  { %v1691_v46 = vmul.f32 %v1689_v32, %v1672_v41 }
0x1499   :  { %1694 = vrot.lane.b32.xlu0 %v1691_v46, %s2652_s3 }
0x14ae   :  { %v3303_v7 = vpop.f32.mrf.mxu3 }
0x150b   :  { %v1695_v8 = vpop.permute.xlu0 %1694 }
0x150c   :  { %2329 = vmatmul.msk.f32.vlgmr.msrb.gmra.mxu3 %vm383_vm9, %v1695_v8 }
0x150d   :  { %1966 = vmatpush.msrb.mxu3 %v3226_v29 }
0x150f   :  { %1967 = vmatpush.msrb.mxu3 %v3237_v12 }
0x1511   :  { %1968 = vmatpush.msrb.mxu3 %v3243_v28 }
0x1513   :  { %1969 = vmatpush.msrb.mxu3 %v3248_v16 }
0x158f   :  { %v1715_v15 = vpop.f32.mrf.mxu3 }
0x1590   :  { %v1718_v17 = vadd.f32 %v1715_v15, %v1570_v13 }
0x1592   :  { %2499 = vtanh.f32 %v1718_v17  ;;  %v2330_v20 = vmul.f32 -1.442695, %v1718_v17 }
0x1594   :  { %2501 = vpow2.f32 %v2330_v20 }
0x1598   :  { %v2500_v18 = vpop.eup %2499 }
0x1599   :  { %1741 = vrot.lane.b32.xlu1 %v2500_v18, %s2651_s0 }
0x159a   :  { %v2502_v21 = vpop.eup %2501 }
0x159b   :  { %v1722_v23 = vadd.f32 1.0, %v2502_v21 }
0x159d   :  { %2503 = vrcp.f32 %v1722_v23  ;;  %v1734_v33 = vand.u32 2147483648, %v1722_v23  ;;  %vm1728_vm0 = vweird.f32 %v1722_v23  ;;  %v1732_v53 = vand.u32 2147483647, %v1722_v23 }
0x159f   :  { %v1735_v49 = vor.u32 1.1754944e-38, %v1734_v33  ;;  %vm1733_vm2 = vcmp.eq.f32.partialorder %v1732_v53, 8.507059e+37 }
0x15a1   :  { %1077 = vrot.lane.b32.xlu1 %v3161_v43, %s2652_s3 }
0x15a3   :  { %v2504_v24 = vpop.eup %2503 }
0x15a4   :  { %v1724_v40 = vmul.f32 %v2504_v24, %v1722_v23  ;;  %vm1729_vm15 = vweird.f32 %v2504_v24 }
0x15a5   :  { %vm1730_vm1 = vmor %vm1728_vm0, %vm1729_vm15 }
0x15a6   :  { %v1725_v47 = vsub.f32 1.0, %v1724_v40 }
0x15a8   :  { %v1726_v44 = vmul.f32 %v2504_v24, %v1725_v47 }
0x15aa   :  { %v1727_v52 = vadd.f32 %v2504_v24, %v1726_v44 }
0x15ac   :  { %v1731_v2 = vsel %vm1730_vm1, %v2504_v24, %v1727_v52  ;;  %v1494_v24 = vpop.f32.mrf.mxu1 }
0x15ad   :  { %v1736_v43 = vsel %vm1733_vm2, %v1735_v49, %v1731_v2 }
0x15ae   :  { %v1739_v57 = vmul.f32 %v1736_v43, %v1685_v39 }
0x160b   :  { %v1742_v59 = vpop.permute.xlu1 %1741 }
0x160c   :  { %v1744_v55 = vmul.f32 %v1742_v59, %v1736_v43 }
0x160e   :  { %1746 = vrot.lane.b32.xlu2 %v1744_v55, %s2651_s0 }
0x1613   :  { %v1078_v35 = vpop.permute.xlu1 %1077 }
0x1614   :  { %1081 = vst.msk [vmem:[#allocation4 + $0x10] sm:$0xff] %vm383_vm9, %v1078_v35 }
0x161b   :  { %v1365_v56 = vld [vmem:[#allocation4 + $0x10] sm:$0xff] }
0x161c   :  { %2311 = vmatmul.msk.f32.gmra.mxu0 %vm383_vm9, %v1365_v56 }
0x1668   :  { %v1747_v58 = vpop.permute.xlu2 %1746 }
0x1669   :  { %v1749_v34 = vadd.f32 %v1747_v58, %v1739_v57 }
0x166b   :  { %2505 = vtanh.f32 %v1749_v34 }
0x1671   :  { %v2506_v60 = vpop.eup %2505 }
0x1672   :  { %1752 = vrot.lane.b32.xlu0 %v2506_v60, %s2651_s0 }
0x1699   :  { %v1426_v1 = vpop.f32.mrf.mxu0 }
0x169a   :  { %v1492_v41 = vadd.f32 %v1491_v3, %v1426_v1 }
0x169c   :  { %v1571_v5 = vadd.f32 %v3271_v50, %v1492_v41 }
0x16e4   :  { %v1753_v61 = vpop.permute.xlu0 %1752 }
0x16e5   :  { %v1755_v63 = vmul.f32 %v1753_v61, %v1736_v43 }
0x16e7   :  { %1758 = vrot.lane.b32.xlu2 %v1755_v63, %s2652_s3 }
0x1741   :  { %v1759_v0 = vpop.permute.xlu2 %1758 }
0x1742   :  { %2331 = vmatmul.msk.f32.vlgmr.msra.gmra.mxu2 %vm383_vm9, %v1759_v0 }
0x1743   :  { %2030 = vmatpush.msra.mxu2 %v3226_v29 }
0x1745   :  { %2031 = vmatpush.msra.mxu2 %v3237_v12 }
0x1747   :  { %2032 = vmatpush.msra.mxu2 %v3243_v28 }
0x1749   :  { %2033 = vmatpush.msra.mxu2 %v3248_v16 }
0x17c5   :  { %v1779_v14 = vpop.f32.mrf.mxu2 }
0x17c6   :  { %v1782_v22 = vadd.f32 %v1779_v14, %v1571_v5 }
0x17c8   :  { %2507 = vtanh.f32 %v1782_v22  ;;  %v2332_v48 = vmul.f32 -1.442695, %v1782_v22  ;;  %v1497_v22 = vpop.f32.mrf.mxu1 }
0x17ca   :  { %2509 = vpow2.f32 %v2332_v48 }
0x17ce   :  { %v2508_v25 = vpop.eup %2507 }
0x17cf   :  { %1805 = vrot.lane.b32.xlu0 %v2508_v25, %s2651_s0 }
0x17d0   :  { %v2510_v26 = vpop.eup %2509 }
0x17d1   :  { %v1786_v27 = vadd.f32 1.0, %v2510_v26 }
0x17d3   :  { %2511 = vrcp.f32 %v1786_v27  ;;  %v1798_v42 = vand.u32 2147483648, %v1786_v27  ;;  %vm1792_vm4 = vweird.f32 %v1786_v27  ;;  %v1796_v38 = vand.u32 2147483647, %v1786_v27 }
0x17d5   :  { %v1799_v32 = vor.u32 1.1754944e-38, %v1798_v42  ;;  %vm1797_vm6 = vcmp.eq.f32.partialorder %v1796_v38, 8.507059e+37 }
0x17d7   :  { %940 = vrot.lane.b32.xlu0 %v3135_v37, %s2652_s3 }
0x17d9   :  { %v2512_v31 = vpop.eup %2511 }
0x17da   :  { %v1788_v51 = vmul.f32 %v2512_v31, %v1786_v27  ;;  %vm1793_vm3 = vweird.f32 %v2512_v31 }
0x17db   :  { %vm1794_vm5 = vmor %vm1792_vm4, %vm1793_vm3 }
0x17dc   :  { %v1789_v36 = vsub.f32 1.0, %v1788_v51 }
0x17de   :  { %v1790_v4 = vmul.f32 %v2512_v31, %v1789_v36 }
0x17e0   :  { %v1791_v39 = vadd.f32 %v2512_v31, %v1790_v4 }
0x17e2   :  { %v1795_v30 = vsel %vm1794_vm5, %v2512_v31, %v1791_v39 }
0x17e3   :  { %v1800_v37 = vsel %vm1797_vm6, %v1799_v32, %v1795_v30 }
0x17e4   :  { %v1803_v11 = vmul.f32 %v1800_v37, %v1749_v34 }
0x1841   :  { %v1806_v46 = vpop.permute.xlu0 %1805 }
0x1842   :  { %v1808_v8 = vmul.f32 %v1806_v46, %v1800_v37 }
0x1844   :  { %1810 = vrot.lane.b32.xlu1 %v1808_v8, %s2651_s0 }
0x1849   :  { %v941_v6 = vpop.permute.xlu0 %940 }
0x184a   :  { %944 = vst.msk [vmem:[#allocation4 + $0x18] sm:$0xff] %vm383_vm9, %v941_v6 }
0x1851   :  { %v1366_v10 = vld [vmem:[#allocation4 + $0x18] sm:$0xff] }
0x1852   :  { %2312 = vmatmul.msk.f32.gmra.mxu0 %vm383_vm9, %v1366_v10 }
0x18b6   :  { %v1811_v13 = vpop.permute.xlu1 %1810 }
0x18b7   :  { %v1813_v15 = vadd.f32 %v1811_v13, %v1803_v11 }
0x18b9   :  { %2513 = vtanh.f32 %v1813_v15 }
0x18bf   :  { %v2514_v17 = vpop.eup %2513 }
0x18c0   :  { %1816 = vrot.lane.b32.xlu2 %v2514_v17, %s2651_s0 }
0x18cf   :  { %v1429_v23 = vpop.f32.mrf.mxu0 }
0x18d0   :  { %v1495_v40 = vadd.f32 %v1494_v24, %v1429_v23 }
0x18d2   :  { %v1572_v47 = vadd.f32 %v3271_v50, %v1495_v40 }
0x191a   :  { %v1817_v18 = vpop.permute.xlu2 %1816 }
0x191b   :  { %v1819_v20 = vmul.f32 %v1817_v18, %v1800_v37 }
0x191d   :  { %1822 = vrot.lane.b32.xlu1 %v1819_v20, %s2652_s3 }
0x198f   :  { %v1823_v21 = vpop.permute.xlu1 %1822 }
0x1990   :  { %2333 = vmatmul.msk.f32.vlgmr.msra.gmra.mxu3 %vm383_vm9, %v1823_v21 }
0x1991   :  { %2094 = vmatpush.msra.mxu3 %v3226_v29 }
0x1993   :  { %2095 = vmatpush.msra.mxu3 %v3237_v12 }
0x1995   :  { %2096 = vmatpush.msra.mxu3 %v3243_v28 }
0x1997   :  { %2097 = vmatpush.msra.mxu3 %v3248_v16 }
0x1a13   :  { %v1843_v44 = vpop.f32.mrf.mxu3 }
0x1a14   :  { %v1846_v52 = vadd.f32 %v1843_v44, %v1572_v47  ;;  %v1500_v44 = vpop.f32.mrf.mxu1 }
0x1a16   :  { %2515 = vtanh.f32 %v1846_v52  ;;  %v2334_v29 = vmul.f32 -1.442695, %v1846_v52 }
0x1a18   :  { %2517 = vpow2.f32 %v2334_v29 }
0x1a1c   :  { %v2516_v33 = vpop.eup %2515 }
0x1a1d   :  { %1869 = vrot.lane.b32.xlu2 %v2516_v33, %s2651_s0 }
0x1a1e   :  { %v2518_v12 = vpop.eup %2517 }
0x1a1f   :  { %v1850_v28 = vadd.f32 1.0, %v2518_v12 }
0x1a21   :  { %2519 = vrcp.f32 %v1850_v28  ;;  %v1862_v43 = vand.u32 2147483648, %v1850_v28  ;;  %vm1856_vm8 = vweird.f32 %v1850_v28  ;;  %v1860_v55 = vand.u32 2147483647, %v1850_v28 }
0x1a23   :  { %v1863_v56 = vor.u32 1.1754944e-38, %v1862_v43  ;;  %vm1861_vm12 = vcmp.eq.f32.partialorder %v1860_v55, 8.507059e+37 }
0x1a25   :  { %803 = vrot.lane.b32.xlu2 %v3104_v9, %s2652_s3 }
0x1a27   :  { %v2520_v16 = vpop.eup %2519 }
0x1a28   :  { %v1852_v53 = vmul.f32 %v2520_v16, %v1850_v28  ;;  %vm1857_vm7 = vweird.f32 %v2520_v16 }
0x1a29   :  { %vm1858_vm11 = vmor %vm1856_vm8, %vm1857_vm7 }
0x1a2a   :  { %v1853_v2 = vsub.f32 1.0, %v1852_v53 }
0x1a2c   :  { %v1854_v49 = vmul.f32 %v2520_v16, %v1853_v2 }
0x1a2e   :  { %v1855_v59 = vadd.f32 %v2520_v16, %v1854_v49 }
0x1a30   :  { %v1859_v35 = vsel %vm1858_vm11, %v2520_v16, %v1855_v59 }
0x1a31   :  { %v1864_v9 = vsel %vm1861_vm12, %v1863_v56, %v1859_v35 }
0x1a32   :  { %v1867_v61 = vmul.f32 %v1864_v9, %v1813_v15 }
0x1a77   :  { %v1870_v57 = vpop.permute.xlu2 %1869 }
0x1a78   :  { %v1872_v58 = vmul.f32 %v1870_v57, %v1864_v9 }
0x1a7a   :  { %1874 = vrot.lane.b32.xlu0 %v1872_v58, %s2651_s0 }
0x1a7f   :  { %v804_v34 = vpop.permute.xlu2 %803 }
0x1a80   :  { %807 = vst.msk [vmem:[#allocation4 + $0x20] sm:$0xff] %vm383_vm9, %v804_v34 }
0x1a87   :  { %v1367_v60 = vld [vmem:[#allocation4 + $0x20] sm:$0xff] }
0x1a88   :  { %2313 = vmatmul.msk.f32.gmra.mxu0 %vm383_vm9, %v1367_v60 }
0x1aec   :  { %v1875_v63 = vpop.permute.xlu0 %1874 }
0x1aed   :  { %v1877_v0 = vadd.f32 %v1875_v63, %v1867_v61 }
0x1aef   :  { %2521 = vtanh.f32 %v1877_v0 }
0x1af5   :  { %v2522_v1 = vpop.eup %2521 }
0x1af6   :  { %1880 = vrot.lane.b32.xlu1 %v2522_v1, %s2651_s0 }
0x1b05   :  { %v1432_v14 = vpop.f32.mrf.mxu0 }
0x1b06   :  { %v1498_v25 = vadd.f32 %v1497_v22, %v1432_v14 }
0x1b08   :  { %v1573_v48 = vadd.f32 %v3271_v50, %v1498_v25 }
0x1b68   :  { %v1881_v3 = vpop.permute.xlu1 %1880 }
0x1b69   :  { %v1883_v41 = vmul.f32 %v1881_v3, %v1864_v9 }
0x1b6b   :  { %1886 = vrot.lane.b32.xlu0 %v1883_v41, %s2652_s3 }
0x1bdd   :  { %v1887_v5 = vpop.permute.xlu0 %1886 }
0x1bde   :  { %2335 = vmatmul.msk.f32.vlgmr.msrb.gmra.mxu2 %vm383_vm9, %v1887_v5 }
0x1c61   :  { %v1907_v26 = vpop.f32.mrf.mxu2 }
0x1c62   :  { %v1910_v27 = vadd.f32 %v1907_v26, %v1573_v48  ;;  %v1503_v48 = vpop.f32.mrf.mxu1 }
0x1c64   :  { %2523 = vtanh.f32 %v1910_v27  ;;  %v2336_v51 = vmul.f32 -1.442695, %v1910_v27 }
0x1c66   :  { %2525 = vpow2.f32 %v2336_v51 }
0x1c6a   :  { %v2524_v31 = vpop.eup %2523 }
0x1c6b   :  { %1933 = vrot.lane.b32.xlu1 %v2524_v31, %s2651_s0 }
0x1c6c   :  { %v2526_v36 = vpop.eup %2525 }
0x1c6d   :  { %v1914_v4 = vadd.f32 1.0, %v2526_v36 }
0x1c6f   :  { %2527 = vrcp.f32 %v1914_v4  ;;  %v1926_v46 = vand.u32 2147483648, %v1914_v4  ;;  %vm1920_vm14 = vweird.f32 %v1914_v4  ;;  %v1924_v37 = vand.u32 2147483647, %v1914_v4 }
0x1c71   :  { %v1927_v6 = vor.u32 1.1754944e-38, %v1926_v46  ;;  %vm1925_vm0 = vcmp.eq.f32.partialorder %v1924_v37, 8.507059e+37 }
0x1c73   :  { %664 = vrot.lane.b32.xlu1 %v3063_v45, %s2652_s3 }
0x1c75   :  { %v2528_v39 = vpop.eup %2527 }
0x1c76   :  { %v1916_v42 = vmul.f32 %v2528_v39, %v1914_v4  ;;  %vm1921_vm13 = vweird.f32 %v2528_v39 }
0x1c77   :  { %vm1922_vm15 = vmor %vm1920_vm14, %vm1921_vm13 }
0x1c78   :  { %v1917_v38 = vsub.f32 1.0, %v1916_v42 }
0x1c7a   :  { %v1918_v30 = vmul.f32 %v2528_v39, %v1917_v38 }
0x1c7c   :  { %v1919_v32 = vadd.f32 %v2528_v39, %v1918_v30 }
0x1c7e   :  { %v1923_v8 = vsel %vm1922_vm15, %v2528_v39, %v1919_v32 }
0x1c7f   :  { %v1928_v45 = vsel %vm1925_vm0, %v1927_v6, %v1923_v8  ;;  %v1563_v6 = vadd.f32 %v3303_v7, %v3266_v19 }
0x1c80   :  { %v1931_v17 = vmul.f32 %v1928_v45, %v1877_v0 }
0x1cdd   :  { %v1934_v10 = vpop.permute.xlu1 %1933 }
0x1cde   :  { %v1936_v11 = vmul.f32 %v1934_v10, %v1928_v45  ;;  %v2358_v10 = vld [vmem:[%s3450_s8] ss:$0 sm:$0xff] }
0x1ce0   :  { %1938 = vrot.lane.b32.xlu2 %v1936_v11, %s2651_s0 }
0x1ce5   :  { %v665_v13 = vpop.permute.xlu1 %664 }
0x1ce6   :  { %668 = vst.msk [vmem:[#allocation4 + $0x28] sm:$0xff] %vm383_vm9, %v665_v13  ;;  %v1589_v13 = vadd.f32 %v2358_v10, %v1563_v6 }
0x1ced   :  { %v1368_v15 = vld [vmem:[#allocation4 + $0x28] sm:$0xff] }
0x1cee   :  { %2314 = vmatmul.msk.f32.gmra.mxu0 %vm383_vm9, %v1368_v15 }
0x1d3a   :  { %v1939_v18 = vpop.permute.xlu2 %1938 }
0x1d3b   :  { %v1941_v20 = vadd.f32 %v1939_v18, %v1931_v17 }
0x1d3d   :  { %2529 = vtanh.f32 %v1941_v20 }
0x1d43   :  { %v2530_v21 = vpop.eup %2529 }
0x1d44   :  { %1944 = vrot.lane.b32.xlu0 %v2530_v21, %s2651_s0 }
0x1d6b   :  { %v1435_v47 = vpop.f32.mrf.mxu0 }
0x1d6c   :  { %v1501_v52 = vadd.f32 %v1500_v44, %v1435_v47 }
0x1d6e   :  { %v1574_v33 = vadd.f32 %v3271_v50, %v1501_v52 }
0x1db6   :  { %v1945_v23 = vpop.permute.xlu0 %1944 }
0x1db7   :  { %v1947_v24 = vmul.f32 %v1945_v23, %v1928_v45 }
0x1db9   :  { %1950 = vrot.lane.b32.xlu2 %v1947_v24, %s2652_s3  ;;  %v2327_v24 = vmul.f32 -1.442695, %v1589_v13 }
0x1e13   :  { %v1951_v40 = vpop.permute.xlu2 %1950 }
0x1e14   :  { %2337 = vmatmul.msk.f32.vlgmr.msrb.gmra.mxu3 %vm383_vm9, %v1951_v40 }
0x1e97   :  { %v1971_v29 = vpop.f32.mrf.mxu3 }
0x1e98   :  { %v1974_v12 = vadd.f32 %v1971_v29, %v1574_v33 }
0x1e9a   :  { %2531 = vtanh.f32 %v1974_v12  ;;  %v2338_v16 = vmul.f32 -1.442695, %v1974_v12 }
0x1e9c   :  { %2533 = vpow2.f32 %v2338_v16 }
0x1ea0   :  { %v2532_v28 = vpop.eup %2531 }
0x1ea1   :  { %1997 = vrot.lane.b32.xlu0 %v2532_v28, %s2651_s0 }
0x1ea2   :  { %v2534_v53 = vpop.eup %2533 }
0x1ea3   :  { %v1978_v2 = vadd.f32 1.0, %v2534_v53 }
0x1ea5   :  { %2535 = vrcp.f32 %v1978_v2  ;;  %v1990_v56 = vand.u32 2147483648, %v1978_v2  ;;  %vm1984_vm2 = vweird.f32 %v1978_v2  ;;  %v1988_v57 = vand.u32 2147483647, %v1978_v2 }
0x1ea7   :  { %v1991_v58 = vor.u32 1.1754944e-38, %v1990_v56  ;;  %vm1989_vm4 = vcmp.eq.f32.partialorder %v1988_v57, 8.507059e+37 }
0x1ea9   :  { %525 = vrot.lane.b32.xlu0 %v3022_v54, %s2652_s3 }
0x1eab   :  { %v2536_v49 = vpop.eup %2535 }
0x1eac   :  { %v1980_v59 = vmul.f32 %v2536_v49, %v1978_v2  ;;  %vm1985_vm1 = vweird.f32 %v2536_v49 }
0x1ead   :  { %vm1986_vm3 = vmor %vm1984_vm2, %vm1985_vm1 }
0x1eae   :  { %v1981_v43 = vsub.f32 1.0, %v1980_v59 }
0x1eb0   :  { %v1982_v55 = vmul.f32 %v2536_v49, %v1981_v43 }
0x1eb2   :  { %v1983_v35 = vadd.f32 %v2536_v49, %v1982_v55 }
0x1eb4   :  { %v1987_v9 = vsel %vm1986_vm3, %v2536_v49, %v1983_v35 }
0x1eb5   :  { %v1992_v54 = vsel %vm1989_vm4, %v1991_v58, %v1987_v9  ;;  %v1506_v9 = vpop.f32.mrf.mxu1 }
0x1eb6   :  { %v1995_v0 = vmul.f32 %v1992_v54, %v1941_v20 }
0x1f13   :  { %v1998_v34 = vpop.permute.xlu0 %1997 }
0x1f14   :  { %v2000_v60 = vmul.f32 %v1998_v34, %v1992_v54 }
0x1f16   :  { %2002 = vrot.lane.b32.xlu1 %v2000_v60, %s2651_s0 }
0x1f1b   :  { %v526_v61 = vpop.permute.xlu0 %525 }
0x1f1c   :  { %529 = vst.msk [vmem:[#allocation4 + $0x30] sm:$0xff] %vm383_vm9, %v526_v61 }
0x1f23   :  { %v1369_v63 = vld [vmem:[#allocation4 + $0x30] sm:$0xff] }
0x1f24   :  { %2315 = vmatmul.msk.f32.gmra.mxu0 %vm383_vm9, %v1369_v63 }
0x1f2c   :  { %2316 = vmatmul.msk.f32.gmra.mxu0 %vm383_vm9, %v3218_v62 }
0x1f88   :  { %v2003_v1 = vpop.permute.xlu1 %2002 }
0x1f89   :  { %v2005_v3 = vadd.f32 %v2003_v1, %v1995_v0 }
0x1f8b   :  { %2537 = vtanh.f32 %v2005_v3 }
0x1f91   :  { %v2538_v41 = vpop.eup %2537 }
0x1f92   :  { %2008 = vrot.lane.b32.xlu2 %v2538_v41, %s2651_s0 }
0x1fa1   :  { %v1438_v25 = vpop.f32.mrf.mxu0 }
0x1fa2   :  { %v1504_v26 = vadd.f32 %v1503_v48, %v1438_v25 }
0x1fa4   :  { %v1575_v27 = vadd.f32 %v3271_v50, %v1504_v26 }
0x1fa9   :  { %v1441_v57 = vpop.f32.mrf.mxu0 }
0x1faa   :  { %v1507_v58 = vadd.f32 %v1506_v9, %v1441_v57 }
0x1fac   :  { %v1576_v34 = vadd.f32 %v3271_v50, %v1507_v58 }
0x1fec   :  { %v2009_v5 = vpop.permute.xlu2 %2008 }
0x1fed   :  { %v2011_v14 = vmul.f32 %v2009_v5, %v1992_v54 }
0x1fef   :  { %2014 = vrot.lane.b32.xlu1 %v2011_v14, %s2652_s3 }
0x2061   :  { %v2015_v22 = vpop.permute.xlu1 %2014 }
0x2062   :  { %2339 = vmatmul.msk.f32.vlgmr.msra.gmra.mxu2 %vm383_vm9, %v2015_v22 }
0x20e5   :  { %v2035_v62 = vpop.f32.mrf.mxu2 }
0x20e6   :  { %v2038_v31 = vadd.f32 %v2035_v62, %v1575_v27 }
0x20e8   :  { %2539 = vtanh.f32 %v2038_v31  ;;  %v2340_v36 = vmul.f32 -1.442695, %v2038_v31 }
0x20ea   :  { %2541 = vpow2.f32 %v2340_v36 }
0x20ee   :  { %v2540_v51 = vpop.eup %2539 }
0x20ef   :  { %2061 = vrot.lane.b32.xlu2 %v2540_v51, %s2651_s0 }
0x20f0   :  { %v2542_v4 = vpop.eup %2541 }
0x20f1   :  { %v2042_v39 = vadd.f32 1.0, %v2542_v4 }
0x20f3   :  { %2543 = vrcp.f32 %v2042_v39  ;;  %v2054_v37 = vand.u32 2147483648, %v2042_v39  ;;  %vm2048_vm6 = vweird.f32 %v2042_v39  ;;  %v2052_v8 = vand.u32 2147483647, %v2042_v39 }
0x20f4   :  { %2545 = vtanh.f32 %v1589_v13 }
0x20f5   :  { %v2055_v11 = vor.u32 1.1754944e-38, %v2054_v37  ;;  %vm2053_vm8 = vcmp.eq.f32.partialorder %v2052_v8, 8.507059e+37 }
0x20f9   :  { %v2544_v42 = vpop.eup %2543 }
0x20fa   :  { %v2044_v38 = vmul.f32 %v2544_v42, %v2042_v39  ;;  %vm2049_vm5 = vweird.f32 %v2544_v42  ;;  %v2546_v20 = vpop.eup %2545 }
0x20fb   :  { %vm2050_vm7 = vmor %vm2048_vm6, %vm2049_vm5 }
0x20fc   :  { %v2045_v30 = vsub.f32 1.0, %v2044_v38 }
0x20fe   :  { %v2046_v32 = vmul.f32 %v2544_v42, %v2045_v30 }
0x2100   :  { %v2047_v46 = vadd.f32 %v2544_v42, %v2046_v32 }
0x2102   :  { %v2051_v45 = vsel %vm2050_vm7, %v2544_v42, %v2047_v46 }
0x2103   :  { %v2056_v17 = vsel %vm2053_vm8, %v2055_v11, %v2051_v45 }
0x2104   :  { %v2059_v21 = vmul.f32 %v2056_v17, %v2005_v3 }
0x2149   :  { %v2062_v15 = vpop.permute.xlu2 %2061 }
0x214a   :  { %v2064_v18 = vmul.f32 %v2062_v15, %v2056_v17  ;;  %v2654_v15 = vmov 64.0  }
0x214c   :  { %2066 = vrot.lane.b32.xlu0 %v2064_v18, %s2651_s0 }
0x2154   :  { %1612 = vrot.lane.b32.xlu0 %v2546_v20, %s2651_s0 }
0x21be   :  { %v2067_v19 = vpop.permute.xlu0 %2066 }
0x21bf   :  { %v3374_v7 = vadd.f32 %v2067_v19, %v2059_v21 }
0x21c1   :  { %2547 = vtanh.f32 %v3374_v7 }
0x21c2   :  { %2549 = vpow2.f32 %v2327_v24 }
0x21c6   :  { %v1613_v43 = vpop.permute.xlu0 %1612 }
0x21c7   :  { %v2548_v23 = vpop.eup %2547 }
0x21c8   :  { %2072 = vrot.lane.b32.xlu1 %v2548_v23, %s2651_s0  ;;  %v2550_v40 = vpop.eup %2549 }
0x21c9   :  { %v1593_v47 = vadd.f32 1.0, %v2550_v40 }
0x21cb   :  { %2551 = vrcp.f32 %v1593_v47  ;;  %v1605_v53 = vand.u32 2147483648, %v1593_v47  ;;  %vm1599_vm12 = vweird.f32 %v1593_v47  ;;  %v1603_v2 = vand.u32 2147483647, %v1593_v47 }
0x21cd   :  { %v1606_v59 = vor.u32 1.1754944e-38, %v1605_v53  ;;  %vm1604_vm14 = vcmp.eq.f32.partialorder %v1603_v2, 8.507059e+37  ;;  %v2189_v53 = vld [vmem:[%s3453_s11 + $0x8] sm:$0xff]  ;;  %v2188_v2 = vld [vmem:[%s3453_s11] sm:$0xff] }
0x21d1   :  { %v2552_v44 = vpop.eup %2551 }
0x21d2   :  { %v1595_v52 = vmul.f32 %v2552_v44, %v1593_v47  ;;  %vm1600_vm11 = vweird.f32 %v2552_v44 }
0x21d3   :  { %vm1601_vm13 = vmor %vm1599_vm12, %vm1600_vm11 }
0x21d4   :  { %v1596_v33 = vsub.f32 1.0, %v1595_v52  ;;  %v2195_v52 = vld [vmem:[%s3453_s11 + $0x38] sm:$0xff] }
0x21d5   :  { %2211 = vmatpush.msrb.mxu2 %v2195_v52 }
0x21d6   :  { %v1597_v29 = vmul.f32 %v2552_v44, %v1596_v33  ;;  %v2194_v33 = vld [vmem:[%s3453_s11 + $0x30] sm:$0xff] }
0x21d7   :  { %2212 = vmatpush.msrb.mxu2 %v2194_v33 }
0x21d8   :  { %v1598_v28 = vadd.f32 %v2552_v44, %v1597_v29  ;;  %v2193_v29 = vld [vmem:[%s3453_s11 + $0x28] sm:$0xff] }
0x21d9   :  { %2213 = vmatpush.msrb.mxu2 %v2193_v29 }
0x21da   :  { %v1602_v49 = vsel %vm1601_vm13, %v2552_v44, %v1598_v28  ;;  %v2191_v28 = vld [vmem:[%s3453_s11 + $0x18] sm:$0xff] }
0x21db   :  { %v1607_v55 = vsel %vm1604_vm14, %v1606_v59, %v1602_v49  ;;  %v2227_v49 = vld [vmem:[%s3455_s13 + $0x18] sm:$0xff]  ;;  %v2226_v59 = vld [vmem:[%s3455_s13 + $0x10] sm:$0xff] }
0x21dc   :  { %v1615_v35 = vmul.f32 %v1613_v43, %v1607_v55  ;;  %v1610_v63 = vmul.f32 0.0, %v1607_v55  ;;  %2247 = vmatpush.msrb.mxu3 %v2227_v49 }
0x21de   :  { %2248 = vmatpush.msrb.mxu3 %v2226_v59 }
0x223a   :  { %v2073_v12 = vpop.permute.xlu1 %2072 }
0x223b   :  { %v2075_v16 = vmul.f32 %v2073_v12, %v2056_v17  ;;  %v2192_v12 = vld [vmem:[%s3453_s11 + $0x20] sm:$0xff] }
0x223c   :  { %2214 = vmatpush.msrb.mxu2 %v2192_v12 }
0x223d   :  { %2078 = vrot.lane.b32.xlu2 %v2075_v16, %s2652_s3  ;;  %v2190_v16 = vld [vmem:[%s3453_s11 + $0x10] sm:$0xff] }
0x223e   :  { %2215 = vmatpush.msrb.mxu2 %v2191_v28 }
0x2240   :  { %2216 = vmatpush.msrb.mxu2 %v2190_v16 }
0x2242   :  { %2217 = vmatpush.msrb.mxu2 %v2189_v53 }
0x2244   :  { %2218 = vmatpush.msrb.mxu2 %v2188_v2 }
0x2245   :  { %1617 = vrot.lane.b32.xlu2 %v1615_v35, %s2651_s0 }
0x2297   :  { %v2079_v56 = vpop.permute.xlu2 %2078 }
0x2298   :  { %2341 = vmatmul.msk.f32.vlgmr.msra.gmra.mxu3 %vm383_vm9, %v2079_v56 }
0x229f   :  { %v1618_v61 = vpop.permute.xlu2 %1617 }
0x22a0   :  { %v1620_v0 = vadd.f32 %v1618_v61, %v1610_v63 }
0x231b   :  { %v2099_v54 = vpop.f32.mrf.mxu3 }
0x231c   :  { %v2102_v60 = vadd.f32 %v2099_v54, %v1576_v34 }
0x231e   :  { %2553 = vtanh.f32 %v2102_v60  ;;  %v2342_v41 = vmul.f32 -1.442695, %v2102_v60  ;;  %v2359_v60 = vld [vmem:[%s3451_s9] ss:$0 sm:$0xff] }
0x231f   :  { %2555 = vtanh.f32 %v1620_v0  ;;  %v2360_v0 = vld [vmem:[%s3452_s10] ss:$0 sm:$0xff] }
0x2320   :  { %2557 = vpow2.f32 %v2342_v41  ;;  %v2225_v41 = vld [vmem:[%s3455_s13 + $0x8] sm:$0xff] }
0x2321   :  { %2249 = vmatpush.msrb.mxu3 %v2225_v41 }
0x2324   :  { %v2554_v1 = vpop.eup %2553 }
0x2325   :  { %2125 = vrot.lane.b32.xlu1 %v2554_v1, %s2651_s0  ;;  %v2556_v3 = vpop.eup %2555 }
0x2326   :  { %v2558_v5 = vpop.eup %2557 }
0x2327   :  { %v2106_v14 = vadd.f32 1.0, %v2558_v5  ;;  %v2224_v5 = vld [vmem:[%s3455_s13] sm:$0xff] }
0x2328   :  { %2250 = vmatpush.msrb.mxu3 %v2224_v5 }
0x2329   :  { %2559 = vrcp.f32 %v2106_v14  ;;  %v2118_v27 = vand.u32 2147483648, %v2106_v14  ;;  %vm2112_vm0 = vweird.f32 %v2106_v14  ;;  %v2116_v62 = vand.u32 2147483647, %v2106_v14 }
0x232b   :  { %v2119_v51 = vor.u32 1.1754944e-38, %v2118_v27  ;;  %vm2117_vm2 = vcmp.eq.f32.partialorder %v2116_v62, 8.507059e+37 }
0x232d   :  { %1623 = vrot.lane.b32.xlu1 %v2556_v3, %s2651_s0 }
0x232f   :  { %v2560_v22 = vpop.eup %2559 }
0x2330   :  { %v2108_v50 = vmul.f32 %v2560_v22, %v2106_v14  ;;  %vm2113_vm15 = vweird.f32 %v2560_v22  ;;  %v2361_v14 = vld [vmem:[%s3454_s12] ss:$0 sm:$0xff] }
0x2331   :  { %vm2114_vm1 = vmor %vm2112_vm0, %vm2113_vm15 }
0x2332   :  { %v2109_v25 = vsub.f32 1.0, %v2108_v50 }
0x2334   :  { %v2110_v48 = vmul.f32 %v2560_v22, %v2109_v25 }
0x2336   :  { %v2111_v26 = vadd.f32 %v2560_v22, %v2110_v48  ;;  %v2362_v48 = vld [vmem:[#allocation5] ss:$0 sm:$0xff] }
0x2338   :  { %v2115_v31 = vsel %vm2114_vm1, %v2560_v22, %v2111_v26 }
0x2339   :  { %v2120_v4 = vsel %vm2117_vm2, %v2119_v51, %v2115_v31 }
0x233a   :  { %v2123_v30 = vmul.f32 %v2120_v4, %v3374_v7 }
0x2397   :  { %v2126_v36 = vpop.permute.xlu1 %2125 }
0x2398   :  { %v2128_v39 = vmul.f32 %v2126_v36, %v2120_v4 }
0x239a   :  { %2130 = vrot.lane.b32.xlu0 %v2128_v39, %s2651_s0 }
0x239f   :  { %v1624_v42 = vpop.permute.xlu1 %1623 }
0x23a0   :  { %v1626_v38 = vmul.f32 %v1624_v42, %v1607_v55 }
0x23a2   :  { %2145 = vrot.lane.b32.xlu1 %v1626_v38, %s2653_s30 }
0x240c   :  { %v2131_v32 = vpop.permute.xlu0 %2130 }
0x240d   :  { %v2133_v46 = vadd.f32 %v2131_v32, %v2123_v30 }
0x240f   :  { %2561 = vtanh.f32 %v2133_v46 }
0x2410   :  { %2563 = vrcp.f32 %v2654_v15 }
0x2414   :  { %v2146_v10 = vpop.permute.xlu1 %2145 }
0x2415   :  { %v2562_v37 = vpop.eup %2561 }
0x2416   :  { %2136 = vrot.lane.b32.xlu2 %v2562_v37, %s2651_s0  ;;  %v2564_v17 = vpop.eup %2563 }
0x2417   :  { %v2153_v18 = vmul.f32 64.0, %v2564_v17  ;;  %vm2157_vm3 = vweird.f32 %v2564_v17 }
0x2419   :  { %v2154_v20 = vsub.f32 1.0, %v2153_v18 }
0x241b   :  { %v2155_v21 = vmul.f32 %v2564_v17, %v2154_v20 }
0x241d   :  { %v2156_v19 = vadd.f32 %v2564_v17, %v2155_v21 }
0x241f   :  { %v2158_v7 = vsel %vm2157_vm3, %v2564_v17, %v2156_v19 }
0x2470   :  { %v2137_v8 = vpop.permute.xlu2 %2136 }
0x2471   :  { %v2139_v6 = vmul.f32 %v2137_v8, %v2120_v4 }
0x2473   :  { %2141 = vrot.lane.b32.xlu0 %v2139_v6, %s2652_s3 }
0x24e5   :  { %v2142_v45 = vpop.permute.xlu0 %2141 }
0x24e6   :  { %v2148_v11 = vsel %vm383_vm9, %v2142_v45, %v2146_v10 }
0x24e7   :  { %v2149_v13 = vsel %vm256_vm10, %v2148_v11, 0.0 }
0x24e8   :  { %2150 = vadd.xlane.f32.xlu2 %v2149_v13 }
0x255b   :  { %v2151_v23 = vpop.xlane.xlu2 %2150 }
0x255c   :  { %v2159_v24 = vmul.f32 %v2158_v7, %v2151_v23 }
0x255e   :  { %v2160_v40 = vsub.f32 %v2148_v11, %v2159_v24 }
0x2560   :  { %v2161_v47 = vmul.f32 %v2160_v40, %v2160_v40 }
0x2562   :  { %v2162_v44 = vsel %vm256_vm10, %v2161_v47, 0.0 }
0x2563   :  { %2163 = vadd.xlane.f32.xlu0 %v2162_v44 }
0x25d6   :  { %v2164_v43 = vpop.xlane.xlu0 %2163 }
0x25d7   :  { %v2165_v55 = vmul.f32 %v2164_v43, %v2158_v7 }
0x25d9   :  { %v2166_v35 = vadd.f32 1e-05, %v2165_v55 }
0x25db   :  { %2565 = vrsqrt.f32 %v2166_v35  ;;  %vm2173_vm5 = vweird.f32 %v2166_v35 }
0x25e1   :  { %v2566_v56 = vpop.eup %2565 }
0x25e2   :  { %v2168_v57 = vmul.f32 %v2566_v56, %v2166_v35  ;;  %vm2174_vm4 = vweird.f32 %v2566_v56 }
0x25e3   :  { %vm2175_vm6 = vmor %vm2173_vm5, %vm2174_vm4 }
0x25e4   :  { %v2169_v9 = vmul.f32 %v2566_v56, %v2168_v57 }
0x25e6   :  { %v2170_v58 = vmul.f32 0.5, %v2169_v9 }
0x25e8   :  { %v2171_v34 = vsub.f32 1.5, %v2170_v58 }
0x25ea   :  { %v2172_v54 = vmul.f32 %v2566_v56, %v2171_v34 }
0x25ec   :  { %v2176_v61 = vsel %vm2175_vm6, %v2566_v56, %v2172_v54 }
0x25ed   :  { %v2177_v63 = vmul.f32 %v2176_v61, %v2160_v40 }
0x25ef   :  { %v2182_v1 = vmul.f32 %v2359_v60, %v2177_v63 }
0x25f1   :  { %v2187_v3 = vadd.f32 %v2360_v0, %v2182_v1 }
0x25f3   :  { %2343 = vmatmul.msk.f32.vlgmr.msrb.gmra.mxu2 %vm256_vm10, %v2187_v3  ;;  %vm2255_vm10 = vcmask 7168  }
0x2676   :  { %v2220_v22 = vpop.f32.mrf.mxu2 }
0x2677   :  { %v2221_v50 = vadd.f32 %v2361_v14, %v2220_v22 }
0x2679   :  { %v2223_v25 = vmax.f32 %v2221_v50, 0.0 }
0x267b   :  { %2344 = vmatmul.msk.f32.vlgmr.msrb.gmra.mxu3 %vm383_vm9, %v2223_v25 }
0x26fe   :  { %v2252_v26 = vpop.f32.mrf.mxu3 }
0x26ff   :  { %v2253_v27 = vadd.f32 %v2362_v48, %v2252_v26 }
0x2701   :  { %2256 = vst.msk [vmem:[%s3457_s15] sm:$0xff] %vm2255_vm10, %v2253_v27 }
0x2702   :  { %2261 = vsyncpa [#allocation7], 1 }
0x2703   :  { %2262 = vsyncpa [#allocation9], 1 }

</bundles_post_ra>
